<compile_context>
chip_gen: v7x
topology: tpu7x:2x2x1
jax: 0.10.0
libtpu: 0.0.40
codegen_flags: <defaults>
</compile_context>

<pallas_src>
import math
import functools

import numpy as np
import jax
import jax.numpy as jnp
from jax.experimental import pallas as pl
from jax.experimental.pallas import tpu as pltpu

# ----------------------------- configuration --------------------------------
INPUT_DIM = 12            # input_feats
LATENT_DIM = 32
FF_SIZE = 64
NUM_LAYERS = 2
NUM_HEADS = 4
HEAD_DIM = LATENT_DIM // NUM_HEADS
OUT_DIM = 512
LN_EPS = 1e-5
NEG_INF = -1e9


# ------------------------------ helpers -------------------------------------
def positional_encoding(max_len, d_model):
    """Same table as PositionalEncoding.__init__ (sin on even, cos on odd)."""
    position = np.arange(max_len, dtype=np.float32)[:, None]
    div_term = np.exp(
        np.arange(0, d_model, 2, dtype=np.float32) * (-np.log(10000.0) / d_model)
    )
    pe = np.zeros((max_len, d_model), dtype=np.float32)
    pe[:, 0::2] = np.sin(position * div_term)
    pe[:, 1::2] = np.cos(position * div_term)
    return jnp.asarray(pe)


def _full_spec(shape):
    """BlockSpec covering the whole array (weights never change across grid)."""
    n = len(shape)
    return pl.BlockSpec(shape, lambda b, _n=n: (0,) * _n)


def _layer_norm(v, g, b):
    mu = jnp.mean(v, axis=-1, keepdims=True)
    var = jnp.mean((v - mu) ** 2, axis=-1, keepdims=True)
    return (v - mu) / jnp.sqrt(var + LN_EPS) * g + b


# ------------------------------ Pallas kernel --------------------------------
def _motion_encoder_kernel(
    h0_ref,      # (Bt, Sp, D)  f32  embedded tokens (+qtok, +PE), seq-padded
    mbias_ref,   # (Bt, 1, Sp)  f32  0 for valid keys, -1e9 for padded keys
    wqkv_ref,    # (L, D, 3D)   bf16
    wo_ref,      # (L, D, D)    bf16
    w1_ref,      # (L, D, F)    bf16
    w2_ref,      # (L, F, D)    bf16
    bvec_ref,    # (L, 2, 3D)   f32  row0 = bqkv, row1 = b1 (zero padded)
    dvec_ref,    # (L, 8, D)    f32  [bo, ln1g, ln1b, ln2g, ln2b, b2, lng, lnb]
    woutb_ref,   # (D+8, 512)   bf16 rows 0..31 = Wout, row 32 = bout
    o_ref,       # (Bt, 512)    f32
    *, bt, sp,
):
    D, H, hd, F = LATENT_DIM, NUM_HEADS, HEAD_DIM, FF_SIZE
    N = bt * sp
    scale = 1.0 / math.sqrt(hd)
    bf16 = jnp.bfloat16

    h = h0_ref[...]                                   # (Bt, Sp, D) f32
    bias = mbias_ref[...]                             # (Bt, 1, Sp) f32

    for l in range(NUM_LAYERS):
        dv = dvec_ref[l]                              # (8, D)
        bo, ln1g, ln1b = dv[0:1], dv[1:2], dv[2:3]
        ln2g, ln2b, b2 = dv[3:4], dv[4:5], dv[5:6]
        bv = bvec_ref[l]                              # (2, 3D)
        bqkv = bv[0:1, :]                             # (1, 96)
        b1 = bv[1:2, :F]                              # (1, 64)

        # ------ fused QKV projection: one (N,32)@(32,96) MXU matmul ------
        hf = h.reshape(N, D)
        qkv = jnp.dot(hf.astype(bf16), wqkv_ref[l],
                      preferred_element_type=jnp.float32) + bqkv   # (N, 96)
        qkv = qkv.reshape(bt, sp, 3 * D)

        # ------ multi-head attention (heads stay in the lane dim) ------
        ctx_heads = []
        for hh in range(H):
            qh = qkv[:, :, 0 * D + hh * hd: 0 * D + (hh + 1) * hd]  # (Bt,Sp,hd)
            kh = qkv[:, :, 1 * D + hh * hd: 1 * D + (hh + 1) * hd]
            vh = qkv[:, :, 2 * D + hh * hd: 2 * D + (hh + 1) * hd]
            sc = jnp.einsum('bqd,bkd->bqk', qh, kh,
                            preferred_element_type=jnp.float32) * scale
            sc = sc + bias                                          # key mask
            sc = sc - jnp.max(sc, axis=-1, keepdims=True)
            p = jnp.exp(sc)
            p = p * pl.reciprocal(jnp.sum(p, axis=-1, keepdims=True),
                                  approx=True)
            ctx_heads.append(jnp.einsum('bqk,bkd->bqd', p, vh,
                                        preferred_element_type=jnp.float32))
        ctx = jnp.concatenate(ctx_heads, axis=-1)                   # (Bt,Sp,D)

        # ------ output projection: one (N,32)@(32,32) matmul ------
        attn = jnp.dot(ctx.reshape(N, D).astype(bf16), wo_ref[l],
                       preferred_element_type=jnp.float32)
        attn = attn.reshape(bt, sp, D) + bo
        h = _layer_norm(h + attn, ln1g, ln1b)

        # ------ feed-forward on flattened tokens ------
        hf = h.reshape(N, D)
        ff = jnp.dot(hf.astype(bf16), w1_ref[l],
                     preferred_element_type=jnp.float32) + b1
        ff = jnp.maximum(ff, 0.0)                                   # relu
        ff = jnp.dot(ff.astype(bf16), w2_ref[l],
                     preferred_element_type=jnp.float32) + b2
        h = _layer_norm(h + ff.reshape(bt, sp, D), ln2g, ln2b)

    # ---- query-token rows first, then final LN + output projection ----
    dv0 = dvec_ref[0]
    qrows = _layer_norm(h[:, 0, :], dv0[6:7], dv0[7:8])             # (Bt, D)

    woutb = woutb_ref[...]                                          # (D+8, 512)
    out = jnp.dot(qrows.astype(bf16), woutb[:D, :],
                  preferred_element_type=jnp.float32)
    out = out + woutb[D:D + 1, :].astype(jnp.float32)
    o_ref[...] = out                                                # lane-dense


# ------------------------------ wrapper --------------------------------------
def _prepare_kernel_params(p):
    """Repack PyTorch-style parameters into the packed kernel arrays."""
    L, D, F = NUM_LAYERS, LATENT_DIM, FF_SIZE
    bf16 = jnp.bfloat16

    bvec = jnp.concatenate(
        [p["bqkv"].reshape(L, 1, 3 * D),
         jnp.pad(p["b1"].reshape(L, 1, F), ((0, 0), (0, 0), (0, 3 * D - F)))],
        axis=1).astype(jnp.float32)                                  # (L, 2, 96)

    dvec = jnp.stack(
        [p["bo"], p["ln1g"], p["ln1b"], p["ln2g"], p["ln2b"], p["b2"]],
        axis=1)                                                      # (L, 6, D)
    lnf = jnp.stack([jnp.broadcast_to(p["lng"], (L, D)),
                     jnp.broadcast_to(p["lnb"], (L, D))], axis=1)    # (L, 2, D)
    dvec = jnp.concatenate([dvec, lnf], axis=1).astype(jnp.float32)  # (L, 8, D)

    woutb = jnp.zeros((D + 8, OUT_DIM), jnp.float32)
    woutb = woutb.at[:D].set(p["Wout"]).at[D].set(p["bout"][0])

    return dict(
        Wqkv=p["Wqkv"].astype(bf16), Wo=p["Wo"].astype(bf16),
        W1=p["W1"].astype(bf16), W2=p["W2"].astype(bf16),
        bvec=bvec, dvec=dvec, Woutb=woutb.astype(bf16))


def motion_encoder_forward(motion, motion_mask, p, batch_tile=64):
    B, T = motion.shape[:2]
    S = T + 1
    D = LATENT_DIM
    Sp = ((S + 7) // 8) * 8                                          # sublane align

    # ---- glue in plain JAX: joint slicing, embedding, qtok concat, PE, mask --
    x = motion.reshape(B, T, 2, -1)[..., :-4].reshape(B, T, -1)
    assert x.shape[-1] == 2 * INPUT_DIM

    xemb = x @ p["Wemb"] + p["bemb"]                                 # (B, T, D)
    qtok = jnp.broadcast_to(p["qtok"][None], (B, 1, D))
    pe = positional_encoding(S, D)
    h0 = jnp.concatenate([qtok, xemb], axis=1) + pe[None]            # (B, S, D)
    h0 = jnp.pad(h0, ((0, 0), (0, Sp - S), (0, 0)))                  # (B, Sp, D)

    valid = jnp.concatenate(
        [jnp.ones((B, 1), dtype=bool), motion_mask > 0.5], axis=1)
    valid = jnp.pad(valid, ((0, 0), (0, Sp - S)), constant_values=False)
    mbias = jnp.where(valid, 0.0, NEG_INF).astype(jnp.float32).reshape(B, 1, Sp)

    # ---- batch tiling: multiple of 8, floor 8, >= 2 grid steps when B > 8 ----
    batch_tile = max(8, (batch_tile // 8) * 8)
    if B <= 8:
        Bt = 8
    else:
        half8 = ((-(-B // 2)) + 7) // 8 * 8          # round up ceil(B/2) to 8
        Bt = min(batch_tile, half8)
    Bp = -(-B // Bt) * Bt
    if Bp != B:
        h0 = jnp.pad(h0, ((0, Bp - B), (0, 0), (0, 0)))
        mbias = jnp.pad(mbias, ((0, Bp - B), (0, 0), (0, 0)))

    kparams = _prepare_kernel_params(p)

    in_specs = [
        pl.BlockSpec((Bt, Sp, D), lambda b: (b, 0, 0)),              # h0
        pl.BlockSpec((Bt, 1, Sp), lambda b: (b, 0, 0)),              # mask bias
        _full_spec(kparams["Wqkv"].shape),
        _full_spec(kparams["Wo"].shape),
        _full_spec(kparams["W1"].shape),
        _full_spec(kparams["W2"].shape),
        _full_spec(kparams["bvec"].shape),
        _full_spec(kparams["dvec"].shape),
        _full_spec(kparams["Woutb"].shape),
    ]
    out_spec = pl.BlockSpec((Bt, OUT_DIM), lambda b: (b, 0))

    kernel = functools.partial(_motion_encoder_kernel, bt=Bt, sp=Sp)

    out = pl.pallas_call(
        kernel,
        out_shape=jax.ShapeDtypeStruct((Bp, OUT_DIM), jnp.float32),
        grid=(Bp // Bt,),
        in_specs=in_specs,
        out_specs=out_spec,
        compiler_params=pltpu.CompilerParams(
            dimension_semantics=("parallel",)),                      # v7x: 2 TCs
    )(
        h0, mbias,
        kparams["Wqkv"], kparams["Wo"], kparams["W1"], kparams["W2"],
        kparams["bvec"], kparams["dvec"], kparams["Woutb"],
    )
    return out[:B]


# ------------------------- pure-JAX reference --------------------------------
def reference_forward(motion, motion_mask, p):
    B, T = motion.shape[:2]
    S, D, H, hd = T + 1, LATENT_DIM, NUM_HEADS, HEAD_DIM
    scale = 1.0 / math.sqrt(hd)

    x = motion.reshape(B, T, 2, -1)[..., :-4].reshape(B, T, -1)
    xemb = x @ p["Wemb"] + p["bemb"]
    qtok = jnp.broadcast_to(p["qtok"][None], (B, 1, D))
    h = jnp.concatenate([qtok, xemb], axis=1) + positional_encoding(S, D)[None]

    valid = jnp.concatenate([jnp.ones((B, 1), bool), motion_mask > 0.5], axis=1)
    bias = jnp.where(valid, 0.0, NEG_INF)[:, None, None, :]          # (B,1,1,S)

    for l in range(NUM_LAYERS):
        qkv = h @ p["Wqkv"][l] + p["bqkv"][l]
        q, k, v = jnp.split(qkv, 3, axis=-1)
        q = q.reshape(B, S, H, hd).transpose(0, 2, 1, 3)
        k = k.reshape(B, S, H, hd).transpose(0, 2, 1, 3)
        v = v.reshape(B, S, H, hd).transpose(0, 2, 1, 3)
        sc = jnp.einsum("bhqd,bhkd->bhqk", q, k) * scale + bias
        a = jax.nn.softmax(sc, axis=-1)
        o = jnp.einsum("bhqk,bhkd->bhqd", a, v).transpose(0, 2, 1, 3).reshape(B, S, D)
        o = o @ p["Wo"][l] + p["bo"][l]
        h = _layer_norm(h + o, p["ln1g"][l], p["ln1b"][l])
        ff = jnp.maximum(h @ p["W1"][l] + p["b1"][l], 0.0)
        ff = ff @ p["W2"][l] + p["b2"][l]
        h = _layer_norm(h + ff, p["ln2g"][l], p["ln2b"][l])

    h = _layer_norm(h, p["lng"], p["lnb"])
    return h[:, 0] @ p["Wout"] + p["bout"][0]


# ------------------------- deterministic params -------------------------------
def init_params(key):
    D, F, L, Din2 = LATENT_DIM, FF_SIZE, NUM_LAYERS, 2 * INPUT_DIM
    ks = jax.random.split(key, 19)

    def rn(k, shape, scale):
        return (scale * jax.random.normal(k, shape)).astype(jnp.float32)

    return dict(
        qtok=rn(ks[0], (1, D), 1.0),
        Wemb=rn(ks[1], (Din2, D), 0.1), bemb=rn(ks[2], (1, D), 0.01),
        Wqkv=rn(ks[3], (L, D, 3 * D), 0.1), bqkv=rn(ks[4], (L, 3 * D), 0.01),
        Wo=rn(ks[5], (L, D, D), 0.1), bo=rn(ks[6], (L, D), 0.01),
        ln1g=1.0 + rn(ks[7], (L, D), 0.01), ln1b=rn(ks[8], (L, D), 0.01),
        ln2g=1.0 + rn(ks[9], (L, D), 0.01), ln2b=rn(ks[10], (L, D), 0.01),
        W1=rn(ks[11], (L, D, F), 0.1), b1=rn(ks[12], (L, F), 0.01),
        W2=rn(ks[13], (L, F, D), 0.1), b2=rn(ks[14], (L, D), 0.01),
        lng=1.0 + rn(ks[15], (1, D), 0.01), lnb=rn(ks[16], (1, D), 0.01),
        Wout=rn(ks[17], (D, OUT_DIM), 0.1), bout=rn(ks[18], (1, OUT_DIM), 0.01),
    )


# --------------------------------- main ---------------------------------------
if __name__ == "__main__":
    key = jax.random.PRNGKey(0)
    kparam, km, kk = jax.random.split(key, 3)
    params = init_params(kparam)
    motion_dim = 2 * (INPUT_DIM + 4)                 # 32 raw channels per frame

    # --- small shape (single grid step) ---
    B, T = 2, 8
    motion = jax.random.normal(km, (B, T, motion_dim), dtype=jnp.float32)
    motion_mask = (jax.random.uniform(kk, (B, T)) > 0.3).astype(jnp.float32)
    motion_mask = motion_mask.at[:, 0].set(1.0)      # keep at least one valid frame

    out = motion_encoder_forward(motion, motion_mask, params)
    out = jax.block_until_ready(out)
    assert out.shape == (B, OUT_DIM)
    ref = reference_forward(motion, motion_mask, params)
    np.testing.assert_allclose(np.asarray(out), np.asarray(ref),
                               rtol=2e-2, atol=1e-2)

    # --- larger batch (multi-step grid + padded batch rows) ---
    B2 = 24
    motion2 = jax.random.normal(km, (B2, T, motion_dim), dtype=jnp.float32)
    motion_mask2 = (jax.random.uniform(kk, (B2, T)) > 0.3).astype(jnp.float32)
    motion_mask2 = motion_mask2.at[:, 0].set(1.0)

    out2 = motion_encoder_forward(motion2, motion_mask2, params)
    out2 = jax.block_until_ready(out2)
    assert out2.shape == (B2, OUT_DIM)
    ref2 = reference_forward(motion2, motion_mask2, params)
    np.testing.assert_allclose(np.asarray(out2), np.asarray(ref2),
                               rtol=2e-2, atol=1e-2)

    print("KERNEL_OK")
</pallas_src>

<mosaic_0001>
module attributes {stable_mosaic.version = 11 : i64} {
  func.func @_motion_encoder_kernel(%arg0: i32, %arg1: memref<8x16x32xf32, #tpu.memory_space<vmem>>, %arg2: memref<8x1x16xf32, #tpu.memory_space<vmem>>, %arg3: memref<2x32x96xbf16, #tpu.memory_space<vmem>>, %arg4: memref<2x32x32xbf16, #tpu.memory_space<vmem>>, %arg5: memref<2x32x64xbf16, #tpu.memory_space<vmem>>, %arg6: memref<2x64x32xbf16, #tpu.memory_space<vmem>>, %arg7: memref<2x2x96xf32, #tpu.memory_space<vmem>>, %arg8: memref<2x8x32xf32, #tpu.memory_space<vmem>>, %arg9: memref<40x512xbf16, #tpu.memory_space<vmem>>, %arg10: memref<8x512xf32, #tpu.memory_space<vmem>>) attributes {dimension_semantics = [#tpu.dimension_semantics<parallel>], iteration_bounds = array<i64: 1>, scalar_prefetch = 0 : i64, scratch_operands = 0 : i64, tpu.core_type = #tpu.core_type<tc>, window_params = [{transform_indices = @transform_0, window_bounds = array<i64: 8, 16, 32>}, {transform_indices = @transform_1, window_bounds = array<i64: 8, 1, 16>}, {pipeline_mode = #tpu.pipeline_mode<synchronous>, transform_indices = @transform_2, window_bounds = array<i64: 2, 32, 96>}, {pipeline_mode = #tpu.pipeline_mode<synchronous>, transform_indices = @transform_3, window_bounds = array<i64: 2, 32, 32>}, {pipeline_mode = #tpu.pipeline_mode<synchronous>, transform_indices = @transform_4, window_bounds = array<i64: 2, 32, 64>}, {pipeline_mode = #tpu.pipeline_mode<synchronous>, transform_indices = @transform_5, window_bounds = array<i64: 2, 64, 32>}, {pipeline_mode = #tpu.pipeline_mode<synchronous>, transform_indices = @transform_6, window_bounds = array<i64: 2, 2, 96>}, {pipeline_mode = #tpu.pipeline_mode<synchronous>, transform_indices = @transform_7, window_bounds = array<i64: 2, 8, 32>}, {pipeline_mode = #tpu.pipeline_mode<synchronous>, transform_indices = @transform_8, window_bounds = array<i64: 40, 512>}, {transform_indices = @transform_9, window_bounds = array<i64: 8, 512>}]} {
    %c0 = arith.constant 0 : index
    %c0_0 = arith.constant 0 : index
    %c0_1 = arith.constant 0 : index
    %0 = vector.load %arg1[%c0, %c0_0, %c0_1] : memref<8x16x32xf32, #tpu.memory_space<vmem>>, vector<8x16x32xf32>
    %c0_2 = arith.constant 0 : index
    %c0_3 = arith.constant 0 : index
    %c0_4 = arith.constant 0 : index
    %1 = vector.load %arg2[%c0_2, %c0_3, %c0_4] : memref<8x1x16xf32, #tpu.memory_space<vmem>>, vector<8x1x16xf32>
    %c0_5 = arith.constant 0 : index
    %c0_6 = arith.constant 0 : index
    %c0_7 = arith.constant 0 : index
    %2 = vector.load %arg8[%c0_5, %c0_6, %c0_7] : memref<2x8x32xf32, #tpu.memory_space<vmem>>, vector<1x8x32xf32>
    %3 = vector.shape_cast %2 : vector<1x8x32xf32> to vector<8x32xf32>
    %4 = vector.extract_strided_slice %3 {offsets = [0, 0], sizes = [1, 32], strides = [1, 1]} : vector<8x32xf32> to vector<1x32xf32>
    %5 = vector.extract_strided_slice %3 {offsets = [1, 0], sizes = [1, 32], strides = [1, 1]} : vector<8x32xf32> to vector<1x32xf32>
    %6 = vector.extract_strided_slice %3 {offsets = [2, 0], sizes = [1, 32], strides = [1, 1]} : vector<8x32xf32> to vector<1x32xf32>
    %7 = vector.extract_strided_slice %3 {offsets = [3, 0], sizes = [1, 32], strides = [1, 1]} : vector<8x32xf32> to vector<1x32xf32>
    %8 = vector.extract_strided_slice %3 {offsets = [4, 0], sizes = [1, 32], strides = [1, 1]} : vector<8x32xf32> to vector<1x32xf32>
    %9 = vector.extract_strided_slice %3 {offsets = [5, 0], sizes = [1, 32], strides = [1, 1]} : vector<8x32xf32> to vector<1x32xf32>
    %c0_8 = arith.constant 0 : index
    %c0_9 = arith.constant 0 : index
    %c0_10 = arith.constant 0 : index
    %10 = vector.load %arg7[%c0_8, %c0_9, %c0_10] : memref<2x2x96xf32, #tpu.memory_space<vmem>>, vector<1x2x96xf32>
    %11 = vector.shape_cast %10 : vector<1x2x96xf32> to vector<2x96xf32>
    %12 = vector.extract_strided_slice %11 {offsets = [0, 0], sizes = [1, 96], strides = [1, 1]} : vector<2x96xf32> to vector<1x96xf32>
    %13 = vector.extract_strided_slice %11 {offsets = [1, 0], sizes = [1, 64], strides = [1, 1]} : vector<2x96xf32> to vector<1x64xf32>
    %14 = vector.shape_cast %0 : vector<8x16x32xf32> to vector<128x32xf32>
    %15 = arith.truncf %14 : vector<128x32xf32> to vector<128x32xbf16>
    %c0_11 = arith.constant 0 : index
    %c0_12 = arith.constant 0 : index
    %c0_13 = arith.constant 0 : index
    %16 = vector.load %arg3[%c0_11, %c0_12, %c0_13] : memref<2x32x96xbf16, #tpu.memory_space<vmem>>, vector<1x32x96xbf16>
    %17 = vector.shape_cast %16 : vector<1x32x96xbf16> to vector<32x96xbf16>
    %cst = arith.constant dense<0.000000e+00> : vector<128x96xf32>
    %18 = tpu.matmul %15, %17, %cst {dimension_numbers = #tpu.dot_dimension_numbers<[1], [0], [0], [1], [0, 0, 1, 1], [], []>} : vector<128x32xbf16>, vector<32x96xbf16>, vector<128x96xf32> -> vector<128x96xf32>
    %19 = vector.broadcast %12 : vector<1x96xf32> to vector<128x96xf32>
    %20 = arith.addf %18, %19 : vector<128x96xf32>
    %21 = vector.shape_cast %20 : vector<128x96xf32> to vector<8x16x96xf32>
    %22 = vector.extract_strided_slice %21 {offsets = [0, 0, 0], sizes = [8, 16, 8], strides = [1, 1, 1]} : vector<8x16x96xf32> to vector<8x16x8xf32>
    %23 = vector.extract_strided_slice %21 {offsets = [0, 0, 32], sizes = [8, 16, 8], strides = [1, 1, 1]} : vector<8x16x96xf32> to vector<8x16x8xf32>
    %24 = vector.extract_strided_slice %21 {offsets = [0, 0, 64], sizes = [8, 16, 8], strides = [1, 1, 1]} : vector<8x16x96xf32> to vector<8x16x8xf32>
    "tpu.trace_start"() <{level = 10 : i32, message = "bqd,bkd->bqk"}> : () -> ()
    %cst_14 = arith.constant dense<0.000000e+00> : vector<8x16x16xf32>
    %25 = tpu.matmul %22, %23, %cst_14 {dimension_numbers = #tpu.dot_dimension_numbers<[2], [2], [1], [1], [0, 0, 0, 1, 1, 1], [0], [0]>} : vector<8x16x8xf32>, vector<8x16x8xf32>, vector<8x16x16xf32> -> vector<8x16x16xf32>
    "tpu.trace_stop"() : () -> ()
    %cst_15 = arith.constant 0.353553385 : f32
    %26 = vector.broadcast %cst_15 : f32 to vector<8x16x16xf32>
    %27 = arith.mulf %25, %26 : vector<8x16x16xf32>
    %28 = vector.broadcast %1 : vector<8x1x16xf32> to vector<8x16x16xf32>
    %29 = arith.addf %27, %28 : vector<8x16x16xf32>
    %cst_16 = arith.constant dense<0xFF800000> : vector<8x16xf32>
    %30 = vector.multi_reduction <maximumf>, %29, %cst_16 [2] : vector<8x16x16xf32> to vector<8x16xf32>
    %31 = vector.shape_cast %30 : vector<8x16xf32> to vector<8x16x1xf32>
    %32 = vector.broadcast %31 : vector<8x16x1xf32> to vector<8x16x16xf32>
    %33 = arith.subf %29, %32 : vector<8x16x16xf32>
    %34 = math.exp %33 : vector<8x16x16xf32>
    %cst_17 = arith.constant dense<0.000000e+00> : vector<8x16xf32>
    %35 = vector.multi_reduction <add>, %34, %cst_17 [2] : vector<8x16x16xf32> to vector<8x16xf32>
    %36 = vector.shape_cast %35 : vector<8x16xf32> to vector<8x16x1xf32>
    %37 = tpu.reciprocal %36 {approx = true} : vector<8x16x1xf32> -> vector<8x16x1xf32>
    %38 = vector.broadcast %37 : vector<8x16x1xf32> to vector<8x16x16xf32>
    %39 = arith.mulf %34, %38 : vector<8x16x16xf32>
    "tpu.trace_start"() <{level = 10 : i32, message = "bqk,bkd->bqd"}> : () -> ()
    %cst_18 = arith.constant dense<0.000000e+00> : vector<8x16x8xf32>
    %40 = tpu.matmul %39, %24, %cst_18 {dimension_numbers = #tpu.dot_dimension_numbers<[2], [1], [1], [2], [0, 0, 0, 1, 1, 2], [0], [0]>} : vector<8x16x16xf32>, vector<8x16x8xf32>, vector<8x16x8xf32> -> vector<8x16x8xf32>
    "tpu.trace_stop"() : () -> ()
    %41 = vector.extract_strided_slice %21 {offsets = [0, 0, 8], sizes = [8, 16, 8], strides = [1, 1, 1]} : vector<8x16x96xf32> to vector<8x16x8xf32>
    %42 = vector.extract_strided_slice %21 {offsets = [0, 0, 40], sizes = [8, 16, 8], strides = [1, 1, 1]} : vector<8x16x96xf32> to vector<8x16x8xf32>
    %43 = vector.extract_strided_slice %21 {offsets = [0, 0, 72], sizes = [8, 16, 8], strides = [1, 1, 1]} : vector<8x16x96xf32> to vector<8x16x8xf32>
    "tpu.trace_start"() <{level = 10 : i32, message = "bqd,bkd->bqk"}> : () -> ()
    %cst_19 = arith.constant dense<0.000000e+00> : vector<8x16x16xf32>
    %44 = tpu.matmul %41, %42, %cst_19 {dimension_numbers = #tpu.dot_dimension_numbers<[2], [2], [1], [1], [0, 0, 0, 1, 1, 1], [0], [0]>} : vector<8x16x8xf32>, vector<8x16x8xf32>, vector<8x16x16xf32> -> vector<8x16x16xf32>
    "tpu.trace_stop"() : () -> ()
    %cst_20 = arith.constant 0.353553385 : f32
    %45 = vector.broadcast %cst_20 : f32 to vector<8x16x16xf32>
    %46 = arith.mulf %44, %45 : vector<8x16x16xf32>
    %47 = vector.broadcast %1 : vector<8x1x16xf32> to vector<8x16x16xf32>
    %48 = arith.addf %46, %47 : vector<8x16x16xf32>
    %cst_21 = arith.constant dense<0xFF800000> : vector<8x16xf32>
    %49 = vector.multi_reduction <maximumf>, %48, %cst_21 [2] : vector<8x16x16xf32> to vector<8x16xf32>
    %50 = vector.shape_cast %49 : vector<8x16xf32> to vector<8x16x1xf32>
    %51 = vector.broadcast %50 : vector<8x16x1xf32> to vector<8x16x16xf32>
    %52 = arith.subf %48, %51 : vector<8x16x16xf32>
    %53 = math.exp %52 : vector<8x16x16xf32>
    %cst_22 = arith.constant dense<0.000000e+00> : vector<8x16xf32>
    %54 = vector.multi_reduction <add>, %53, %cst_22 [2] : vector<8x16x16xf32> to vector<8x16xf32>
    %55 = vector.shape_cast %54 : vector<8x16xf32> to vector<8x16x1xf32>
    %56 = tpu.reciprocal %55 {approx = true} : vector<8x16x1xf32> -> vector<8x16x1xf32>
    %57 = vector.broadcast %56 : vector<8x16x1xf32> to vector<8x16x16xf32>
    %58 = arith.mulf %53, %57 : vector<8x16x16xf32>
    "tpu.trace_start"() <{level = 10 : i32, message = "bqk,bkd->bqd"}> : () -> ()
    %cst_23 = arith.constant dense<0.000000e+00> : vector<8x16x8xf32>
    %59 = tpu.matmul %58, %43, %cst_23 {dimension_numbers = #tpu.dot_dimension_numbers<[2], [1], [1], [2], [0, 0, 0, 1, 1, 2], [0], [0]>} : vector<8x16x16xf32>, vector<8x16x8xf32>, vector<8x16x8xf32> -> vector<8x16x8xf32>
    "tpu.trace_stop"() : () -> ()
    %60 = vector.extract_strided_slice %21 {offsets = [0, 0, 16], sizes = [8, 16, 8], strides = [1, 1, 1]} : vector<8x16x96xf32> to vector<8x16x8xf32>
    %61 = vector.extract_strided_slice %21 {offsets = [0, 0, 48], sizes = [8, 16, 8], strides = [1, 1, 1]} : vector<8x16x96xf32> to vector<8x16x8xf32>
    %62 = vector.extract_strided_slice %21 {offsets = [0, 0, 80], sizes = [8, 16, 8], strides = [1, 1, 1]} : vector<8x16x96xf32> to vector<8x16x8xf32>
    "tpu.trace_start"() <{level = 10 : i32, message = "bqd,bkd->bqk"}> : () -> ()
    %cst_24 = arith.constant dense<0.000000e+00> : vector<8x16x16xf32>
    %63 = tpu.matmul %60, %61, %cst_24 {dimension_numbers = #tpu.dot_dimension_numbers<[2], [2], [1], [1], [0, 0, 0, 1, 1, 1], [0], [0]>} : vector<8x16x8xf32>, vector<8x16x8xf32>, vector<8x16x16xf32> -> vector<8x16x16xf32>
    "tpu.trace_stop"() : () -> ()
    %cst_25 = arith.constant 0.353553385 : f32
    %64 = vector.broadcast %cst_25 : f32 to vector<8x16x16xf32>
    %65 = arith.mulf %63, %64 : vector<8x16x16xf32>
    %66 = vector.broadcast %1 : vector<8x1x16xf32> to vector<8x16x16xf32>
    %67 = arith.addf %65, %66 : vector<8x16x16xf32>
    %cst_26 = arith.constant dense<0xFF800000> : vector<8x16xf32>
    %68 = vector.multi_reduction <maximumf>, %67, %cst_26 [2] : vector<8x16x16xf32> to vector<8x16xf32>
    %69 = vector.shape_cast %68 : vector<8x16xf32> to vector<8x16x1xf32>
    %70 = vector.broadcast %69 : vector<8x16x1xf32> to vector<8x16x16xf32>
    %71 = arith.subf %67, %70 : vector<8x16x16xf32>
    %72 = math.exp %71 : vector<8x16x16xf32>
    %cst_27 = arith.constant dense<0.000000e+00> : vector<8x16xf32>
    %73 = vector.multi_reduction <add>, %72, %cst_27 [2] : vector<8x16x16xf32> to vector<8x16xf32>
    %74 = vector.shape_cast %73 : vector<8x16xf32> to vector<8x16x1xf32>
    %75 = tpu.reciprocal %74 {approx = true} : vector<8x16x1xf32> -> vector<8x16x1xf32>
    %76 = vector.broadcast %75 : vector<8x16x1xf32> to vector<8x16x16xf32>
    %77 = arith.mulf %72, %76 : vector<8x16x16xf32>
    "tpu.trace_start"() <{level = 10 : i32, message = "bqk,bkd->bqd"}> : () -> ()
    %cst_28 = arith.constant dense<0.000000e+00> : vector<8x16x8xf32>
    %78 = tpu.matmul %77, %62, %cst_28 {dimension_numbers = #tpu.dot_dimension_numbers<[2], [1], [1], [2], [0, 0, 0, 1, 1, 2], [0], [0]>} : vector<8x16x16xf32>, vector<8x16x8xf32>, vector<8x16x8xf32> -> vector<8x16x8xf32>
    "tpu.trace_stop"() : () -> ()
    %79 = vector.extract_strided_slice %21 {offsets = [0, 0, 24], sizes = [8, 16, 8], strides = [1, 1, 1]} : vector<8x16x96xf32> to vector<8x16x8xf32>
    %80 = vector.extract_strided_slice %21 {offsets = [0, 0, 56], sizes = [8, 16, 8], strides = [1, 1, 1]} : vector<8x16x96xf32> to vector<8x16x8xf32>
    %81 = vector.extract_strided_slice %21 {offsets = [0, 0, 88], sizes = [8, 16, 8], strides = [1, 1, 1]} : vector<8x16x96xf32> to vector<8x16x8xf32>
    "tpu.trace_start"() <{level = 10 : i32, message = "bqd,bkd->bqk"}> : () -> ()
    %cst_29 = arith.constant dense<0.000000e+00> : vector<8x16x16xf32>
    %82 = tpu.matmul %79, %80, %cst_29 {dimension_numbers = #tpu.dot_dimension_numbers<[2], [2], [1], [1], [0, 0, 0, 1, 1, 1], [0], [0]>} : vector<8x16x8xf32>, vector<8x16x8xf32>, vector<8x16x16xf32> -> vector<8x16x16xf32>
    "tpu.trace_stop"() : () -> ()
    %cst_30 = arith.constant 0.353553385 : f32
    %83 = vector.broadcast %cst_30 : f32 to vector<8x16x16xf32>
    %84 = arith.mulf %82, %83 : vector<8x16x16xf32>
    %85 = vector.broadcast %1 : vector<8x1x16xf32> to vector<8x16x16xf32>
    %86 = arith.addf %84, %85 : vector<8x16x16xf32>
    %cst_31 = arith.constant dense<0xFF800000> : vector<8x16xf32>
    %87 = vector.multi_reduction <maximumf>, %86, %cst_31 [2] : vector<8x16x16xf32> to vector<8x16xf32>
    %88 = vector.shape_cast %87 : vector<8x16xf32> to vector<8x16x1xf32>
    %89 = vector.broadcast %88 : vector<8x16x1xf32> to vector<8x16x16xf32>
    %90 = arith.subf %86, %89 : vector<8x16x16xf32>
    %91 = math.exp %90 : vector<8x16x16xf32>
    %cst_32 = arith.constant dense<0.000000e+00> : vector<8x16xf32>
    %92 = vector.multi_reduction <add>, %91, %cst_32 [2] : vector<8x16x16xf32> to vector<8x16xf32>
    %93 = vector.shape_cast %92 : vector<8x16xf32> to vector<8x16x1xf32>
    %94 = tpu.reciprocal %93 {approx = true} : vector<8x16x1xf32> -> vector<8x16x1xf32>
    %95 = vector.broadcast %94 : vector<8x16x1xf32> to vector<8x16x16xf32>
    %96 = arith.mulf %91, %95 : vector<8x16x16xf32>
    "tpu.trace_start"() <{level = 10 : i32, message = "bqk,bkd->bqd"}> : () -> ()
    %cst_33 = arith.constant dense<0.000000e+00> : vector<8x16x8xf32>
    %97 = tpu.matmul %96, %81, %cst_33 {dimension_numbers = #tpu.dot_dimension_numbers<[2], [1], [1], [2], [0, 0, 0, 1, 1, 2], [0], [0]>} : vector<8x16x16xf32>, vector<8x16x8xf32>, vector<8x16x8xf32> -> vector<8x16x8xf32>
    "tpu.trace_stop"() : () -> ()
    %98 = tpu.concatenate %40, %59, %78, %97 in 2 : vector<8x16x8xf32>, vector<8x16x8xf32>, vector<8x16x8xf32>, vector<8x16x8xf32> -> vector<8x16x32xf32>
    %99 = vector.shape_cast %98 : vector<8x16x32xf32> to vector<128x32xf32>
    %100 = arith.truncf %99 : vector<128x32xf32> to vector<128x32xbf16>
    %c0_34 = arith.constant 0 : index
    %c0_35 = arith.constant 0 : index
    %c0_36 = arith.constant 0 : index
    %101 = vector.load %arg4[%c0_34, %c0_35, %c0_36] : memref<2x32x32xbf16, #tpu.memory_space<vmem>>, vector<1x32x32xbf16>
    %102 = vector.shape_cast %101 : vector<1x32x32xbf16> to vector<32x32xbf16>
    %cst_37 = arith.constant dense<0.000000e+00> : vector<128x32xf32>
    %103 = tpu.matmul %100, %102, %cst_37 {dimension_numbers = #tpu.dot_dimension_numbers<[1], [0], [0], [1], [0, 0, 1, 1], [], []>} : vector<128x32xbf16>, vector<32x32xbf16>, vector<128x32xf32> -> vector<128x32xf32>
    %104 = vector.shape_cast %103 : vector<128x32xf32> to vector<8x16x32xf32>
    %105 = vector.shape_cast %4 : vector<1x32xf32> to vector<1x1x32xf32>
    %106 = vector.broadcast %105 : vector<1x1x32xf32> to vector<8x16x32xf32>
    %107 = arith.addf %104, %106 : vector<8x16x32xf32>
    %108 = arith.addf %0, %107 : vector<8x16x32xf32>
    %cst_38 = arith.constant dense<0.000000e+00> : vector<8x16xf32>
    %109 = vector.multi_reduction <add>, %108, %cst_38 [2] : vector<8x16x32xf32> to vector<8x16xf32>
    %110 = vector.shape_cast %109 : vector<8x16xf32> to vector<8x16x1xf32>
    %cst_39 = arith.constant 3.200000e+01 : f32
    %111 = vector.broadcast %cst_39 : f32 to vector<8x16x1xf32>
    %112 = arith.divf %110, %111 : vector<8x16x1xf32>
    %113 = vector.broadcast %112 : vector<8x16x1xf32> to vector<8x16x32xf32>
    %114 = arith.subf %108, %113 : vector<8x16x32xf32>
    %115 = arith.mulf %114, %114 : vector<8x16x32xf32>
    %cst_40 = arith.constant dense<0.000000e+00> : vector<8x16xf32>
    %116 = vector.multi_reduction <add>, %115, %cst_40 [2] : vector<8x16x32xf32> to vector<8x16xf32>
    %117 = vector.shape_cast %116 : vector<8x16xf32> to vector<8x16x1xf32>
    %cst_41 = arith.constant 3.200000e+01 : f32
    %118 = vector.broadcast %cst_41 : f32 to vector<8x16x1xf32>
    %119 = arith.divf %117, %118 : vector<8x16x1xf32>
    %120 = vector.broadcast %112 : vector<8x16x1xf32> to vector<8x16x32xf32>
    %121 = arith.subf %108, %120 : vector<8x16x32xf32>
    %cst_42 = arith.constant 9.99999974E-6 : f32
    %122 = vector.broadcast %cst_42 : f32 to vector<8x16x1xf32>
    %123 = arith.addf %119, %122 : vector<8x16x1xf32>
    %124 = math.sqrt %123 : vector<8x16x1xf32>
    %125 = vector.broadcast %124 : vector<8x16x1xf32> to vector<8x16x32xf32>
    %126 = arith.divf %121, %125 : vector<8x16x32xf32>
    %127 = vector.shape_cast %5 : vector<1x32xf32> to vector<1x1x32xf32>
    %128 = vector.broadcast %127 : vector<1x1x32xf32> to vector<8x16x32xf32>
    %129 = arith.mulf %126, %128 : vector<8x16x32xf32>
    %130 = vector.shape_cast %6 : vector<1x32xf32> to vector<1x1x32xf32>
    %131 = vector.broadcast %130 : vector<1x1x32xf32> to vector<8x16x32xf32>
    %132 = arith.addf %129, %131 : vector<8x16x32xf32>
    %133 = vector.shape_cast %132 : vector<8x16x32xf32> to vector<128x32xf32>
    %134 = arith.truncf %133 : vector<128x32xf32> to vector<128x32xbf16>
    %c0_43 = arith.constant 0 : index
    %c0_44 = arith.constant 0 : index
    %c0_45 = arith.constant 0 : index
    %135 = vector.load %arg5[%c0_43, %c0_44, %c0_45] : memref<2x32x64xbf16, #tpu.memory_space<vmem>>, vector<1x32x64xbf16>
    %136 = vector.shape_cast %135 : vector<1x32x64xbf16> to vector<32x64xbf16>
    %cst_46 = arith.constant dense<0.000000e+00> : vector<128x64xf32>
    %137 = tpu.matmul %134, %136, %cst_46 {dimension_numbers = #tpu.dot_dimension_numbers<[1], [0], [0], [1], [0, 0, 1, 1], [], []>} : vector<128x32xbf16>, vector<32x64xbf16>, vector<128x64xf32> -> vector<128x64xf32>
    %138 = vector.broadcast %13 : vector<1x64xf32> to vector<128x64xf32>
    %139 = arith.addf %137, %138 : vector<128x64xf32>
    %cst_47 = arith.constant 0.000000e+00 : f32
    %140 = vector.broadcast %cst_47 : f32 to vector<128x64xf32>
    %141 = arith.maximumf %139, %140 : vector<128x64xf32>
    %142 = arith.truncf %141 : vector<128x64xf32> to vector<128x64xbf16>
    %c0_48 = arith.constant 0 : index
    %c0_49 = arith.constant 0 : index
    %c0_50 = arith.constant 0 : index
    %143 = vector.load %arg6[%c0_48, %c0_49, %c0_50] : memref<2x64x32xbf16, #tpu.memory_space<vmem>>, vector<1x64x32xbf16>
    %144 = vector.shape_cast %143 : vector<1x64x32xbf16> to vector<64x32xbf16>
    %cst_51 = arith.constant dense<0.000000e+00> : vector<128x32xf32>
    %145 = tpu.matmul %142, %144, %cst_51 {dimension_numbers = #tpu.dot_dimension_numbers<[1], [0], [0], [1], [0, 0, 1, 1], [], []>} : vector<128x64xbf16>, vector<64x32xbf16>, vector<128x32xf32> -> vector<128x32xf32>
    %146 = vector.broadcast %9 : vector<1x32xf32> to vector<128x32xf32>
    %147 = arith.addf %145, %146 : vector<128x32xf32>
    %148 = vector.shape_cast %147 : vector<128x32xf32> to vector<8x16x32xf32>
    %149 = arith.addf %132, %148 : vector<8x16x32xf32>
    %cst_52 = arith.constant dense<0.000000e+00> : vector<8x16xf32>
    %150 = vector.multi_reduction <add>, %149, %cst_52 [2] : vector<8x16x32xf32> to vector<8x16xf32>
    %151 = vector.shape_cast %150 : vector<8x16xf32> to vector<8x16x1xf32>
    %cst_53 = arith.constant 3.200000e+01 : f32
    %152 = vector.broadcast %cst_53 : f32 to vector<8x16x1xf32>
    %153 = arith.divf %151, %152 : vector<8x16x1xf32>
    %154 = vector.broadcast %153 : vector<8x16x1xf32> to vector<8x16x32xf32>
    %155 = arith.subf %149, %154 : vector<8x16x32xf32>
    %156 = arith.mulf %155, %155 : vector<8x16x32xf32>
    %cst_54 = arith.constant dense<0.000000e+00> : vector<8x16xf32>
    %157 = vector.multi_reduction <add>, %156, %cst_54 [2] : vector<8x16x32xf32> to vector<8x16xf32>
    %158 = vector.shape_cast %157 : vector<8x16xf32> to vector<8x16x1xf32>
    %cst_55 = arith.constant 3.200000e+01 : f32
    %159 = vector.broadcast %cst_55 : f32 to vector<8x16x1xf32>
    %160 = arith.divf %158, %159 : vector<8x16x1xf32>
    %161 = vector.broadcast %153 : vector<8x16x1xf32> to vector<8x16x32xf32>
    %162 = arith.subf %149, %161 : vector<8x16x32xf32>
    %cst_56 = arith.constant 9.99999974E-6 : f32
    %163 = vector.broadcast %cst_56 : f32 to vector<8x16x1xf32>
    %164 = arith.addf %160, %163 : vector<8x16x1xf32>
    %165 = math.sqrt %164 : vector<8x16x1xf32>
    %166 = vector.broadcast %165 : vector<8x16x1xf32> to vector<8x16x32xf32>
    %167 = arith.divf %162, %166 : vector<8x16x32xf32>
    %168 = vector.shape_cast %7 : vector<1x32xf32> to vector<1x1x32xf32>
    %169 = vector.broadcast %168 : vector<1x1x32xf32> to vector<8x16x32xf32>
    %170 = arith.mulf %167, %169 : vector<8x16x32xf32>
    %171 = vector.shape_cast %8 : vector<1x32xf32> to vector<1x1x32xf32>
    %172 = vector.broadcast %171 : vector<1x1x32xf32> to vector<8x16x32xf32>
    %173 = arith.addf %170, %172 : vector<8x16x32xf32>
    %c1 = arith.constant 1 : index
    %c0_57 = arith.constant 0 : index
    %c0_58 = arith.constant 0 : index
    %174 = vector.load %arg8[%c1, %c0_57, %c0_58] : memref<2x8x32xf32, #tpu.memory_space<vmem>>, vector<1x8x32xf32>
    %175 = vector.shape_cast %174 : vector<1x8x32xf32> to vector<8x32xf32>
    %176 = vector.extract_strided_slice %175 {offsets = [0, 0], sizes = [1, 32], strides = [1, 1]} : vector<8x32xf32> to vector<1x32xf32>
    %177 = vector.extract_strided_slice %175 {offsets = [1, 0], sizes = [1, 32], strides = [1, 1]} : vector<8x32xf32> to vector<1x32xf32>
    %178 = vector.extract_strided_slice %175 {offsets = [2, 0], sizes = [1, 32], strides = [1, 1]} : vector<8x32xf32> to vector<1x32xf32>
    %179 = vector.extract_strided_slice %175 {offsets = [3, 0], sizes = [1, 32], strides = [1, 1]} : vector<8x32xf32> to vector<1x32xf32>
    %180 = vector.extract_strided_slice %175 {offsets = [4, 0], sizes = [1, 32], strides = [1, 1]} : vector<8x32xf32> to vector<1x32xf32>
    %181 = vector.extract_strided_slice %175 {offsets = [5, 0], sizes = [1, 32], strides = [1, 1]} : vector<8x32xf32> to vector<1x32xf32>
    %c1_59 = arith.constant 1 : index
    %c0_60 = arith.constant 0 : index
    %c0_61 = arith.constant 0 : index
    %182 = vector.load %arg7[%c1_59, %c0_60, %c0_61] : memref<2x2x96xf32, #tpu.memory_space<vmem>>, vector<1x2x96xf32>
    %183 = vector.shape_cast %182 : vector<1x2x96xf32> to vector<2x96xf32>
    %184 = vector.extract_strided_slice %183 {offsets = [0, 0], sizes = [1, 96], strides = [1, 1]} : vector<2x96xf32> to vector<1x96xf32>
    %185 = vector.extract_strided_slice %183 {offsets = [1, 0], sizes = [1, 64], strides = [1, 1]} : vector<2x96xf32> to vector<1x64xf32>
    %186 = vector.shape_cast %173 : vector<8x16x32xf32> to vector<128x32xf32>
    %187 = arith.truncf %186 : vector<128x32xf32> to vector<128x32xbf16>
    %c1_62 = arith.constant 1 : index
    %c0_63 = arith.constant 0 : index
    %c0_64 = arith.constant 0 : index
    %188 = vector.load %arg3[%c1_62, %c0_63, %c0_64] : memref<2x32x96xbf16, #tpu.memory_space<vmem>>, vector<1x32x96xbf16>
    %189 = vector.shape_cast %188 : vector<1x32x96xbf16> to vector<32x96xbf16>
    %cst_65 = arith.constant dense<0.000000e+00> : vector<128x96xf32>
    %190 = tpu.matmul %187, %189, %cst_65 {dimension_numbers = #tpu.dot_dimension_numbers<[1], [0], [0], [1], [0, 0, 1, 1], [], []>} : vector<128x32xbf16>, vector<32x96xbf16>, vector<128x96xf32> -> vector<128x96xf32>
    %191 = vector.broadcast %184 : vector<1x96xf32> to vector<128x96xf32>
    %192 = arith.addf %190, %191 : vector<128x96xf32>
    %193 = vector.shape_cast %192 : vector<128x96xf32> to vector<8x16x96xf32>
    %194 = vector.extract_strided_slice %193 {offsets = [0, 0, 0], sizes = [8, 16, 8], strides = [1, 1, 1]} : vector<8x16x96xf32> to vector<8x16x8xf32>
    %195 = vector.extract_strided_slice %193 {offsets = [0, 0, 32], sizes = [8, 16, 8], strides = [1, 1, 1]} : vector<8x16x96xf32> to vector<8x16x8xf32>
    %196 = vector.extract_strided_slice %193 {offsets = [0, 0, 64], sizes = [8, 16, 8], strides = [1, 1, 1]} : vector<8x16x96xf32> to vector<8x16x8xf32>
    "tpu.trace_start"() <{level = 10 : i32, message = "bqd,bkd->bqk"}> : () -> ()
    %cst_66 = arith.constant dense<0.000000e+00> : vector<8x16x16xf32>
    %197 = tpu.matmul %194, %195, %cst_66 {dimension_numbers = #tpu.dot_dimension_numbers<[2], [2], [1], [1], [0, 0, 0, 1, 1, 1], [0], [0]>} : vector<8x16x8xf32>, vector<8x16x8xf32>, vector<8x16x16xf32> -> vector<8x16x16xf32>
    "tpu.trace_stop"() : () -> ()
    %cst_67 = arith.constant 0.353553385 : f32
    %198 = vector.broadcast %cst_67 : f32 to vector<8x16x16xf32>
    %199 = arith.mulf %197, %198 : vector<8x16x16xf32>
    %200 = vector.broadcast %1 : vector<8x1x16xf32> to vector<8x16x16xf32>
    %201 = arith.addf %199, %200 : vector<8x16x16xf32>
    %cst_68 = arith.constant dense<0xFF800000> : vector<8x16xf32>
    %202 = vector.multi_reduction <maximumf>, %201, %cst_68 [2] : vector<8x16x16xf32> to vector<8x16xf32>
    %203 = vector.shape_cast %202 : vector<8x16xf32> to vector<8x16x1xf32>
    %204 = vector.broadcast %203 : vector<8x16x1xf32> to vector<8x16x16xf32>
    %205 = arith.subf %201, %204 : vector<8x16x16xf32>
    %206 = math.exp %205 : vector<8x16x16xf32>
    %cst_69 = arith.constant dense<0.000000e+00> : vector<8x16xf32>
    %207 = vector.multi_reduction <add>, %206, %cst_69 [2] : vector<8x16x16xf32> to vector<8x16xf32>
    %208 = vector.shape_cast %207 : vector<8x16xf32> to vector<8x16x1xf32>
    %209 = tpu.reciprocal %208 {approx = true} : vector<8x16x1xf32> -> vector<8x16x1xf32>
    %210 = vector.broadcast %209 : vector<8x16x1xf32> to vector<8x16x16xf32>
    %211 = arith.mulf %206, %210 : vector<8x16x16xf32>
    "tpu.trace_start"() <{level = 10 : i32, message = "bqk,bkd->bqd"}> : () -> ()
    %cst_70 = arith.constant dense<0.000000e+00> : vector<8x16x8xf32>
    %212 = tpu.matmul %211, %196, %cst_70 {dimension_numbers = #tpu.dot_dimension_numbers<[2], [1], [1], [2], [0, 0, 0, 1, 1, 2], [0], [0]>} : vector<8x16x16xf32>, vector<8x16x8xf32>, vector<8x16x8xf32> -> vector<8x16x8xf32>
    "tpu.trace_stop"() : () -> ()
    %213 = vector.extract_strided_slice %193 {offsets = [0, 0, 8], sizes = [8, 16, 8], strides = [1, 1, 1]} : vector<8x16x96xf32> to vector<8x16x8xf32>
    %214 = vector.extract_strided_slice %193 {offsets = [0, 0, 40], sizes = [8, 16, 8], strides = [1, 1, 1]} : vector<8x16x96xf32> to vector<8x16x8xf32>
    %215 = vector.extract_strided_slice %193 {offsets = [0, 0, 72], sizes = [8, 16, 8], strides = [1, 1, 1]} : vector<8x16x96xf32> to vector<8x16x8xf32>
    "tpu.trace_start"() <{level = 10 : i32, message = "bqd,bkd->bqk"}> : () -> ()
    %cst_71 = arith.constant dense<0.000000e+00> : vector<8x16x16xf32>
    %216 = tpu.matmul %213, %214, %cst_71 {dimension_numbers = #tpu.dot_dimension_numbers<[2], [2], [1], [1], [0, 0, 0, 1, 1, 1], [0], [0]>} : vector<8x16x8xf32>, vector<8x16x8xf32>, vector<8x16x16xf32> -> vector<8x16x16xf32>
    "tpu.trace_stop"() : () -> ()
    %cst_72 = arith.constant 0.353553385 : f32
    %217 = vector.broadcast %cst_72 : f32 to vector<8x16x16xf32>
    %218 = arith.mulf %216, %217 : vector<8x16x16xf32>
    %219 = vector.broadcast %1 : vector<8x1x16xf32> to vector<8x16x16xf32>
    %220 = arith.addf %218, %219 : vector<8x16x16xf32>
    %cst_73 = arith.constant dense<0xFF800000> : vector<8x16xf32>
    %221 = vector.multi_reduction <maximumf>, %220, %cst_73 [2] : vector<8x16x16xf32> to vector<8x16xf32>
    %222 = vector.shape_cast %221 : vector<8x16xf32> to vector<8x16x1xf32>
    %223 = vector.broadcast %222 : vector<8x16x1xf32> to vector<8x16x16xf32>
    %224 = arith.subf %220, %223 : vector<8x16x16xf32>
    %225 = math.exp %224 : vector<8x16x16xf32>
    %cst_74 = arith.constant dense<0.000000e+00> : vector<8x16xf32>
    %226 = vector.multi_reduction <add>, %225, %cst_74 [2] : vector<8x16x16xf32> to vector<8x16xf32>
    %227 = vector.shape_cast %226 : vector<8x16xf32> to vector<8x16x1xf32>
    %228 = tpu.reciprocal %227 {approx = true} : vector<8x16x1xf32> -> vector<8x16x1xf32>
    %229 = vector.broadcast %228 : vector<8x16x1xf32> to vector<8x16x16xf32>
    %230 = arith.mulf %225, %229 : vector<8x16x16xf32>
    "tpu.trace_start"() <{level = 10 : i32, message = "bqk,bkd->bqd"}> : () -> ()
    %cst_75 = arith.constant dense<0.000000e+00> : vector<8x16x8xf32>
    %231 = tpu.matmul %230, %215, %cst_75 {dimension_numbers = #tpu.dot_dimension_numbers<[2], [1], [1], [2], [0, 0, 0, 1, 1, 2], [0], [0]>} : vector<8x16x16xf32>, vector<8x16x8xf32>, vector<8x16x8xf32> -> vector<8x16x8xf32>
    "tpu.trace_stop"() : () -> ()
    %232 = vector.extract_strided_slice %193 {offsets = [0, 0, 16], sizes = [8, 16, 8], strides = [1, 1, 1]} : vector<8x16x96xf32> to vector<8x16x8xf32>
    %233 = vector.extract_strided_slice %193 {offsets = [0, 0, 48], sizes = [8, 16, 8], strides = [1, 1, 1]} : vector<8x16x96xf32> to vector<8x16x8xf32>
    %234 = vector.extract_strided_slice %193 {offsets = [0, 0, 80], sizes = [8, 16, 8], strides = [1, 1, 1]} : vector<8x16x96xf32> to vector<8x16x8xf32>
    "tpu.trace_start"() <{level = 10 : i32, message = "bqd,bkd->bqk"}> : () -> ()
    %cst_76 = arith.constant dense<0.000000e+00> : vector<8x16x16xf32>
    %235 = tpu.matmul %232, %233, %cst_76 {dimension_numbers = #tpu.dot_dimension_numbers<[2], [2], [1], [1], [0, 0, 0, 1, 1, 1], [0], [0]>} : vector<8x16x8xf32>, vector<8x16x8xf32>, vector<8x16x16xf32> -> vector<8x16x16xf32>
    "tpu.trace_stop"() : () -> ()
    %cst_77 = arith.constant 0.353553385 : f32
    %236 = vector.broadcast %cst_77 : f32 to vector<8x16x16xf32>
    %237 = arith.mulf %235, %236 : vector<8x16x16xf32>
    %238 = vector.broadcast %1 : vector<8x1x16xf32> to vector<8x16x16xf32>
    %239 = arith.addf %237, %238 : vector<8x16x16xf32>
    %cst_78 = arith.constant dense<0xFF800000> : vector<8x16xf32>
    %240 = vector.multi_reduction <maximumf>, %239, %cst_78 [2] : vector<8x16x16xf32> to vector<8x16xf32>
    %241 = vector.shape_cast %240 : vector<8x16xf32> to vector<8x16x1xf32>
    %242 = vector.broadcast %241 : vector<8x16x1xf32> to vector<8x16x16xf32>
    %243 = arith.subf %239, %242 : vector<8x16x16xf32>
    %244 = math.exp %243 : vector<8x16x16xf32>
    %cst_79 = arith.constant dense<0.000000e+00> : vector<8x16xf32>
    %245 = vector.multi_reduction <add>, %244, %cst_79 [2] : vector<8x16x16xf32> to vector<8x16xf32>
    %246 = vector.shape_cast %245 : vector<8x16xf32> to vector<8x16x1xf32>
    %247 = tpu.reciprocal %246 {approx = true} : vector<8x16x1xf32> -> vector<8x16x1xf32>
    %248 = vector.broadcast %247 : vector<8x16x1xf32> to vector<8x16x16xf32>
    %249 = arith.mulf %244, %248 : vector<8x16x16xf32>
    "tpu.trace_start"() <{level = 10 : i32, message = "bqk,bkd->bqd"}> : () -> ()
    %cst_80 = arith.constant dense<0.000000e+00> : vector<8x16x8xf32>
    %250 = tpu.matmul %249, %234, %cst_80 {dimension_numbers = #tpu.dot_dimension_numbers<[2], [1], [1], [2], [0, 0, 0, 1, 1, 2], [0], [0]>} : vector<8x16x16xf32>, vector<8x16x8xf32>, vector<8x16x8xf32> -> vector<8x16x8xf32>
    "tpu.trace_stop"() : () -> ()
    %251 = vector.extract_strided_slice %193 {offsets = [0, 0, 24], sizes = [8, 16, 8], strides = [1, 1, 1]} : vector<8x16x96xf32> to vector<8x16x8xf32>
    %252 = vector.extract_strided_slice %193 {offsets = [0, 0, 56], sizes = [8, 16, 8], strides = [1, 1, 1]} : vector<8x16x96xf32> to vector<8x16x8xf32>
    %253 = vector.extract_strided_slice %193 {offsets = [0, 0, 88], sizes = [8, 16, 8], strides = [1, 1, 1]} : vector<8x16x96xf32> to vector<8x16x8xf32>
    "tpu.trace_start"() <{level = 10 : i32, message = "bqd,bkd->bqk"}> : () -> ()
    %cst_81 = arith.constant dense<0.000000e+00> : vector<8x16x16xf32>
    %254 = tpu.matmul %251, %252, %cst_81 {dimension_numbers = #tpu.dot_dimension_numbers<[2], [2], [1], [1], [0, 0, 0, 1, 1, 1], [0], [0]>} : vector<8x16x8xf32>, vector<8x16x8xf32>, vector<8x16x16xf32> -> vector<8x16x16xf32>
    "tpu.trace_stop"() : () -> ()
    %cst_82 = arith.constant 0.353553385 : f32
    %255 = vector.broadcast %cst_82 : f32 to vector<8x16x16xf32>
    %256 = arith.mulf %254, %255 : vector<8x16x16xf32>
    %257 = vector.broadcast %1 : vector<8x1x16xf32> to vector<8x16x16xf32>
    %258 = arith.addf %256, %257 : vector<8x16x16xf32>
    %cst_83 = arith.constant dense<0xFF800000> : vector<8x16xf32>
    %259 = vector.multi_reduction <maximumf>, %258, %cst_83 [2] : vector<8x16x16xf32> to vector<8x16xf32>
    %260 = vector.shape_cast %259 : vector<8x16xf32> to vector<8x16x1xf32>
    %261 = vector.broadcast %260 : vector<8x16x1xf32> to vector<8x16x16xf32>
    %262 = arith.subf %258, %261 : vector<8x16x16xf32>
    %263 = math.exp %262 : vector<8x16x16xf32>
    %cst_84 = arith.constant dense<0.000000e+00> : vector<8x16xf32>
    %264 = vector.multi_reduction <add>, %263, %cst_84 [2] : vector<8x16x16xf32> to vector<8x16xf32>
    %265 = vector.shape_cast %264 : vector<8x16xf32> to vector<8x16x1xf32>
    %266 = tpu.reciprocal %265 {approx = true} : vector<8x16x1xf32> -> vector<8x16x1xf32>
    %267 = vector.broadcast %266 : vector<8x16x1xf32> to vector<8x16x16xf32>
    %268 = arith.mulf %263, %267 : vector<8x16x16xf32>
    "tpu.trace_start"() <{level = 10 : i32, message = "bqk,bkd->bqd"}> : () -> ()
    %cst_85 = arith.constant dense<0.000000e+00> : vector<8x16x8xf32>
    %269 = tpu.matmul %268, %253, %cst_85 {dimension_numbers = #tpu.dot_dimension_numbers<[2], [1], [1], [2], [0, 0, 0, 1, 1, 2], [0], [0]>} : vector<8x16x16xf32>, vector<8x16x8xf32>, vector<8x16x8xf32> -> vector<8x16x8xf32>
    "tpu.trace_stop"() : () -> ()
    %270 = tpu.concatenate %212, %231, %250, %269 in 2 : vector<8x16x8xf32>, vector<8x16x8xf32>, vector<8x16x8xf32>, vector<8x16x8xf32> -> vector<8x16x32xf32>
    %271 = vector.shape_cast %270 : vector<8x16x32xf32> to vector<128x32xf32>
    %272 = arith.truncf %271 : vector<128x32xf32> to vector<128x32xbf16>
    %c1_86 = arith.constant 1 : index
    %c0_87 = arith.constant 0 : index
    %c0_88 = arith.constant 0 : index
    %273 = vector.load %arg4[%c1_86, %c0_87, %c0_88] : memref<2x32x32xbf16, #tpu.memory_space<vmem>>, vector<1x32x32xbf16>
    %274 = vector.shape_cast %273 : vector<1x32x32xbf16> to vector<32x32xbf16>
    %cst_89 = arith.constant dense<0.000000e+00> : vector<128x32xf32>
    %275 = tpu.matmul %272, %274, %cst_89 {dimension_numbers = #tpu.dot_dimension_numbers<[1], [0], [0], [1], [0, 0, 1, 1], [], []>} : vector<128x32xbf16>, vector<32x32xbf16>, vector<128x32xf32> -> vector<128x32xf32>
    %276 = vector.shape_cast %275 : vector<128x32xf32> to vector<8x16x32xf32>
    %277 = vector.shape_cast %176 : vector<1x32xf32> to vector<1x1x32xf32>
    %278 = vector.broadcast %277 : vector<1x1x32xf32> to vector<8x16x32xf32>
    %279 = arith.addf %276, %278 : vector<8x16x32xf32>
    %280 = arith.addf %173, %279 : vector<8x16x32xf32>
    %cst_90 = arith.constant dense<0.000000e+00> : vector<8x16xf32>
    %281 = vector.multi_reduction <add>, %280, %cst_90 [2] : vector<8x16x32xf32> to vector<8x16xf32>
    %282 = vector.shape_cast %281 : vector<8x16xf32> to vector<8x16x1xf32>
    %cst_91 = arith.constant 3.200000e+01 : f32
    %283 = vector.broadcast %cst_91 : f32 to vector<8x16x1xf32>
    %284 = arith.divf %282, %283 : vector<8x16x1xf32>
    %285 = vector.broadcast %284 : vector<8x16x1xf32> to vector<8x16x32xf32>
    %286 = arith.subf %280, %285 : vector<8x16x32xf32>
    %287 = arith.mulf %286, %286 : vector<8x16x32xf32>
    %cst_92 = arith.constant dense<0.000000e+00> : vector<8x16xf32>
    %288 = vector.multi_reduction <add>, %287, %cst_92 [2] : vector<8x16x32xf32> to vector<8x16xf32>
    %289 = vector.shape_cast %288 : vector<8x16xf32> to vector<8x16x1xf32>
    %cst_93 = arith.constant 3.200000e+01 : f32
    %290 = vector.broadcast %cst_93 : f32 to vector<8x16x1xf32>
    %291 = arith.divf %289, %290 : vector<8x16x1xf32>
    %292 = vector.broadcast %284 : vector<8x16x1xf32> to vector<8x16x32xf32>
    %293 = arith.subf %280, %292 : vector<8x16x32xf32>
    %cst_94 = arith.constant 9.99999974E-6 : f32
    %294 = vector.broadcast %cst_94 : f32 to vector<8x16x1xf32>
    %295 = arith.addf %291, %294 : vector<8x16x1xf32>
    %296 = math.sqrt %295 : vector<8x16x1xf32>
    %297 = vector.broadcast %296 : vector<8x16x1xf32> to vector<8x16x32xf32>
    %298 = arith.divf %293, %297 : vector<8x16x32xf32>
    %299 = vector.shape_cast %177 : vector<1x32xf32> to vector<1x1x32xf32>
    %300 = vector.broadcast %299 : vector<1x1x32xf32> to vector<8x16x32xf32>
    %301 = arith.mulf %298, %300 : vector<8x16x32xf32>
    %302 = vector.shape_cast %178 : vector<1x32xf32> to vector<1x1x32xf32>
    %303 = vector.broadcast %302 : vector<1x1x32xf32> to vector<8x16x32xf32>
    %304 = arith.addf %301, %303 : vector<8x16x32xf32>
    %305 = vector.shape_cast %304 : vector<8x16x32xf32> to vector<128x32xf32>
    %306 = arith.truncf %305 : vector<128x32xf32> to vector<128x32xbf16>
    %c1_95 = arith.constant 1 : index
    %c0_96 = arith.constant 0 : index
    %c0_97 = arith.constant 0 : index
    %307 = vector.load %arg5[%c1_95, %c0_96, %c0_97] : memref<2x32x64xbf16, #tpu.memory_space<vmem>>, vector<1x32x64xbf16>
    %308 = vector.shape_cast %307 : vector<1x32x64xbf16> to vector<32x64xbf16>
    %cst_98 = arith.constant dense<0.000000e+00> : vector<128x64xf32>
    %309 = tpu.matmul %306, %308, %cst_98 {dimension_numbers = #tpu.dot_dimension_numbers<[1], [0], [0], [1], [0, 0, 1, 1], [], []>} : vector<128x32xbf16>, vector<32x64xbf16>, vector<128x64xf32> -> vector<128x64xf32>
    %310 = vector.broadcast %185 : vector<1x64xf32> to vector<128x64xf32>
    %311 = arith.addf %309, %310 : vector<128x64xf32>
    %cst_99 = arith.constant 0.000000e+00 : f32
    %312 = vector.broadcast %cst_99 : f32 to vector<128x64xf32>
    %313 = arith.maximumf %311, %312 : vector<128x64xf32>
    %314 = arith.truncf %313 : vector<128x64xf32> to vector<128x64xbf16>
    %c1_100 = arith.constant 1 : index
    %c0_101 = arith.constant 0 : index
    %c0_102 = arith.constant 0 : index
    %315 = vector.load %arg6[%c1_100, %c0_101, %c0_102] : memref<2x64x32xbf16, #tpu.memory_space<vmem>>, vector<1x64x32xbf16>
    %316 = vector.shape_cast %315 : vector<1x64x32xbf16> to vector<64x32xbf16>
    %cst_103 = arith.constant dense<0.000000e+00> : vector<128x32xf32>
    %317 = tpu.matmul %314, %316, %cst_103 {dimension_numbers = #tpu.dot_dimension_numbers<[1], [0], [0], [1], [0, 0, 1, 1], [], []>} : vector<128x64xbf16>, vector<64x32xbf16>, vector<128x32xf32> -> vector<128x32xf32>
    %318 = vector.broadcast %181 : vector<1x32xf32> to vector<128x32xf32>
    %319 = arith.addf %317, %318 : vector<128x32xf32>
    %320 = vector.shape_cast %319 : vector<128x32xf32> to vector<8x16x32xf32>
    %321 = arith.addf %304, %320 : vector<8x16x32xf32>
    %cst_104 = arith.constant dense<0.000000e+00> : vector<8x16xf32>
    %322 = vector.multi_reduction <add>, %321, %cst_104 [2] : vector<8x16x32xf32> to vector<8x16xf32>
    %323 = vector.shape_cast %322 : vector<8x16xf32> to vector<8x16x1xf32>
    %cst_105 = arith.constant 3.200000e+01 : f32
    %324 = vector.broadcast %cst_105 : f32 to vector<8x16x1xf32>
    %325 = arith.divf %323, %324 : vector<8x16x1xf32>
    %326 = vector.broadcast %325 : vector<8x16x1xf32> to vector<8x16x32xf32>
    %327 = arith.subf %321, %326 : vector<8x16x32xf32>
    %328 = arith.mulf %327, %327 : vector<8x16x32xf32>
    %cst_106 = arith.constant dense<0.000000e+00> : vector<8x16xf32>
    %329 = vector.multi_reduction <add>, %328, %cst_106 [2] : vector<8x16x32xf32> to vector<8x16xf32>
    %330 = vector.shape_cast %329 : vector<8x16xf32> to vector<8x16x1xf32>
    %cst_107 = arith.constant 3.200000e+01 : f32
    %331 = vector.broadcast %cst_107 : f32 to vector<8x16x1xf32>
    %332 = arith.divf %330, %331 : vector<8x16x1xf32>
    %333 = vector.broadcast %325 : vector<8x16x1xf32> to vector<8x16x32xf32>
    %334 = arith.subf %321, %333 : vector<8x16x32xf32>
    %cst_108 = arith.constant 9.99999974E-6 : f32
    %335 = vector.broadcast %cst_108 : f32 to vector<8x16x1xf32>
    %336 = arith.addf %332, %335 : vector<8x16x1xf32>
    %337 = math.sqrt %336 : vector<8x16x1xf32>
    %338 = vector.broadcast %337 : vector<8x16x1xf32> to vector<8x16x32xf32>
    %339 = arith.divf %334, %338 : vector<8x16x32xf32>
    %340 = vector.shape_cast %179 : vector<1x32xf32> to vector<1x1x32xf32>
    %341 = vector.broadcast %340 : vector<1x1x32xf32> to vector<8x16x32xf32>
    %342 = arith.mulf %339, %341 : vector<8x16x32xf32>
    %343 = vector.shape_cast %180 : vector<1x32xf32> to vector<1x1x32xf32>
    %344 = vector.broadcast %343 : vector<1x1x32xf32> to vector<8x16x32xf32>
    %345 = arith.addf %342, %344 : vector<8x16x32xf32>
    %c0_109 = arith.constant 0 : index
    %c0_110 = arith.constant 0 : index
    %c0_111 = arith.constant 0 : index
    %346 = vector.load %arg8[%c0_109, %c0_110, %c0_111] : memref<2x8x32xf32, #tpu.memory_space<vmem>>, vector<1x8x32xf32>
    %347 = vector.shape_cast %346 : vector<1x8x32xf32> to vector<8x32xf32>
    %348 = vector.extract_strided_slice %345 {offsets = [0, 0, 0], sizes = [8, 1, 32], strides = [1, 1, 1]} : vector<8x16x32xf32> to vector<8x1x32xf32>
    %349 = vector.shape_cast %348 : vector<8x1x32xf32> to vector<8x32xf32>
    %350 = vector.extract_strided_slice %347 {offsets = [6, 0], sizes = [1, 32], strides = [1, 1]} : vector<8x32xf32> to vector<1x32xf32>
    %351 = vector.extract_strided_slice %347 {offsets = [7, 0], sizes = [1, 32], strides = [1, 1]} : vector<8x32xf32> to vector<1x32xf32>
    %cst_112 = arith.constant dense<0.000000e+00> : vector<8xf32>
    %352 = vector.multi_reduction <add>, %349, %cst_112 [1] : vector<8x32xf32> to vector<8xf32>
    %353 = vector.shape_cast %352 : vector<8xf32> to vector<8x1xf32>
    %cst_113 = arith.constant 3.200000e+01 : f32
    %354 = vector.broadcast %cst_113 : f32 to vector<8x1xf32>
    %355 = arith.divf %353, %354 : vector<8x1xf32>
    %356 = vector.broadcast %355 : vector<8x1xf32> to vector<8x32xf32>
    %357 = arith.subf %349, %356 : vector<8x32xf32>
    %358 = arith.mulf %357, %357 : vector<8x32xf32>
    %cst_114 = arith.constant dense<0.000000e+00> : vector<8xf32>
    %359 = vector.multi_reduction <add>, %358, %cst_114 [1] : vector<8x32xf32> to vector<8xf32>
    %360 = vector.shape_cast %359 : vector<8xf32> to vector<8x1xf32>
    %cst_115 = arith.constant 3.200000e+01 : f32
    %361 = vector.broadcast %cst_115 : f32 to vector<8x1xf32>
    %362 = arith.divf %360, %361 : vector<8x1xf32>
    %363 = vector.broadcast %355 : vector<8x1xf32> to vector<8x32xf32>
    %364 = arith.subf %349, %363 : vector<8x32xf32>
    %cst_116 = arith.constant 9.99999974E-6 : f32
    %365 = vector.broadcast %cst_116 : f32 to vector<8x1xf32>
    %366 = arith.addf %362, %365 : vector<8x1xf32>
    %367 = math.sqrt %366 : vector<8x1xf32>
    %368 = vector.broadcast %367 : vector<8x1xf32> to vector<8x32xf32>
    %369 = arith.divf %364, %368 : vector<8x32xf32>
    %370 = vector.broadcast %350 : vector<1x32xf32> to vector<8x32xf32>
    %371 = arith.mulf %369, %370 : vector<8x32xf32>
    %372 = vector.broadcast %351 : vector<1x32xf32> to vector<8x32xf32>
    %373 = arith.addf %371, %372 : vector<8x32xf32>
    %c0_117 = arith.constant 0 : index
    %c0_118 = arith.constant 0 : index
    %374 = vector.load %arg9[%c0_117, %c0_118] : memref<40x512xbf16, #tpu.memory_space<vmem>>, vector<40x512xbf16>
    %375 = arith.truncf %373 : vector<8x32xf32> to vector<8x32xbf16>
    %376 = vector.extract_strided_slice %374 {offsets = [0, 0], sizes = [32, 512], strides = [1, 1]} : vector<40x512xbf16> to vector<32x512xbf16>
    %cst_119 = arith.constant dense<0.000000e+00> : vector<8x512xf32>
    %377 = tpu.matmul %375, %376, %cst_119 {dimension_numbers = #tpu.dot_dimension_numbers<[1], [0], [0], [1], [0, 0, 1, 1], [], []>} : vector<8x32xbf16>, vector<32x512xbf16>, vector<8x512xf32> -> vector<8x512xf32>
    %378 = vector.extract_strided_slice %374 {offsets = [32, 0], sizes = [1, 512], strides = [1, 1]} : vector<40x512xbf16> to vector<1x512xbf16>
    %379 = arith.extf %378 : vector<1x512xbf16> to vector<1x512xf32>
    %380 = vector.broadcast %379 : vector<1x512xf32> to vector<8x512xf32>
    %381 = arith.addf %377, %380 : vector<8x512xf32>
    %c0_120 = arith.constant 0 : index
    %c0_121 = arith.constant 0 : index
    %382 = vector.load %arg10[%c0_120, %c0_121] : memref<8x512xf32, #tpu.memory_space<vmem>>, vector<8x512xf32>
    tpu.vector_store %arg10[%c0_120, %c0_121], %381 {strides = array<i32>} : memref<8x512xf32, #tpu.memory_space<vmem>>, vector<8x512xf32>,
    return
  }
  func.func @transform_0(%arg0: i32) -> (i32, i32, i32) {
    %c0_i32 = arith.constant 0 : i32
    %c0_i32_0 = arith.constant 0 : i32
    %c0_i32_1 = arith.constant 0 : i32
    return %arg0, %c0_i32, %c0_i32_0 : i32, i32, i32
  }
  func.func @transform_1(%arg0: i32) -> (i32, i32, i32) {
    %c0_i32 = arith.constant 0 : i32
    %c0_i32_0 = arith.constant 0 : i32
    %c0_i32_1 = arith.constant 0 : i32
    return %arg0, %c0_i32, %c0_i32_0 : i32, i32, i32
  }
  func.func @transform_2(%arg0: i32) -> (i32, i32, i32) {
    %c0_i32 = arith.constant 0 : i32
    %c0_i32_0 = arith.constant 0 : i32
    %c0_i32_1 = arith.constant 0 : i32
    %c0_i32_2 = arith.constant 0 : i32
    return %c0_i32, %c0_i32_0, %c0_i32_1 : i32, i32, i32
  }
  func.func @transform_3(%arg0: i32) -> (i32, i32, i32) {
    %c0_i32 = arith.constant 0 : i32
    %c0_i32_0 = arith.constant 0 : i32
    %c0_i32_1 = arith.constant 0 : i32
    %c0_i32_2 = arith.constant 0 : i32
    return %c0_i32, %c0_i32_0, %c0_i32_1 : i32, i32, i32
  }
  func.func @transform_4(%arg0: i32) -> (i32, i32, i32) {
    %c0_i32 = arith.constant 0 : i32
    %c0_i32_0 = arith.constant 0 : i32
    %c0_i32_1 = arith.constant 0 : i32
    %c0_i32_2 = arith.constant 0 : i32
    return %c0_i32, %c0_i32_0, %c0_i32_1 : i32, i32, i32
  }
  func.func @transform_5(%arg0: i32) -> (i32, i32, i32) {
    %c0_i32 = arith.constant 0 : i32
    %c0_i32_0 = arith.constant 0 : i32
    %c0_i32_1 = arith.constant 0 : i32
    %c0_i32_2 = arith.constant 0 : i32
    return %c0_i32, %c0_i32_0, %c0_i32_1 : i32, i32, i32
  }
  func.func @transform_6(%arg0: i32) -> (i32, i32, i32) {
    %c0_i32 = arith.constant 0 : i32
    %c0_i32_0 = arith.constant 0 : i32
    %c0_i32_1 = arith.constant 0 : i32
    %c0_i32_2 = arith.constant 0 : i32
    return %c0_i32, %c0_i32_0, %c0_i32_1 : i32, i32, i32
  }
  func.func @transform_7(%arg0: i32) -> (i32, i32, i32) {
    %c0_i32 = arith.constant 0 : i32
    %c0_i32_0 = arith.constant 0 : i32
    %c0_i32_1 = arith.constant 0 : i32
    %c0_i32_2 = arith.constant 0 : i32
    return %c0_i32, %c0_i32_0, %c0_i32_1 : i32, i32, i32
  }
  func.func @transform_8(%arg0: i32) -> (i32, i32) {
    %c0_i32 = arith.constant 0 : i32
    %c0_i32_0 = arith.constant 0 : i32
    %c0_i32_1 = arith.constant 0 : i32
    return %c0_i32, %c0_i32_0 : i32, i32
  }
  func.func @transform_9(%arg0: i32) -> (i32, i32) {
    %c0_i32 = arith.constant 0 : i32
    %c0_i32_0 = arith.constant 0 : i32
    return %arg0, %c0_i32 : i32, i32
  }
}

</mosaic_0001>

<bundles_post_ra>
// kernel: tpu_custom_call.1
= control target key start
LH: loop header
LB: loop body
LE: loop exit
PB: predicated region body
PF: predicated region fallthrough
CT: control target
= control target key end

     0   :  { %14 = vsyncpa [#allocation3], 0  ;;  %s26346_s0 = inlined_call_operand.hbm [shape: f32[8,16,32], index: 0, kind: input, shape index: {}]   ;;  %s26347_s1 = inlined_call_operand.vmem [shape: f32[8,1,16], index: 1, kind: input, shape index: {}]   ;;  %s26348_s2 = inlined_call_operand.vmem [shape: bf16[2,32,96], index: 2, kind: input, shape index: {}]   ;;  %s26349_s3 = inlined_call_operand.hbm [shape: bf16[2,32,32], index: 3, kind: input, shape index: {}]   ;;  %s26350_s4 = inlined_call_operand.hbm [shape: bf16[2,32,64], index: 4, kind: input, shape index: {}]   ;;  %s26351_s5 = inlined_call_operand.vmem [shape: bf16[2,64,32], index: 5, kind: input, shape index: {}]   ;;  %s26352_s6 = inlined_call_operand.vmem [shape: f32[2,2,96], index: 6, kind: input, shape index: {}]   ;;  %s26353_s7 = inlined_call_operand.hbm [shape: f32[2,8,32], index: 7, kind: input, shape index: {}]   ;;  %s26354_s8 = inlined_call_operand.vmem [shape: bf16[40,512], index: 8, kind: input, shape index: {}]   ;;  %s26355_s9 = inlined_call_operand.hbm [shape: f32[8,512], index: 9, kind: output, shape index: {}]  }
   0x1   :  { %15 = vsyncpa [#allocation6], 0 }
   0x2   :  { %16 = vsyncpa [#allocation9], 0 }
   0x3   :  { %17 = vsyncpa [#allocation4], 0  ;;  %s21307_s30 = smov [#allocation5]   ;;  %s21189_s13 = scalar_lea.hbm %s26349_s3, 512 }
   0x4   :  { %s39_s10 = sshll.u32 %s21307_s30, 4  ;;  %p21190_p0 = scmp.ne.s32.totalorder %s26349_s3, %s21189_s13  ;;  %s40_s10 = int_to_ptr.vmem [resolvable:$true] %s39_s10 }
   0x5   :  { %p21193_p1 = scmp.lt.u32.totalorder %s21189_s13, %s26349_s3 }
   0x7   :  { %p21195_p2 = pnand %p21193_p1, %p21190_p0 }
   0x9   :  { %21198 = shalt.err (!%p21195_p2)
}
   0xa   :  { %s21199_s18 = scalar_lea.vmem %s40_s10, 512  ;;  %p21204_p4 = scmp.lt.s32.totalorder %s40_s10, %s40_s10 }
   0xb   :  { %p21200_p3 = scmp.ne.s32.totalorder %s40_s10, %s21199_s18  ;;  %p21205_p5 = scmp.lt.s32.totalorder %s21199_s18, %s21199_s18 }
   0xd   :  { %p21206_p6 = por %p21205_p5, %p21204_p4 }
   0xf   :  { %p21207_p7 = pnand %p21206_p6, %p21200_p3 }
  0x11   :  { %21210 = shalt.err (!%p21207_p7)
}
  0x12   :  { %s21308_s19 = smov 64   ;;  %s21309_s20 = smov 4  }
  0x13   :  { %45 = dma.hbm_to_vmem [thread:$0]  %s26349_s3, 512, %s40_s10, [#allocation6], %s21308_s19, %s21308_s19, %s21309_s20  }
  0x14   :  { %s21310_s23 = smov [#allocation2]   ;;  %s21211_s27 = scalar_lea.hbm %s26346_s0, 2048 }
  0x15   :  { %s23_s24 = sshll.u32 %s21310_s23, 4  ;;  %p21212_p8 = scmp.ne.s32.totalorder %s26346_s0, %s21211_s27  ;;  %s24_s24 = int_to_ptr.vmem [resolvable:$true] %s23_s24 }
  0x16   :  { %p21215_p9 = scmp.lt.u32.totalorder %s21211_s27, %s26346_s0 }
  0x18   :  { %p21217_p10 = pnand %p21215_p9, %p21212_p8 }
  0x1a   :  { %21220 = shalt.err (!%p21217_p10)
}
  0x1b   :  { %s21221_s12 = scalar_lea.vmem %s24_s24, 2048  ;;  %p21226_p12 = scmp.lt.s32.totalorder %s24_s24, %s24_s24 }
  0x1c   :  { %p21222_p11 = scmp.ne.s32.totalorder %s24_s24, %s21221_s12  ;;  %p21227_p13 = scmp.lt.s32.totalorder %s21221_s12, %s21221_s12 }
  0x1e   :  { %p21228_p0 = por %p21227_p13, %p21226_p12 }
  0x20   :  { %p21229_p1 = pnand %p21228_p0, %p21222_p11 }
  0x22   :  { %21232 = shalt.err (!%p21229_p1)
}
  0x23   :  { %s21311_s3 = smov 128   ;;  %s21312_s10 = smov 8  }
  0x24   :  { %29 = dma.hbm_to_vmem [thread:$0]  %s26346_s0, 2048, %s24_s24, [#allocation3], %s21311_s3, %s21311_s3, %s21312_s10  }
  0x25   :  { %s21313_s15 = smov [#allocation7]   ;;  %s21314_s17 = smov [#allocation8]  }
  0x26   :  { %s51_s16 = sshll.u32 %s21313_s15, 4  ;;  %s67_s18 = sshll.u32 %s21314_s17, 4  ;;  %s52_s16 = int_to_ptr.vmem [resolvable:$true] %s51_s16  ;;  %s21409_s18 = int_to_ptr.vmem [resolvable:$true] %s67_s18 }
  0x27   :  { %s21233_s23 = scalar_lea.hbm %s26350_s4, 512 }
  0x28   :  { %p21234_p2 = scmp.ne.s32.totalorder %s26350_s4, %s21233_s23  ;;  %p21237_p3 = scmp.lt.u32.totalorder %s21233_s23, %s26350_s4 }
  0x2a   :  { %p21239_p4 = pnand %p21237_p3, %p21234_p2 }
  0x2c   :  { %21242 = shalt.err (!%p21239_p4)
}
  0x2d   :  { %s21243_s0 = scalar_lea.vmem %s52_s16, 512  ;;  %p21248_p6 = scmp.lt.s32.totalorder %s52_s16, %s52_s16 }
  0x2e   :  { %p21244_p5 = scmp.ne.s32.totalorder %s52_s16, %s21243_s0  ;;  %p21249_p7 = scmp.lt.s32.totalorder %s21243_s0, %s21243_s0 }
  0x30   :  { %p21250_p8 = por %p21249_p7, %p21248_p6 }
  0x32   :  { %p21251_p9 = pnand %p21250_p8, %p21244_p5 }
  0x34   :  { %21254 = shalt.err (!%p21251_p9)
}
  0x35   :  { %57 = dma.hbm_to_vmem [thread:$0]  %s26350_s4, 512, %s52_s16, [#allocation6], %s21308_s19, %s21308_s19, %s21309_s20  }
  0x36   :  { %s21255_s12 = scalar_lea.hbm %s26353_s7, 256 }
  0x37   :  { %p21256_p10 = scmp.ne.s32.totalorder %s26353_s7, %s21255_s12  ;;  %p21259_p11 = scmp.lt.u32.totalorder %s21255_s12, %s26353_s7 }
  0x39   :  { %p21261_p12 = pnand %p21259_p11, %p21256_p10 }
  0x3b   :  { %21264 = shalt.err (!%p21261_p12)
}
  0x3c   :  { %s21265_s21 = scalar_lea.vmem %s21409_s18, 256  ;;  %p21270_p0 = scmp.lt.s32.totalorder %s21409_s18, %s21409_s18 }
  0x3d   :  { %p21266_p13 = scmp.ne.s32.totalorder %s21409_s18, %s21265_s21  ;;  %p21271_p1 = scmp.lt.s32.totalorder %s21265_s21, %s21265_s21 }
  0x3f   :  { %p21272_p2 = por %p21271_p1, %p21270_p0 }
  0x41   :  { %p21273_p3 = pnand %p21272_p2, %p21266_p13 }
  0x43   :  { %21276 = shalt.err (!%p21273_p3)
}
  0x44   :  { %73 = dma.hbm_to_vmem [thread:$0]  %s26353_s7, 256, %s21409_s18, [#allocation9], %s21311_s3, %s21311_s3, %s21312_s10  }
  0x45   :  { %21299 = dma.done.wait [#allocation3], 2048  }
  0x46   :  { %21300 = vsyncadd [#allocation3], 4294965248 }
  0x47   :  { %21301 = dma.done.wait [#allocation6], 1024  }
  0x48   :  { %21302 = vsyncadd [#allocation6], 4294966272 }
  0x49   :  { %21303 = dma.done.wait [#allocation9], 256  }
  0x4a   :  { %21304 = vsyncadd [#allocation9], 4294967040  ;;  %v20359_v0 = vld [vmem:[%s26348_s2] sm:$0xff]   ;;  %v20360_v1 = vld [vmem:[%s26348_s2 + $0x8] sm:$0xff]   ;;  %vm143_vm0 = vcmask 261120   ;;  %v127_v26 = vlaneseq  ;;  %vm271_vm1 = vcmask 64512  }
  0x4b   :  { %17749 = vmatprep.subr.bf16.mxu0 %v20359_v0  ;;  %v89_v2 = vld [vmem:[#allocation2] sm:$0xff]  ;;  %v90_v3 = vld [vmem:[#allocation2 + $0x8] sm:$0xff]  ;;  %19453 = vmatprep.subr.bf16.mxu1 %v20359_v0  ;;  %v91_v5 = vld [vmem:[#allocation2 + $0x10] sm:$0xff]  ;;  %s21315_s18 = smov 96   ;;  %s21316_s26 = smov 88   ;;  %vm1058_vm3 = vcmask 130048  }
  0x4c   :  { %17750 = vmatpush3.bf16.msra.mxu0 %v20359_v0  ;;  %v115_v4 = vpack.c.bf16 %v90_v3, %v89_v2  ;;  %v92_v6 = vld [vmem:[#allocation2 + $0x18] sm:$0xff]  ;;  %19455 = vmatpush3.bf16.msra.mxu1 %v20359_v0  ;;  %v93_v7 = vld [vmem:[#allocation2 + $0x20] sm:$0xff]  ;;  %v94_v8 = vld [vmem:[#allocation2 + $0x28] sm:$0xff]  ;;  %v21460_v27 = vshrl.u32 %v127_v26, 7  ;;  %s21317_s22 = smov 120   ;;  %s21318_s23 = smov 56  }
  0x4d   :  { %17751 = vmatprep.subr.bf16.mxu0 %v20360_v1  ;;  %19454 = vmatprep.subr.bf16.mxu1 %v20360_v1  ;;  %v116_v9 = vpack.c.bf16 %v92_v6, %v91_v5  ;;  %v101_v10 = vld [vmem:[#allocation2 + $0x60] sm:$0xff]  ;;  %v102_v11 = vld [vmem:[#allocation2 + $0x68] sm:$0xff]  ;;  %v103_v12 = vld [vmem:[#allocation2 + $0x70] sm:$0xff]  ;;  %v117_v13 = vpack.c.bf16 %v94_v8, %v93_v7  ;;  %s21319_s25 = smov 80   ;;  %s21320_s7 = smov 112   ;;  %vm7051_vm4 = vcmask 195584  }
  0x4e   :  { %17753 = vmatprep.mubr.msk.bf16.mxu0 %vm143_vm0, %v115_v4  ;;  %v121_v14 = vpack.c.bf16 %v102_v11, %v101_v10  ;;  %v104_v15 = vld [vmem:[#allocation2 + $0x78] sm:$0xff]  ;;  %v95_v17 = vld [vmem:[#allocation2 + $0x30] sm:$0xff]  ;;  %v97_v19 = vld [vmem:[#allocation2 + $0x40] sm:$0xff]  ;;  %26470 = vst [vmem:[#allocation15_spill] sm:$0xff] %v21460_v27  ;;  %v21463_v28 = vsub.s32 0, %v21460_v27  ;;  %s21321_s3 = smov 48  }
  0x4f   :  { %v122_v16 = vpack.c.bf16 %v104_v15, %v103_v12  ;;  %v96_v18 = vld [vmem:[#allocation2 + $0x38] sm:$0xff]  ;;  %v98_v20 = vld [vmem:[#allocation2 + $0x48] sm:$0xff]  ;;  %v99_v23 = vld [vmem:[#allocation2 + $0x50] sm:$0xff]  ;;  %s21322_s27 = smov 72   ;;  %s21323_s28 = smov 104  }
  0x50   :  { %17752 = vmatpush3.bf16.msra.mxu0 %v20360_v1  ;;  %19456 = vmatpush3.bf16.msra.mxu1 %v20360_v1  ;;  %v118_v21 = vpack.c.bf16 %v96_v18, %v95_v17  ;;  %v119_v22 = vpack.c.bf16 %v98_v20, %v97_v19  ;;  %v100_v24 = vld [vmem:[#allocation2 + $0x58] sm:$0xff]  ;;  %26471 = vst [vmem:[#allocation16_spill] sm:$0xff] %v21463_v28  ;;  %v114_v29 = vld [vmem:[%s26352_s6] sm:$0x3]  ;;  %vm21579_vm2 = vmpackc.low %vm271_vm1, %vm271_vm1  ;;  %s21324_s29 = smov 40   ;;  %s21325_s30 = smov 16  }
  0x51   :  { %17765 = vmatprep.mubr.msk.bf16.mxu1 %vm143_vm0, %v121_v14  ;;  %v120_v25 = vpack.c.bf16 %v100_v24, %v99_v23  ;;  %v130_v30 = vrot.slane %v114_v29, %v21463_v28  ;;  %s21326_s11 = smov 24  }
  0x53   :  { %17754 = vmatmul.mubr.msk.bf16.vlgmr.msra.gmra.mrb[0].mxu0 %vm143_vm0, %v116_v9  ;;  %17766 = vmatmul.mubr.msk.bf16.vlgmr.msra.gmra.mrb[0].mxu1 %vm143_vm0, %v122_v16 }
  0x54   :  { %17757 = vmatprep.mubr.msk.bf16.mxu0 %vm143_vm0, %v117_v13 }
  0x5b   :  { %17758 = vmatmul.mubr.msk.bf16.gmra.mrb[4].mxu0 %vm143_vm0, %v118_v21 }
  0x5c   :  { %17761 = vmatprep.mubr.msk.bf16.mxu0 %vm143_vm0, %v119_v22 }
  0x63   :  { %17762 = vmatmul.mubr.msk.bf16.gmra.mrb[8].mxu0 %vm143_vm0, %v120_v25 }
 0x126   :  { %v17755_v31 = vpop.f32.mrb[0].mxu0  ;;  %v17767_v32 = vpop.f32.mrb[0].mxu1 }
 0x127   :  { %v202_v33 = vpop.f32.mrb[1].mxu0  ;;  %v250_v34 = vpop.f32.mrb[1].mxu1  ;;  %v21481_v43 = vadd.f32 %v17755_v31, %v130_v30  ;;  %v21515_v62 = vadd.f32 %v17767_v32, %v130_v30 }
 0x128   :  { %v21469_v35 = vadd.f32 %v202_v33, %v130_v30  ;;  %v17756_v36 = vpop.f32.mrb[2].mxu0  ;;  %v17768_v37 = vpop.f32.mrb[2].mxu1  ;;  %v21517_v63 = vadd.f32 %v250_v34, %v130_v30 }
 0x129   :  { %v205_v38 = vpop.f32.mrb[3].mxu0  ;;  %v253_v39 = vpop.f32.mrb[3].mxu1  ;;  %v21475_v41 = vadd.f32 %v17756_v36, %v130_v30  ;;  %v21525_v1 = vadd.f32 %v17768_v37, %v130_v30 }
 0x12a   :  { %26472 = vst [vmem:[#allocation17_spill] sm:$0xff] %v21469_v35  ;;  %v21471_v40 = vadd.f32 %v205_v38, %v130_v30  ;;  %17773 = vmatprep.mubr.msk.f32.mxu1 %vm271_vm1, %v21469_v35  ;;  %v21527_v2 = vadd.f32 %v253_v39, %v130_v30 }
 0x12b   :  { %v21489_v48 = vpack.i.bf16 %v21475_v41, %v21481_v43  ;;  %v21543_v5 = vpack.i.bf16 %v21525_v1, %v21515_v62 }
 0x12c   :  { %26473 = vst [vmem:[#allocation18_spill] sm:$0xff] %v21471_v40  ;;  %v21479_v42 = vpack.i.bf16 %v21471_v40, %v21469_v35  ;;  %v21547_v6 = vpack.i.bf16 %v21527_v2, %v21517_v63 }
 0x12d   :  { %26474 = vst [vmem:[#allocation19_spill] sm:$0xff] %v21489_v48 }
 0x12e   :  { %v17759_v44 = vpop.f32.mrb[4].mxu0  ;;  %19480 = vrot.lane.b32.xlu0 %v21479_v42, %s21315_s18 }
 0x12f   :  { %v218_v45 = vpop.f32.mrb[5].mxu0  ;;  %v21495_v51 = vadd.f32 %v17759_v44, %v130_v30 }
 0x130   :  { %v21485_v46 = vadd.f32 %v218_v45, %v130_v30  ;;  %v17760_v47 = vpop.f32.mrb[6].mxu0 }
 0x131   :  { %v221_v49 = vpop.f32.mrb[7].mxu0  ;;  %v21497_v52 = vadd.f32 %v17760_v47, %v130_v30 }
 0x132   :  { %v21491_v50 = vadd.f32 %v221_v49, %v130_v30  ;;  %19485 = vrot.lane.b32.xlu0 %v21489_v48, %s21315_s18 }
 0x133   :  { %v21511_v59 = vpack.i.bf16 %v21497_v52, %v21495_v51 }
 0x134   :  { %v21501_v53 = vpack.i.bf16 %v21491_v50, %v21485_v46 }
 0x135   :  { %26476 = vst [vmem:[#allocation21_spill] sm:$0xff] %v21511_v59 }
 0x136   :  { %26475 = vst [vmem:[#allocation20_spill] sm:$0xff] %v21501_v53  ;;  %v17763_v54 = vpop.f32.mrb[8].mxu0  ;;  %19490 = vrot.lane.b32.xlu1 %v21501_v53, %s21315_s18 }
 0x137   :  { %v21505_v55 = vadd.f32 %v17763_v54, %v130_v30  ;;  %v234_v56 = vpop.f32.mrb[9].mxu0 }
 0x138   :  { %v21507_v57 = vadd.f32 %v234_v56, %v130_v30  ;;  %v17764_v58 = vpop.f32.mrb[10].mxu0 }
 0x139   :  { %v21513_v60 = vadd.f32 %v17764_v58, %v130_v30  ;;  %v237_v61 = vpop.f32.mrb[11].mxu0 }
 0x13a   :  { %v21519_v0 = vadd.f32 %v237_v61, %v130_v30  ;;  %17801 = vmatprep.mubr.msk.f32.mxu0 %vm271_vm1, %v21507_v57  ;;  %19495 = vrot.lane.b32.xlu1 %v21511_v59, %s21315_s18 }
 0x13b   :  { %v21531_v3 = vpack.i.bf16 %v21513_v60, %v21505_v55 }
 0x13c   :  { %v21535_v4 = vpack.i.bf16 %v21519_v0, %v21507_v57 }
 0x13e   :  { %19505 = vrot.lane.b32.xlu1 %v21531_v3, %s21315_s18  ;;  %19500 = vrot.lane.b32.xlu0 %v21535_v4, %s21315_s18 }
 0x142   :  { %19515 = vrot.lane.b32.xlu1 %v21543_v5, %s21315_s18  ;;  %19510 = vrot.lane.b32.xlu0 %v21547_v6, %s21315_s18 }
 0x146   :  { %19520 = vrot.lane.b32.xlu1 %v21479_v42, %s21308_s19  ;;  %19525 = vrot.lane.b32.xlu0 %v21489_v48, %s21308_s19 }
 0x14a   :  { %19530 = vrot.lane.b32.xlu1 %v21501_v53, %s21308_s19  ;;  %19545 = vrot.lane.b32.xlu0 %v21547_v6, %s21308_s19 }
 0x14e   :  { %19535 = vrot.lane.b32.xlu1 %v21511_v59, %s21308_s19  ;;  %19555 = vrot.lane.b32.xlu0 %v21479_v42, %s21316_s26 }
 0x152   :  { %19540 = vrot.lane.b32.xlu1 %v21531_v3, %s21308_s19  ;;  %19565 = vrot.lane.b32.xlu0 %v21501_v53, %s21316_s26 }
 0x156   :  { %19550 = vrot.lane.b32.xlu1 %v21543_v5, %s21308_s19  ;;  %19575 = vrot.lane.b32.xlu0 %v21535_v4, %s21308_s19 }
 0x15a   :  { %19560 = vrot.lane.b32.xlu1 %v21489_v48, %s21316_s26 }
 0x15e   :  { %19570 = vrot.lane.b32.xlu1 %v21511_v59, %s21316_s26 }
 0x1a0   :  { %v19481_v7 = vpop.permute.xlu0 %19480 }
 0x1a1   :  { %v19483_v8 = vunpack.i.h.bf16 %v19481_v7  ;;  %v19482_v9 = vunpack.i.l.bf16 %v19481_v7 }
 0x1a3   :  { %v18813_v11 = vpack.c.bf16 %v19483_v8, %v19482_v9 }
 0x1a4   :  { %v19486_v12 = vpop.permute.xlu0 %19485 }
 0x1a5   :  { %v19488_v13 = vunpack.i.h.bf16 %v19486_v12  ;;  %v19487_v14 = vunpack.i.l.bf16 %v19486_v12  ;;  %18815 = vmatprep.subr.msk.bf16.mxu1 %vm21579_vm2, %v18813_v11 }
 0x1a6   :  { %18818 = vmatpush3.bf16.xpose.msk.msra.mxu1 %vm21579_vm2, %v18813_v11 }
 0x1a7   :  { %v18819_v15 = vpack.c.bf16 %v19488_v13, %v19487_v14 }
 0x1a8   :  { %v19491_v16 = vpop.permute.xlu1 %19490 }
 0x1a9   :  { %v19493_v17 = vunpack.i.h.bf16 %v19491_v16  ;;  %v19492_v18 = vunpack.i.l.bf16 %v19491_v16  ;;  %18821 = vmatprep.subr.msk.bf16.mxu1 %vm21579_vm2, %v18819_v15 }
 0x1ab   :  { %v18825_v19 = vpack.c.bf16 %v19493_v17, %v19492_v18 }
 0x1ac   :  { %v19496_v20 = vpop.permute.xlu1 %19495 }
 0x1ad   :  { %17774 = vmatmul.mubr.msk.f32.vlgmr.msra.gmra.mrb[4].mxu1 %vm271_vm1, %v21471_v40  ;;  %v19498_v23 = vunpack.i.h.bf16 %v19496_v20  ;;  %v19497_v24 = vunpack.i.l.bf16 %v19496_v20  ;;  %v21652_v20 = vld [vmem:[%s26347_s1] ss:$0 sm:$0xff] }
 0x1ae   :  { %18824 = vmatpush3.bf16.xpose.msk.msra.mxu1 %vm21579_vm2, %v18819_v15  ;;  %17780 = vmatprep.mubr.msk.f32.mxu1 %vm271_vm1, %v21481_v43 }
 0x1af   :  { %18827 = vmatprep.subr.msk.bf16.mxu1 %vm21579_vm2, %v18825_v19  ;;  %v18831_v32 = vpack.c.bf16 %v19498_v23, %v19497_v24 }
 0x1b0   :  { %v19506_v21 = vpop.permute.xlu1 %19505  ;;  %v19501_v22 = vpop.permute.xlu0 %19500 }
 0x1b1   :  { %v19503_v25 = vunpack.i.h.bf16 %v19501_v22  ;;  %v19502_v26 = vunpack.i.l.bf16 %v19501_v22  ;;  %v19508_v38 = vunpack.i.h.bf16 %v19506_v21  ;;  %v19507_v39 = vunpack.i.l.bf16 %v19506_v21 }
 0x1b3   :  { %v18837_v29 = vpack.c.bf16 %v19503_v25, %v19502_v26  ;;  %v18843_v47 = vpack.c.bf16 %v19508_v38, %v19507_v39 }
 0x1b4   :  { %v19516_v30 = vpop.permute.xlu1 %19515  ;;  %v19511_v31 = vpop.permute.xlu0 %19510 }
 0x1b5   :  { %v19513_v33 = vunpack.i.h.bf16 %v19511_v31  ;;  %v19512_v34 = vunpack.i.l.bf16 %v19511_v31  ;;  %17781 = vmatmul.mubr.msk.f32.vlgmr.msra.gmra.mrb[6].mxu1 %vm271_vm1, %v21475_v41  ;;  %18839 = vmatprep.subr.msk.bf16.mxu0 %vm21579_vm2, %v18837_v29  ;;  %v19518_v56 = vunpack.i.h.bf16 %v19516_v30  ;;  %v19517_v58 = vunpack.i.l.bf16 %v19516_v30  ;;  %v21667_v31 = vld [vmem:[%s26347_s1 + $0x1] ss:$0 sm:$0xff] }
 0x1b6   :  { %18830 = vmatpush3.bf16.xpose.msk.msra.mxu1 %vm21579_vm2, %v18825_v19  ;;  %17787 = vmatprep.mubr.msk.f32.mxu1 %vm271_vm1, %v21485_v46  ;;  %26479 = vst [vmem:[#allocation22_spill] sm:$0xff] %v21667_v31 }
 0x1b7   :  { %v18849_v36 = vpack.c.bf16 %v19513_v33, %v19512_v34  ;;  %18842 = vmatpush3.bf16.xpose.msk.msra.mxu0 %vm21579_vm2, %v18837_v29  ;;  %18833 = vmatprep.subr.msk.bf16.mxu1 %vm21579_vm2, %v18831_v32  ;;  %v18855_v8 = vpack.c.bf16 %v19518_v56, %v19517_v58 }
 0x1b8   :  { %v19521_v37 = vpop.permute.xlu1 %19520  ;;  %v19526_v9 = vpop.permute.xlu0 %19525 }
 0x1b9   :  { %18851 = vmatprep.subr.msk.bf16.mxu0 %vm21579_vm2, %v18849_v36  ;;  %v19523_v44 = vunpack.i.h.bf16 %v19521_v37  ;;  %v19522_v45 = vunpack.i.l.bf16 %v19521_v37  ;;  %v19528_v12 = vunpack.i.h.bf16 %v19526_v9  ;;  %v19527_v13 = vunpack.i.l.bf16 %v19526_v9 }
 0x1bb   :  { %v18861_v54 = vpack.c.bf16 %v19523_v44, %v19522_v45  ;;  %v18865_v14 = vpack.c.bf16 %v19528_v12, %v19527_v13  ;;  %v21680_v44 = vld [vmem:[%s26347_s1 + $0x2] ss:$0 sm:$0xff]  ;;  %v21685_v45 = vld [vmem:[%s26347_s1 + $0x4] ss:$0 sm:$0xff] }
 0x1bc   :  { %v19531_v49 = vpop.permute.xlu1 %19530  ;;  %26480 = vst [vmem:[#allocation23_spill] sm:$0xff] %v21680_v44  ;;  %26481 = vst [vmem:[#allocation24_spill] sm:$0xff] %v21685_v45 }
 0x1bd   :  { %17788 = vmatmul.mubr.msk.f32.vlgmr.msra.gmra.mrb[8].mxu1 %vm271_vm1, %v21491_v50  ;;  %v19533_v61 = vunpack.i.h.bf16 %v19531_v49  ;;  %v19532_v7 = vunpack.i.l.bf16 %v19531_v49 }
 0x1be   :  { %17802 = vmatmul.mubr.msk.f32.vlgmr.msra.gmra.mrb[12].mxu0 %vm271_vm1, %v21519_v0  ;;  %18836 = vmatpush3.bf16.xpose.msk.msra.mxu1 %vm21579_vm2, %v18831_v32 }
 0x1bf   :  { %17794 = vmatprep.mubr.msk.f32.mxu1 %vm271_vm1, %v21495_v51  ;;  %18854 = vmatpush3.bf16.xpose.msk.msra.mxu0 %vm21579_vm2, %v18849_v36  ;;  %v21631_v11 = vpack.c.bf16 %v19533_v61, %v19532_v7 }
 0x1c0   :  { %17815 = vmatprep.mubr.msk.f32.mxu0 %vm271_vm1, %v21517_v63  ;;  %18845 = vmatprep.subr.msk.bf16.mxu1 %vm21579_vm2, %v18843_v47  ;;  %v19536_v15 = vpop.permute.xlu1 %19535 }
 0x1c1   :  { %18862 = vmatprep.subr.bf16.mxu0 %v18861_v54  ;;  %v19538_v16 = vunpack.i.h.bf16 %v19536_v15  ;;  %v19537_v17 = vunpack.i.l.bf16 %v19536_v15 }
 0x1c3   :  { %v21646_v18 = vpack.c.bf16 %v19538_v16, %v19537_v17 }
 0x1c5   :  { %17795 = vmatmul.mubr.msk.f32.vlgmr.msra.gmra.mrb[10].mxu1 %vm271_vm1, %v21497_v52 }
 0x1c6   :  { %17816 = vmatmul.mubr.msk.f32.vlgmr.msra.gmra.mrb[14].mxu0 %vm271_vm1, %v21527_v2  ;;  %18848 = vmatpush3.bf16.xpose.msk.msra.mxu1 %vm21579_vm2, %v18843_v47 }
 0x1c7   :  { %17808 = vmatprep.mubr.msk.f32.mxu1 %vm271_vm1, %v21505_v55  ;;  %18864 = vmatpush3.bf16.msra.mxu0 %v18861_v54 }
 0x1c8   :  { %18870 = vmatprep.subr.bf16.mxu0 %v21631_v11  ;;  %18857 = vmatprep.subr.msk.bf16.mxu1 %vm21579_vm2, %v18855_v8 }
 0x1cd   :  { %17809 = vmatmul.mubr.msk.f32.vlgmr.msra.gmra.mrb[12].mxu1 %vm271_vm1, %v21513_v60 }
 0x1ce   :  { %18860 = vmatpush3.bf16.xpose.msk.msra.mxu1 %vm21579_vm2, %v18855_v8  ;;  %17822 = vmatprep.mubr.msk.f32.mxu1 %vm271_vm1, %v21515_v62 }
 0x1cf   :  { %18866 = vmatprep.subr.bf16.mxu1 %v18865_v14 }
 0x1d5   :  { %17823 = vmatmul.mubr.msk.f32.vlgmr.msra.gmra.mrb[14].mxu1 %vm271_vm1, %v21525_v1 }
 0x1d6   :  { %18868 = vmatpush3.bf16.msra.mxu1 %v18865_v14 }
 0x1d7   :  { %18874 = vmatprep.subr.bf16.mxu1 %v21646_v18 }
 0x280   :  { %v17775_v19 = vpop.f32.mrb[4].mxu1 }
 0x281   :  { %v979_v21 = vmul.f32 0.35355338, %v17775_v19  ;;  %v346_v22 = vpop.f32.mrb[5].mxu1  ;;  %v21708_v19 = vld [vmem:[%s26347_s1 + $0x3] ss:$0 sm:$0xff] }
 0x282   :  { %v978_v23 = vmul.f32 0.35355338, %v346_v22  ;;  %26482 = vst [vmem:[#allocation25_spill] sm:$0xff] %v21708_v19 }
 0x283   :  { %v21655_v24 = vadd.f32 %v21652_v20, %v979_v21  ;;  %v21713_v21 = vld [vmem:[%s26347_s1 + $0x6] ss:$0 sm:$0xff] }
 0x284   :  { %v21658_v25 = vadd.f32 %v21652_v20, %v978_v23  ;;  %26483 = vst [vmem:[#allocation26_spill] sm:$0xff] %v21713_v21 }
 0x285   :  { %v1062_v26 = vsel %vm1058_vm3, %v21655_v24, -inf }
 0x286   :  { %1063 = vmax.xlane.f32.xlu1 %v1062_v26  ;;  %v1059_v29 = vsel %vm1058_vm3, %v21658_v25, -inf }
 0x287   :  { %1060 = vmax.xlane.f32.xlu0 %v1059_v29 }
 0x288   :  { %v17782_v30 = vpop.f32.mrb[6].mxu1 }
 0x289   :  { %v981_v32 = vmul.f32 0.35355338, %v17782_v30  ;;  %v435_v33 = vpop.f32.mrb[7].mxu1 }
 0x28a   :  { %v980_v34 = vmul.f32 0.35355338, %v435_v33 }
 0x28b   :  { %v21670_v36 = vadd.f32 %v21667_v31, %v981_v32 }
 0x28c   :  { %v21675_v38 = vadd.f32 %v21667_v31, %v980_v34 }
 0x28d   :  { %v1068_v37 = vsel %vm1058_vm3, %v21670_v36, -inf }
 0x28e   :  { %1069 = vmax.xlane.f32.xlu0 %v1068_v37  ;;  %v1065_v56 = vsel %vm1058_vm3, %v21675_v38, -inf }
 0x290   :  { %v17789_v39 = vpop.f32.mrb[8].mxu1 }
 0x291   :  { %v983_v47 = vmul.f32 0.35355338, %v17789_v39  ;;  %v17803_v49 = vpop.f32.mrb[12].mxu0  ;;  %v524_v54 = vpop.f32.mrb[9].mxu1 }
 0x292   :  { %v987_v58 = vmul.f32 0.35355338, %v17803_v49  ;;  %v982_v61 = vmul.f32 0.35355338, %v524_v54  ;;  %v702_v7 = vpop.f32.mrb[13].mxu0  ;;  %1066 = vmax.xlane.f32.xlu0 %v1065_v56 }
 0x293   :  { %v986_v8 = vmul.f32 0.35355338, %v702_v7  ;;  %v21690_v9 = vadd.f32 %v21680_v44, %v983_v47  ;;  %v21738_v7 = vld [vmem:[%s26347_s1 + $0x5] ss:$0 sm:$0xff] }
 0x294   :  { %v21693_v12 = vadd.f32 %v21680_v44, %v982_v61  ;;  %v21698_v14 = vadd.f32 %v21685_v45, %v987_v58  ;;  %26484 = vst [vmem:[#allocation27_spill] sm:$0xff] %v21738_v7 }
 0x295   :  { %v1074_v13 = vsel %vm1058_vm3, %v21690_v9, -inf  ;;  %v21703_v16 = vadd.f32 %v21685_v45, %v986_v8 }
 0x296   :  { %1075 = vmax.xlane.f32.xlu0 %v1074_v13  ;;  %v1071_v15 = vsel %vm1058_vm3, %v21693_v12, -inf  ;;  %v1086_v29 = vsel %vm1058_vm3, %v21698_v14, -inf }
 0x297   :  { %1072 = vmax.xlane.f32.xlu1 %v1071_v15  ;;  %v1083_v34 = vsel %vm1058_vm3, %v21703_v16, -inf }
 0x298   :  { %v17796_v17 = vpop.f32.mrb[10].mxu1 }
 0x299   :  { %v985_v22 = vmul.f32 0.35355338, %v17796_v17  ;;  %v17817_v23 = vpop.f32.mrb[14].mxu0  ;;  %v613_v26 = vpop.f32.mrb[11].mxu1 }
 0x29a   :  { %v991_v30 = vmul.f32 0.35355338, %v17817_v23  ;;  %v984_v32 = vmul.f32 0.35355338, %v613_v26  ;;  %v880_v33 = vpop.f32.mrb[15].mxu0  ;;  %1087 = vmax.xlane.f32.xlu0 %v1086_v29 }
 0x29b   :  { %v990_v37 = vmul.f32 0.35355338, %v880_v33  ;;  %1084 = vmax.xlane.f32.xlu1 %v1083_v34  ;;  %v21720_v39 = vadd.f32 %v21708_v19, %v985_v22  ;;  %v21757_v33 = vld [vmem:[%s26347_s1 + $0x7] ss:$0 sm:$0xff] }
 0x29c   :  { %v21723_v47 = vadd.f32 %v21708_v19, %v984_v32  ;;  %v21728_v54 = vadd.f32 %v21713_v21, %v991_v30  ;;  %26485 = vst [vmem:[#allocation28_spill] sm:$0xff] %v21757_v33 }
 0x29d   :  { %v1080_v49 = vsel %vm1058_vm3, %v21720_v39, -inf  ;;  %v21733_v58 = vadd.f32 %v21713_v21, %v990_v37 }
 0x29e   :  { %1081 = vmax.xlane.f32.xlu0 %v1080_v49  ;;  %v1077_v56 = vsel %vm1058_vm3, %v21723_v47, -inf  ;;  %v1098_v15 = vsel %vm1058_vm3, %v21728_v54, -inf }
 0x29f   :  { %1078 = vmax.xlane.f32.xlu1 %v1077_v56  ;;  %v1095_v22 = vsel %vm1058_vm3, %v21733_v58, -inf }
 0x2a0   :  { %v17810_v61 = vpop.f32.mrb[12].mxu1 }
 0x2a1   :  { %v989_v8 = vmul.f32 0.35355338, %v17810_v61  ;;  %v791_v13 = vpop.f32.mrb[13].mxu1 }
 0x2a2   :  { %v988_v17 = vmul.f32 0.35355338, %v791_v13  ;;  %1099 = vmax.xlane.f32.xlu0 %v1098_v15  ;;  %v21773_v15 = vpop.permute.xlu1 %19540 }
 0x2a3   :  { %1096 = vmax.xlane.f32.xlu1 %v1095_v22  ;;  %v21745_v23 = vadd.f32 %v21738_v7, %v989_v8 }
 0x2a4   :  { %v21748_v26 = vadd.f32 %v21738_v7, %v988_v17  ;;  %v21775_v17 = vpop.permute.xlu0 %19545 }
 0x2a5   :  { %v1092_v29 = vsel %vm1058_vm3, %v21745_v23, -inf }
 0x2a6   :  { %1093 = vmax.xlane.f32.xlu0 %v1092_v29  ;;  %v1089_v30 = vsel %vm1058_vm3, %v21748_v26, -inf  ;;  %v21777_v22 = vpop.permute.xlu1 %19550 }
 0x2a7   :  { %1090 = vmax.xlane.f32.xlu1 %v1089_v30 }
 0x2a8   :  { %v17824_v32 = vpop.f32.mrb[14].mxu1  ;;  %v21779_v29 = vpop.permute.xlu0 %19555 }
 0x2a9   :  { %v993_v34 = vmul.f32 0.35355338, %v17824_v32  ;;  %v969_v37 = vpop.f32.mrb[15].mxu1 }
 0x2aa   :  { %v992_v61 = vmul.f32 0.35355338, %v969_v37  ;;  %v21781_v30 = vpop.permute.xlu1 %19560 }
 0x2ab   :  { %v21760_v49 = vadd.f32 %v21757_v33, %v993_v34 }
 0x2ac   :  { %v21769_v8 = vadd.f32 %v21757_v33, %v992_v61  ;;  %v21783_v32 = vpop.permute.xlu0 %19565 }
 0x2ad   :  { %v1104_v56 = vsel %vm1058_vm3, %v21760_v49, -inf }
 0x2ae   :  { %1105 = vmax.xlane.f32.xlu0 %v1104_v56  ;;  %v1101_v13 = vsel %vm1058_vm3, %v21769_v8, -inf  ;;  %v21785_v34 = vpop.permute.xlu1 %19570 }
 0x2b0   :  { %v21787_v37 = vpop.permute.xlu0 %19575 }
 0x2b8   :  { %1933 = vrot.lane.b32.xlu1 %v21471_v40, %s21317_s22 }
 0x2c4   :  { %1931 = vrot.lane.b32.xlu0 %v21469_v35, %s21317_s22 }
 0x2dc   :  { %1102 = vmax.xlane.f32.xlu1 %v1101_v13 }
 0x313   :  { %v1064_v56 = vpop.xlane.xlu1 %1063 }
 0x314   :  { %v1108_v61 = vsub.f32 %v21655_v24, %v1064_v56  ;;  %v1061_v13 = vpop.xlane.xlu0 %1060 }
 0x315   :  { %v1107_v27 = vsub.f32 %v21658_v25, %v1061_v13 }
 0x316   :  { %v1125_v28 = vmul.f32 1.442695, %v1108_v61 }
 0x317   :  { %v1123_v35 = vmul.f32 1.442695, %v1107_v27 }
 0x318   :  { %20391 = vpow2.f32 %v1125_v28 }
 0x319   :  { %20393 = vpow2.f32 %v1123_v35 }
 0x31b   :  { %v1070_v40 = vpop.xlane.xlu0 %1069 }
 0x31c   :  { %v1110_v33 = vsub.f32 %v21670_v36, %v1070_v40 }
 0x31e   :  { %v1129_v7 = vmul.f32 1.442695, %v1110_v33 }
 0x31f   :  { %v1067_v21 = vpop.xlane.xlu0 %1066 }
 0x320   :  { %20395 = vpow2.f32 %v1129_v7  ;;  %v1109_v19 = vsub.f32 %v21675_v38, %v1067_v21 }
 0x322   :  { %v21793_v31 = vpop.eup %20391  ;;  %v1127_v45 = vmul.f32 1.442695, %v1109_v19 }
 0x323   :  { %v21795_v44 = vpop.eup %20393  ;;  %v1076_v24 = vpop.xlane.xlu0 %1075  ;;  %v1158_v25 = vsel %vm1058_vm3, %v21793_v31, 0.0 }
 0x324   :  { %20397 = vpow2.f32 %v1127_v45  ;;  %v1112_v27 = vsub.f32 %v21690_v9, %v1076_v24  ;;  %v1073_v28 = vpop.xlane.xlu1 %1072  ;;  %1159 = vadd.xlane.f32.xlu0 %v1158_v25  ;;  %v1155_v35 = vsel %vm1058_vm3, %v21795_v44, 0.0 }
 0x325   :  { %v1111_v40 = vsub.f32 %v21693_v12, %v1073_v28  ;;  %1156 = vadd.xlane.f32.xlu1 %v1155_v35 }
 0x326   :  { %v1133_v36 = vmul.f32 1.442695, %v1112_v27 }
 0x327   :  { %v1131_v38 = vmul.f32 1.442695, %v1111_v40  ;;  %v1088_v19 = vpop.xlane.xlu0 %1087 }
 0x328   :  { %20399 = vpow2.f32 %v1133_v36  ;;  %v1116_v21 = vsub.f32 %v21698_v14, %v1088_v19  ;;  %v1085_v7 = vpop.xlane.xlu1 %1084 }
 0x329   :  { %20401 = vpow2.f32 %v1131_v38  ;;  %v1115_v45 = vsub.f32 %v21703_v16, %v1085_v7 }
 0x32a   :  { %v21805_v33 = vpop.eup %20395  ;;  %v1141_v9 = vmul.f32 1.442695, %v1116_v21 }
 0x32b   :  { %v1139_v56 = vmul.f32 1.442695, %v1115_v45  ;;  %v1082_v61 = vpop.xlane.xlu0 %1081  ;;  %v1164_v13 = vsel %vm1058_vm3, %v21805_v33, 0.0 }
 0x32c   :  { %20403 = vpow2.f32 %v1141_v9  ;;  %v1114_v12 = vsub.f32 %v21720_v39, %v1082_v61  ;;  %v1079_v24 = vpop.xlane.xlu1 %1078  ;;  %1165 = vadd.xlane.f32.xlu0 %v1164_v13 }
 0x32d   :  { %20405 = vpow2.f32 %v1139_v56  ;;  %v1113_v14 = vsub.f32 %v21723_v47, %v1079_v24 }
 0x32e   :  { %v21811_v25 = vpop.eup %20397  ;;  %v1137_v27 = vmul.f32 1.442695, %v1114_v12 }
 0x32f   :  { %v1135_v16 = vmul.f32 1.442695, %v1113_v14  ;;  %v1100_v28 = vpop.xlane.xlu0 %1099  ;;  %v1161_v35 = vsel %vm1058_vm3, %v21811_v25, 0.0 }
 0x330   :  { %20407 = vpow2.f32 %v1137_v27  ;;  %v1120_v40 = vsub.f32 %v21728_v54, %v1100_v28  ;;  %v1097_v36 = vpop.xlane.xlu1 %1096  ;;  %1162 = vadd.xlane.f32.xlu1 %v1161_v35 }
 0x331   :  { %20409 = vpow2.f32 %v1135_v16  ;;  %v1119_v39 = vsub.f32 %v21733_v58, %v1097_v36 }
 0x332   :  { %v21817_v38 = vpop.eup %20399  ;;  %v1149_v19 = vmul.f32 1.442695, %v1120_v40 }
 0x333   :  { %v21819_v47 = vpop.eup %20401  ;;  %v1147_v21 = vmul.f32 1.442695, %v1119_v39  ;;  %v1094_v7 = vpop.xlane.xlu0 %1093  ;;  %v1170_v45 = vsel %vm1058_vm3, %v21817_v38, 0.0 }
 0x334   :  { %20411 = vpow2.f32 %v1149_v19  ;;  %v1118_v9 = vsub.f32 %v21745_v23, %v1094_v7  ;;  %1171 = vadd.xlane.f32.xlu0 %v1170_v45  ;;  %v1167_v54 = vsel %vm1058_vm3, %v21819_v47, 0.0  ;;  %v1091_v19 = vpop.xlane.xlu1 %1090 }
 0x335   :  { %20413 = vpow2.f32 %v1147_v21  ;;  %1168 = vadd.xlane.f32.xlu1 %v1167_v54  ;;  %v1117_v21 = vsub.f32 %v21748_v26, %v1091_v19 }
 0x336   :  { %v21826_v58 = vpop.eup %20403  ;;  %v1145_v56 = vmul.f32 1.442695, %v1118_v9 }
 0x337   :  { %v21828_v61 = vpop.eup %20405  ;;  %v1182_v13 = vsel %vm1058_vm3, %v21826_v58, 0.0  ;;  %v1143_v9 = vmul.f32 1.442695, %v1117_v21 }
 0x338   :  { %20415 = vpow2.f32 %v1145_v56  ;;  %1183 = vadd.xlane.f32.xlu0 %v1182_v13  ;;  %v1179_v12 = vsel %vm1058_vm3, %v21828_v61, 0.0  ;;  %v21870_v26 = vpop.permute.xlu1 %1933 }
 0x339   :  { %1180 = vadd.xlane.f32.xlu1 %v1179_v12  ;;  %20417 = vpow2.f32 %v1143_v9 }
 0x33a   :  { %v21834_v23 = vpop.eup %20407 }
 0x33b   :  { %v21836_v24 = vpop.eup %20409  ;;  %v1176_v14 = vsel %vm1058_vm3, %v21834_v23, 0.0  ;;  %v1106_v7 = vpop.xlane.xlu0 %1105 }
 0x33c   :  { %1177 = vadd.xlane.f32.xlu0 %v1176_v14  ;;  %v1173_v27 = vsel %vm1058_vm3, %v21836_v24, 0.0  ;;  %v1122_v45 = vsub.f32 %v21760_v49, %v1106_v7 }
 0x33d   :  { %1174 = vadd.xlane.f32.xlu1 %v1173_v27 }
 0x33e   :  { %v21842_v16 = vpop.eup %20411  ;;  %v1153_v54 = vmul.f32 1.442695, %v1122_v45 }
 0x33f   :  { %v21844_v28 = vpop.eup %20413  ;;  %v1194_v35 = vsel %vm1058_vm3, %v21842_v16, 0.0 }
 0x340   :  { %1195 = vadd.xlane.f32.xlu0 %v1194_v35  ;;  %v1191_v40 = vsel %vm1058_vm3, %v21844_v28, 0.0  ;;  %20419 = vpow2.f32 %v1153_v54  ;;  %v19578_v54 = vunpack.i.h.bf16 %v21787_v37 }
 0x341   :  { %1192 = vadd.xlane.f32.xlu1 %v1191_v40 }
 0x342   :  { %v21850_v36 = vpop.eup %20415 }
 0x343   :  { %v1188_v39 = vsel %vm1058_vm3, %v21850_v36, 0.0  ;;  %v21860_v56 = vpop.eup %20417 }
 0x344   :  { %1189 = vadd.xlane.f32.xlu0 %v1188_v39  ;;  %v1185_v12 = vsel %vm1058_vm3, %v21860_v56, 0.0  ;;  %v21893_v39 = vpop.permute.xlu0 %1931 }
 0x34a   :  { %v21862_v13 = vpop.eup %20419 }
 0x34b   :  { %v1200_v14 = vsel %vm1058_vm3, %v21862_v13, 0.0 }
 0x352   :  { %2024 = vrot.lane.b32.xlu1 %v21475_v41, %s21317_s22 }
 0x35a   :  { %2022 = vrot.lane.b32.xlu0 %v21481_v43, %s21317_s22 }
 0x369   :  { %v1103_v49 = vpop.xlane.xlu1 %1102 }
 0x36a   :  { %v1121_v27 = vsub.f32 %v21769_v8, %v1103_v49 }
 0x36c   :  { %v1151_v35 = vmul.f32 1.442695, %v1121_v27 }
 0x36e   :  { %20421 = vpow2.f32 %v1151_v35 }
 0x376   :  { %1186 = vadd.xlane.f32.xlu1 %v1185_v12  ;;  %v19577_v12 = vunpack.i.l.bf16 %v21787_v37 }
 0x378   :  { %v21885_v40 = vpop.eup %20421 }
 0x379   :  { %1201 = vadd.xlane.f32.xlu0 %v1200_v14  ;;  %v1197_v8 = vsel %vm1058_vm3, %v21885_v40, 0.0 }
 0x387   :  { %19585 = vrot.lane.b32.xlu1 %v21531_v3, %s21316_s26 }
 0x38f   :  { %19580 = vrot.lane.b32.xlu0 %v21535_v4, %s21316_s26 }
 0x393   :  { %2113 = vrot.lane.b32.xlu0 %v21485_v46, %s21317_s22 }
 0x397   :  { %2204 = vrot.lane.b32.xlu0 %v21495_v51, %s21317_s22 }
 0x39b   :  { %2295 = vrot.lane.b32.xlu0 %v21507_v57, %s21317_s22 }
 0x39f   :  { %2297 = vrot.lane.b32.xlu0 %v21519_v0, %s21317_s22 }
 0x3a3   :  { %19595 = vrot.lane.b32.xlu0 %v21543_v5, %s21316_s26 }
 0x3a7   :  { %2477 = vrot.lane.b32.xlu0 %v21517_v63, %s21317_s22 }
 0x3ab   :  { %2568 = vrot.lane.b32.xlu0 %v21515_v62, %s21317_s22  ;;  %1198 = vadd.xlane.f32.xlu1 %v1197_v8  ;;  %v18877_v8 = vpack.c.bf16 %v19578_v54, %v19577_v12 }
 0x3af   :  { %19605 = vrot.lane.b32.xlu0 %v21489_v48, %s21318_s23 }
 0x3b1   :  { %v1160_v19 = vpop.xlane.xlu0 %1159 }
 0x3b2   :  { %20423 = vrcp.f32 %v1160_v19  ;;  %v1157_v21 = vpop.xlane.xlu1 %1156 }
 0x3b3   :  { %20425 = vrcp.f32 %v1157_v21  ;;  %19620 = vrot.lane.b32.xlu0 %v21535_v4, %s21318_s23 }
 0x3b7   :  { %19630 = vrot.lane.b32.xlu0 %v21547_v6, %s21318_s23 }
 0x3b9   :  { %v1166_v7 = vpop.xlane.xlu0 %1165 }
 0x3ba   :  { %20427 = vrcp.f32 %v1166_v7  ;;  %v19543_v7 = vunpack.i.h.bf16 %v21773_v15 }
 0x3bb   :  { %19640 = vrot.lane.b32.xlu0 %v21479_v42, %s21319_s25 }
 0x3bc   :  { %v20424_v45 = vpop.eup %20423  ;;  %2115 = vrot.lane.b32.xlu1 %v21491_v50, %s21317_s22 }
 0x3bd   :  { %v20426_v9 = vpop.eup %20425  ;;  %v1163_v14 = vpop.xlane.xlu1 %1162  ;;  %v1220_v27 = vmul.f32 %v20424_v45, %v21793_v31  ;;  %v19542_v45 = vunpack.i.l.bf16 %v21773_v15 }
 0x3be   :  { %20429 = vrcp.f32 %v1163_v14  ;;  %v1219_v49 = vmul.f32 %v20426_v9, %v21795_v44 }
 0x3bf   :  { %19650 = vrot.lane.b32.xlu0 %v21501_v53, %s21319_s25  ;;  %v18881_v15 = vpack.c.bf16 %v19543_v7, %v19542_v45 }
 0x3c0   :  { %2206 = vrot.lane.b32.xlu1 %v21497_v52, %s21317_s22  ;;  %17829 = vmatprep.mubr.msk.f32.mxu0 %vm1058_vm3, %v1219_v49 }
 0x3c1   :  { %v1172_v35 = vpop.xlane.xlu0 %1171  ;;  %17830 = vmatmul.mubr.msk.f32.vlgmr.msra.gmra.mrb[16].mxu0 %vm1058_vm3, %v1220_v27  ;;  %v19548_v27 = vunpack.i.h.bf16 %v21775_v17 }
 0x3c2   :  { %20431 = vrcp.f32 %v1172_v35  ;;  %18872 = vmatpush3.bf16.msra.mxu0 %v21631_v11  ;;  %v1169_v37 = vpop.xlane.xlu1 %1168  ;;  %v19547_v35 = vunpack.i.l.bf16 %v21775_v17  ;;  %v19558_v17 = vunpack.i.h.bf16 %v21779_v29 }
 0x3c3   :  { %18878 = vmatprep.subr.bf16.mxu0 %v18877_v8  ;;  %20433 = vrcp.f32 %v1169_v37 }
 0x3c4   :  { %19590 = vrot.lane.b32.xlu1 %v21547_v6, %s21316_s26  ;;  %v20428_v19 = vpop.eup %20427 }
 0x3c5   :  { %v1184_v44 = vpop.xlane.xlu0 %1183  ;;  %v1222_v12 = vmul.f32 %v20428_v19, %v21805_v33 }
 0x3c6   :  { %20435 = vrcp.f32 %v1184_v44  ;;  %v1181_v31 = vpop.xlane.xlu1 %1180 }
 0x3c7   :  { %20437 = vrcp.f32 %v1181_v31 }
 0x3c8   :  { %v20430_v21 = vpop.eup %20429  ;;  %2386 = vrot.lane.b32.xlu1 %v21505_v55, %s21317_s22 }
 0x3c9   :  { %v1178_v11 = vpop.xlane.xlu0 %1177  ;;  %v1221_v9 = vmul.f32 %v20430_v21, %v21811_v25  ;;  %v18885_v21 = vpack.c.bf16 %v19548_v27, %v19547_v35 }
 0x3ca   :  { %20439 = vrcp.f32 %v1178_v11  ;;  %v1175_v54 = vpop.xlane.xlu1 %1174 }
 0x3cb   :  { %20441 = vrcp.f32 %v1175_v54  ;;  %17836 = vmatprep.mubr.msk.f32.mxu1 %vm1058_vm3, %v1221_v9  ;;  %v19553_v9 = vunpack.i.h.bf16 %v21777_v22 }
 0x3cc   :  { %v20432_v14 = vpop.eup %20431  ;;  %2388 = vrot.lane.b32.xlu1 %v21513_v60, %s21317_s22  ;;  %17837 = vmatmul.mubr.msk.f32.vlgmr.msra.gmra.mrb[16].mxu1 %vm1058_vm3, %v1222_v12  ;;  %v19568_v12 = vunpack.i.h.bf16 %v21783_v32 }
 0x3cd   :  { %v20434_v49 = vpop.eup %20433  ;;  %18876 = vmatpush3.bf16.msra.mxu1 %v21646_v18  ;;  %v1196_v25 = vpop.xlane.xlu0 %1195  ;;  %v1224_v44 = vmul.f32 %v20432_v14, %v21817_v38  ;;  %v19557_v18 = vunpack.i.l.bf16 %v21779_v29  ;;  %v19552_v29 = vunpack.i.l.bf16 %v21777_v22  ;;  %v19567_v14 = vunpack.i.l.bf16 %v21783_v32 }
 0x3ce   :  { %20443 = vrcp.f32 %v1196_v25  ;;  %18882 = vmatprep.subr.bf16.mxu1 %v18881_v15  ;;  %v1193_v33 = vpop.xlane.xlu1 %1192  ;;  %v1223_v37 = vmul.f32 %v20434_v49, %v21819_v47 }
 0x3cf   :  { %20445 = vrcp.f32 %v1193_v33  ;;  %v18893_v11 = vpack.c.bf16 %v19558_v17, %v19557_v18  ;;  %v18889_v22 = vpack.c.bf16 %v19553_v9, %v19552_v29  ;;  %v18905_v49 = vpack.c.bf16 %v19568_v12, %v19567_v14 }
 0x3d0   :  { %v20436_v31 = vpop.eup %20435  ;;  %2479 = vrot.lane.b32.xlu1 %v21527_v2, %s21317_s22  ;;  %17843 = vmatprep.mubr.msk.f32.mxu0 %vm1058_vm3, %v1223_v37 }
 0x3d1   :  { %v20438_v19 = vpop.eup %20437  ;;  %17844 = vmatmul.mubr.msk.f32.vlgmr.msra.gmra.mrb[18].mxu0 %vm1058_vm3, %v1224_v44  ;;  %v1228_v38 = vmul.f32 %v20436_v31, %v21826_v58  ;;  %v1190_v32 = vpop.xlane.xlu0 %1189  ;;  %v19563_v44 = vunpack.i.h.bf16 %v21781_v30  ;;  %v19562_v31 = vunpack.i.l.bf16 %v21781_v30 }
 0x3d2   :  { %18880 = vmatpush3.bf16.msra.mxu0 %v18877_v8  ;;  %v1227_v47 = vmul.f32 %v20438_v19, %v21828_v61  ;;  %20447 = vrcp.f32 %v1190_v32 }
 0x3d3   :  { %18886 = vmatprep.subr.bf16.mxu0 %v18885_v21 }
 0x3d4   :  { %v20440_v7 = vpop.eup %20439  ;;  %2570 = vrot.lane.b32.xlu1 %v21525_v1, %s21317_s22  ;;  %17857 = vmatprep.mubr.msk.f32.mxu0 %vm1058_vm3, %v1227_v47 }
 0x3d5   :  { %v20442_v45 = vpop.eup %20441  ;;  %17858 = vmatmul.mubr.msk.f32.vlgmr.msra.gmra.mrb[20].mxu0 %vm1058_vm3, %v1228_v38  ;;  %v1226_v58 = vmul.f32 %v20440_v7, %v21834_v23 }
 0x3d6   :  { %18888 = vmatpush3.bf16.msra.mxu0 %v18885_v21  ;;  %v1225_v61 = vmul.f32 %v20442_v45, %v21836_v24  ;;  %v18899_v21 = vpack.c.bf16 %v19563_v44, %v19562_v31 }
 0x3d7   :  { %18895 = vmatprep.subr.msk.bf16.mxu0 %vm21579_vm2, %v18893_v11 }
 0x3d8   :  { %v20444_v8 = vpop.eup %20443  ;;  %19600 = vrot.lane.b32.xlu1 %v21479_v42, %s21318_s23  ;;  %17850 = vmatprep.mubr.msk.f32.mxu1 %vm1058_vm3, %v1225_v61  ;;  %v19573_v61 = vunpack.i.h.bf16 %v21785_v34 }
 0x3d9   :  { %v20446_v54 = vpop.eup %20445  ;;  %17851 = vmatmul.mubr.msk.f32.vlgmr.msra.gmra.mrb[18].mxu1 %vm1058_vm3, %v1226_v58  ;;  %v1232_v23 = vmul.f32 %v20444_v8, %v21842_v16  ;;  %v21983_v16 = vpop.permute.xlu1 %2024  ;;  %v19572_v58 = vunpack.i.l.bf16 %v21785_v34 }
 0x3da   :  { %18884 = vmatpush3.bf16.msra.mxu1 %v18881_v15  ;;  %v1231_v24 = vmul.f32 %v20446_v54, %v21844_v28  ;;  %v2023_v28 = vpop.permute.xlu0 %2022 }
 0x3db   :  { %18890 = vmatprep.subr.bf16.mxu1 %v18889_v22 }
 0x3dc   :  { %19610 = vrot.lane.b32.xlu1 %v21501_v53, %s21318_s23  ;;  %17871 = vmatprep.mubr.msk.f32.mxu0 %vm1058_vm3, %v1231_v24  ;;  %v20448_v25 = vpop.eup %20447 }
 0x3dd   :  { %17872 = vmatmul.mubr.msk.f32.vlgmr.msra.gmra.mrb[22].mxu0 %vm1058_vm3, %v1232_v23  ;;  %v1230_v18 = vmul.f32 %v20448_v25, %v21850_v36  ;;  %v18911_v23 = vpack.c.bf16 %v19573_v61, %v19572_v58 }
 0x3de   :  { %17885 = vmatprep.mubr.msk.f32.mxu0 %vm271_vm1, %v21893_v39 }
 0x3df   :  { %18898 = vmatpush3.bf16.xpose.msk.msra.mxu0 %vm21579_vm2, %v18893_v11 }
 0x3e0   :  { %18907 = vmatprep.subr.msk.bf16.mxu0 %vm21579_vm2, %v18905_v49  ;;  %19615 = vrot.lane.b32.xlu1 %v21511_v59, %s21318_s23 }
 0x3e4   :  { %19625 = vrot.lane.b32.xlu1 %v21531_v3, %s21318_s23 }
 0x3e6   :  { %17886 = vmatmul.mubr.msk.f32.vlgmr.msra.gmra.mrb[24].mxu0 %vm271_vm1, %v21870_v26 }
 0x3e7   :  { %18910 = vmatpush3.bf16.xpose.msk.msra.mxu0 %vm21579_vm2, %v18905_v49 }
 0x3e8   :  { %19635 = vrot.lane.b32.xlu1 %v21543_v5, %s21318_s23 }
 0x3ec   :  { %19645 = vrot.lane.b32.xlu1 %v21489_v48, %s21319_s25 }
 0x3f0   :  { %19655 = vrot.lane.b32.xlu1 %v21511_v59, %s21319_s25 }
 0x403   :  { %v1187_v39 = vpop.xlane.xlu1 %1186 }
 0x404   :  { %20449 = vrcp.f32 %v1187_v39 }
 0x406   :  { %v1202_v26 = vpop.xlane.xlu0 %1201 }
 0x407   :  { %v19586_v38 = vpop.permute.xlu1 %19585  ;;  %20451 = vrcp.f32 %v1202_v26 }
 0x40a   :  { %v19581_v15 = vpop.permute.xlu0 %19580 }
 0x40b   :  { %v19583_v27 = vunpack.i.h.bf16 %v19581_v15  ;;  %v19582_v35 = vunpack.i.l.bf16 %v19581_v15 }
 0x40d   :  { %v18917_v33 = vpack.c.bf16 %v19583_v27, %v19582_v35 }
 0x40e   :  { %v20450_v37 = vpop.eup %20449  ;;  %v2114_v19 = vpop.permute.xlu0 %2113 }
 0x40f   :  { %17899 = vmatprep.mubr.msk.f32.mxu0 %vm271_vm1, %v2114_v19  ;;  %18919 = vmatprep.subr.msk.bf16.mxu0 %vm21579_vm2, %v18917_v33  ;;  %v1229_v17 = vmul.f32 %v20450_v37, %v21860_v56 }
 0x411   :  { %17864 = vmatprep.mubr.msk.f32.mxu1 %vm1058_vm3, %v1229_v17  ;;  %v20452_v9 = vpop.eup %20451 }
 0x412   :  { %17865 = vmatmul.mubr.msk.f32.vlgmr.msra.gmra.mrb[20].mxu1 %vm1058_vm3, %v1230_v18  ;;  %v2205_v30 = vpop.permute.xlu0 %2204  ;;  %v1234_v24 = vmul.f32 %v20452_v9, %v21862_v13  ;;  %v19588_v13 = vunpack.i.h.bf16 %v19586_v38 }
 0x413   :  { %18892 = vmatpush3.bf16.msra.mxu1 %v18889_v22 }
 0x414   :  { %18901 = vmatprep.subr.msk.bf16.mxu1 %vm21579_vm2, %v18899_v21 }
 0x416   :  { %v2296_v47 = vpop.permute.xlu0 %2295 }
 0x41a   :  { %v2298_v45 = vpop.permute.xlu0 %2297 }
 0x41e   :  { %v19596_v36 = vpop.permute.xlu0 %19595 }
 0x41f   :  { %v19598_v15 = vunpack.i.h.bf16 %v19596_v36  ;;  %v19597_v27 = vunpack.i.l.bf16 %v19596_v36 }
 0x421   :  { %v18935_v25 = vpack.c.bf16 %v19598_v15, %v19597_v27 }
 0x422   :  { %v2478_v22 = vpop.permute.xlu0 %2477 }
 0x426   :  { %v2569_v26 = vpop.permute.xlu0 %2568 }
 0x438   :  { %v1199_v7 = vpop.xlane.xlu1 %1198 }
 0x439   :  { %20453 = vrcp.f32 %v1199_v7 }
 0x43c   :  { %v2116_v11 = vpop.permute.xlu1 %2115 }
 0x43d   :  { %17900 = vmatmul.mubr.msk.f32.vlgmr.msra.gmra.mrb[26].mxu0 %vm271_vm1, %v2116_v11 }
 0x43e   :  { %18922 = vmatpush3.bf16.xpose.msk.msra.mxu0 %vm21579_vm2, %v18917_v33  ;;  %17913 = vmatprep.mubr.msk.f32.mxu0 %vm271_vm1, %v2296_v47  ;;  %v19606_v33 = vpop.permute.xlu0 %19605 }
 0x43f   :  { %v19608_v31 = vunpack.i.h.bf16 %v19606_v33  ;;  %v19607_v19 = vunpack.i.l.bf16 %v19606_v33 }
 0x440   :  { %v2207_v56 = vpop.permute.xlu1 %2206 }
 0x441   :  { %v18945_v47 = vpack.c.bf16 %v19608_v31, %v19607_v19 }
 0x443   :  { %v20454_v29 = vpop.eup %20453 }
 0x444   :  { %v19591_v8 = vpop.permute.xlu1 %19590  ;;  %v1233_v54 = vmul.f32 %v20454_v29, %v21885_v40  ;;  %v19587_v40 = vunpack.i.l.bf16 %v19586_v38 }
 0x445   :  { %17914 = vmatmul.mubr.msk.f32.vlgmr.msra.gmra.mrb[28].mxu0 %vm271_vm1, %v2298_v45  ;;  %v19593_v12 = vunpack.i.h.bf16 %v19591_v8  ;;  %v19592_v14 = vunpack.i.l.bf16 %v19591_v8 }
 0x446   :  { %17927 = vmatprep.mubr.msk.f32.mxu0 %vm271_vm1, %v2478_v22  ;;  %17878 = vmatprep.mubr.msk.f32.mxu1 %vm1058_vm3, %v1233_v54  ;;  %v18923_v39 = vpack.c.bf16 %v19588_v13, %v19587_v40 }
 0x447   :  { %v18929_v49 = vpack.c.bf16 %v19593_v12, %v19592_v14  ;;  %17879 = vmatmul.mubr.msk.f32.vlgmr.msra.gmra.mrb[22].mxu1 %vm1058_vm3, %v1234_v24 }
 0x448   :  { %18904 = vmatpush3.bf16.xpose.msk.msra.mxu1 %vm21579_vm2, %v18899_v21  ;;  %17892 = vmatprep.mubr.msk.f32.mxu1 %vm271_vm1, %v2023_v28  ;;  %v2387_v34 = vpop.permute.xlu1 %2386 }
 0x449   :  { %18913 = vmatprep.subr.msk.bf16.mxu1 %vm21579_vm2, %v18911_v23  ;;  %18931 = vmatprep.subr.msk.bf16.mxu0 %vm21579_vm2, %v18929_v49 }
 0x44a   :  { %18934 = vmatpush3.bf16.xpose.msk.msra.mxu0 %vm21579_vm2, %v18929_v49 }
 0x44c   :  { %v2389_v32 = vpop.permute.xlu1 %2388 }
 0x44f   :  { %17893 = vmatmul.mubr.msk.f32.vlgmr.msra.gmra.mrb[24].mxu1 %vm271_vm1, %v21983_v16 }
 0x450   :  { %18916 = vmatpush3.bf16.xpose.msk.msra.mxu1 %vm21579_vm2, %v18911_v23  ;;  %17906 = vmatprep.mubr.msk.f32.mxu1 %vm271_vm1, %v2205_v30  ;;  %v2480_v28 = vpop.permute.xlu1 %2479 }
 0x451   :  { %18925 = vmatprep.subr.msk.bf16.mxu1 %vm21579_vm2, %v18923_v39  ;;  %17928 = vmatmul.mubr.msk.f32.vlgmr.msra.gmra.mrb[30].mxu0 %vm271_vm1, %v2480_v28 }
 0x454   :  { %v2571_v35 = vpop.permute.xlu1 %2570 }
 0x457   :  { %17907 = vmatmul.mubr.msk.f32.vlgmr.msra.gmra.mrb[26].mxu1 %vm271_vm1, %v2207_v56 }
 0x458   :  { %18928 = vmatpush3.bf16.xpose.msk.msra.mxu1 %vm21579_vm2, %v18923_v39  ;;  %17920 = vmatprep.mubr.msk.f32.mxu1 %vm271_vm1, %v2387_v34  ;;  %v19601_v16 = vpop.permute.xlu1 %19600 }
 0x459   :  { %v19603_v37 = vunpack.i.h.bf16 %v19601_v16  ;;  %v19602_v44 = vunpack.i.l.bf16 %v19601_v16  ;;  %18937 = vmatprep.subr.msk.bf16.mxu1 %vm21579_vm2, %v18935_v25 }
 0x45b   :  { %v18941_v17 = vpack.c.bf16 %v19603_v37, %v19602_v44  ;;  %v26500_v37 = vld [vmem:[#allocation23_spill] sm:$0xff] }
 0x45c   :  { %v19611_v18 = vpop.permute.xlu1 %19610 }
 0x45d   :  { %v19613_v21 = vunpack.i.h.bf16 %v19611_v18  ;;  %v19612_v30 = vunpack.i.l.bf16 %v19611_v18  ;;  %18942 = vmatprep.subr.bf16.mxu0 %v18941_v17 }
 0x45e   :  { %18944 = vmatpush3.bf16.msra.mxu0 %v18941_v17 }
 0x45f   :  { %17921 = vmatmul.mubr.msk.f32.vlgmr.msra.gmra.mrb[28].mxu1 %vm271_vm1, %v2389_v32  ;;  %v22032_v38 = vpack.c.bf16 %v19613_v21, %v19612_v30 }
 0x460   :  { %18940 = vmatpush3.bf16.xpose.msk.msra.mxu1 %vm21579_vm2, %v18935_v25  ;;  %17934 = vmatprep.mubr.msk.f32.mxu1 %vm271_vm1, %v2569_v26  ;;  %v19616_v7 = vpop.permute.xlu1 %19615 }
 0x461   :  { %18946 = vmatprep.subr.bf16.mxu1 %v18945_v47  ;;  %18950 = vmatprep.subr.bf16.mxu0 %v22032_v38  ;;  %v19618_v45 = vunpack.i.h.bf16 %v19616_v7  ;;  %v19617_v11 = vunpack.i.l.bf16 %v19616_v7  ;;  %v26503_v7 = vld [vmem:[#allocation24_spill] sm:$0xff] }
 0x463   :  { %v22039_v36 = vpack.c.bf16 %v19618_v45, %v19617_v11 }
 0x467   :  { %17935 = vmatmul.mubr.msk.f32.vlgmr.msra.gmra.mrb[30].mxu1 %vm271_vm1, %v2571_v35 }
 0x468   :  { %18948 = vmatpush3.bf16.msra.mxu1 %v18945_v47 }
 0x469   :  { %18954 = vmatprep.subr.bf16.mxu1 %v22039_v36 }
 0x494   :  { %v22042_v56 = vpop.f32.mrb[16].mxu0 }
 0x495   :  { %26486 = vst [vmem:[#allocation29_spill] sm:$0xff] %v22042_v56  ;;  %v22044_v9 = vpop.f32.mrb[17].mxu0 }
 0x496   :  { %26487 = vst [vmem:[#allocation30_spill] sm:$0xff] %v22044_v9 }
 0x49f   :  { %v22046_v29 = vpop.f32.mrb[16].mxu1 }
 0x4a0   :  { %26488 = vst [vmem:[#allocation31_spill] sm:$0xff] %v22046_v29  ;;  %v22048_v61 = vpop.f32.mrb[17].mxu1 }
 0x4a1   :  { %26489 = vst [vmem:[#allocation32_spill] sm:$0xff] %v22048_v61 }
 0x4a4   :  { %v22050_v58 = vpop.f32.mrb[18].mxu0 }
 0x4a5   :  { %26490 = vst [vmem:[#allocation33_spill] sm:$0xff] %v22050_v58  ;;  %v22052_v8 = vpop.f32.mrb[19].mxu0 }
 0x4a6   :  { %26491 = vst [vmem:[#allocation34_spill] sm:$0xff] %v22052_v8 }
 0x4a8   :  { %v22054_v54 = vpop.f32.mrb[20].mxu0 }
 0x4a9   :  { %26492 = vst [vmem:[#allocation35_spill] sm:$0xff] %v22054_v54  ;;  %v22056_v22 = vpop.f32.mrb[21].mxu0 }
 0x4aa   :  { %26493 = vst [vmem:[#allocation36_spill] sm:$0xff] %v22056_v22 }
 0x4ac   :  { %v22058_v12 = vpop.f32.mrb[18].mxu1 }
 0x4ad   :  { %26494 = vst [vmem:[#allocation37_spill] sm:$0xff] %v22058_v12  ;;  %v22060_v14 = vpop.f32.mrb[19].mxu1 }
 0x4ae   :  { %26495 = vst [vmem:[#allocation38_spill] sm:$0xff] %v22060_v14 }
 0x4b0   :  { %v22062_v24 = vpop.f32.mrb[22].mxu0 }
 0x4b1   :  { %26496 = vst [vmem:[#allocation39_spill] sm:$0xff] %v22062_v24  ;;  %v22064_v23 = vpop.f32.mrb[23].mxu0 }
 0x4b2   :  { %26497 = vst [vmem:[#allocation40_spill] sm:$0xff] %v22064_v23 }
 0x4b9   :  { %v17887_v49 = vpop.f32.mrb[24].mxu0 }
 0x4ba   :  { %v2660_v34 = vmul.f32 0.35355338, %v17887_v49  ;;  %v2013_v13 = vpop.f32.mrb[25].mxu0 }
 0x4bb   :  { %v2659_v40 = vmul.f32 0.35355338, %v2013_v13 }
 0x4bc   :  { %v22067_v32 = vadd.f32 %v21652_v20, %v2660_v34 }
 0x4bd   :  { %v22070_v39 = vadd.f32 %v21652_v20, %v2659_v40 }
 0x4be   :  { %v2694_v28 = vsel %vm1058_vm3, %v22067_v32, -inf }
 0x4bf   :  { %2695 = vmax.xlane.f32.xlu1 %v2694_v28  ;;  %v2691_v26 = vsel %vm1058_vm3, %v22070_v39, -inf }
 0x4c0   :  { %2692 = vmax.xlane.f32.xlu0 %v2691_v26 }
 0x4e5   :  { %v22076_v15 = vpop.f32.mrb[20].mxu1 }
 0x4e6   :  { %26498 = vst [vmem:[#allocation41_spill] sm:$0xff] %v22076_v15  ;;  %v22078_v27 = vpop.f32.mrb[21].mxu1 }
 0x4e7   :  { %26499 = vst [vmem:[#allocation42_spill] sm:$0xff] %v22078_v27 }
 0x510   :  { %v17901_v35 = vpop.f32.mrb[26].mxu0 }
 0x511   :  { %v2664_v25 = vmul.f32 0.35355338, %v17901_v35  ;;  %v2195_v33 = vpop.f32.mrb[27].mxu0  ;;  %v26504_v35 = vld [vmem:[#allocation22_spill] sm:$0xff] }
 0x512   :  { %v2663_v16 = vmul.f32 0.35355338, %v2195_v33 }
 0x513   :  { %v22081_v44 = vadd.f32 %v26500_v37, %v2664_v25 }
 0x514   :  { %v22084_v20 = vadd.f32 %v26500_v37, %v2663_v16 }
 0x515   :  { %v2706_v31 = vsel %vm1058_vm3, %v22081_v44, -inf }
 0x516   :  { %2707 = vmax.xlane.f32.xlu0 %v2706_v31  ;;  %v2703_v19 = vsel %vm1058_vm3, %v22084_v20, -inf }
 0x517   :  { %2704 = vmax.xlane.f32.xlu1 %v2703_v19 }
 0x518   :  { %v17915_v17 = vpop.f32.mrb[28].mxu0 }
 0x519   :  { %v2377_v18 = vpop.f32.mrb[29].mxu0  ;;  %v2668_v33 = vmul.f32 0.35355338, %v17915_v17  ;;  %v26505_v17 = vld [vmem:[#allocation25_spill] sm:$0xff] }
 0x51a   :  { %v2667_v21 = vmul.f32 0.35355338, %v2377_v18  ;;  %v22090_v30 = vpop.f32.mrb[22].mxu1 }
 0x51b   :  { %26501 = vst [vmem:[#allocation23_spill] sm:$0xff] %v22090_v30  ;;  %v22092_v47 = vpop.f32.mrb[23].mxu1 }
 0x51c   :  { %26502 = vst [vmem:[#allocation43_spill] sm:$0xff] %v22092_v47  ;;  %v22095_v45 = vadd.f32 %v26503_v7, %v2667_v21 }
 0x51e   :  { %v2715_v11 = vsel %vm1058_vm3, %v22095_v45, -inf }
 0x51f   :  { %2716 = vmax.xlane.f32.xlu1 %v2715_v11  ;;  %v22110_v11 = vadd.f32 %v26503_v7, %v2668_v33 }
 0x522   :  { %v17894_v49 = vpop.f32.mrb[24].mxu1 }
 0x523   :  { %v2662_v34 = vmul.f32 0.35355338, %v17894_v49  ;;  %v2104_v13 = vpop.f32.mrb[25].mxu1 }
 0x524   :  { %v2661_v40 = vmul.f32 0.35355338, %v2104_v13  ;;  %v17929_v28 = vpop.f32.mrb[30].mxu0 }
 0x525   :  { %v2559_v26 = vpop.f32.mrb[31].mxu0  ;;  %v22100_v25 = vadd.f32 %v26504_v35, %v2662_v34  ;;  %v2672_v47 = vmul.f32 0.35355338, %v17929_v28 }
 0x526   :  { %v22105_v37 = vadd.f32 %v26504_v35, %v2661_v40  ;;  %v2671_v49 = vmul.f32 0.35355338, %v2559_v26  ;;  %v2718_v40 = vsel %vm1058_vm3, %v22110_v11, -inf }
 0x527   :  { %v2700_v16 = vsel %vm1058_vm3, %v22100_v25, -inf }
 0x528   :  { %2701 = vmax.xlane.f32.xlu0 %v2700_v16  ;;  %v2697_v21 = vsel %vm1058_vm3, %v22105_v37, -inf }
 0x52a   :  { %v17908_v31 = vpop.f32.mrb[26].mxu1 }
 0x52b   :  { %v2666_v19 = vmul.f32 0.35355338, %v17908_v31  ;;  %v2286_v18 = vpop.f32.mrb[27].mxu1  ;;  %v26506_v31 = vld [vmem:[#allocation26_spill] sm:$0xff] }
 0x52c   :  { %v2665_v34 = vmul.f32 0.35355338, %v2286_v18  ;;  %2698 = vmax.xlane.f32.xlu0 %v2697_v21  ;;  %v22123_v7 = vadd.f32 %v26506_v31, %v2671_v49  ;;  %v22128_v21 = vadd.f32 %v26506_v31, %v2672_v47 }
 0x52d   :  { %v22118_v35 = vadd.f32 %v26505_v17, %v2666_v19 }
 0x52e   :  { %v22113_v13 = vadd.f32 %v26505_v17, %v2665_v34  ;;  %v2727_v19 = vsel %vm1058_vm3, %v22123_v7, -inf  ;;  %v26507_v17 = vld [vmem:[#allocation27_spill] sm:$0xff]  ;;  %v2730_v49 = vsel %vm1058_vm3, %v22128_v21, -inf }
 0x52f   :  { %v2712_v28 = vsel %vm1058_vm3, %v22118_v35, -inf }
 0x530   :  { %2719 = vmax.xlane.f32.xlu0 %v2718_v40  ;;  %v2709_v16 = vsel %vm1058_vm3, %v22113_v13, -inf }
 0x531   :  { %2710 = vmax.xlane.f32.xlu1 %v2709_v16 }
 0x532   :  { %v17922_v26 = vpop.f32.mrb[28].mxu1 }
 0x533   :  { %v2670_v33 = vmul.f32 0.35355338, %v17922_v26  ;;  %v2468_v18 = vpop.f32.mrb[29].mxu1 }
 0x534   :  { %v2669_v34 = vmul.f32 0.35355338, %v2468_v18  ;;  %2713 = vmax.xlane.f32.xlu0 %v2712_v28 }
 0x535   :  { %2728 = vmax.xlane.f32.xlu1 %v2727_v19  ;;  %v22138_v16 = vadd.f32 %v26507_v17, %v2670_v33  ;;  %v22149_v33 = vpop.permute.xlu0 %19620 }
 0x536   :  { %v22133_v40 = vadd.f32 %v26507_v17, %v2669_v34  ;;  %v26508_v34 = vld [vmem:[#allocation28_spill] sm:$0xff]  ;;  %v22151_v17 = vpop.permute.xlu1 %19625 }
 0x537   :  { %v2724_v28 = vsel %vm1058_vm3, %v22138_v16, -inf }
 0x538   :  { %2731 = vmax.xlane.f32.xlu0 %v2730_v49  ;;  %v2721_v47 = vsel %vm1058_vm3, %v22133_v40, -inf }
 0x539   :  { %2722 = vmax.xlane.f32.xlu1 %v2721_v47  ;;  %v22153_v49 = vpop.permute.xlu0 %19630  ;;  %v26509_v47 = vld [vmem:[#allocation18_spill] sm:$0xff] }
 0x53a   :  { %v17936_v31 = vpop.f32.mrb[30].mxu1 }
 0x53b   :  { %v2674_v26 = vmul.f32 0.35355338, %v17936_v31  ;;  %v2650_v18 = vpop.f32.mrb[31].mxu1  ;;  %v22157_v31 = vpop.permute.xlu1 %19635 }
 0x53c   :  { %2725 = vmax.xlane.f32.xlu0 %v2724_v28  ;;  %v2673_v61 = vmul.f32 0.35355338, %v2650_v18 }
 0x53d   :  { %v22145_v19 = vadd.f32 %v26508_v34, %v2674_v26  ;;  %v22159_v28 = vpop.permute.xlu0 %19640 }
 0x53e   :  { %v22172_v29 = vadd.f32 %v26508_v34, %v2673_v61 }
 0x53f   :  { %v2736_v30 = vsel %vm1058_vm3, %v22145_v19, -inf  ;;  %v22161_v26 = vpop.permute.xlu1 %19645 }
 0x540   :  { %2737 = vmax.xlane.f32.xlu0 %v2736_v30  ;;  %v26510_v30 = vld [vmem:[#allocation17_spill] sm:$0xff]  ;;  %v2733_v8 = vsel %vm1058_vm3, %v22172_v29, -inf }
 0x541   :  { %v22163_v23 = vpop.permute.xlu0 %19650 }
 0x543   :  { %v22167_v24 = vpop.permute.xlu1 %19655 }
 0x544   :  { %26511 = vst [vmem:[#allocation24_spill] sm:$0xff] %v22167_v24 }
 0x54a   :  { %3565 = vrot.lane.b32.xlu1 %v26509_v47, %s21320_s7 }
 0x54c   :  { %v2696_v15 = vpop.xlane.xlu1 %2695 }
 0x54d   :  { %v2693_v27 = vpop.xlane.xlu0 %2692  ;;  %v2740_v54 = vsub.f32 %v22067_v32, %v2696_v15 }
 0x54e   :  { %v2739_v22 = vsub.f32 %v22070_v39, %v2693_v27 }
 0x54f   :  { %v2757_v12 = vmul.f32 1.442695, %v2740_v54 }
 0x550   :  { %v2755_v14 = vmul.f32 1.442695, %v2739_v22 }
 0x552   :  { %20455 = vpow2.f32 %v2755_v14 }
 0x553   :  { %20457 = vpow2.f32 %v2757_v12 }
 0x556   :  { %3563 = vrot.lane.b32.xlu0 %v26510_v30, %s21320_s7 }
 0x55c   :  { %v22176_v58 = vpop.eup %20455 }
 0x55d   :  { %v22178_v9 = vpop.eup %20457  ;;  %v2787_v39 = vsel %vm1058_vm3, %v22176_v58, 0.0 }
 0x55e   :  { %v2790_v54 = vsel %vm1058_vm3, %v22178_v9, 0.0 }
 0x56e   :  { %2734 = vmax.xlane.f32.xlu1 %v2733_v8 }
 0x572   :  { %2788 = vadd.xlane.f32.xlu1 %v2787_v39 }
 0x575   :  { %2791 = vadd.xlane.f32.xlu0 %v2790_v54 }
 0x5a3   :  { %v2708_v22 = vpop.xlane.xlu0 %2707 }
 0x5a4   :  { %v2744_v61 = vsub.f32 %v22081_v44, %v2708_v22  ;;  %v2705_v12 = vpop.xlane.xlu1 %2704 }
 0x5a5   :  { %v2743_v14 = vsub.f32 %v22084_v20, %v2705_v12 }
 0x5a6   :  { %v2765_v32 = vmul.f32 1.442695, %v2744_v61 }
 0x5a7   :  { %v2763_v15 = vmul.f32 1.442695, %v2743_v14 }
 0x5a8   :  { %20459 = vpow2.f32 %v2765_v32 }
 0x5a9   :  { %20461 = vpow2.f32 %v2763_v15 }
 0x5ac   :  { %v2717_v39 = vpop.xlane.xlu1 %2716 }
 0x5ad   :  { %v2747_v54 = vsub.f32 %v22095_v45, %v2717_v39 }
 0x5af   :  { %v2771_v14 = vmul.f32 1.442695, %v2747_v54 }
 0x5b2   :  { %v22186_v8 = vpop.eup %20459 }
 0x5b3   :  { %v22188_v27 = vpop.eup %20461  ;;  %v2802_v18 = vsel %vm1058_vm3, %v22186_v8, 0.0 }
 0x5b4   :  { %2803 = vadd.xlane.f32.xlu0 %v2802_v18  ;;  %v2799_v34 = vsel %vm1058_vm3, %v22188_v27, 0.0 }
 0x5b5   :  { %v2702_v44 = vpop.xlane.xlu0 %2701  ;;  %2800 = vadd.xlane.f32.xlu1 %v2799_v34 }
 0x5b6   :  { %v2742_v20 = vsub.f32 %v22100_v25, %v2702_v44 }
 0x5b8   :  { %v2761_v22 = vmul.f32 1.442695, %v2742_v20 }
 0x5b9   :  { %v2699_v61 = vpop.xlane.xlu0 %2698 }
 0x5ba   :  { %20463 = vpow2.f32 %v2761_v22  ;;  %v2741_v12 = vsub.f32 %v22105_v37, %v2699_v61 }
 0x5bc   :  { %v2759_v32 = vmul.f32 1.442695, %v2741_v12 }
 0x5bd   :  { %v2720_v15 = vpop.xlane.xlu0 %2719 }
 0x5be   :  { %20465 = vpow2.f32 %v2759_v32  ;;  %v2748_v18 = vsub.f32 %v22110_v11, %v2720_v15  ;;  %v2711_v56 = vpop.xlane.xlu1 %2710 }
 0x5bf   :  { %v2745_v47 = vsub.f32 %v22113_v13, %v2711_v56  ;;  %20467 = vpow2.f32 %v2771_v14 }
 0x5c0   :  { %v2773_v34 = vmul.f32 1.442695, %v2748_v18 }
 0x5c1   :  { %v2767_v24 = vmul.f32 1.442695, %v2745_v47  ;;  %v2714_v25 = vpop.xlane.xlu0 %2713 }
 0x5c2   :  { %20469 = vpow2.f32 %v2773_v34  ;;  %v2746_v45 = vsub.f32 %v22118_v35, %v2714_v25  ;;  %v2729_v39 = vpop.xlane.xlu1 %2728 }
 0x5c3   :  { %v2751_v44 = vsub.f32 %v22123_v7, %v2729_v39  ;;  %20471 = vpow2.f32 %v2767_v24 }
 0x5c4   :  { %v22201_v37 = vpop.eup %20463  ;;  %v2769_v20 = vmul.f32 1.442695, %v2746_v45 }
 0x5c5   :  { %v2779_v54 = vmul.f32 1.442695, %v2751_v44  ;;  %v2732_v22 = vpop.xlane.xlu0 %2731  ;;  %v2796_v11 = vsel %vm1058_vm3, %v22201_v37, 0.0 }
 0x5c6   :  { %20473 = vpow2.f32 %v2769_v20  ;;  %v2752_v56 = vsub.f32 %v22128_v21, %v2732_v22  ;;  %2797 = vadd.xlane.f32.xlu0 %v2796_v11  ;;  %v2723_v22 = vpop.xlane.xlu1 %2722 }
 0x5c7   :  { %20475 = vpow2.f32 %v2779_v54  ;;  %v2749_v11 = vsub.f32 %v22133_v40, %v2723_v22 }
 0x5c8   :  { %v22206_v13 = vpop.eup %20465  ;;  %v2781_v35 = vmul.f32 1.442695, %v2752_v56 }
 0x5c9   :  { %v2726_v47 = vpop.xlane.xlu0 %2725  ;;  %v2793_v7 = vsel %vm1058_vm3, %v22206_v13, 0.0  ;;  %v22210_v61 = vpop.eup %20467 }
 0x5ca   :  { %20477 = vpow2.f32 %v2781_v35  ;;  %v2750_v24 = vsub.f32 %v22138_v16, %v2726_v47  ;;  %2794 = vadd.xlane.f32.xlu1 %v2793_v7  ;;  %v2811_v32 = vsel %vm1058_vm3, %v22210_v61, 0.0  ;;  %v22244_v35 = vpop.permute.xlu1 %3565  ;;  %v2775_v7 = vmul.f32 1.442695, %v2749_v11 }
 0x5cc   :  { %v22213_v12 = vpop.eup %20469  ;;  %v2777_v14 = vmul.f32 1.442695, %v2750_v24 }
 0x5cd   :  { %v2814_v21 = vsel %vm1058_vm3, %v22213_v12, 0.0  ;;  %v22219_v15 = vpop.eup %20471  ;;  %v2738_v56 = vpop.xlane.xlu0 %2737 }
 0x5ce   :  { %20479 = vpow2.f32 %v2777_v14  ;;  %2815 = vadd.xlane.f32.xlu0 %v2814_v21  ;;  %2812 = vadd.xlane.f32.xlu1 %v2811_v32  ;;  %v2805_v34 = vsel %vm1058_vm3, %v22219_v15, 0.0  ;;  %v2754_v47 = vsub.f32 %v22145_v19, %v2738_v56  ;;  %v19623_v19 = vunpack.i.h.bf16 %v22149_v33 }
 0x5cf   :  { %20481 = vpow2.f32 %v2775_v7 }
 0x5d0   :  { %v22221_v18 = vpop.eup %20473  ;;  %v2785_v14 = vmul.f32 1.442695, %v2754_v47 }
 0x5d1   :  { %v2808_v16 = vsel %vm1058_vm3, %v22221_v18, 0.0  ;;  %v22227_v25 = vpop.eup %20475  ;;  %v22247_v21 = vpop.permute.xlu0 %3563 }
 0x5d2   :  { %2809 = vadd.xlane.f32.xlu0 %v2808_v16  ;;  %2806 = vadd.xlane.f32.xlu1 %v2805_v34  ;;  %v2823_v44 = vsel %vm1058_vm3, %v22227_v25, 0.0  ;;  %20483 = vpow2.f32 %v2785_v14 }
 0x5d4   :  { %v22229_v45 = vpop.eup %20477 }
 0x5d5   :  { %v2826_v39 = vsel %vm1058_vm3, %v22229_v45, 0.0 }
 0x5d6   :  { %2827 = vadd.xlane.f32.xlu0 %v2826_v39  ;;  %2824 = vadd.xlane.f32.xlu1 %v2823_v44 }
 0x5d8   :  { %v22235_v20 = vpop.eup %20479 }
 0x5d9   :  { %v2820_v54 = vsel %vm1058_vm3, %v22235_v20, 0.0  ;;  %v22249_v34 = vpop.eup %20481 }
 0x5da   :  { %2821 = vadd.xlane.f32.xlu0 %v2820_v54  ;;  %v2817_v40 = vsel %vm1058_vm3, %v22249_v34, 0.0  ;;  %v19622_v54 = vunpack.i.l.bf16 %v22149_v33 }
 0x5dc   :  { %v22251_v39 = vpop.eup %20483  ;;  %v18957_v7 = vpack.c.bf16 %v19623_v19, %v19622_v54 }
 0x5dd   :  { %v2832_v56 = vsel %vm1058_vm3, %v22251_v39, 0.0 }
 0x5e7   :  { %3656 = vrot.lane.b32.xlu1 %v21475_v41, %s21320_s7 }
 0x5f0   :  { %3654 = vrot.lane.b32.xlu0 %v21481_v43, %s21320_s7 }
 0x5fb   :  { %v2735_v24 = vpop.xlane.xlu1 %2734 }
 0x5ff   :  { %v2789_v32 = vpop.xlane.xlu1 %2788 }
 0x600   :  { %20485 = vrcp.f32 %v2789_v32 }
 0x602   :  { %v2792_v16 = vpop.xlane.xlu0 %2791 }
 0x603   :  { %20487 = vrcp.f32 %v2792_v16  ;;  %v19633_v16 = vunpack.i.h.bf16 %v22153_v49 }
 0x60a   :  { %v20486_v44 = vpop.eup %20485 }
 0x60b   :  { %2818 = vadd.xlane.f32.xlu1 %v2817_v40  ;;  %v2851_v22 = vmul.f32 %v20486_v44, %v22176_v58  ;;  %v2753_v58 = vsub.f32 %v22172_v29, %v2735_v24  ;;  %v19632_v40 = vunpack.i.l.bf16 %v22153_v49 }
 0x60d   :  { %v20488_v11 = vpop.eup %20487  ;;  %17941 = vmatprep.mubr.msk.f32.mxu0 %vm1058_vm3, %v2851_v22  ;;  %v18965_v54 = vpack.c.bf16 %v19633_v16, %v19632_v40 }
 0x60e   :  { %v2852_v47 = vmul.f32 %v20488_v11, %v22178_v9  ;;  %v2783_v9 = vmul.f32 1.442695, %v2753_v58  ;;  %v19628_v58 = vunpack.i.h.bf16 %v22151_v17 }
 0x60f   :  { %2833 = vadd.xlane.f32.xlu0 %v2832_v56 }
 0x610   :  { %17942 = vmatmul.mubr.msk.f32.vlgmr.msra.gmra.mrb[32].mxu0 %vm1058_vm3, %v2852_v47  ;;  %20489 = vpow2.f32 %v2783_v9  ;;  %v19627_v9 = vunpack.i.l.bf16 %v22151_v17  ;;  %v19643_v17 = vunpack.i.h.bf16 %v22159_v28 }
 0x611   :  { %18952 = vmatpush3.bf16.msra.mxu0 %v22032_v38 }
 0x612   :  { %18958 = vmatprep.subr.bf16.mxu0 %v18957_v7  ;;  %v18961_v16 = vpack.c.bf16 %v19628_v58, %v19627_v9 }
 0x61a   :  { %v22279_v38 = vpop.eup %20489 }
 0x61b   :  { %v2829_v29 = vsel %vm1058_vm3, %v22279_v38, 0.0 }
 0x61c   :  { %19665 = vrot.lane.b32.xlu1 %v21531_v3, %s21319_s25 }
 0x625   :  { %19660 = vrot.lane.b32.xlu0 %v21535_v4, %s21319_s25 }
 0x629   :  { %3745 = vrot.lane.b32.xlu0 %v21485_v46, %s21320_s7 }
 0x62d   :  { %3836 = vrot.lane.b32.xlu0 %v21495_v51, %s21320_s7 }
 0x631   :  { %3927 = vrot.lane.b32.xlu0 %v21507_v57, %s21320_s7 }
 0x635   :  { %3929 = vrot.lane.b32.xlu0 %v21519_v0, %s21320_s7 }
 0x639   :  { %19675 = vrot.lane.b32.xlu0 %v21543_v5, %s21319_s25 }
 0x63d   :  { %4109 = vrot.lane.b32.xlu0 %v21517_v63, %s21320_s7 }
 0x640   :  { %2830 = vadd.xlane.f32.xlu1 %v2829_v29 }
 0x641   :  { %4200 = vrot.lane.b32.xlu0 %v21515_v62, %s21320_s7  ;;  %v2804_v33 = vpop.xlane.xlu0 %2803 }
 0x642   :  { %20491 = vrcp.f32 %v2804_v33  ;;  %v2801_v24 = vpop.xlane.xlu1 %2800 }
 0x643   :  { %20493 = vrcp.f32 %v2801_v24 }
 0x645   :  { %19685 = vrot.lane.b32.xlu0 %v21489_v48, %s21321_s3 }
 0x649   :  { %19700 = vrot.lane.b32.xlu0 %v21535_v4, %s21321_s3 }
 0x64c   :  { %v20492_v14 = vpop.eup %20491 }
 0x64d   :  { %v20494_v32 = vpop.eup %20493  ;;  %19710 = vrot.lane.b32.xlu0 %v21547_v6, %s21321_s3  ;;  %v2856_v19 = vmul.f32 %v20492_v14, %v22186_v8 }
 0x64e   :  { %v2855_v44 = vmul.f32 %v20494_v32, %v22188_v27 }
 0x650   :  { %17955 = vmatprep.mubr.msk.f32.mxu0 %vm1058_vm3, %v2855_v44  ;;  %v19642_v44 = vunpack.i.l.bf16 %v22159_v28 }
 0x651   :  { %19720 = vrot.lane.b32.xlu0 %v21479_v42, %s21322_s27  ;;  %3747 = vrot.lane.b32.xlu1 %v21491_v50, %s21320_s7 }
 0x652   :  { %17956 = vmatmul.mubr.msk.f32.vlgmr.msra.gmra.mrb[34].mxu0 %vm1058_vm3, %v2856_v19 }
 0x653   :  { %18960 = vmatpush3.bf16.msra.mxu0 %v18957_v7  ;;  %v2798_v22 = vpop.xlane.xlu0 %2797 }
 0x654   :  { %18966 = vmatprep.subr.bf16.mxu0 %v18965_v54  ;;  %20495 = vrcp.f32 %v2798_v22 }
 0x655   :  { %19730 = vrot.lane.b32.xlu0 %v21501_v53, %s21322_s27  ;;  %3838 = vrot.lane.b32.xlu1 %v21497_v52, %s21320_s7 }
 0x657   :  { %v2795_v49 = vpop.xlane.xlu1 %2794 }
 0x658   :  { %20497 = vrcp.f32 %v2795_v49  ;;  %v18973_v49 = vpack.c.bf16 %v19643_v17, %v19642_v44 }
 0x659   :  { %19670 = vrot.lane.b32.xlu1 %v21547_v6, %s21319_s25 }
 0x65b   :  { %v2816_v8 = vpop.xlane.xlu0 %2815  ;;  %v2813_v27 = vpop.xlane.xlu1 %2812 }
 0x65c   :  { %20499 = vrcp.f32 %v2816_v8  ;;  %v19638_v8 = vunpack.i.h.bf16 %v22157_v31 }
 0x65d   :  { %20501 = vrcp.f32 %v2813_v27  ;;  %4018 = vrot.lane.b32.xlu1 %v21505_v55, %s21320_s7  ;;  %v19637_v27 = vunpack.i.l.bf16 %v22157_v31 }
 0x65e   :  { %v20496_v47 = vpop.eup %20495 }
 0x65f   :  { %v2810_v11 = vpop.xlane.xlu0 %2809  ;;  %v2807_v56 = vpop.xlane.xlu1 %2806  ;;  %v2854_v14 = vmul.f32 %v20496_v47, %v22201_v37  ;;  %v18969_v31 = vpack.c.bf16 %v19638_v8, %v19637_v27  ;;  %v26512_v8 = vld [vmem:[#allocation24_spill] sm:$0xff] }
 0x660   :  { %20503 = vrcp.f32 %v2810_v11  ;;  %v19658_v27 = vunpack.i.h.bf16 %v26512_v8 }
 0x661   :  { %20505 = vrcp.f32 %v2807_v56  ;;  %4020 = vrot.lane.b32.xlu1 %v21513_v60, %s21320_s7 }
 0x662   :  { %v20498_v7 = vpop.eup %20497 }
 0x663   :  { %v2828_v29 = vpop.xlane.xlu0 %2827  ;;  %v2825_v33 = vpop.xlane.xlu1 %2824  ;;  %v2853_v24 = vmul.f32 %v20498_v7, %v22206_v13 }
 0x664   :  { %20507 = vrcp.f32 %v2828_v29 }
 0x665   :  { %20509 = vrcp.f32 %v2825_v33  ;;  %4111 = vrot.lane.b32.xlu1 %v21527_v2, %s21320_s7  ;;  %17948 = vmatprep.mubr.msk.f32.mxu1 %vm1058_vm3, %v2853_v24  ;;  %v19648_v33 = vunpack.i.h.bf16 %v22161_v26  ;;  %v19647_v24 = vunpack.i.l.bf16 %v22161_v26 }
 0x666   :  { %v20500_v32 = vpop.eup %20499  ;;  %17949 = vmatmul.mubr.msk.f32.vlgmr.msra.gmra.mrb[32].mxu1 %vm1058_vm3, %v2854_v14 }
 0x667   :  { %v20502_v40 = vpop.eup %20501  ;;  %18956 = vmatpush3.bf16.msra.mxu1 %v22039_v36  ;;  %v2860_v13 = vmul.f32 %v20500_v32, %v22213_v12 }
 0x668   :  { %18962 = vmatprep.subr.bf16.mxu1 %v18961_v16  ;;  %v2859_v37 = vmul.f32 %v20502_v40, %v22210_v61  ;;  %v18979_v40 = vpack.c.bf16 %v19648_v33, %v19647_v24 }
 0x669   :  { %4202 = vrot.lane.b32.xlu1 %v21525_v1, %s21320_s7 }
 0x66a   :  { %v20504_v19 = vpop.eup %20503  ;;  %17969 = vmatprep.mubr.msk.f32.mxu0 %vm1058_vm3, %v2859_v37 }
 0x66b   :  { %v20506_v22 = vpop.eup %20505  ;;  %17970 = vmatmul.mubr.msk.f32.vlgmr.msra.gmra.mrb[36].mxu0 %vm1058_vm3, %v2860_v13  ;;  %v2858_v36 = vmul.f32 %v20504_v19, %v22221_v18  ;;  %v19653_v18 = vunpack.i.h.bf16 %v22163_v23 }
 0x66c   :  { %18968 = vmatpush3.bf16.msra.mxu0 %v18965_v54  ;;  %v2857_v28 = vmul.f32 %v20506_v22, %v22219_v15  ;;  %v19652_v54 = vunpack.i.l.bf16 %v22163_v23  ;;  %v2822_v23 = vpop.xlane.xlu0 %2821 }
 0x66d   :  { %18975 = vmatprep.subr.msk.bf16.mxu0 %vm21579_vm2, %v18973_v49  ;;  %19680 = vrot.lane.b32.xlu1 %v21479_v42, %s21321_s3  ;;  %20511 = vrcp.f32 %v2822_v23 }
 0x66e   :  { %v20508_v61 = vpop.eup %20507  ;;  %17962 = vmatprep.mubr.msk.f32.mxu1 %vm1058_vm3, %v2857_v28  ;;  %v18985_v56 = vpack.c.bf16 %v19653_v18, %v19652_v54 }
 0x66f   :  { %v20510_v12 = vpop.eup %20509  ;;  %17963 = vmatmul.mubr.msk.f32.vlgmr.msra.gmra.mrb[34].mxu1 %vm1058_vm3, %v2858_v36  ;;  %v2864_v11 = vmul.f32 %v20508_v61, %v22229_v45  ;;  %v19657_v36 = vunpack.i.l.bf16 %v26512_v8 }
 0x670   :  { %18964 = vmatpush3.bf16.msra.mxu1 %v18961_v16  ;;  %v2863_v15 = vmul.f32 %v20510_v12, %v22227_v25  ;;  %v22368_v25 = vpop.permute.xlu1 %3656  ;;  %v3655_v45 = vpop.permute.xlu0 %3654 }
 0x671   :  { %18970 = vmatprep.subr.bf16.mxu1 %v18969_v31  ;;  %19690 = vrot.lane.b32.xlu1 %v21501_v53, %s21321_s3  ;;  %v18991_v54 = vpack.c.bf16 %v19658_v27, %v19657_v36 }
 0x672   :  { %17983 = vmatprep.mubr.msk.f32.mxu0 %vm1058_vm3, %v2863_v15 }
 0x673   :  { %17984 = vmatmul.mubr.msk.f32.vlgmr.msra.gmra.mrb[38].mxu0 %vm1058_vm3, %v2864_v11 }
 0x674   :  { %17997 = vmatprep.mubr.msk.f32.mxu0 %vm271_vm1, %v22247_v21 }
 0x675   :  { %18978 = vmatpush3.bf16.xpose.msk.msra.mxu0 %vm21579_vm2, %v18973_v49  ;;  %19695 = vrot.lane.b32.xlu1 %v21511_v59, %s21321_s3 }
 0x676   :  { %18987 = vmatprep.subr.msk.bf16.mxu0 %vm21579_vm2, %v18985_v56 }
 0x677   :  { %v20512_v9 = vpop.eup %20511 }
 0x678   :  { %v2862_v16 = vmul.f32 %v20512_v9, %v22235_v20 }
 0x679   :  { %19705 = vrot.lane.b32.xlu1 %v21531_v3, %s21321_s3 }
 0x67c   :  { %17998 = vmatmul.mubr.msk.f32.vlgmr.msra.gmra.mrb[40].mxu0 %vm271_vm1, %v22244_v35 }
 0x67d   :  { %18990 = vmatpush3.bf16.xpose.msk.msra.mxu0 %vm21579_vm2, %v18985_v56  ;;  %19715 = vrot.lane.b32.xlu1 %v21543_v5, %s21321_s3 }
 0x681   :  { %19725 = vrot.lane.b32.xlu1 %v21489_v48, %s21322_s27 }
 0x685   :  { %5195 = vrot.lane.b32.xlu1 %v26510_v30, %s21323_s28 }
 0x698   :  { %v2819_v21 = vpop.xlane.xlu1 %2818 }
 0x699   :  { %20513 = vrcp.f32 %v2819_v21 }
 0x69c   :  { %v2834_v35 = vpop.xlane.xlu0 %2833  ;;  %v19666_v44 = vpop.permute.xlu1 %19665 }
 0x69d   :  { %20515 = vrcp.f32 %v2834_v35  ;;  %v19667_v56 = vunpack.i.l.bf16 %v19666_v44 }
 0x6a0   :  { %v19661_v47 = vpop.permute.xlu0 %19660 }
 0x6a1   :  { %v19663_v7 = vunpack.i.h.bf16 %v19661_v47  ;;  %v19662_v58 = vunpack.i.l.bf16 %v19661_v47 }
 0x6a3   :  { %v20514_v29 = vpop.eup %20513  ;;  %v18997_v14 = vpack.c.bf16 %v19663_v7, %v19662_v58 }
 0x6a4   :  { %v3746_v32 = vpop.permute.xlu0 %3745  ;;  %v2861_v30 = vmul.f32 %v20514_v29, %v22249_v34 }
 0x6a5   :  { %18011 = vmatprep.mubr.msk.f32.mxu0 %vm271_vm1, %v3746_v32  ;;  %18999 = vmatprep.subr.msk.bf16.mxu0 %vm21579_vm2, %v18997_v14 }
 0x6a6   :  { %17976 = vmatprep.mubr.msk.f32.mxu1 %vm1058_vm3, %v2861_v30 }
 0x6a7   :  { %17977 = vmatmul.mubr.msk.f32.vlgmr.msra.gmra.mrb[36].mxu1 %vm1058_vm3, %v2862_v16  ;;  %v20516_v22 = vpop.eup %20515 }
 0x6a8   :  { %18972 = vmatpush3.bf16.msra.mxu1 %v18969_v31  ;;  %v3837_v26 = vpop.permute.xlu0 %3836  ;;  %v2866_v18 = vmul.f32 %v20516_v22, %v22251_v39  ;;  %v19668_v39 = vunpack.i.h.bf16 %v19666_v44 }
 0x6a9   :  { %18981 = vmatprep.subr.msk.bf16.mxu1 %vm21579_vm2, %v18979_v40 }
 0x6aa   :  { %v19003_v35 = vpack.c.bf16 %v19668_v39, %v19667_v56 }
 0x6ac   :  { %v3928_v17 = vpop.permute.xlu0 %3927 }
 0x6b0   :  { %v3930_v13 = vpop.permute.xlu0 %3929 }
 0x6b4   :  { %v19676_v20 = vpop.permute.xlu0 %19675 }
 0x6b5   :  { %v19678_v9 = vunpack.i.h.bf16 %v19676_v20  ;;  %v19677_v29 = vunpack.i.l.bf16 %v19676_v20 }
 0x6b7   :  { %v19015_v33 = vpack.c.bf16 %v19678_v9, %v19677_v29  ;;  %v22466_v29 = vld [vmem:[%s26347_s1] ss:$0 sm:$0xff] }
 0x6b8   :  { %v4110_v12 = vpop.permute.xlu0 %4109 }
 0x6bc   :  { %v4201_v58 = vpop.permute.xlu0 %4200 }
 0x6c0   :  { %v19686_v24 = vpop.permute.xlu0 %19685 }
 0x6c1   :  { %v19688_v16 = vunpack.i.h.bf16 %v19686_v24 }
 0x6cd   :  { %v2831_v34 = vpop.xlane.xlu1 %2830 }
 0x6ce   :  { %20517 = vrcp.f32 %v2831_v34 }
 0x6d1   :  { %v3748_v37 = vpop.permute.xlu1 %3747 }
 0x6d2   :  { %18012 = vmatmul.mubr.msk.f32.vlgmr.msra.gmra.mrb[42].mxu0 %vm271_vm1, %v3748_v37 }
 0x6d3   :  { %19002 = vmatpush3.bf16.xpose.msk.msra.mxu0 %vm21579_vm2, %v18997_v14  ;;  %18025 = vmatprep.mubr.msk.f32.mxu0 %vm271_vm1, %v3928_v17 }
 0x6d5   :  { %v3839_v19 = vpop.permute.xlu1 %3838 }
 0x6d8   :  { %v20518_v49 = vpop.eup %20517 }
 0x6d9   :  { %v19671_v28 = vpop.permute.xlu1 %19670  ;;  %v2865_v61 = vmul.f32 %v20518_v49, %v22279_v38 }
 0x6da   :  { %18026 = vmatmul.mubr.msk.f32.vlgmr.msra.gmra.mrb[44].mxu0 %vm271_vm1, %v3930_v13  ;;  %v19673_v31 = vunpack.i.h.bf16 %v19671_v28  ;;  %v19672_v11 = vunpack.i.l.bf16 %v19671_v28 }
 0x6db   :  { %18039 = vmatprep.mubr.msk.f32.mxu0 %vm271_vm1, %v4110_v12  ;;  %17990 = vmatprep.mubr.msk.f32.mxu1 %vm1058_vm3, %v2865_v61 }
 0x6dc   :  { %v19009_v15 = vpack.c.bf16 %v19673_v31, %v19672_v11  ;;  %17991 = vmatmul.mubr.msk.f32.vlgmr.msra.gmra.mrb[38].mxu1 %vm1058_vm3, %v2866_v18 }
 0x6dd   :  { %18984 = vmatpush3.bf16.xpose.msk.msra.mxu1 %vm21579_vm2, %v18979_v40  ;;  %18004 = vmatprep.mubr.msk.f32.mxu1 %vm271_vm1, %v3655_v45  ;;  %v4019_v38 = vpop.permute.xlu1 %4018  ;;  %v19687_v40 = vunpack.i.l.bf16 %v19686_v24 }
 0x6de   :  { %18993 = vmatprep.subr.msk.bf16.mxu1 %vm21579_vm2, %v18991_v54  ;;  %19011 = vmatprep.subr.msk.bf16.mxu0 %vm21579_vm2, %v19009_v15 }
 0x6df   :  { %19014 = vmatpush3.bf16.xpose.msk.msra.mxu0 %vm21579_vm2, %v19009_v15  ;;  %v19025_v13 = vpack.c.bf16 %v19688_v16, %v19687_v40  ;;  %v22518_v16 = vld [vmem:[%s26347_s1 + $0x1] ss:$0 sm:$0xff] }
 0x6e0   :  { %26529 = vst [vmem:[#allocation53_spill] sm:$0xff] %v22518_v16 }
 0x6e1   :  { %v4021_v23 = vpop.permute.xlu1 %4020 }
 0x6e3   :  { %v22402_v21 = vpop.f32.mrb[32].mxu0 }
 0x6e4   :  { %26513 = vst [vmem:[#allocation22_spill] sm:$0xff] %v22402_v21  ;;  %18005 = vmatmul.mubr.msk.f32.vlgmr.msra.gmra.mrb[40].mxu1 %vm271_vm1, %v22368_v25  ;;  %v22406_v45 = vpop.f32.mrb[33].mxu0 }
 0x6e5   :  { %26514 = vst [vmem:[#allocation25_spill] sm:$0xff] %v22406_v45  ;;  %18996 = vmatpush3.bf16.xpose.msk.msra.mxu1 %vm21579_vm2, %v18991_v54  ;;  %18018 = vmatprep.mubr.msk.f32.mxu1 %vm271_vm1, %v3837_v26  ;;  %v4112_v7 = vpop.permute.xlu1 %4111 }
 0x6e6   :  { %19005 = vmatprep.subr.msk.bf16.mxu1 %vm21579_vm2, %v19003_v35  ;;  %18040 = vmatmul.mubr.msk.f32.vlgmr.msra.gmra.mrb[46].mxu0 %vm271_vm1, %v4112_v7 }
 0x6e9   :  { %v4203_v25 = vpop.permute.xlu1 %4202 }
 0x6ec   :  { %18019 = vmatmul.mubr.msk.f32.vlgmr.msra.gmra.mrb[42].mxu1 %vm271_vm1, %v3839_v19 }
 0x6ed   :  { %19008 = vmatpush3.bf16.xpose.msk.msra.mxu1 %vm21579_vm2, %v19003_v35  ;;  %18032 = vmatprep.mubr.msk.f32.mxu1 %vm271_vm1, %v4019_v38  ;;  %v19681_v14 = vpop.permute.xlu1 %19680 }
 0x6ee   :  { %v19683_v32 = vunpack.i.h.bf16 %v19681_v14  ;;  %v19682_v30 = vunpack.i.l.bf16 %v19681_v14  ;;  %19017 = vmatprep.subr.msk.bf16.mxu1 %vm21579_vm2, %v19015_v33 }
 0x6f0   :  { %v19021_v26 = vpack.c.bf16 %v19683_v32, %v19682_v30 }
 0x6f1   :  { %v19691_v17 = vpop.permute.xlu1 %19690 }
 0x6f2   :  { %v19693_v44 = vunpack.i.h.bf16 %v19691_v17  ;;  %v19692_v34 = vunpack.i.l.bf16 %v19691_v17  ;;  %19022 = vmatprep.subr.bf16.mxu0 %v19021_v26 }
 0x6f3   :  { %19024 = vmatpush3.bf16.msra.mxu0 %v19021_v26 }
 0x6f4   :  { %18033 = vmatmul.mubr.msk.f32.vlgmr.msra.gmra.mrb[44].mxu1 %vm271_vm1, %v4021_v23  ;;  %v22423_v37 = vpack.c.bf16 %v19693_v44, %v19692_v34  ;;  %v22487_v34 = vld [vmem:[%s26347_s1 + $0x2] ss:$0 sm:$0xff] }
 0x6f5   :  { %19020 = vmatpush3.bf16.xpose.msk.msra.mxu1 %vm21579_vm2, %v19015_v33  ;;  %18046 = vmatprep.mubr.msk.f32.mxu1 %vm271_vm1, %v4201_v58  ;;  %v19696_v20 = vpop.permute.xlu1 %19695 }
 0x6f6   :  { %19026 = vmatprep.subr.bf16.mxu1 %v19025_v13  ;;  %19030 = vmatprep.subr.bf16.mxu0 %v22423_v37  ;;  %v19698_v19 = vunpack.i.h.bf16 %v19696_v20  ;;  %v19697_v22 = vunpack.i.l.bf16 %v19696_v20 }
 0x6f8   :  { %v22430_v49 = vpack.c.bf16 %v19698_v19, %v19697_v22 }
 0x6fc   :  { %18047 = vmatmul.mubr.msk.f32.vlgmr.msra.gmra.mrb[46].mxu1 %vm271_vm1, %v4203_v25 }
 0x6fd   :  { %19028 = vmatpush3.bf16.msra.mxu1 %v19025_v13 }
 0x6fe   :  { %19034 = vmatprep.subr.bf16.mxu1 %v22430_v49 }
 0x725   :  { %v22433_v8 = vpop.f32.mrb[34].mxu0 }
 0x726   :  { %26515 = vst [vmem:[#allocation26_spill] sm:$0xff] %v22433_v8  ;;  %v22435_v27 = vpop.f32.mrb[35].mxu0 }
 0x727   :  { %26516 = vst [vmem:[#allocation27_spill] sm:$0xff] %v22435_v27 }
 0x739   :  { %v22439_v28 = vpop.f32.mrb[32].mxu1 }
 0x73a   :  { %26517 = vst [vmem:[#allocation28_spill] sm:$0xff] %v22439_v28  ;;  %v22441_v61 = vpop.f32.mrb[33].mxu1 }
 0x73b   :  { %26518 = vst [vmem:[#allocation17_spill] sm:$0xff] %v22441_v61 }
 0x73e   :  { %v22445_v31 = vpop.f32.mrb[36].mxu0 }
 0x73f   :  { %26519 = vst [vmem:[#allocation24_spill] sm:$0xff] %v22445_v31  ;;  %v22447_v11 = vpop.f32.mrb[37].mxu0 }
 0x740   :  { %26520 = vst [vmem:[#allocation44_spill] sm:$0xff] %v22447_v11 }
 0x742   :  { %v22451_v54 = vpop.f32.mrb[34].mxu1 }
 0x743   :  { %26521 = vst [vmem:[#allocation45_spill] sm:$0xff] %v22451_v54  ;;  %v22453_v15 = vpop.f32.mrb[35].mxu1 }
 0x744   :  { %26522 = vst [vmem:[#allocation46_spill] sm:$0xff] %v22453_v15 }
 0x746   :  { %v22457_v39 = vpop.f32.mrb[38].mxu0 }
 0x747   :  { %26523 = vst [vmem:[#allocation47_spill] sm:$0xff] %v22457_v39  ;;  %v22459_v56 = vpop.f32.mrb[39].mxu0 }
 0x748   :  { %26524 = vst [vmem:[#allocation48_spill] sm:$0xff] %v22459_v56 }
 0x74f   :  { %v17999_v35 = vpop.f32.mrb[40].mxu0 }
 0x750   :  { %v4292_v7 = vmul.f32 0.35355338, %v17999_v35  ;;  %v3645_v58 = vpop.f32.mrb[41].mxu0 }
 0x751   :  { %v4291_v9 = vmul.f32 0.35355338, %v3645_v58 }
 0x752   :  { %v22469_v25 = vadd.f32 %v22466_v29, %v4292_v7 }
 0x753   :  { %v22472_v33 = vadd.f32 %v22466_v29, %v4291_v9 }
 0x754   :  { %v4326_v24 = vsel %vm1058_vm3, %v22469_v25, -inf }
 0x755   :  { %4327 = vmax.xlane.f32.xlu1 %v4326_v24  ;;  %v4323_v14 = vsel %vm1058_vm3, %v22472_v33, -inf }
 0x756   :  { %4324 = vmax.xlane.f32.xlu0 %v4323_v14  ;;  %v22506_v14 = vld [vmem:[%s26347_s1 + $0x4] ss:$0 sm:$0xff] }
 0x77a   :  { %v22478_v32 = vpop.f32.mrb[36].mxu1 }
 0x77b   :  { %26525 = vst [vmem:[#allocation49_spill] sm:$0xff] %v22478_v32  ;;  %v22480_v30 = vpop.f32.mrb[37].mxu1 }
 0x77c   :  { %26526 = vst [vmem:[#allocation50_spill] sm:$0xff] %v22480_v30 }
 0x7a5   :  { %v18013_v40 = vpop.f32.mrb[42].mxu0 }
 0x7a6   :  { %v4296_v26 = vmul.f32 0.35355338, %v18013_v40  ;;  %v3827_v17 = vpop.f32.mrb[43].mxu0 }
 0x7a7   :  { %v4295_v44 = vmul.f32 0.35355338, %v3827_v17 }
 0x7a8   :  { %v22490_v13 = vadd.f32 %v22487_v34, %v4296_v26 }
 0x7a9   :  { %v22493_v20 = vadd.f32 %v22487_v34, %v4295_v44 }
 0x7aa   :  { %v4338_v19 = vsel %vm1058_vm3, %v22490_v13, -inf }
 0x7ab   :  { %4339 = vmax.xlane.f32.xlu0 %v4338_v19  ;;  %v4335_v22 = vsel %vm1058_vm3, %v22493_v20, -inf }
 0x7ac   :  { %4336 = vmax.xlane.f32.xlu1 %v4335_v22 }
 0x7ad   :  { %v18027_v35 = vpop.f32.mrb[44].mxu0 }
 0x7ae   :  { %v4009_v7 = vpop.f32.mrb[45].mxu0  ;;  %v4300_v38 = vmul.f32 0.35355338, %v18027_v35  ;;  %v22536_v35 = vld [vmem:[%s26347_s1 + $0x3] ss:$0 sm:$0xff] }
 0x7af   :  { %v4299_v58 = vmul.f32 0.35355338, %v4009_v7  ;;  %v22499_v9 = vpop.f32.mrb[38].mxu1  ;;  %26530 = vst [vmem:[#allocation54_spill] sm:$0xff] %v22536_v35 }
 0x7b0   :  { %26527 = vst [vmem:[#allocation51_spill] sm:$0xff] %v22499_v9  ;;  %v22501_v24 = vpop.f32.mrb[39].mxu1 }
 0x7b1   :  { %26528 = vst [vmem:[#allocation52_spill] sm:$0xff] %v22501_v24  ;;  %v22509_v40 = vadd.f32 %v22506_v14, %v4299_v58 }
 0x7b3   :  { %v4347_v17 = vsel %vm1058_vm3, %v22509_v40, -inf }
 0x7b4   :  { %4348 = vmax.xlane.f32.xlu1 %v4347_v17 }
 0x7b7   :  { %v18006_v44 = vpop.f32.mrb[40].mxu1 }
 0x7b8   :  { %v4294_v19 = vmul.f32 0.35355338, %v18006_v44  ;;  %v3736_v22 = vpop.f32.mrb[41].mxu1 }
 0x7b9   :  { %v4293_v7 = vmul.f32 0.35355338, %v3736_v22  ;;  %v18041_v23 = vpop.f32.mrb[46].mxu0  ;;  %v22529_v22 = vadd.f32 %v22506_v14, %v4300_v38 }
 0x7ba   :  { %v22521_v58 = vadd.f32 %v22518_v16, %v4294_v19  ;;  %v4191_v18 = vpop.f32.mrb[47].mxu0 }
 0x7bb   :  { %v22524_v26 = vadd.f32 %v22518_v16, %v4293_v7  ;;  %v4303_v19 = vmul.f32 0.35355338, %v4191_v18 }
 0x7bc   :  { %v4332_v17 = vsel %vm1058_vm3, %v22521_v58, -inf }
 0x7bd   :  { %4333 = vmax.xlane.f32.xlu0 %v4332_v17  ;;  %v4329_v47 = vsel %vm1058_vm3, %v22524_v26, -inf  ;;  %v4304_v17 = vmul.f32 0.35355338, %v18041_v23 }
 0x7bf   :  { %v18020_v44 = vpop.f32.mrb[42].mxu1 }
 0x7c0   :  { %v4298_v12 = vmul.f32 0.35355338, %v18020_v44  ;;  %v3918_v36 = vpop.f32.mrb[43].mxu1  ;;  %v4350_v44 = vsel %vm1058_vm3, %v22529_v22, -inf }
 0x7c1   :  { %v4297_v24 = vmul.f32 0.35355338, %v3918_v36  ;;  %4330 = vmax.xlane.f32.xlu0 %v4329_v47  ;;  %v22549_v36 = vld [vmem:[%s26347_s1 + $0x6] ss:$0 sm:$0xff] }
 0x7c2   :  { %v22542_v38 = vadd.f32 %v22536_v35, %v4298_v12  ;;  %26531 = vst [vmem:[#allocation55_spill] sm:$0xff] %v22549_v36  ;;  %v22552_v47 = vadd.f32 %v22549_v36, %v4303_v19  ;;  %v22557_v12 = vadd.f32 %v22549_v36, %v4304_v17 }
 0x7c3   :  { %v22539_v7 = vadd.f32 %v22536_v35, %v4297_v24 }
 0x7c4   :  { %v4344_v56 = vsel %vm1058_vm3, %v22542_v38, -inf  ;;  %v4359_v19 = vsel %vm1058_vm3, %v22552_v47, -inf }
 0x7c5   :  { %4351 = vmax.xlane.f32.xlu0 %v4350_v44  ;;  %v4341_v18 = vsel %vm1058_vm3, %v22539_v7, -inf  ;;  %v22566_v44 = vld [vmem:[%s26347_s1 + $0x5] ss:$0 sm:$0xff] }
 0x7c6   :  { %4342 = vmax.xlane.f32.xlu1 %v4341_v18  ;;  %26532 = vst [vmem:[#allocation56_spill] sm:$0xff] %v22566_v44 }
 0x7c7   :  { %v18034_v23 = vpop.f32.mrb[44].mxu1 }
 0x7c8   :  { %v4302_v24 = vmul.f32 0.35355338, %v18034_v23  ;;  %v4100_v9 = vpop.f32.mrb[45].mxu1  ;;  %v4362_v23 = vsel %vm1058_vm3, %v22557_v12, -inf }
 0x7c9   :  { %v4301_v39 = vmul.f32 0.35355338, %v4100_v9  ;;  %4345 = vmax.xlane.f32.xlu0 %v4344_v56 }
 0x7ca   :  { %4360 = vmax.xlane.f32.xlu1 %v4359_v19  ;;  %v22572_v17 = vadd.f32 %v22566_v44, %v4302_v24 }
 0x7cb   :  { %v22569_v18 = vadd.f32 %v22566_v44, %v4301_v39  ;;  %v22583_v39 = vld [vmem:[%s26347_s1 + $0x7] ss:$0 sm:$0xff] }
 0x7cc   :  { %v4356_v32 = vsel %vm1058_vm3, %v22572_v17, -inf  ;;  %26533 = vst [vmem:[#allocation57_spill] sm:$0xff] %v22583_v39 }
 0x7cd   :  { %4363 = vmax.xlane.f32.xlu0 %v4362_v23  ;;  %v4353_v56 = vsel %vm1058_vm3, %v22569_v18, -inf }
 0x7ce   :  { %4354 = vmax.xlane.f32.xlu1 %v4353_v56  ;;  %v22590_v56 = vpop.permute.xlu0 %19700 }
 0x7cf   :  { %v18048_v9 = vpop.f32.mrb[46].mxu1 }
 0x7d0   :  { %v4306_v19 = vmul.f32 0.35355338, %v18048_v9  ;;  %v4282_v30 = vpop.f32.mrb[47].mxu1  ;;  %v22592_v9 = vpop.permute.xlu1 %19705 }
 0x7d1   :  { %4357 = vmax.xlane.f32.xlu0 %v4356_v32  ;;  %v26534_v32 = vld [vmem:[#allocation18_spill] sm:$0xff]  ;;  %v4305_v21 = vmul.f32 0.35355338, %v4282_v30 }
 0x7d2   :  { %v22586_v24 = vadd.f32 %v22583_v39, %v4306_v19  ;;  %v22594_v11 = vpop.permute.xlu0 %19710 }
 0x7d3   :  { %v22613_v48 = vadd.f32 %v22583_v39, %v4305_v21 }
 0x7d4   :  { %v4368_v23 = vsel %vm1058_vm3, %v22586_v24, -inf  ;;  %v22598_v31 = vpop.permute.xlu1 %19715 }
 0x7d5   :  { %4369 = vmax.xlane.f32.xlu0 %v4368_v23  ;;  %v4365_v53 = vsel %vm1058_vm3, %v22613_v48, -inf }
 0x7d6   :  { %v22600_v15 = vpop.permute.xlu0 %19720 }
 0x7d8   :  { %v22602_v54 = vpop.permute.xlu1 %19725 }
 0x7da   :  { %v22604_v19 = vpop.permute.xlu0 %19730 }
 0x7dc   :  { %v22608_v23 = vpop.permute.xlu1 %5195 }
 0x7df   :  { %5197 = vrot.lane.b32.xlu1 %v26534_v32, %s21323_s28 }
 0x7e2   :  { %v4328_v28 = vpop.xlane.xlu1 %4327 }
 0x7e3   :  { %v4325_v61 = vpop.xlane.xlu0 %4324  ;;  %v4372_v8 = vsub.f32 %v22469_v25, %v4328_v28 }
 0x7e4   :  { %v4371_v27 = vsub.f32 %v22472_v33, %v4325_v61 }
 0x7e5   :  { %v4389_v45 = vmul.f32 1.442695, %v4372_v8 }
 0x7e6   :  { %v4387_v32 = vmul.f32 1.442695, %v4371_v27 }
 0x7e8   :  { %20519 = vpow2.f32 %v4387_v32 }
 0x7e9   :  { %20521 = vpow2.f32 %v4389_v45 }
 0x7eb   :  { %19735 = vrot.lane.b32.xlu0 %v21511_v59, %s21322_s27 }
 0x7f2   :  { %v22617_v59 = vpop.eup %20519 }
 0x7f3   :  { %v22619_v44 = vpop.eup %20521  ;;  %v4419_v61 = vsel %vm1058_vm3, %v22617_v59, 0.0 }
 0x7f4   :  { %v4422_v8 = vsel %vm1058_vm3, %v22619_v44, 0.0 }
 0x803   :  { %4366 = vmax.xlane.f32.xlu1 %v4365_v53 }
 0x807   :  { %4420 = vadd.xlane.f32.xlu1 %v4419_v61 }
 0x80a   :  { %4423 = vadd.xlane.f32.xlu0 %v4422_v8 }
 0x838   :  { %v4340_v45 = vpop.xlane.xlu0 %4339 }
 0x839   :  { %v4376_v21 = vsub.f32 %v22490_v13, %v4340_v45  ;;  %v4337_v27 = vpop.xlane.xlu1 %4336 }
 0x83a   :  { %v4375_v28 = vsub.f32 %v22493_v20, %v4337_v27 }
 0x83b   :  { %v4397_v25 = vmul.f32 1.442695, %v4376_v21 }
 0x83c   :  { %v4395_v33 = vmul.f32 1.442695, %v4375_v28 }
 0x83d   :  { %20523 = vpow2.f32 %v4397_v25 }
 0x83e   :  { %20525 = vpow2.f32 %v4395_v33 }
 0x841   :  { %v4349_v8 = vpop.xlane.xlu1 %4348 }
 0x842   :  { %v4379_v45 = vsub.f32 %v22509_v40, %v4349_v8 }
 0x844   :  { %v4403_v25 = vmul.f32 1.442695, %v4379_v45 }
 0x847   :  { %v22627_v53 = vpop.eup %20523 }
 0x848   :  { %v22629_v30 = vpop.eup %20525  ;;  %v4434_v32 = vsel %vm1058_vm3, %v22627_v53, 0.0 }
 0x849   :  { %4435 = vadd.xlane.f32.xlu0 %v4434_v32  ;;  %v4431_v61 = vsel %vm1058_vm3, %v22629_v30, 0.0 }
 0x84a   :  { %v4334_v13 = vpop.xlane.xlu0 %4333  ;;  %4432 = vadd.xlane.f32.xlu1 %v4431_v61 }
 0x84b   :  { %v4374_v20 = vsub.f32 %v22521_v58, %v4334_v13 }
 0x84d   :  { %v4393_v21 = vmul.f32 1.442695, %v4374_v20 }
 0x84e   :  { %v4331_v27 = vpop.xlane.xlu0 %4330 }
 0x84f   :  { %20527 = vpow2.f32 %v4393_v21  ;;  %v4373_v28 = vsub.f32 %v22524_v26, %v4331_v27 }
 0x851   :  { %v4391_v33 = vmul.f32 1.442695, %v4373_v28 }
 0x852   :  { %v4352_v39 = vpop.xlane.xlu0 %4351 }
 0x853   :  { %20529 = vpow2.f32 %v4391_v33  ;;  %v4380_v32 = vsub.f32 %v22529_v22, %v4352_v39  ;;  %v4343_v36 = vpop.xlane.xlu1 %4342 }
 0x854   :  { %v4377_v35 = vsub.f32 %v22539_v7, %v4343_v36  ;;  %20531 = vpow2.f32 %v4403_v25 }
 0x855   :  { %v4405_v61 = vmul.f32 1.442695, %v4380_v32 }
 0x856   :  { %v4399_v16 = vmul.f32 1.442695, %v4377_v35  ;;  %v4346_v58 = vpop.xlane.xlu0 %4345 }
 0x857   :  { %20533 = vpow2.f32 %v4405_v61  ;;  %v4378_v40 = vsub.f32 %v22542_v38, %v4346_v58  ;;  %v4361_v8 = vpop.xlane.xlu1 %4360 }
 0x858   :  { %v4383_v13 = vsub.f32 %v22552_v47, %v4361_v8  ;;  %20535 = vpow2.f32 %v4399_v16 }
 0x859   :  { %v22642_v26 = vpop.eup %20527  ;;  %v4401_v20 = vmul.f32 1.442695, %v4378_v40 }
 0x85a   :  { %v4411_v45 = vmul.f32 1.442695, %v4383_v13  ;;  %v4364_v21 = vpop.xlane.xlu0 %4363  ;;  %v4428_v22 = vsel %vm1058_vm3, %v22642_v26, 0.0 }
 0x85b   :  { %20537 = vpow2.f32 %v4401_v20  ;;  %v4384_v7 = vsub.f32 %v22557_v12, %v4364_v21  ;;  %4429 = vadd.xlane.f32.xlu0 %v4428_v22  ;;  %v4355_v21 = vpop.xlane.xlu1 %4354 }
 0x85c   :  { %20539 = vpow2.f32 %v4411_v45  ;;  %v4381_v22 = vsub.f32 %v22569_v18, %v4355_v21 }
 0x85d   :  { %v22647_v35 = vpop.eup %20529  ;;  %v4413_v38 = vmul.f32 1.442695, %v4384_v7 }
 0x85e   :  { %v4358_v36 = vpop.xlane.xlu0 %4357  ;;  %v4425_v47 = vsel %vm1058_vm3, %v22647_v35, 0.0  ;;  %v22651_v39 = vpop.eup %20531 }
 0x85f   :  { %20541 = vpow2.f32 %v4413_v38  ;;  %v4382_v16 = vsub.f32 %v22572_v17, %v4358_v36  ;;  %4426 = vadd.xlane.f32.xlu1 %v4425_v47  ;;  %v4443_v25 = vsel %vm1058_vm3, %v22651_v39, 0.0  ;;  %v22685_v38 = vpop.permute.xlu1 %5197  ;;  %v4407_v47 = vmul.f32 1.442695, %v4381_v22 }
 0x861   :  { %v22654_v27 = vpop.eup %20533  ;;  %v4409_v28 = vmul.f32 1.442695, %v4382_v16 }
 0x862   :  { %v4446_v12 = vsel %vm1058_vm3, %v22654_v27, 0.0  ;;  %v22660_v33 = vpop.eup %20535  ;;  %v4370_v7 = vpop.xlane.xlu0 %4369 }
 0x863   :  { %20543 = vpow2.f32 %v4409_v28  ;;  %4447 = vadd.xlane.f32.xlu0 %v4446_v12  ;;  %4444 = vadd.xlane.f32.xlu1 %v4443_v25  ;;  %v4437_v61 = vsel %vm1058_vm3, %v22660_v33, 0.0  ;;  %v4386_v36 = vsub.f32 %v22586_v24, %v4370_v7  ;;  %v19703_v24 = vunpack.i.h.bf16 %v22590_v56 }
 0x864   :  { %20545 = vpow2.f32 %v4407_v47 }
 0x865   :  { %v22662_v32 = vpop.eup %20537  ;;  %v4417_v28 = vmul.f32 1.442695, %v4386_v36  ;;  %v19712_v36 = vunpack.i.l.bf16 %v22594_v11 }
 0x866   :  { %v4440_v17 = vsel %vm1058_vm3, %v22662_v32, 0.0  ;;  %v22668_v58 = vpop.eup %20539  ;;  %v22688_v12 = vpop.permute.xlu0 %19735 }
 0x867   :  { %4441 = vadd.xlane.f32.xlu0 %v4440_v17  ;;  %4438 = vadd.xlane.f32.xlu1 %v4437_v61  ;;  %v4455_v13 = vsel %vm1058_vm3, %v22668_v58, 0.0  ;;  %20547 = vpow2.f32 %v4417_v28 }
 0x869   :  { %v22670_v40 = vpop.eup %20541 }
 0x86a   :  { %v4458_v8 = vsel %vm1058_vm3, %v22670_v40, 0.0 }
 0x86b   :  { %4459 = vadd.xlane.f32.xlu0 %v4458_v8  ;;  %4456 = vadd.xlane.f32.xlu1 %v4455_v13  ;;  %v19702_v8 = vunpack.i.l.bf16 %v22590_v56  ;;  %v19713_v56 = vunpack.i.h.bf16 %v22594_v11 }
 0x86d   :  { %v22676_v20 = vpop.eup %20543  ;;  %v19037_v7 = vpack.c.bf16 %v19703_v24, %v19702_v8 }
 0x86e   :  { %v4452_v45 = vsel %vm1058_vm3, %v22676_v20, 0.0 }
 0x86f   :  { %4453 = vadd.xlane.f32.xlu0 %v4452_v45 }
 0x87c   :  { %5288 = vrot.lane.b32.xlu1 %v21475_v41, %s21323_s28 }
 0x885   :  { %5286 = vrot.lane.b32.xlu0 %v21481_v43, %s21323_s28  ;;  %v22690_v43 = vpop.eup %20545 }
 0x886   :  { %v22692_v17 = vpop.eup %20547  ;;  %v4449_v18 = vsel %vm1058_vm3, %v22690_v43, 0.0 }
 0x887   :  { %v4464_v21 = vsel %vm1058_vm3, %v22692_v17, 0.0 }
 0x890   :  { %v4367_v16 = vpop.xlane.xlu1 %4366 }
 0x894   :  { %v4421_v25 = vpop.xlane.xlu1 %4420 }
 0x895   :  { %20549 = vrcp.f32 %v4421_v25 }
 0x897   :  { %v4424_v41 = vpop.xlane.xlu0 %4423 }
 0x898   :  { %20551 = vrcp.f32 %v4424_v41  ;;  %v19708_v41 = vunpack.i.h.bf16 %v22592_v9 }
 0x89f   :  { %v20550_v61 = vpop.eup %20549 }
 0x8a0   :  { %4450 = vadd.xlane.f32.xlu1 %v4449_v18  ;;  %v4483_v13 = vmul.f32 %v20550_v61, %v22617_v59  ;;  %v4385_v59 = vsub.f32 %v22613_v48, %v4367_v16  ;;  %v19707_v18 = vunpack.i.l.bf16 %v22592_v9  ;;  %v19723_v9 = vunpack.i.h.bf16 %v22600_v15 }
 0x8a2   :  { %v20552_v45 = vpop.eup %20551  ;;  %18053 = vmatprep.mubr.msk.f32.mxu0 %vm1058_vm3, %v4483_v13 }
 0x8a3   :  { %v4484_v22 = vmul.f32 %v20552_v45, %v22619_v44  ;;  %v4415_v44 = vmul.f32 1.442695, %v4385_v59  ;;  %v19718_v59 = vunpack.i.h.bf16 %v22598_v31 }
 0x8a4   :  { %4465 = vadd.xlane.f32.xlu0 %v4464_v21  ;;  %v19722_v21 = vunpack.i.l.bf16 %v22600_v15 }
 0x8a5   :  { %18054 = vmatmul.mubr.msk.f32.vlgmr.msra.gmra.mrb[48].mxu0 %vm1058_vm3, %v4484_v22  ;;  %20553 = vpow2.f32 %v4415_v44  ;;  %v19717_v44 = vunpack.i.l.bf16 %v22598_v31 }
 0x8a6   :  { %19032 = vmatpush3.bf16.msra.mxu0 %v22423_v37 }
 0x8a7   :  { %19038 = vmatprep.subr.bf16.mxu0 %v19037_v7  ;;  %v19049_v31 = vpack.c.bf16 %v19718_v59, %v19717_v44 }
 0x8b1   :  { %5377 = vrot.lane.b32.xlu1 %v21485_v46, %s21323_s28  ;;  %v22720_v46 = vpop.eup %20553 }
 0x8b2   :  { %v4461_v48 = vsel %vm1058_vm3, %v22720_v46, 0.0 }
 0x8ba   :  { %19740 = vrot.lane.b32.xlu0 %v21535_v4, %s21322_s27 }
 0x8be   :  { %19745 = vrot.lane.b32.xlu0 %v21531_v3, %s21322_s27 }
 0x8c2   :  { %5468 = vrot.lane.b32.xlu0 %v21495_v51, %s21323_s28 }
 0x8c6   :  { %5559 = vrot.lane.b32.xlu0 %v21507_v57, %s21323_s28 }
 0x8ca   :  { %5561 = vrot.lane.b32.xlu0 %v21519_v0, %s21323_s28 }
 0x8ce   :  { %19755 = vrot.lane.b32.xlu0 %v21543_v5, %s21322_s27 }
 0x8d2   :  { %5741 = vrot.lane.b32.xlu0 %v21517_v63, %s21323_s28 }
 0x8d5   :  { %4462 = vadd.xlane.f32.xlu1 %v4461_v48 }
 0x8d6   :  { %5832 = vrot.lane.b32.xlu0 %v21515_v62, %s21323_s28  ;;  %v4436_v51 = vpop.xlane.xlu0 %4435  ;;  %v19045_v62 = vpack.c.bf16 %v19713_v56, %v19712_v36 }
 0x8d7   :  { %20555 = vrcp.f32 %v4436_v51  ;;  %v4433_v57 = vpop.xlane.xlu1 %4432 }
 0x8d8   :  { %20557 = vrcp.f32 %v4433_v57 }
 0x8e1   :  { %v20556_v0 = vpop.eup %20555 }
 0x8e2   :  { %v20558_v37 = vpop.eup %20557  ;;  %v4488_v63 = vmul.f32 %v20556_v0, %v22627_v53 }
 0x8e3   :  { %v4487_v47 = vmul.f32 %v20558_v37, %v22629_v30 }
 0x8e5   :  { %18067 = vmatprep.mubr.msk.f32.mxu0 %vm1058_vm3, %v4487_v47 }
 0x8e6   :  { %5379 = vrot.lane.b32.xlu1 %v21491_v50, %s21323_s28  ;;  %18068 = vmatmul.mubr.msk.f32.vlgmr.msra.gmra.mrb[50].mxu0 %vm1058_vm3, %v4488_v63  ;;  %v19727_v63 = vunpack.i.l.bf16 %v22602_v54 }
 0x8e7   :  { %19040 = vmatpush3.bf16.msra.mxu0 %v19037_v7  ;;  %v19053_v7 = vpack.c.bf16 %v19723_v9, %v19722_v21 }
 0x8e8   :  { %19046 = vmatprep.subr.bf16.mxu0 %v19045_v62  ;;  %v4430_v16 = vpop.xlane.xlu0 %4429 }
 0x8e9   :  { %20559 = vrcp.f32 %v4430_v16 }
 0x8ea   :  { %5470 = vrot.lane.b32.xlu1 %v21497_v52, %s21323_s28 }
 0x8ec   :  { %v4427_v11 = vpop.xlane.xlu1 %4426 }
 0x8ed   :  { %20561 = vrcp.f32 %v4427_v11 }
 0x8ee   :  { %19750 = vrot.lane.b32.xlu1 %v21547_v6, %s21322_s27 }
 0x8f0   :  { %v4448_v53 = vpop.xlane.xlu0 %4447  ;;  %v4445_v30 = vpop.xlane.xlu1 %4444 }
 0x8f1   :  { %20563 = vrcp.f32 %v4448_v53 }
 0x8f2   :  { %20565 = vrcp.f32 %v4445_v30  ;;  %5650 = vrot.lane.b32.xlu1 %v21505_v55, %s21323_s28 }
 0x8f3   :  { %v20560_v25 = vpop.eup %20559 }
 0x8f4   :  { %v4442_v50 = vpop.xlane.xlu0 %4441  ;;  %v4439_v28 = vpop.xlane.xlu1 %4438  ;;  %v4486_v55 = vmul.f32 %v20560_v25, %v22642_v26 }
 0x8f5   :  { %20567 = vrcp.f32 %v4442_v50 }
 0x8f6   :  { %20569 = vrcp.f32 %v4439_v28  ;;  %5652 = vrot.lane.b32.xlu1 %v21513_v60, %s21323_s28  ;;  %v19041_v60 = vpack.c.bf16 %v19708_v41, %v19707_v18 }
 0x8f7   :  { %v20562_v52 = vpop.eup %20561 }
 0x8f8   :  { %v4460_v61 = vpop.xlane.xlu0 %4459  ;;  %v4457_v24 = vpop.xlane.xlu1 %4456  ;;  %v4485_v8 = vmul.f32 %v20562_v52, %v22647_v35 }
 0x8f9   :  { %20571 = vrcp.f32 %v4460_v61  ;;  %v19738_v61 = vunpack.i.h.bf16 %v22688_v12 }
 0x8fa   :  { %20573 = vrcp.f32 %v4457_v24  ;;  %5743 = vrot.lane.b32.xlu1 %v21527_v2, %s21323_s28  ;;  %18060 = vmatprep.mubr.msk.f32.mxu1 %vm1058_vm3, %v4485_v8  ;;  %v19737_v24 = vunpack.i.l.bf16 %v22688_v12 }
 0x8fb   :  { %v20564_v13 = vpop.eup %20563  ;;  %18061 = vmatmul.mubr.msk.f32.vlgmr.msra.gmra.mrb[48].mxu1 %vm1058_vm3, %v4486_v55 }
 0x8fc   :  { %v20566_v45 = vpop.eup %20565  ;;  %19036 = vmatpush3.bf16.msra.mxu1 %v22430_v49  ;;  %v4492_v35 = vmul.f32 %v20564_v13, %v22654_v27  ;;  %v19071_v21 = vpack.c.bf16 %v19738_v61, %v19737_v24 }
 0x8fd   :  { %19042 = vmatprep.subr.bf16.mxu1 %v19041_v60  ;;  %v4491_v26 = vmul.f32 %v20566_v45, %v22651_v39 }
 0x8fe   :  { %5834 = vrot.lane.b32.xlu1 %v21525_v1, %s21323_s28 }
 0x8ff   :  { %v20568_v2 = vpop.eup %20567  ;;  %18081 = vmatprep.mubr.msk.f32.mxu0 %vm1058_vm3, %v4491_v26 }
 0x900   :  { %v20570_v22 = vpop.eup %20569  ;;  %18082 = vmatmul.mubr.msk.f32.vlgmr.msra.gmra.mrb[52].mxu0 %vm1058_vm3, %v4492_v35  ;;  %v4490_v49 = vmul.f32 %v20568_v2, %v22662_v32  ;;  %v19733_v32 = vunpack.i.h.bf16 %v22604_v19 }
 0x901   :  { %19048 = vmatpush3.bf16.msra.mxu0 %v19045_v62  ;;  %v4489_v15 = vmul.f32 %v20570_v22, %v22660_v33  ;;  %v19732_v33 = vunpack.i.l.bf16 %v22604_v19  ;;  %v4454_v19 = vpop.xlane.xlu0 %4453 }
 0x902   :  { %19055 = vmatprep.subr.msk.bf16.mxu0 %vm21579_vm2, %v19053_v7  ;;  %19760 = vrot.lane.b32.xlu1 %v21479_v42, %s21324_s29  ;;  %20575 = vrcp.f32 %v4454_v19 }
 0x903   :  { %v20572_v1 = vpop.eup %20571  ;;  %18074 = vmatprep.mubr.msk.f32.mxu1 %vm1058_vm3, %v4489_v15  ;;  %v19065_v42 = vpack.c.bf16 %v19733_v32, %v19732_v33 }
 0x904   :  { %v20574_v39 = vpop.eup %20573  ;;  %18075 = vmatmul.mubr.msk.f32.vlgmr.msra.gmra.mrb[50].mxu1 %vm1058_vm3, %v4490_v49  ;;  %v4496_v27 = vmul.f32 %v20572_v1, %v22670_v40 }
 0x905   :  { %19044 = vmatpush3.bf16.msra.mxu1 %v19041_v60  ;;  %v4495_v48 = vmul.f32 %v20574_v39, %v22668_v58  ;;  %v22787_v58 = vpop.permute.xlu1 %5288  ;;  %v5287_v40 = vpop.permute.xlu0 %5286 }
 0x906   :  { %19050 = vmatprep.subr.bf16.mxu1 %v19049_v31 }
 0x907   :  { %18095 = vmatprep.mubr.msk.f32.mxu0 %vm1058_vm3, %v4495_v48 }
 0x908   :  { %18096 = vmatmul.mubr.msk.f32.vlgmr.msra.gmra.mrb[54].mxu0 %vm1058_vm3, %v4496_v27 }
 0x909   :  { %18109 = vmatprep.mubr.msk.f32.mxu0 %vm271_vm1, %v22608_v23 }
 0x90a   :  { %19058 = vmatpush3.bf16.xpose.msk.msra.mxu0 %vm21579_vm2, %v19053_v7 }
 0x90b   :  { %19067 = vmatprep.subr.msk.bf16.mxu0 %vm21579_vm2, %v19065_v42 }
 0x90c   :  { %v20576_v36 = vpop.eup %20575 }
 0x90d   :  { %v4494_v11 = vmul.f32 %v20576_v36, %v22676_v20 }
 0x911   :  { %18110 = vmatmul.mubr.msk.f32.vlgmr.msra.gmra.mrb[56].mxu0 %vm271_vm1, %v22685_v38  ;;  %v19728_v38 = vunpack.i.h.bf16 %v22602_v54 }
 0x912   :  { %19070 = vmatpush3.bf16.xpose.msk.msra.mxu0 %vm21579_vm2, %v19065_v42 }
 0x913   :  { %v19059_v53 = vpack.c.bf16 %v19728_v38, %v19727_v63 }
 0x92d   :  { %v4451_v51 = vpop.xlane.xlu1 %4450 }
 0x92e   :  { %20577 = vrcp.f32 %v4451_v51 }
 0x931   :  { %v4466_v23 = vpop.xlane.xlu0 %4465  ;;  %v5378_v57 = vpop.permute.xlu1 %5377 }
 0x932   :  { %18123 = vmatprep.mubr.msk.f32.mxu0 %vm271_vm1, %v5378_v57  ;;  %20579 = vrcp.f32 %v4466_v23 }
 0x935   :  { %v19741_v0 = vpop.permute.xlu0 %19740 }
 0x936   :  { %v19743_v37 = vunpack.i.h.bf16 %v19741_v0  ;;  %v19742_v56 = vunpack.i.l.bf16 %v19741_v0 }
 0x938   :  { %v20578_v47 = vpop.eup %20577  ;;  %v19077_v62 = vpack.c.bf16 %v19743_v37, %v19742_v56 }
 0x939   :  { %v4493_v16 = vmul.f32 %v20578_v47, %v22690_v43  ;;  %v19746_v30 = vpop.permute.xlu0 %19745 }
 0x93a   :  { %19079 = vmatprep.subr.msk.bf16.mxu0 %vm21579_vm2, %v19077_v62 }
 0x93b   :  { %18088 = vmatprep.mubr.msk.f32.mxu1 %vm1058_vm3, %v4493_v16 }
 0x93c   :  { %18089 = vmatmul.mubr.msk.f32.vlgmr.msra.gmra.mrb[52].mxu1 %vm1058_vm3, %v4494_v11  ;;  %v20580_v41 = vpop.eup %20579 }
 0x93d   :  { %19052 = vmatpush3.bf16.msra.mxu1 %v19049_v31  ;;  %v5469_v50 = vpop.permute.xlu0 %5468  ;;  %v4498_v9 = vmul.f32 %v20580_v41, %v22692_v17  ;;  %v19748_v17 = vunpack.i.h.bf16 %v19746_v30 }
 0x93e   :  { %19061 = vmatprep.subr.msk.bf16.mxu1 %vm21579_vm2, %v19059_v53 }
 0x941   :  { %v5560_v54 = vpop.permute.xlu0 %5559 }
 0x945   :  { %v5562_v43 = vpop.permute.xlu0 %5561 }
 0x949   :  { %v19756_v20 = vpop.permute.xlu0 %19755 }
 0x94a   :  { %v19758_v49 = vunpack.i.h.bf16 %v19756_v20  ;;  %v19757_v15 = vunpack.i.l.bf16 %v19756_v20 }
 0x94c   :  { %v19095_v39 = vpack.c.bf16 %v19758_v49, %v19757_v15  ;;  %v26535_v15 = vld [vmem:[#allocation53_spill] sm:$0xff] }
 0x94d   :  { %v5742_v13 = vpop.permute.xlu0 %5741 }
 0x951   :  { %v5833_v48 = vpop.permute.xlu0 %5832 }
 0x962   :  { %v4463_v28 = vpop.xlane.xlu1 %4462 }
 0x963   :  { %20581 = vrcp.f32 %v4463_v28 }
 0x966   :  { %v5380_v25 = vpop.permute.xlu1 %5379 }
 0x967   :  { %18124 = vmatmul.mubr.msk.f32.vlgmr.msra.gmra.mrb[58].mxu0 %vm271_vm1, %v5380_v25 }
 0x968   :  { %19082 = vmatpush3.bf16.xpose.msk.msra.mxu0 %vm21579_vm2, %v19077_v62  ;;  %18137 = vmatprep.mubr.msk.f32.mxu0 %vm271_vm1, %v5560_v54 }
 0x96a   :  { %v5471_v52 = vpop.permute.xlu1 %5470 }
 0x96d   :  { %v20582_v18 = vpop.eup %20581 }
 0x96e   :  { %v19751_v8 = vpop.permute.xlu1 %19750  ;;  %v4497_v55 = vmul.f32 %v20582_v18, %v22720_v46  ;;  %v19747_v46 = vunpack.i.l.bf16 %v19746_v30 }
 0x96f   :  { %18138 = vmatmul.mubr.msk.f32.vlgmr.msra.gmra.mrb[60].mxu0 %vm271_vm1, %v5562_v43  ;;  %v19753_v60 = vunpack.i.h.bf16 %v19751_v8  ;;  %v19752_v45 = vunpack.i.l.bf16 %v19751_v8 }
 0x970   :  { %18151 = vmatprep.mubr.msk.f32.mxu0 %vm271_vm1, %v5742_v13  ;;  %18102 = vmatprep.mubr.msk.f32.mxu1 %vm1058_vm3, %v4497_v55  ;;  %v19083_v22 = vpack.c.bf16 %v19748_v17, %v19747_v46 }
 0x971   :  { %v19089_v35 = vpack.c.bf16 %v19753_v60, %v19752_v45  ;;  %18103 = vmatmul.mubr.msk.f32.vlgmr.msra.gmra.mrb[54].mxu1 %vm1058_vm3, %v4498_v9 }
 0x972   :  { %19064 = vmatpush3.bf16.xpose.msk.msra.mxu1 %vm21579_vm2, %v19059_v53  ;;  %18116 = vmatprep.mubr.msk.f32.mxu1 %vm271_vm1, %v5287_v40  ;;  %v5651_v12 = vpop.permute.xlu1 %5650 }
 0x973   :  { %19073 = vmatprep.subr.msk.bf16.mxu1 %vm21579_vm2, %v19071_v21  ;;  %19091 = vmatprep.subr.msk.bf16.mxu0 %vm21579_vm2, %v19089_v35 }
 0x974   :  { %19094 = vmatpush3.bf16.xpose.msk.msra.mxu0 %vm21579_vm2, %v19089_v35 }
 0x976   :  { %v5653_v26 = vpop.permute.xlu1 %5652 }
 0x978   :  { %v22821_v2 = vpop.f32.mrb[48].mxu0 }
 0x979   :  { %18117 = vmatmul.mubr.msk.f32.vlgmr.msra.gmra.mrb[56].mxu1 %vm271_vm1, %v22787_v58  ;;  %v22825_v7 = vpop.f32.mrb[49].mxu0 }
 0x97a   :  { %v19809_v59 = vpack.i.bf16 %v22821_v2, %v22825_v7  ;;  %19076 = vmatpush3.bf16.xpose.msk.msra.mxu1 %vm21579_vm2, %v19071_v21  ;;  %18130 = vmatprep.mubr.msk.f32.mxu1 %vm271_vm1, %v5469_v50  ;;  %v5744_v44 = vpop.permute.xlu1 %5743  ;;  %v26549_v2 = vld [vmem:[#allocation28_spill] sm:$0xff]  ;;  %v26550_v7 = vld [vmem:[#allocation17_spill] sm:$0xff] }
 0x97b   :  { %19085 = vmatprep.subr.msk.bf16.mxu1 %vm21579_vm2, %v19083_v22  ;;  %18152 = vmatmul.mubr.msk.f32.vlgmr.msra.gmra.mrb[62].mxu0 %vm271_vm1, %v5744_v44 }
 0x97e   :  { %v5835_v1 = vpop.permute.xlu1 %5834 }
 0x981   :  { %18131 = vmatmul.mubr.msk.f32.vlgmr.msra.gmra.mrb[58].mxu1 %vm271_vm1, %v5471_v52 }
 0x982   :  { %19088 = vmatpush3.bf16.xpose.msk.msra.mxu1 %vm21579_vm2, %v19083_v22  ;;  %18144 = vmatprep.mubr.msk.f32.mxu1 %vm271_vm1, %v5651_v12  ;;  %v19761_v31 = vpop.permute.xlu1 %19760 }
 0x983   :  { %19097 = vmatprep.subr.msk.bf16.mxu1 %vm21579_vm2, %v19095_v39  ;;  %v19763_v27 = vunpack.i.h.bf16 %v19761_v31  ;;  %v19762_v32 = vunpack.i.l.bf16 %v19761_v31 }
 0x985   :  { %v19101_v33 = vpack.c.bf16 %v19763_v27, %v19762_v32 }
 0x987   :  { %19102 = vmatprep.subr.bf16.mxu0 %v19101_v33 }
 0x988   :  { %19104 = vmatpush3.bf16.msra.mxu0 %v19101_v33 }
 0x989   :  { %18145 = vmatmul.mubr.msk.f32.vlgmr.msra.gmra.mrb[60].mxu1 %vm271_vm1, %v5653_v26 }
 0x98a   :  { %19100 = vmatpush3.bf16.xpose.msk.msra.mxu1 %vm21579_vm2, %v19095_v39  ;;  %18158 = vmatprep.mubr.msk.f32.mxu1 %vm271_vm1, %v5833_v48 }
 0x991   :  { %18159 = vmatmul.mubr.msk.f32.vlgmr.msra.gmra.mrb[62].mxu1 %vm271_vm1, %v5835_v1 }
 0x9b9   :  { %v22846_v42 = vpop.f32.mrb[50].mxu0 }
 0x9ba   :  { %v22848_v19 = vpop.f32.mrb[51].mxu0 }
 0x9bb   :  { %v19829_v58 = vpack.i.bf16 %v22846_v42, %v22848_v19  ;;  %v26552_v42 = vld [vmem:[#allocation45_spill] sm:$0xff]  ;;  %v26553_v19 = vld [vmem:[#allocation46_spill] sm:$0xff] }
 0x9ce   :  { %v22852_v40 = vpop.f32.mrb[48].mxu1 }
 0x9cf   :  { %v22854_v51 = vpop.f32.mrb[49].mxu1 }
 0x9d0   :  { %v19814_v23 = vpack.i.bf16 %v22852_v40, %v22854_v51 }
 0x9d3   :  { %v22858_v57 = vpop.f32.mrb[52].mxu0 }
 0x9d4   :  { %v22860_v0 = vpop.f32.mrb[53].mxu0 }
 0x9d5   :  { %v19864_v37 = vpack.i.bf16 %v22858_v57, %v22860_v0 }
 0x9d7   :  { %v22864_v56 = vpop.f32.mrb[50].mxu1 }
 0x9d8   :  { %v22866_v36 = vpop.f32.mrb[51].mxu1 }
 0x9d9   :  { %v19834_v47 = vpack.i.bf16 %v22864_v56, %v22866_v36 }
 0x9db   :  { %v22870_v38 = vpop.f32.mrb[54].mxu0 }
 0x9dc   :  { %v22872_v63 = vpop.f32.mrb[55].mxu0 }
 0x9dd   :  { %v19899_v62 = vpack.i.bf16 %v22870_v38, %v22872_v63 }
 0x9e4   :  { %v18111_v16 = vpop.f32.mrb[56].mxu0 }
 0x9e5   :  { %v5924_v11 = vmul.f32 0.35355338, %v18111_v16  ;;  %v5277_v53 = vpop.f32.mrb[57].mxu0 }
 0x9e6   :  { %v5923_v30 = vmul.f32 0.35355338, %v5277_v53 }
 0x9e7   :  { %v22877_v50 = vadd.f32 %v22466_v29, %v5924_v11 }
 0x9e8   :  { %v22880_v54 = vadd.f32 %v22466_v29, %v5923_v30 }
 0x9e9   :  { %v5958_v28 = vsel %vm1058_vm3, %v22877_v50, -inf }
 0x9ea   :  { %5959 = vmax.xlane.f32.xlu1 %v5958_v28  ;;  %v5955_v43 = vsel %vm1058_vm3, %v22880_v54, -inf }
 0x9eb   :  { %5956 = vmax.xlane.f32.xlu0 %v5955_v43  ;;  %v26536_v43 = vld [vmem:[#allocation54_spill] sm:$0xff] }
 0xa0f   :  { %v22886_v25 = vpop.f32.mrb[52].mxu1 }
 0xa10   :  { %v22888_v20 = vpop.f32.mrb[53].mxu1 }
 0xa11   :  { %v19874_v52 = vpack.i.bf16 %v22886_v25, %v22888_v20  ;;  %v26564_v25 = vld [vmem:[#allocation51_spill] sm:$0xff]  ;;  %v26565_v20 = vld [vmem:[#allocation52_spill] sm:$0xff] }
 0xa3a   :  { %v18125_v41 = vpop.f32.mrb[58].mxu0 }
 0xa3b   :  { %v5928_v18 = vmul.f32 0.35355338, %v18125_v41  ;;  %v5459_v61 = vpop.f32.mrb[59].mxu0 }
 0xa3c   :  { %v5927_v29 = vmul.f32 0.35355338, %v5459_v61 }
 0xa3d   :  { %v22893_v24 = vadd.f32 %v22487_v34, %v5928_v18 }
 0xa3e   :  { %v22896_v8 = vadd.f32 %v22487_v34, %v5927_v29 }
 0xa3f   :  { %v5970_v55 = vsel %vm1058_vm3, %v22893_v24, -inf }
 0xa40   :  { %5971 = vmax.xlane.f32.xlu0 %v5970_v55  ;;  %v5967_v13 = vsel %vm1058_vm3, %v22896_v8, -inf }
 0xa41   :  { %5968 = vmax.xlane.f32.xlu1 %v5967_v13 }
 0xa42   :  { %v18139_v60 = vpop.f32.mrb[60].mxu0 }
 0xa43   :  { %v5641_v45 = vpop.f32.mrb[61].mxu0  ;;  %v5932_v31 = vmul.f32 0.35355338, %v18139_v60 }
 0xa44   :  { %v5931_v9 = vmul.f32 0.35355338, %v5641_v45  ;;  %v22902_v21 = vpop.f32.mrb[54].mxu1 }
 0xa45   :  { %v22904_v35 = vpop.f32.mrb[55].mxu1  ;;  %v22922_v48 = vadd.f32 %v22506_v14, %v5932_v31 }
 0xa46   :  { %v22907_v12 = vadd.f32 %v22506_v14, %v5931_v9  ;;  %v19904_v34 = vpack.i.bf16 %v22902_v21, %v22904_v35  ;;  %v26537_v14 = vld [vmem:[#allocation55_spill] sm:$0xff]  ;;  %v26567_v21 = vld [vmem:[#allocation29_spill] sm:$0xff] }
 0xa47   :  { %v5982_v29 = vsel %vm1058_vm3, %v22922_v48, -inf }
 0xa48   :  { %v5979_v17 = vsel %vm1058_vm3, %v22907_v12, -inf }
 0xa49   :  { %5980 = vmax.xlane.f32.xlu1 %v5979_v17 }
 0xa4c   :  { %v18118_v46 = vpop.f32.mrb[56].mxu1 }
 0xa4d   :  { %v5926_v26 = vmul.f32 0.35355338, %v18118_v46  ;;  %v5368_v22 = vpop.f32.mrb[57].mxu1 }
 0xa4e   :  { %v5925_v44 = vmul.f32 0.35355338, %v5368_v22  ;;  %v18153_v49 = vpop.f32.mrb[62].mxu0  ;;  %v26538_v22 = vld [vmem:[#allocation56_spill] sm:$0xff] }
 0xa4f   :  { %v22914_v1 = vadd.f32 %v26535_v15, %v5926_v26  ;;  %v5823_v39 = vpop.f32.mrb[63].mxu0  ;;  %v5936_v18 = vmul.f32 0.35355338, %v18153_v49 }
 0xa50   :  { %v22917_v27 = vadd.f32 %v26535_v15, %v5925_v44  ;;  %v5935_v30 = vmul.f32 0.35355338, %v5823_v39 }
 0xa51   :  { %v5964_v32 = vsel %vm1058_vm3, %v22914_v1, -inf  ;;  %v22940_v45 = vadd.f32 %v26537_v14, %v5936_v18 }
 0xa52   :  { %5965 = vmax.xlane.f32.xlu0 %v5964_v32  ;;  %v5961_v53 = vsel %vm1058_vm3, %v22917_v27, -inf  ;;  %v22935_v55 = vadd.f32 %v26537_v14, %v5935_v30  ;;  %v26539_v32 = vld [vmem:[#allocation20_spill] sm:$0xff] }
 0xa53   :  { %v5994_v49 = vsel %vm1058_vm3, %v22940_v45, -inf }
 0xa54   :  { %v18132_v33 = vpop.f32.mrb[58].mxu1  ;;  %v5991_v26 = vsel %vm1058_vm3, %v22935_v55, -inf }
 0xa55   :  { %v5930_v16 = vmul.f32 0.35355338, %v18132_v33  ;;  %v5550_v11 = vpop.f32.mrb[59].mxu1  ;;  %v26540_v33 = vld [vmem:[#allocation19_spill] sm:$0xff] }
 0xa56   :  { %v5929_v28 = vmul.f32 0.35355338, %v5550_v11  ;;  %5962 = vmax.xlane.f32.xlu0 %v5961_v53 }
 0xa57   :  { %v22930_v61 = vadd.f32 %v26536_v43, %v5930_v16 }
 0xa58   :  { %v22927_v41 = vadd.f32 %v26536_v43, %v5929_v28  ;;  %v26541_v28 = vld [vmem:[#allocation57_spill] sm:$0xff] }
 0xa59   :  { %v5976_v46 = vsel %vm1058_vm3, %v22930_v61, -inf }
 0xa5a   :  { %5983 = vmax.xlane.f32.xlu0 %v5982_v29  ;;  %v5973_v13 = vsel %vm1058_vm3, %v22927_v41, -inf  ;;  %v26542_v29 = vld [vmem:[#allocation21_spill] sm:$0xff] }
 0xa5b   :  { %5974 = vmax.xlane.f32.xlu1 %v5973_v13 }
 0xa5c   :  { %v18146_v60 = vpop.f32.mrb[60].mxu1 }
 0xa5d   :  { %v5934_v9 = vmul.f32 0.35355338, %v18146_v60  ;;  %v5732_v17 = vpop.f32.mrb[61].mxu1 }
 0xa5e   :  { %5977 = vmax.xlane.f32.xlu0 %v5976_v46  ;;  %v5933_v16 = vmul.f32 0.35355338, %v5732_v17 }
 0xa5f   :  { %5992 = vmax.xlane.f32.xlu1 %v5991_v26  ;;  %v22947_v44 = vadd.f32 %v26538_v22, %v5934_v9 }
 0xa60   :  { %v22958_v11 = vadd.f32 %v26538_v22, %v5933_v16 }
 0xa61   :  { %v5988_v31 = vsel %vm1058_vm3, %v22947_v44, -inf }
 0xa62   :  { %5995 = vmax.xlane.f32.xlu0 %v5994_v49  ;;  %v5985_v30 = vsel %vm1058_vm3, %v22958_v11, -inf }
 0xa64   :  { %v18160_v15 = vpop.f32.mrb[62].mxu1 }
 0xa65   :  { %v5914_v39 = vpop.f32.mrb[63].mxu1  ;;  %v5938_v53 = vmul.f32 0.35355338, %v18160_v15 }
 0xa66   :  { %5989 = vmax.xlane.f32.xlu0 %v5988_v31  ;;  %v5937_v9 = vmul.f32 0.35355338, %v5914_v39 }
 0xa67   :  { %v22963_v43 = vadd.f32 %v26541_v28, %v5938_v53 }
 0xa68   :  { %v22973_v17 = vadd.f32 %v26541_v28, %v5937_v9 }
 0xa69   :  { %v6000_v18 = vsel %vm1058_vm3, %v22963_v43, -inf }
 0xa6a   :  { %v5997_v46 = vsel %vm1058_vm3, %v22973_v17, -inf }
 0xa70   :  { %19770 = vrot.lane.b32.xlu1 %v26539_v32, %s21324_s29 }
 0xa77   :  { %v5960_v14 = vpop.xlane.xlu1 %5959 }
 0xa78   :  { %v6004_v13 = vsub.f32 %v22877_v50, %v5960_v14  ;;  %v5957_v26 = vpop.xlane.xlu0 %5956 }
 0xa79   :  { %v6003_v28 = vsub.f32 %v22880_v54, %v5957_v26 }
 0xa7a   :  { %v6021_v60 = vmul.f32 1.442695, %v6004_v13 }
 0xa7b   :  { %v6019_v13 = vmul.f32 1.442695, %v6003_v28 }
 0xa7c   :  { %19765 = vrot.lane.b32.xlu0 %v26540_v33, %s21324_s29  ;;  %20583 = vpow2.f32 %v6021_v60 }
 0xa86   :  { %v22977_v22 = vpop.eup %20583 }
 0xa87   :  { %v6054_v15 = vsel %vm1058_vm3, %v22977_v22, 0.0 }
 0xa94   :  { %5986 = vmax.xlane.f32.xlu1 %v5985_v30 }
 0xa9b   :  { %6001 = vmax.xlane.f32.xlu0 %v6000_v18 }
 0xaa5   :  { %19780 = vrot.lane.b32.xlu1 %v21535_v4, %s21324_s29 }
 0xab1   :  { %19775 = vrot.lane.b32.xlu0 %v26542_v29, %s21324_s29 }
 0xac9   :  { %5998 = vmax.xlane.f32.xlu1 %v5997_v46 }
 0xacd   :  { %v5972_v4 = vpop.xlane.xlu0 %5971 }
 0xace   :  { %v6008_v49 = vsub.f32 %v22893_v24, %v5972_v4  ;;  %v5969_v33 = vpop.xlane.xlu1 %5968 }
 0xacf   :  { %v6007_v60 = vsub.f32 %v22896_v8, %v5969_v33 }
 0xad0   :  { %v6029_v50 = vmul.f32 1.442695, %v6008_v49  ;;  %6055 = vadd.xlane.f32.xlu0 %v6054_v15 }
 0xad1   :  { %v6027_v15 = vmul.f32 1.442695, %v6007_v60 }
 0xad2   :  { %20585 = vpow2.f32 %v6029_v50 }
 0xad6   :  { %v5981_v30 = vpop.xlane.xlu1 %5980 }
 0xad7   :  { %v6011_v33 = vsub.f32 %v22907_v12, %v5981_v30 }
 0xada   :  { %19785 = vrot.lane.b32.xlu1 %v21531_v3, %s21324_s29 }
 0xadc   :  { %v22984_v39 = vpop.eup %20585 }
 0xadd   :  { %v6066_v31 = vsel %vm1058_vm3, %v22984_v39, 0.0 }
 0xade   :  { %6067 = vadd.xlane.f32.xlu0 %v6066_v31 }
 0xadf   :  { %v5966_v32 = vpop.xlane.xlu0 %5965 }
 0xae0   :  { %v6006_v16 = vsub.f32 %v22914_v1, %v5966_v32 }
 0xae2   :  { %v6025_v24 = vmul.f32 1.442695, %v6006_v16 }
 0xae3   :  { %v5963_v53 = vpop.xlane.xlu0 %5962 }
 0xae4   :  { %20587 = vpow2.f32 %v6025_v24  ;;  %v6005_v54 = vsub.f32 %v22917_v27, %v5963_v53 }
 0xae6   :  { %v6023_v16 = vmul.f32 1.442695, %v6005_v54 }
 0xae7   :  { %v5984_v18 = vpop.xlane.xlu0 %5983 }
 0xae8   :  { %v6012_v29 = vsub.f32 %v22922_v48, %v5984_v18  ;;  %v5975_v3 = vpop.xlane.xlu1 %5974  ;;  %v6035_v18 = vmul.f32 1.442695, %v6011_v33 }
 0xae9   :  { %v6009_v12 = vsub.f32 %v22927_v41, %v5975_v3 }
 0xaea   :  { %v6037_v14 = vmul.f32 1.442695, %v6012_v29 }
 0xaeb   :  { %v5978_v9 = vpop.xlane.xlu0 %5977 }
 0xaec   :  { %20589 = vpow2.f32 %v6037_v14  ;;  %v6010_v46 = vsub.f32 %v22930_v61, %v5978_v9  ;;  %v5993_v4 = vpop.xlane.xlu1 %5992 }
 0xaed   :  { %20591 = vpow2.f32 %v6019_v13 }
 0xaee   :  { %v22993_v1 = vpop.eup %20587  ;;  %v6033_v49 = vmul.f32 1.442695, %v6010_v46 }
 0xaef   :  { %v5996_v26 = vpop.xlane.xlu0 %5995  ;;  %v6060_v48 = vsel %vm1058_vm3, %v22993_v1, 0.0 }
 0xaf0   :  { %20593 = vpow2.f32 %v6033_v49  ;;  %v6016_v50 = vsub.f32 %v22940_v45, %v5996_v26  ;;  %6061 = vadd.xlane.f32.xlu0 %v6060_v48  ;;  %v19771_v8 = vpop.permute.xlu1 %19770  ;;  %v6031_v49 = vmul.f32 1.442695, %v6009_v12 }
 0xaf1   :  { %v19773_v31 = vunpack.i.h.bf16 %v19771_v8  ;;  %v19772_v32 = vunpack.i.l.bf16 %v19771_v8  ;;  %20595 = vpow2.f32 %v6027_v15  ;;  %v6015_v15 = vsub.f32 %v22935_v55, %v5993_v4 }
 0xaf2   :  { %v6045_v61 = vmul.f32 1.442695, %v6016_v50 }
 0xaf3   :  { %v5990_v24 = vpop.xlane.xlu0 %5989  ;;  %v23000_v28 = vpack.c.bf16 %v19773_v31, %v19772_v32  ;;  %v6043_v48 = vmul.f32 1.442695, %v6015_v15 }
 0xaf4   :  { %20597 = vpow2.f32 %v6045_v61  ;;  %v6014_v27 = vsub.f32 %v22947_v44, %v5990_v24 }
 0xaf5   :  { %19110 = vmatprep.subr.bf16.mxu0 %v23000_v28  ;;  %20599 = vpow2.f32 %v6023_v16 }
 0xaf6   :  { %v23004_v53 = vpop.eup %20589  ;;  %v6041_v45 = vmul.f32 1.442695, %v6014_v27 }
 0xaf7   :  { %v19766_v29 = vpop.permute.xlu0 %19765  ;;  %v6078_v14 = vsel %vm1058_vm3, %v23004_v53, 0.0  ;;  %v23009_v60 = vpop.eup %20591 }
 0xaf8   :  { %20601 = vpow2.f32 %v6041_v45  ;;  %v19768_v30 = vunpack.i.h.bf16 %v19766_v29  ;;  %v19767_v13 = vunpack.i.l.bf16 %v19766_v29  ;;  %6079 = vadd.xlane.f32.xlu0 %v6078_v14  ;;  %v6051_v41 = vsel %vm1058_vm3, %v23009_v60, 0.0 }
 0xaf9   :  { %20603 = vpow2.f32 %v6035_v18 }
 0xafa   :  { %v23011_v44 = vpop.eup %20593  ;;  %v19105_v9 = vpack.c.bf16 %v19768_v30, %v19767_v13  ;;  %20605 = vpow2.f32 %v6031_v49 }
 0xafb   :  { %v6072_v46 = vsel %vm1058_vm3, %v23011_v44, 0.0  ;;  %v23016_v54 = vpop.eup %20595  ;;  %20607 = vpow2.f32 %v6043_v48  ;;  %v26543_v48 = vld [vmem:[#allocation22_spill] sm:$0xff] }
 0xafc   :  { %6073 = vadd.xlane.f32.xlu0 %v6072_v46  ;;  %19106 = vmatprep.subr.bf16.mxu1 %v19105_v9  ;;  %v6063_v55 = vsel %vm1058_vm3, %v23016_v54, 0.0 }
 0xafd   :  { %19108 = vmatpush3.bf16.msra.mxu1 %v19105_v9 }
 0xafe   :  { %v23020_v3 = vpop.eup %20597  ;;  %6052 = vadd.xlane.f32.xlu1 %v6051_v41 }
 0xaff   :  { %v6090_v26 = vsel %vm1058_vm3, %v23020_v3, 0.0  ;;  %v23024_v50 = vpop.eup %20599 }
 0xb00   :  { %6091 = vadd.xlane.f32.xlu0 %v6090_v26  ;;  %v6057_v31 = vsel %vm1058_vm3, %v23024_v50, 0.0 }
 0xb02   :  { %v23028_v4 = vpop.eup %20601  ;;  %6064 = vadd.xlane.f32.xlu1 %v6063_v55  ;;  %v26544_v55 = vld [vmem:[#allocation25_spill] sm:$0xff] }
 0xb03   :  { %v6084_v8 = vsel %vm1058_vm3, %v23028_v4, 0.0  ;;  %v23034_v32 = vpop.eup %20603 }
 0xb04   :  { %6085 = vadd.xlane.f32.xlu0 %v6084_v8  ;;  %v6075_v61 = vsel %vm1058_vm3, %v23034_v32, 0.0  ;;  %v23038_v33 = vpop.eup %20605  ;;  %v26545_v8 = vpack.i.bf16 %v26543_v48, %v26544_v55 }
 0xb05   :  { %v6069_v16 = vsel %vm1058_vm3, %v23038_v33, 0.0  ;;  %v23042_v24 = vpop.eup %20607 }
 0xb06   :  { %6058 = vadd.xlane.f32.xlu1 %v6057_v31  ;;  %v6087_v27 = vsel %vm1058_vm3, %v23042_v24, 0.0 }
 0xb0a   :  { %6076 = vadd.xlane.f32.xlu1 %v6075_v61 }
 0xb0e   :  { %6070 = vadd.xlane.f32.xlu1 %v6069_v16 }
 0xb12   :  { %6088 = vadd.xlane.f32.xlu1 %v6087_v27  ;;  %v26546_v27 = vld [vmem:[#allocation26_spill] sm:$0xff] }
 0xb21   :  { %v5987_v45 = vpop.xlane.xlu1 %5986 }
 0xb22   :  { %v6013_v18 = vsub.f32 %v22958_v11, %v5987_v45 }
 0xb24   :  { %v6039_v29 = vmul.f32 1.442695, %v6013_v18 }
 0xb25   :  { %v19781_v26 = vpop.permute.xlu1 %19780 }
 0xb26   :  { %20609 = vpow2.f32 %v6039_v29 }
 0xb28   :  { %v6002_v14 = vpop.xlane.xlu0 %6001 }
 0xb29   :  { %v6018_v12 = vsub.f32 %v22963_v43, %v6002_v14 }
 0xb2b   :  { %v6049_v30 = vmul.f32 1.442695, %v6018_v12 }
 0xb2c   :  { %v19776_v13 = vpop.permute.xlu0 %19775 }
 0xb2d   :  { %20611 = vpow2.f32 %v6049_v30  ;;  %v19778_v9 = vunpack.i.h.bf16 %v19776_v13  ;;  %v19777_v46 = vunpack.i.l.bf16 %v19776_v13 }
 0xb2f   :  { %v23048_v49 = vpack.c.bf16 %v19778_v9, %v19777_v46  ;;  %v19783_v46 = vunpack.i.h.bf16 %v19781_v26 }
 0xb30   :  { %v23050_v15 = vpop.eup %20609 }
 0xb31   :  { %19114 = vmatprep.subr.bf16.mxu1 %v23048_v49  ;;  %v6081_v41 = vsel %vm1058_vm3, %v23050_v15, 0.0 }
 0xb32   :  { %6082 = vadd.xlane.f32.xlu1 %v6081_v41  ;;  %v19782_v41 = vunpack.i.l.bf16 %v19781_v26 }
 0xb37   :  { %v23055_v11 = vpop.eup %20611 }
 0xb38   :  { %v6096_v43 = vsel %vm1058_vm3, %v23055_v11, 0.0 }
 0xb39   :  { %6097 = vadd.xlane.f32.xlu0 %v6096_v43 }
 0xb4f   :  { %19790 = vrot.lane.b32.xlu0 %v21547_v6, %s21324_s29  ;;  %v26547_v6 = vld [vmem:[#allocation27_spill] sm:$0xff] }
 0xb50   :  { %v26548_v45 = vpack.i.bf16 %v26546_v27, %v26547_v6 }
 0xb53   :  { %19800 = vrot.lane.b32.xlu0 %v26545_v8, %s21312_s10  ;;  %v19117_v8 = vpack.c.bf16 %v19783_v46, %v19782_v41 }
 0xb56   :  { %v5999_v31 = vpop.xlane.xlu1 %5998 }
 0xb57   :  { %v6017_v61 = vsub.f32 %v22973_v17, %v5999_v31  ;;  %19810 = vrot.lane.b32.xlu0 %v19809_v59, %s21325_s30  ;;  %v26551_v59 = vpack.i.bf16 %v26549_v2, %v26550_v7 }
 0xb59   :  { %v6047_v16 = vmul.f32 1.442695, %v6017_v61 }
 0xb5a   :  { %v19786_v14 = vpop.permute.xlu1 %19785 }
 0xb5b   :  { %20613 = vpow2.f32 %v6047_v16  ;;  %19820 = vrot.lane.b32.xlu0 %v26548_v45, %s21312_s10  ;;  %v19788_v16 = vunpack.i.h.bf16 %v19786_v14  ;;  %v19787_v27 = vunpack.i.l.bf16 %v19786_v14 }
 0xb5d   :  { %v6056_v29 = vpop.xlane.xlu0 %6055 }
 0xb5e   :  { %20615 = vrcp.f32 %v6056_v29 }
 0xb5f   :  { %19830 = vrot.lane.b32.xlu0 %v19829_v58, %s21325_s30  ;;  %v26554_v58 = vpack.i.bf16 %v26552_v42, %v26553_v19 }
 0xb65   :  { %v23078_v18 = vpop.eup %20613 }
 0xb66   :  { %v6093_v17 = vsel %vm1058_vm3, %v23078_v18, 0.0 }
 0xb67   :  { %6094 = vadd.xlane.f32.xlu1 %v6093_v17 }
 0xb68   :  { %v20616_v13 = vpop.eup %20615 }
 0xb78   :  { %19795 = vrot.lane.b32.xlu1 %v21543_v5, %s21324_s29  ;;  %v6068_v5 = vpop.xlane.xlu0 %6067 }
 0xb7c   :  { %19805 = vrot.lane.b32.xlu1 %v26551_v59, %s21312_s10 }
 0xb7d   :  { %v6062_v30 = vpop.xlane.xlu0 %6061 }
 0xb80   :  { %19815 = vrot.lane.b32.xlu1 %v19814_v23, %s21325_s30 }
 0xb84   :  { %19825 = vrot.lane.b32.xlu1 %v26554_v58, %s21312_s10 }
 0xb85   :  { %v6080_v51 = vpop.xlane.xlu0 %6079 }
 0xb88   :  { %19835 = vrot.lane.b32.xlu1 %v19834_v47, %s21325_s30  ;;  %v6116_v47 = vmul.f32 %v20616_v13, %v22977_v22 }
 0xb89   :  { %v6074_v36 = vpop.xlane.xlu0 %6073 }
 0xb8b   :  { %v6053_v12 = vpop.xlane.xlu1 %6052 }
 0xb8c   :  { %20617 = vrcp.f32 %v6053_v12 }
 0xb8d   :  { %20619 = vrcp.f32 %v6068_v5 }
 0xb8f   :  { %v6065_v40 = vpop.xlane.xlu1 %6064 }
 0xb90   :  { %20621 = vrcp.f32 %v6065_v40 }
 0xb91   :  { %20623 = vrcp.f32 %v6062_v30 }
 0xb93   :  { %v6059_v23 = vpop.xlane.xlu1 %6058 }
 0xb94   :  { %20625 = vrcp.f32 %v6059_v23 }
 0xb95   :  { %20627 = vrcp.f32 %v6080_v51 }
 0xb96   :  { %v20618_v9 = vpop.eup %20617 }
 0xb97   :  { %v6077_v43 = vpop.xlane.xlu1 %6076  ;;  %v6115_v56 = vmul.f32 %v20618_v9, %v23009_v60  ;;  %v20620_v48 = vpop.eup %20619 }
 0xb98   :  { %20629 = vrcp.f32 %v6077_v43  ;;  %v6120_v60 = vmul.f32 %v20620_v48, %v22984_v39  ;;  %v19121_v39 = vpack.c.bf16 %v19788_v16, %v19787_v27 }
 0xb99   :  { %18165 = vmatprep.mubr.msk.f32.mxu0 %vm1058_vm3, %v6115_v56  ;;  %20631 = vrcp.f32 %v6074_v36 }
 0xb9a   :  { %v20622_v55 = vpop.eup %20621  ;;  %18166 = vmatmul.mubr.msk.f32.vlgmr.msra.gmra.mrb[64].mxu0 %vm1058_vm3, %v6116_v47 }
 0xb9b   :  { %19112 = vmatpush3.bf16.msra.mxu0 %v23000_v28  ;;  %v6071_v31 = vpop.xlane.xlu1 %6070  ;;  %v6119_v26 = vmul.f32 %v20622_v55, %v23016_v54  ;;  %v20624_v61 = vpop.eup %20623 }
 0xb9c   :  { %20633 = vrcp.f32 %v6071_v31  ;;  %19118 = vmatprep.subr.bf16.mxu0 %v19117_v8  ;;  %v6118_v28 = vmul.f32 %v20624_v61, %v22993_v1 }
 0xb9d   :  { %18179 = vmatprep.mubr.msk.f32.mxu0 %vm1058_vm3, %v6119_v26 }
 0xb9e   :  { %v20626_v22 = vpop.eup %20625  ;;  %18180 = vmatmul.mubr.msk.f32.vlgmr.msra.gmra.mrb[66].mxu0 %vm1058_vm3, %v6120_v60  ;;  %v26556_v60 = vld [vmem:[#allocation44_spill] sm:$0xff] }
 0xb9f   :  { %19120 = vmatpush3.bf16.msra.mxu0 %v19117_v8  ;;  %v6089_v6 = vpop.xlane.xlu1 %6088  ;;  %v6117_v45 = vmul.f32 %v20626_v22, %v23024_v50  ;;  %v20628_v54 = vpop.eup %20627  ;;  %v20362_v8 = vld [vmem:[#allocation5 + $0x8] sm:$0xff]  }
 0xba0   :  { %20635 = vrcp.f32 %v6089_v6  ;;  %v6124_v7 = vmul.f32 %v20628_v54, %v23004_v53  ;;  %v6092_v53 = vpop.xlane.xlu0 %6091  ;;  %v26558_v54 = vld [vmem:[#allocation49_spill] sm:$0xff] }
 0xba1   :  { %18172 = vmatprep.mubr.msk.f32.mxu1 %vm1058_vm3, %v6117_v45 }
 0xba2   :  { %v20630_v17 = vpop.eup %20629  ;;  %18173 = vmatmul.mubr.msk.f32.vlgmr.msra.gmra.mrb[64].mxu1 %vm1058_vm3, %v6118_v28 }
 0xba3   :  { %19116 = vmatpush3.bf16.msra.mxu1 %v23048_v49  ;;  %v6123_v2 = vmul.f32 %v20630_v17, %v23034_v32  ;;  %v20632_v59 = vpop.eup %20631  ;;  %v26559_v17 = vld [vmem:[#allocation50_spill] sm:$0xff] }
 0xba4   :  { %19122 = vmatprep.subr.bf16.mxu1 %v19121_v39  ;;  %v6122_v42 = vmul.f32 %v20632_v59, %v23011_v44  ;;  %v6086_v49 = vpop.xlane.xlu0 %6085 }
 0xba5   :  { %18193 = vmatprep.mubr.msk.f32.mxu0 %vm1058_vm3, %v6123_v2  ;;  %20637 = vrcp.f32 %v6086_v49 }
 0xba6   :  { %v20634_v50 = vpop.eup %20633  ;;  %18194 = vmatmul.mubr.msk.f32.vlgmr.msra.gmra.mrb[68].mxu0 %vm1058_vm3, %v6124_v7 }
 0xba7   :  { %v6121_v1 = vmul.f32 %v20634_v50, %v23038_v33  ;;  %v26561_v50 = vld [vmem:[#allocation47_spill] sm:$0xff] }
 0xba9   :  { %18186 = vmatprep.mubr.msk.f32.mxu1 %vm1058_vm3, %v6121_v1  ;;  %v26562_v1 = vld [vmem:[#allocation48_spill] sm:$0xff] }
 0xbaa   :  { %v20636_v19 = vpop.eup %20635  ;;  %18187 = vmatmul.mubr.msk.f32.vlgmr.msra.gmra.mrb[66].mxu1 %vm1058_vm3, %v6122_v42  ;;  %v26563_v42 = vpack.i.bf16 %v26561_v50, %v26562_v1 }
 0xbab   :  { %19124 = vmatpush3.bf16.msra.mxu1 %v19121_v39  ;;  %v6127_v32 = vmul.f32 %v20636_v19, %v23042_v24  ;;  %v26560_v39 = vpack.i.bf16 %v26558_v54, %v26559_v17 }
 0xbad   :  { %18207 = vmatprep.mubr.msk.f32.mxu0 %vm1058_vm3, %v6127_v32 }
 0xbaf   :  { %v20638_v33 = vpop.eup %20637 }
 0xbb0   :  { %v6126_v40 = vmul.f32 %v20638_v33, %v23028_v4 }
 0xbbf   :  { %v6083_v58 = vpop.xlane.xlu1 %6082 }
 0xbc0   :  { %20639 = vrcp.f32 %v6083_v58 }
 0xbc1   :  { %20641 = vrcp.f32 %v6092_v53 }
 0xbc6   :  { %v6098_v29 = vpop.xlane.xlu0 %6097 }
 0xbc7   :  { %20643 = vrcp.f32 %v6098_v29 }
 0xbca   :  { %v20640_v14 = vpop.eup %20639  ;;  %v19791_v44 = vpop.permute.xlu0 %19790 }
 0xbcb   :  { %v19793_v5 = vunpack.i.h.bf16 %v19791_v44  ;;  %v19792_v12 = vunpack.i.l.bf16 %v19791_v44  ;;  %v6125_v30 = vmul.f32 %v20640_v14, %v23050_v15  ;;  %v20642_v51 = vpop.eup %20641 }
 0xbcc   :  { %v6128_v23 = vmul.f32 %v20642_v51, %v23020_v3  ;;  %v20361_v3 = vld [vmem:[#allocation5] sm:$0xff]  }
 0xbcd   :  { %18200 = vmatprep.mubr.msk.f32.mxu1 %vm1058_vm3, %v6125_v30  ;;  %v19125_v24 = vpack.c.bf16 %v19793_v5, %v19792_v12 }
 0xbce   :  { %18201 = vmatmul.mubr.msk.f32.vlgmr.msra.gmra.mrb[68].mxu1 %vm1058_vm3, %v6126_v40  ;;  %v19801_v38 = vpop.permute.xlu0 %19800 }
 0xbcf   :  { %19126 = vmatprep.subr.bf16.mxu0 %v19125_v24  ;;  %v19803_v5 = vunpack.i.h.bf16 %v19801_v38  ;;  %v19802_v12 = vunpack.i.l.bf16 %v19801_v38 }
 0xbd0   :  { %19128 = vmatpush3.bf16.msra.mxu0 %v19125_v24 }
 0xbd1   :  { %v20644_v4 = vpop.eup %20643  ;;  %18217 = vmatprep.subr.bf16.mxu0 %v20361_v3  ;;  %v7020_v35 = vsel %vm271_vm1, %v26567_v21, %v19803_v5  ;;  %v26574_v5 = vld [vmem:[#allocation38_spill] sm:$0xff] }
 0xbd2   :  { %v6130_v36 = vmul.f32 %v20644_v4, %v23055_v11  ;;  %v26555_v11 = vld [vmem:[#allocation24_spill] sm:$0xff]  ;;  %v19811_v63 = vpop.permute.xlu0 %19810 }
 0xbd3   :  { %18208 = vmatmul.mubr.msk.f32.vlgmr.msra.gmra.mrb[70].mxu0 %vm1058_vm3, %v6128_v23  ;;  %v26557_v61 = vpack.i.bf16 %v26555_v11, %v26556_v60  ;;  %v19813_v30 = vunpack.i.h.bf16 %v19811_v63  ;;  %v19812_v40 = vunpack.i.l.bf16 %v19811_v63  ;;  %v26569_v11 = vld [vmem:[#allocation33_spill] sm:$0xff] }
 0xbd4   :  { %18218 = vmatpush3.bf16.msra.mxu0 %v20361_v3 }
 0xbd5   :  { %18219 = vmatprep.subr.bf16.mxu0 %v20362_v8 }
 0xbd6   :  { %v19821_v33 = vpop.permute.xlu0 %19820 }
 0xbd7   :  { %v19822_v4 = vunpack.i.l.bf16 %v19821_v33 }
 0xbd8   :  { %18220 = vmatpush3.bf16.msra.mxu0 %v20362_v8 }
 0xbda   :  { %v19831_v44 = vpop.permute.xlu0 %19830 }
 0xbdb   :  { %v19832_v3 = vunpack.i.l.bf16 %v19831_v44 }
 0xbf4   :  { %v6095_v13 = vpop.xlane.xlu1 %6094 }
 0xbf5   :  { %20645 = vrcp.f32 %v6095_v13 }
 0xbf8   :  { %v19796_v9 = vpop.permute.xlu1 %19795 }
 0xbf9   :  { %v19798_v46 = vunpack.i.h.bf16 %v19796_v9  ;;  %v19797_v15 = vunpack.i.l.bf16 %v19796_v9 }
 0xbfb   :  { %v19129_v41 = vpack.c.bf16 %v19798_v46, %v19797_v15  ;;  %v7036_v15 = vsel %vm1058_vm3, %v7020_v35, %v19813_v30  ;;  %v26575_v30 = vld [vmem:[#allocation35_spill] sm:$0xff] }
 0xbfd   :  { %19130 = vmatprep.subr.bf16.mxu1 %v19129_v41 }
 0xbfe   :  { %19132 = vmatpush3.bf16.msra.mxu1 %v19129_v41  ;;  %v19823_v41 = vunpack.i.h.bf16 %v19821_v33 }
 0xbff   :  { %v20646_v43 = vpop.eup %20645 }
 0xc00   :  { %v6129_v56 = vmul.f32 %v20646_v43, %v23078_v18  ;;  %v19833_v43 = vunpack.i.h.bf16 %v19831_v44  ;;  %v7024_v60 = vsel %vm271_vm1, %v26569_v11, %v19823_v41 }
 0xc02   :  { %18214 = vmatprep.mubr.msk.f32.mxu1 %vm1058_vm3, %v6129_v56 }
 0xc03   :  { %18215 = vmatmul.mubr.msk.f32.vlgmr.msra.gmra.mrb[70].mxu1 %vm1058_vm3, %v6130_v36 }
 0xc6d   :  { %v18167_v47 = vpop.f32.mrb[64].mxu0 }
 0xc6e   :  { %v6209_v48 = vpop.f32.mrb[65].mxu0 }
 0xc6f   :  { %v19839_v55 = vpack.i.bf16 %v18167_v47, %v6209_v48 }
 0xc71   :  { %19840 = vrot.lane.b32.xlu0 %v19839_v55, %s21326_s11  ;;  %v18181_v31 = vpop.f32.mrb[66].mxu0 }
 0xc72   :  { %v6383_v26 = vpop.f32.mrb[67].mxu0 }
 0xc73   :  { %v19849_v18 = vpack.i.bf16 %v18181_v31, %v6383_v26 }
 0xc75   :  { %19845 = vrot.lane.b32.xlu0 %v26557_v61, %s21312_s10  ;;  %v18174_v22 = vpop.f32.mrb[64].mxu1  ;;  %v26570_v61 = vld [vmem:[#allocation34_spill] sm:$0xff] }
 0xc76   :  { %v6296_v16 = vpop.f32.mrb[65].mxu1 }
 0xc77   :  { %v19854_v27 = vpack.i.bf16 %v18174_v22, %v6296_v16  ;;  %v7023_v22 = vsel %vm271_vm1, %v26570_v61, %v19822_v4 }
 0xc78   :  { %v7039_v16 = vsel %vm1058_vm3, %v7023_v22, %v19832_v3  ;;  %v26577_v22 = vld [vmem:[#allocation41_spill] sm:$0xff] }
 0xc79   :  { %19855 = vrot.lane.b32.xlu1 %v19854_v27, %s21326_s11  ;;  %19850 = vrot.lane.b32.xlu0 %v19849_v18, %s21326_s11  ;;  %v18195_v6 = vpop.f32.mrb[68].mxu0  ;;  %v7040_v27 = vsel %vm1058_vm3, %v7024_v60, %v19833_v43 }
 0xc7a   :  { %v6557_v45 = vpop.f32.mrb[69].mxu0 }
 0xc7b   :  { %v19879_v28 = vpack.i.bf16 %v18195_v6, %v6557_v45  ;;  %v26571_v6 = vld [vmem:[#allocation31_spill] sm:$0xff] }
 0xc7d   :  { %19860 = vrot.lane.b32.xlu1 %v26560_v39, %s21312_s10  ;;  %v18188_v2 = vpop.f32.mrb[66].mxu1  ;;  %19865 = vrot.lane.b32.xlu0 %v19864_v37, %s21325_s30 }
 0xc7e   :  { %v6470_v7 = vpop.f32.mrb[67].mxu1 }
 0xc7f   :  { %v19869_v59 = vpack.i.bf16 %v18188_v2, %v6470_v7 }
 0xc81   :  { %19870 = vrot.lane.b32.xlu1 %v19869_v59, %s21326_s11  ;;  %19880 = vrot.lane.b32.xlu0 %v19879_v28, %s21326_s11  ;;  %v26572_v28 = vld [vmem:[#allocation32_spill] sm:$0xff] }
 0xc85   :  { %19875 = vrot.lane.b32.xlu1 %v19874_v52, %s21325_s30  ;;  %19885 = vrot.lane.b32.xlu0 %v26563_v42, %s21312_s10  ;;  %v26566_v52 = vpack.i.bf16 %v26564_v25, %v26565_v20 }
 0xc89   :  { %19900 = vrot.lane.b32.xlu0 %v19899_v62, %s21325_s30  ;;  %v19806_v62 = vpop.permute.xlu1 %19805 }
 0xc8a   :  { %v19808_v47 = vunpack.i.h.bf16 %v19806_v62  ;;  %v19807_v48 = vunpack.i.l.bf16 %v19806_v62 }
 0xc8c   :  { %v7022_v45 = vsel %vm271_vm1, %v26571_v6, %v19808_v47  ;;  %v7021_v54 = vsel %vm271_vm1, %v26572_v28, %v19807_v48 }
 0xc8d   :  { %v19816_v14 = vpop.permute.xlu1 %19815 }
 0xc8e   :  { %v19818_v26 = vunpack.i.h.bf16 %v19816_v14  ;;  %v19817_v18 = vunpack.i.l.bf16 %v19816_v14  ;;  %v26573_v14 = vld [vmem:[#allocation37_spill] sm:$0xff] }
 0xc90   :  { %v7037_v1 = vsel %vm1058_vm3, %v7021_v54, %v19817_v18  ;;  %v7038_v42 = vsel %vm1058_vm3, %v7022_v45, %v19818_v26 }
 0xc91   :  { %v19826_v24 = vpop.permute.xlu1 %19825 }
 0xc95   :  { %v19836_v55 = vpop.permute.xlu1 %19835 }
 0xca1   :  { %v18202_v57 = vpop.f32.mrb[68].mxu1 }
 0xca2   :  { %v6644_v0 = vpop.f32.mrb[69].mxu1 }
 0xca3   :  { %v19889_v37 = vpack.i.bf16 %v18202_v57, %v6644_v0  ;;  %v19828_v57 = vunpack.i.h.bf16 %v19826_v24  ;;  %v19827_v0 = vunpack.i.l.bf16 %v19826_v24  ;;  %v26576_v24 = vld [vmem:[#allocation36_spill] sm:$0xff] }
 0xca5   :  { %19890 = vrot.lane.b32.xlu1 %v19889_v37, %s21326_s11  ;;  %v7026_v44 = vsel %vm271_vm1, %v26573_v14, %v19828_v57 }
 0xca6   :  { %v18209_v19 = vpop.f32.mrb[70].mxu0 }
 0xca7   :  { %v6731_v32 = vpop.f32.mrb[71].mxu0 }
 0xca8   :  { %v19909_v53 = vpack.i.bf16 %v18209_v19, %v6731_v32 }
 0xca9   :  { %19895 = vrot.lane.b32.xlu1 %v26566_v52, %s21312_s10 }
 0xcaa   :  { %19910 = vrot.lane.b32.xlu0 %v19909_v53, %s21326_s11 }
 0xcad   :  { %19905 = vrot.lane.b32.xlu1 %v19904_v34, %s21325_s30  ;;  %v26568_v34 = vld [vmem:[#allocation30_spill] sm:$0xff] }
 0xcae   :  { %v7019_v23 = vsel %vm271_vm1, %v26568_v34, %v19802_v12  ;;  %v7025_v12 = vsel %vm271_vm1, %v26574_v5, %v19827_v0  ;;  %v26579_v0 = vld [vmem:[#allocation39_spill] sm:$0xff] }
 0xcaf   :  { %v7035_v46 = vsel %vm1058_vm3, %v7019_v23, %v19812_v40 }
 0xcd6   :  { %v18216_v49 = vpop.f32.mrb[70].mxu1 }
 0xcd7   :  { %v6818_v58 = vpop.f32.mrb[71].mxu1 }
 0xcd8   :  { %v19914_v29 = vpack.i.bf16 %v18216_v49, %v6818_v58  ;;  %v19838_v49 = vunpack.i.h.bf16 %v19836_v55  ;;  %v19837_v58 = vunpack.i.l.bf16 %v19836_v55 }
 0xcda   :  { %19915 = vrot.lane.b32.xlu1 %v19914_v29, %s21326_s11 }
 0xce3   :  { %v19841_v51 = vpop.permute.xlu0 %19840 }
 0xce4   :  { %v19843_v13 = vunpack.i.h.bf16 %v19841_v51  ;;  %v19842_v9 = vunpack.i.l.bf16 %v19841_v51 }
 0xce6   :  { %v7053_v56 = vsel %vm7051_vm4, %v7036_v15, %v19843_v13  ;;  %v7052_v36 = vsel %vm7051_vm4, %v7035_v46, %v19842_v9  ;;  %v7041_v46 = vsel %vm1058_vm3, %v7025_v12, %v19837_v58  ;;  %v7042_v15 = vsel %vm1058_vm3, %v7026_v44, %v19838_v49  ;;  %v26581_v12 = vld [vmem:[#allocation23_spill] sm:$0xff] }
 0xce7   :  { %v19846_v8 = vpop.permute.xlu0 %19845  ;;  %v7068_v31 = vpack.c.bf16 %v7053_v56, %v7052_v36 }
 0xce8   :  { %v19848_v25 = vunpack.i.h.bf16 %v19846_v8  ;;  %v19847_v20 = vunpack.i.l.bf16 %v19846_v8 }
 0xce9   :  { %18221 = vmatprep.mubr.msk.bf16.mxu0 %vm143_vm0, %v7068_v31 }
 0xcea   :  { %v7028_v40 = vsel %vm271_vm1, %v26575_v30, %v19848_v25  ;;  %v7027_v51 = vsel %vm271_vm1, %v26576_v24, %v19847_v20 }
 0xceb   :  { %v19856_v17 = vpop.permute.xlu1 %19855  ;;  %v19851_v39 = vpop.permute.xlu0 %19850 }
 0xcec   :  { %v19858_v2 = vunpack.i.h.bf16 %v19856_v17  ;;  %v19857_v7 = vunpack.i.l.bf16 %v19856_v17  ;;  %v19853_v59 = vunpack.i.h.bf16 %v19851_v39  ;;  %v19852_v50 = vunpack.i.l.bf16 %v19851_v39 }
 0xcee   :  { %v7054_v37 = vsel %vm7051_vm4, %v7037_v1, %v19857_v7  ;;  %v7055_v19 = vsel %vm7051_vm4, %v7038_v42, %v19858_v2  ;;  %v7057_v32 = vsel %vm7051_vm4, %v7040_v27, %v19853_v59  ;;  %v7056_v53 = vsel %vm7051_vm4, %v7039_v16, %v19852_v50  ;;  %v26578_v27 = vld [vmem:[#allocation42_spill] sm:$0xff] }
 0xcef   :  { %v7069_v52 = vpack.c.bf16 %v7055_v19, %v7054_v37  ;;  %v19861_v38 = vpop.permute.xlu1 %19860  ;;  %v19866_v63 = vpop.permute.xlu0 %19865  ;;  %v7070_v62 = vpack.c.bf16 %v7057_v32, %v7056_v53  ;;  %v26580_v19 = vld [vmem:[#allocation40_spill] sm:$0xff] }
 0xcf0   :  { %v19868_v29 = vunpack.i.h.bf16 %v19866_v63  ;;  %v19867_v33 = vunpack.i.l.bf16 %v19866_v63  ;;  %v19863_v31 = vunpack.i.h.bf16 %v19861_v38  ;;  %v19862_v26 = vunpack.i.l.bf16 %v19861_v38 }
 0xcf1   :  { %18222 = vmatmul.mubr.msk.bf16.vlgmr.msra.gmra.mrb[72].mxu0 %vm143_vm0, %v7069_v52 }
 0xcf2   :  { %18225 = vmatprep.mubr.msk.bf16.mxu0 %vm143_vm0, %v7070_v62  ;;  %v7044_v41 = vsel %vm1058_vm3, %v7028_v40, %v19868_v29  ;;  %v7043_v4 = vsel %vm1058_vm3, %v7027_v51, %v19867_v33  ;;  %v7030_v16 = vsel %vm271_vm1, %v26577_v22, %v19863_v31  ;;  %v7029_v6 = vsel %vm271_vm1, %v26578_v27, %v19862_v26  ;;  %v26582_v40 = vld [vmem:[#allocation43_spill] sm:$0xff]  ;;  %v21156_v27 = vld [vmem:[#allocation2 + $0x18] sm:$0xff] }
 0xcf3   :  { %v19871_v21 = vpop.permute.xlu1 %19870  ;;  %v19881_v35 = vpop.permute.xlu0 %19880  ;;  %v21154_v26 = vld [vmem:[#allocation2 + $0x10] sm:$0xff] }
 0xcf4   :  { %v19873_v34 = vunpack.i.h.bf16 %v19871_v21  ;;  %v19872_v23 = vunpack.i.l.bf16 %v19871_v21  ;;  %v19883_v13 = vunpack.i.h.bf16 %v19881_v35  ;;  %v19882_v9 = vunpack.i.l.bf16 %v19881_v35 }
 0xcf6   :  { %v7058_v43 = vsel %vm7051_vm4, %v7041_v46, %v19872_v23  ;;  %v7059_v56 = vsel %vm7051_vm4, %v7042_v15, %v19873_v34  ;;  %v7061_v36 = vsel %vm7051_vm4, %v7044_v41, %v19883_v13  ;;  %v7060_v3 = vsel %vm7051_vm4, %v7043_v4, %v19882_v9  ;;  %v23246_v46 = vld [vmem:[#allocation8] sm:$0xff]  ;;  %v26583_v15 = vld [vmem:[#allocation16_spill] sm:$0xff] }
 0xcf7   :  { %v7071_v47 = vpack.c.bf16 %v7059_v56, %v7058_v43  ;;  %v7072_v48 = vpack.c.bf16 %v7061_v36, %v7060_v3  ;;  %v19886_v55 = vpop.permute.xlu0 %19885  ;;  %v19876_v8 = vpop.permute.xlu1 %19875  ;;  %v23250_v41 = vrot.slane %v23246_v46, %v26583_v15 }
 0xcf8   :  { %v19878_v18 = vunpack.i.h.bf16 %v19876_v8  ;;  %v19877_v11 = vunpack.i.l.bf16 %v19876_v8  ;;  %v19888_v39 = vunpack.i.h.bf16 %v19886_v55  ;;  %v19887_v2 = vunpack.i.l.bf16 %v19886_v55 }
 0xcf9   :  { %18226 = vmatmul.mubr.msk.bf16.gmra.mrb[76].mxu0 %vm143_vm0, %v7071_v47 }
 0xcfa   :  { %18229 = vmatprep.mubr.msk.bf16.mxu0 %vm143_vm0, %v7072_v48  ;;  %v7045_v54 = vsel %vm1058_vm3, %v7029_v6, %v19877_v11  ;;  %v7046_v17 = vsel %vm1058_vm3, %v7030_v16, %v19878_v18  ;;  %v7032_v37 = vsel %vm271_vm1, %v26579_v0, %v19888_v39  ;;  %v7031_v32 = vsel %vm271_vm1, %v26580_v19, %v19887_v2  ;;  %v21153_v48 = vld [vmem:[#allocation2] sm:$0xff]  ;;  %v21155_v11 = vld [vmem:[#allocation2 + $0x8] sm:$0xff] }
 0xcfb   :  { %v19901_v60 = vpop.permute.xlu0 %19900 }
 0xcfc   :  { %v19903_v7 = vunpack.i.h.bf16 %v19901_v60  ;;  %v19902_v59 = vunpack.i.l.bf16 %v19901_v60 }
 0xcfe   :  { %v7047_v20 = vsel %vm1058_vm3, %v7031_v32, %v19902_v59  ;;  %v7048_v52 = vsel %vm1058_vm3, %v7032_v37, %v19903_v7  ;;  %v21157_v7 = vld [vmem:[#allocation2 + $0x20] sm:$0xff]  ;;  %v21159_v37 = vld [vmem:[#allocation2 + $0x28] sm:$0xff] }
 0xd17   :  { %v19891_v61 = vpop.permute.xlu1 %19890 }
 0xd18   :  { %v19893_v45 = vunpack.i.h.bf16 %v19891_v61  ;;  %v19892_v28 = vunpack.i.l.bf16 %v19891_v61 }
 0xd1a   :  { %v7063_v50 = vsel %vm7051_vm4, %v7046_v17, %v19893_v45  ;;  %v7062_v1 = vsel %vm7051_vm4, %v7045_v54, %v19892_v28 }
 0xd1b   :  { %v7073_v42 = vpack.c.bf16 %v7063_v50, %v7062_v1  ;;  %v19896_v49 = vpop.permute.xlu1 %19895 }
 0xd1c   :  { %v19911_v57 = vpop.permute.xlu0 %19910  ;;  %v19898_v29 = vunpack.i.h.bf16 %v19896_v49  ;;  %v19897_v33 = vunpack.i.l.bf16 %v19896_v49 }
 0xd1d   :  { %v19913_v53 = vunpack.i.h.bf16 %v19911_v57  ;;  %v19912_v25 = vunpack.i.l.bf16 %v19911_v57  ;;  %18230 = vmatmul.mubr.msk.bf16.gmra.mrb[80].mxu0 %vm143_vm0, %v7073_v42  ;;  %v21158_v42 = vld [vmem:[#allocation2 + $0x30] sm:$0xff] }
 0xd1e   :  { %v7034_v30 = vsel %vm271_vm1, %v26581_v12, %v19898_v29  ;;  %v7033_v24 = vsel %vm271_vm1, %v26582_v40, %v19897_v33 }
 0xd1f   :  { %v7065_v38 = vsel %vm7051_vm4, %v7048_v52, %v19913_v53  ;;  %v7064_v63 = vsel %vm7051_vm4, %v7047_v20, %v19912_v25  ;;  %v19906_v58 = vpop.permute.xlu1 %19905  ;;  %v21160_v53 = vld [vmem:[#allocation2 + $0x38] sm:$0xff] }
 0xd20   :  { %v7074_v62 = vpack.c.bf16 %v7065_v38, %v7064_v63  ;;  %v19908_v14 = vunpack.i.h.bf16 %v19906_v58  ;;  %v19907_v44 = vunpack.i.l.bf16 %v19906_v58 }
 0xd22   :  { %18233 = vmatprep.mubr.msk.bf16.mxu0 %vm143_vm0, %v7074_v62  ;;  %v7049_v35 = vsel %vm1058_vm3, %v7033_v24, %v19907_v44  ;;  %v7050_v34 = vsel %vm1058_vm3, %v7034_v30, %v19908_v14  ;;  %v21161_v14 = vld [vmem:[#allocation2 + $0x40] sm:$0xff]  ;;  %v21162_v30 = vld [vmem:[#allocation2 + $0x50] sm:$0xff]  ;;  %v21163_v24 = vld [vmem:[#allocation2 + $0x48] sm:$0xff] }
 0xd4c   :  { %v19916_v5 = vpop.permute.xlu1 %19915 }
 0xd4d   :  { %v19918_v51 = vunpack.i.h.bf16 %v19916_v5  ;;  %v19917_v21 = vunpack.i.l.bf16 %v19916_v5 }
 0xd4f   :  { %v7067_v23 = vsel %vm7051_vm4, %v7050_v34, %v19918_v51  ;;  %v7066_v13 = vsel %vm7051_vm4, %v7049_v35, %v19917_v21  ;;  %v21164_v35 = vld [vmem:[#allocation2 + $0x58] sm:$0xff] }
 0xd50   :  { %v7075_v9 = vpack.c.bf16 %v7067_v23, %v7066_v13 }
 0xd52   :  { %18234 = vmatmul.mubr.msk.bf16.gmra.mrb[84].mxu0 %vm143_vm0, %v7075_v9 }
 0xdc4   :  { %v18223_v4 = vpop.f32.mrb[72].mxu0 }
 0xdc5   :  { %v7150_v43 = vpop.f32.mrb[73].mxu0  ;;  %v7219_v56 = vadd.f32 %v18223_v4, %v23250_v41 }
 0xdc6   :  { %v7217_v36 = vadd.f32 %v23250_v41, %v7150_v43  ;;  %v18224_v3 = vpop.f32.mrb[74].mxu0 }
 0xdc7   :  { %v7153_v47 = vpop.f32.mrb[75].mxu0  ;;  %v7220_v31 = vadd.f32 %v18224_v3, %v23250_v41  ;;  %v23258_v18 = vadd.f32 %v21154_v26, %v7219_v56 }
 0xdc8   :  { %v23254_v55 = vadd.f32 %v21153_v48, %v7217_v36  ;;  %v7218_v8 = vadd.f32 %v23250_v41, %v7153_v47  ;;  %v21165_v48 = vld [vmem:[#allocation2 + $0x60] sm:$0xff] }
 0xdc9   :  { %v23266_v6 = vadd.f32 %v21156_v27, %v7220_v31  ;;  %v7255_v39 = vsel %vm143_vm0, %v23258_v18, 0.0 }
 0xdca   :  { %v23260_v60 = vadd.f32 %v21155_v11, %v7218_v8  ;;  %v7249_v61 = vsel %vm143_vm0, %v23254_v55, 0.0  ;;  %v21166_v11 = vld [vmem:[#allocation2 + $0x70] sm:$0xff] }
 0xdcb   :  { %7250 = vadd.xlane.f32.xlu0 %v7249_v61  ;;  %v7258_v1 = vsel %vm143_vm0, %v23266_v6, 0.0 }
 0xdcc   :  { %v18227_v22 = vpop.f32.mrb[76].mxu0  ;;  %v7252_v16 = vsel %vm143_vm0, %v23260_v60, 0.0 }
 0xdcd   :  { %7253 = vadd.xlane.f32.xlu1 %v7252_v16  ;;  %v7166_v45 = vpop.f32.mrb[77].mxu0  ;;  %v7223_v28 = vadd.f32 %v18227_v22, %v23250_v41  ;;  %v21167_v22 = vld [vmem:[#allocation2 + $0x68] sm:$0xff] }
 0xdce   :  { %v7221_v54 = vadd.f32 %v23250_v41, %v7166_v45  ;;  %v18228_v17 = vpop.f32.mrb[78].mxu0  ;;  %v21168_v45 = vld [vmem:[#allocation2 + $0x78] sm:$0xff] }
 0xdcf   :  { %7256 = vadd.xlane.f32.xlu0 %v7255_v39  ;;  %v7169_v2 = vpop.f32.mrb[79].mxu0  ;;  %v23277_v57 = vadd.f32 %v21158_v42, %v7223_v28  ;;  %v7224_v0 = vadd.f32 %v18228_v17, %v23250_v41 }
 0xdd0   :  { %v23272_v59 = vadd.f32 %v21157_v7, %v7221_v54  ;;  %v7222_v50 = vadd.f32 %v23250_v41, %v7169_v2 }
 0xdd1   :  { %v23284_v25 = vadd.f32 %v21160_v53, %v7224_v0  ;;  %v7267_v20 = vsel %vm143_vm0, %v23277_v57, 0.0 }
 0xdd2   :  { %v23280_v19 = vadd.f32 %v21159_v37, %v7222_v50  ;;  %v7261_v32 = vsel %vm143_vm0, %v23272_v59, 0.0 }
 0xdd3   :  { %7259 = vadd.xlane.f32.xlu0 %v7258_v1  ;;  %7262 = vadd.xlane.f32.xlu1 %v7261_v32  ;;  %v7270_v38 = vsel %vm143_vm0, %v23284_v25, 0.0 }
 0xdd4   :  { %v7264_v52 = vsel %vm143_vm0, %v23280_v19, 0.0 }
 0xdd7   :  { %7268 = vadd.xlane.f32.xlu1 %v7267_v20  ;;  %7265 = vadd.xlane.f32.xlu0 %v7264_v52 }
 0xddb   :  { %7271 = vadd.xlane.f32.xlu0 %v7270_v38 }
 0xdf0   :  { %v18231_v63 = vpop.f32.mrb[80].mxu0 }
 0xdf1   :  { %v7182_v62 = vpop.f32.mrb[81].mxu0  ;;  %v7227_v49 = vadd.f32 %v18231_v63, %v23250_v41 }
 0xdf2   :  { %v7225_v58 = vadd.f32 %v23250_v41, %v7182_v62  ;;  %v18232_v29 = vpop.f32.mrb[82].mxu0 }
 0xdf3   :  { %v7185_v33 = vpop.f32.mrb[83].mxu0  ;;  %v7228_v5 = vadd.f32 %v18232_v29, %v23250_v41  ;;  %v23298_v40 = vadd.f32 %v21162_v30, %v7227_v49 }
 0xdf4   :  { %v23294_v44 = vadd.f32 %v21161_v14, %v7225_v58  ;;  %v7226_v12 = vadd.f32 %v23250_v41, %v7185_v33 }
 0xdf5   :  { %v23304_v34 = vadd.f32 %v21164_v35, %v7228_v5  ;;  %v7279_v13 = vsel %vm143_vm0, %v23298_v40, 0.0 }
 0xdf6   :  { %v23300_v51 = vadd.f32 %v21163_v24, %v7226_v12  ;;  %v7273_v21 = vsel %vm143_vm0, %v23294_v44, 0.0 }
 0xdf7   :  { %7274 = vadd.xlane.f32.xlu1 %v7273_v21  ;;  %v7282_v9 = vsel %vm143_vm0, %v23304_v34, 0.0 }
 0xdf8   :  { %v7276_v23 = vsel %vm143_vm0, %v23300_v51, 0.0 }
 0xdf9   :  { %7277 = vadd.xlane.f32.xlu0 %v7276_v23 }
 0xdfb   :  { %7280 = vadd.xlane.f32.xlu1 %v7279_v13 }
 0xdfd   :  { %7283 = vadd.xlane.f32.xlu0 %v7282_v9 }
 0xe25   :  { %v18235_v4 = vpop.f32.mrb[84].mxu0 }
 0xe26   :  { %v7198_v43 = vpop.f32.mrb[85].mxu0  ;;  %v7231_v56 = vadd.f32 %v18235_v4, %v23250_v41 }
 0xe27   :  { %v7229_v36 = vadd.f32 %v23250_v41, %v7198_v43  ;;  %v18236_v3 = vpop.f32.mrb[86].mxu0 }
 0xe28   :  { %v7201_v47 = vpop.f32.mrb[87].mxu0  ;;  %v7232_v31 = vadd.f32 %v18236_v3, %v23250_v41  ;;  %v23318_v61 = vadd.f32 %v21166_v11, %v7231_v56 }
 0xe29   :  { %v23314_v8 = vadd.f32 %v21165_v48, %v7229_v36  ;;  %v7230_v26 = vadd.f32 %v23250_v41, %v7201_v47 }
 0xe2a   :  { %v23324_v28 = vadd.f32 %v21168_v45, %v7232_v31  ;;  %v7291_v41 = vsel %vm143_vm0, %v23318_v61, 0.0 }
 0xe2b   :  { %v23320_v16 = vadd.f32 %v21167_v22, %v7230_v26  ;;  %v7285_v27 = vsel %vm143_vm0, %v23314_v8, 0.0 }
 0xe2c   :  { %7286 = vadd.xlane.f32.xlu1 %v7285_v27  ;;  %v7294_v17 = vsel %vm143_vm0, %v23324_v28, 0.0 }
 0xe2d   :  { %v7288_v54 = vsel %vm143_vm0, %v23320_v16, 0.0 }
 0xe2e   :  { %7289 = vadd.xlane.f32.xlu0 %v7288_v54 }
 0xe30   :  { %7292 = vadd.xlane.f32.xlu1 %v7291_v41 }
 0xe32   :  { %7295 = vadd.xlane.f32.xlu0 %v7294_v17 }
 0xe58   :  { %v7251_v39 = vpop.xlane.xlu0 %7250 }
 0xe59   :  { %v7298_v2 = vmul.f32 0.03125, %v7251_v39 }
 0xe5a   :  { %v7254_v7 = vpop.xlane.xlu1 %7253 }
 0xe5b   :  { %v23333_v50 = vsub.f32 %v23254_v55, %v7298_v2  ;;  %v7299_v1 = vmul.f32 0.03125, %v7254_v7 }
 0xe5c   :  { %v7257_v42 = vpop.xlane.xlu0 %7256 }
 0xe5d   :  { %v23336_v0 = vsub.f32 %v23260_v60, %v7299_v1  ;;  %v7300_v37 = vmul.f32 0.03125, %v7257_v42  ;;  %v7330_v32 = vmul.f32 %v23333_v50, %v23333_v50  ;;  %v20363_v42 = vld [vmem:[#allocation7] sm:$0xff]  }
 0xe5e   :  { %18237 = vmatprep.subr.bf16.mxu1 %v20363_v42 }
 0xe5f   :  { %v23341_v53 = vsub.f32 %v23258_v18, %v7300_v37  ;;  %v7346_v20 = vsel %vm143_vm0, %v7330_v32, 0.0  ;;  %v7331_v52 = vmul.f32 %v23336_v0, %v23336_v0  ;;  %18238 = vmatpush3.bf16.msra.mxu1 %v20363_v42 }
 0xe60   :  { %v7260_v38 = vpop.xlane.xlu0 %7259  ;;  %v7263_v55 = vpop.xlane.xlu1 %7262  ;;  %7347 = vadd.xlane.f32.xlu1 %v7346_v20 }
 0xe61   :  { %v7301_v63 = vmul.f32 0.03125, %v7260_v38  ;;  %v7302_v62 = vmul.f32 0.03125, %v7263_v55  ;;  %v7349_v60 = vsel %vm143_vm0, %v7331_v52, 0.0  ;;  %v7332_v49 = vmul.f32 %v23341_v53, %v23341_v53 }
 0xe62   :  { %7350 = vadd.xlane.f32.xlu0 %v7349_v60 }
 0xe63   :  { %v23350_v58 = vsub.f32 %v23266_v6, %v7301_v63  ;;  %v23353_v18 = vsub.f32 %v23272_v59, %v7302_v62  ;;  %v7352_v29 = vsel %vm143_vm0, %v7332_v49, 0.0 }
 0xe64   :  { %v7269_v33 = vpop.xlane.xlu1 %7268  ;;  %v7266_v14 = vpop.xlane.xlu0 %7265  ;;  %7353 = vadd.xlane.f32.xlu1 %v7352_v29 }
 0xe65   :  { %v7304_v5 = vmul.f32 0.03125, %v7269_v33  ;;  %v7303_v12 = vmul.f32 0.03125, %v7266_v14  ;;  %v7334_v30 = vmul.f32 %v23353_v18, %v23353_v18  ;;  %v7333_v24 = vmul.f32 %v23350_v58, %v23350_v58 }
 0xe67   :  { %v23361_v21 = vsub.f32 %v23277_v57, %v7304_v5  ;;  %v23364_v6 = vsub.f32 %v23280_v19, %v7303_v12  ;;  %v7358_v59 = vsel %vm143_vm0, %v7334_v30, 0.0  ;;  %v7355_v35 = vsel %vm143_vm0, %v7333_v24, 0.0 }
 0xe68   :  { %v7272_v23 = vpop.xlane.xlu0 %7271  ;;  %7359 = vadd.xlane.f32.xlu1 %v7358_v59  ;;  %7356 = vadd.xlane.f32.xlu0 %v7355_v35 }
 0xe69   :  { %v7305_v13 = vmul.f32 0.03125, %v7272_v23  ;;  %v7336_v9 = vmul.f32 %v23361_v21, %v23361_v21  ;;  %v7335_v4 = vmul.f32 %v23364_v6, %v23364_v6 }
 0xe6b   :  { %v23373_v57 = vsub.f32 %v23284_v25, %v7305_v13  ;;  %v7364_v19 = vsel %vm143_vm0, %v7336_v9, 0.0  ;;  %v7361_v43 = vsel %vm143_vm0, %v7335_v4, 0.0 }
 0xe6c   :  { %7365 = vadd.xlane.f32.xlu1 %v7364_v19  ;;  %7362 = vadd.xlane.f32.xlu0 %v7361_v43 }
 0xe6d   :  { %v7337_v56 = vmul.f32 %v23373_v57, %v23373_v57 }
 0xe6f   :  { %v7367_v36 = vsel %vm143_vm0, %v7337_v56, 0.0 }
 0xe70   :  { %7368 = vadd.xlane.f32.xlu0 %v7367_v36 }
 0xe84   :  { %v7275_v3 = vpop.xlane.xlu1 %7274 }
 0xe85   :  { %v7306_v47 = vmul.f32 0.03125, %v7275_v3 }
 0xe86   :  { %v7278_v48 = vpop.xlane.xlu0 %7277 }
 0xe87   :  { %v23381_v31 = vsub.f32 %v23294_v44, %v7306_v47  ;;  %v7307_v25 = vmul.f32 0.03125, %v7278_v48 }
 0xe88   :  { %v7281_v26 = vpop.xlane.xlu1 %7280 }
 0xe89   :  { %v23384_v11 = vsub.f32 %v23300_v51, %v7307_v25  ;;  %v7308_v22 = vmul.f32 0.03125, %v7281_v26  ;;  %v7338_v27 = vmul.f32 %v23381_v31, %v23381_v31 }
 0xe8a   :  { %v7284_v45 = vpop.xlane.xlu0 %7283 }
 0xe8b   :  { %v23389_v54 = vsub.f32 %v23298_v40, %v7308_v22  ;;  %v7309_v41 = vmul.f32 0.03125, %v7284_v45  ;;  %v7370_v17 = vsel %vm143_vm0, %v7338_v27, 0.0  ;;  %v7339_v44 = vmul.f32 %v23384_v11, %v23384_v11 }
 0xe8c   :  { %7371 = vadd.xlane.f32.xlu1 %v7370_v17  ;;  %v20365_v17 = vld [vmem:[%s26351_s5] sm:$0xff]  }
 0xe8d   :  { %v23395_v39 = vsub.f32 %v23304_v34, %v7309_v41  ;;  %v7373_v51 = vsel %vm143_vm0, %v7339_v44, 0.0  ;;  %v7340_v2 = vmul.f32 %v23389_v54, %v23389_v54  ;;  %v20364_v34 = vld [vmem:[#allocation7 + $0x8] sm:$0xff]   ;;  %18257 = vmatprep.subr.bf16.mxu0 %v20365_v17 }
 0xe8e   :  { %7374 = vadd.xlane.f32.xlu0 %v7373_v51  ;;  %18239 = vmatprep.subr.bf16.mxu1 %v20364_v34  ;;  %v20366_v44 = vld [vmem:[%s26351_s5 + $0x8] sm:$0xff]  }
 0xe8f   :  { %v7376_v7 = vsel %vm143_vm0, %v7340_v2, 0.0  ;;  %v7341_v40 = vmul.f32 %v23395_v39, %v23395_v39  ;;  %18240 = vmatpush3.bf16.msra.mxu1 %v20364_v34  ;;  %18258 = vmatpush3.bf16.msra.mxu0 %v20365_v17 }
 0xe90   :  { %7377 = vadd.xlane.f32.xlu1 %v7376_v7  ;;  %18259 = vmatprep.subr.bf16.mxu0 %v20366_v44 }
 0xe91   :  { %v7379_v1 = vsel %vm143_vm0, %v7341_v40, 0.0 }
 0xe92   :  { %7380 = vadd.xlane.f32.xlu0 %v7379_v1 }
 0xe93   :  { %18260 = vmatpush3.bf16.msra.mxu0 %v20366_v44 }
 0xeb9   :  { %v7287_v37 = vpop.xlane.xlu1 %7286 }
 0xeba   :  { %v7310_v32 = vmul.f32 0.03125, %v7287_v37 }
 0xebb   :  { %v7290_v20 = vpop.xlane.xlu0 %7289 }
 0xebc   :  { %v23405_v52 = vsub.f32 %v23314_v8, %v7310_v32  ;;  %v7311_v38 = vmul.f32 0.03125, %v7290_v20 }
 0xebd   :  { %v7293_v55 = vpop.xlane.xlu1 %7292 }
 0xebe   :  { %v23408_v63 = vsub.f32 %v23320_v16, %v7311_v38  ;;  %v7312_v62 = vmul.f32 0.03125, %v7293_v55  ;;  %v7342_v60 = vmul.f32 %v23405_v52, %v23405_v52 }
 0xebf   :  { %v7296_v49 = vpop.xlane.xlu0 %7295 }
 0xec0   :  { %v23413_v29 = vsub.f32 %v23318_v61, %v7312_v62  ;;  %v7313_v33 = vmul.f32 0.03125, %v7296_v49  ;;  %v7382_v14 = vsel %vm143_vm0, %v7342_v60, 0.0  ;;  %v7343_v8 = vmul.f32 %v23408_v63, %v23408_v63 }
 0xec1   :  { %7383 = vadd.xlane.f32.xlu1 %v7382_v14 }
 0xec2   :  { %v23419_v5 = vsub.f32 %v23324_v28, %v7313_v33  ;;  %v7385_v16 = vsel %vm143_vm0, %v7343_v8, 0.0  ;;  %v7344_v12 = vmul.f32 %v23413_v29, %v23413_v29 }
 0xec3   :  { %7386 = vadd.xlane.f32.xlu0 %v7385_v16 }
 0xec4   :  { %v7388_v30 = vsel %vm143_vm0, %v7344_v12, 0.0  ;;  %v7345_v61 = vmul.f32 %v23419_v5, %v23419_v5  ;;  %v26584_v12 = vld [vmem:[#allocation15_spill] sm:$0xff] }
 0xec5   :  { %7389 = vadd.xlane.f32.xlu1 %v7388_v30  ;;  %v23447_v30 = vsub.s32 1, %v26584_v12 }
 0xec6   :  { %v7391_v24 = vsel %vm143_vm0, %v7345_v61, 0.0 }
 0xec7   :  { %7392 = vadd.xlane.f32.xlu0 %v7391_v24  ;;  %26585 = vst [vmem:[#allocation18_spill] sm:$0xff] %v23447_v30 }
 0xeed   :  { %v7348_v59 = vpop.xlane.xlu1 %7347 }
 0xeee   :  { %v7394_v35 = vmul.f32 0.03125, %v7348_v59 }
 0xeef   :  { %v7351_v23 = vpop.xlane.xlu0 %7350 }
 0xef0   :  { %v7410_v28 = vadd.f32 1e-05, %v7394_v35  ;;  %v7395_v13 = vmul.f32 0.03125, %v7351_v23  ;;  %v26411_v35 = vsub.s32 2, %v26584_v12 }
 0xef1   :  { %v7354_v9 = vpop.xlane.xlu1 %7353 }
 0xef2   :  { %20647 = vrsqrt.f32 %v7410_v28  ;;  %v7411_v4 = vadd.f32 1e-05, %v7395_v13  ;;  %v7396_v19 = vmul.f32 0.03125, %v7354_v9  ;;  %vm7428_vm5 = vcmp.eq.f32.partialorder %v7410_v28, inf }
 0xef3   :  { %v7431_v1 = vand.u32 2147483648, %v7410_v28  ;;  %vm7430_vm6 = vcmp.eq.f32.partialorder %v7410_v28, 0.0 }
 0xef4   :  { %20649 = vrsqrt.f32 %v7411_v4  ;;  %v7412_v36 = vadd.f32 1e-05, %v7396_v19  ;;  %vm7435_vm7 = vcmp.eq.f32.partialorder %v7411_v4, inf  ;;  %v7438_v38 = vand.u32 2147483648, %v7411_v4 }
 0xef5   :  { %v7360_v43 = vpop.xlane.xlu1 %7359  ;;  %v7357_v56 = vpop.xlane.xlu0 %7356  ;;  %vm7437_vm8 = vcmp.eq.f32.partialorder %v7411_v4, 0.0 }
 0xef6   :  { %v7398_v3 = vmul.f32 0.03125, %v7360_v43  ;;  %v7397_v47 = vmul.f32 0.03125, %v7357_v56  ;;  %20651 = vrsqrt.f32 %v7412_v36  ;;  %vm7442_vm9 = vcmp.eq.f32.partialorder %v7412_v36, inf }
 0xef7   :  { %v7445_v14 = vand.u32 2147483648, %v7412_v36  ;;  %vm7444_vm10 = vcmp.eq.f32.partialorder %v7412_v36, 0.0  ;;  %v23457_v56 = vrot.slane %v23246_v46, %v23447_v30 }
 0xef8   :  { %v7414_v48 = vadd.f32 1e-05, %v7398_v3  ;;  %v23428_v25 = vadd.f32 1e-05, %v7397_v47 }
 0xef9   :  { %v7366_v26 = vpop.xlane.xlu1 %7365  ;;  %v7363_v22 = vpop.xlane.xlu0 %7362 }
 0xefa   :  { %v7400_v27 = vmul.f32 0.03125, %v7366_v26  ;;  %v7399_v45 = vmul.f32 0.03125, %v7363_v22  ;;  %20653 = vrsqrt.f32 %v7414_v48  ;;  %vm7456_vm11 = vcmp.eq.f32.partialorder %v7414_v48, inf }
 0xefb   :  { %20655 = vrsqrt.f32 %v23428_v25  ;;  %v7459_v23 = vand.u32 2147483648, %v7414_v48  ;;  %vm7458_vm12 = vcmp.eq.f32.partialorder %v7414_v48, 0.0  ;;  %vm7449_vm13 = vcmp.eq.f32.partialorder %v23428_v25, inf }
 0xefc   :  { %v20648_v41 = vpop.eup %20647  ;;  %v23437_v2 = vadd.f32 1e-05, %v7400_v27  ;;  %v23439_v7 = vadd.f32 1e-05, %v7399_v45  ;;  %v7452_v9 = vand.u32 2147483648, %v23428_v25  ;;  %vm7451_vm14 = vcmp.eq.f32.partialorder %v23428_v25, 0.0 }
 0xefd   :  { %v7427_v51 = vmul.f32 %v20648_v41, %v7410_v28  ;;  %v7369_v40 = vpop.xlane.xlu0 %7368 }
 0xefe   :  { %v7401_v42 = vmul.f32 0.03125, %v7369_v40  ;;  %v20650_v34 = vpop.eup %20649  ;;  %20657 = vrsqrt.f32 %v23437_v2  ;;  %vm7470_vm15 = vcmp.eq.f32.partialorder %v23437_v2, inf  ;;  %v7473_v26 = vand.u32 2147483648, %v23437_v2 }
 0xeff   :  { %v7429_v37 = vsel %vm7428_vm5, %v7410_v28, %v7427_v51  ;;  %v7434_v20 = vmul.f32 %v20650_v34, %v7411_v4  ;;  %20659 = vrsqrt.f32 %v23439_v7  ;;  %vm7472_vm5 = vcmp.eq.f32.partialorder %v23437_v2, 0.0 }
 0xf00   :  { %v7432_v32 = vsel %vm7430_vm6, %v7431_v1, %v7429_v37  ;;  %v20652_v55 = vpop.eup %20651  ;;  %v23443_v60 = vadd.f32 1e-05, %v7401_v42  ;;  %vm7463_vm6 = vcmp.eq.f32.partialorder %v23439_v7, inf  ;;  %v7466_v27 = vand.u32 2147483648, %v23439_v7 }
 0xf01   :  { %20661 = vrcp.f32 %v7432_v32  ;;  %v7436_v62 = vsel %vm7435_vm7, %v7411_v4, %v7434_v20  ;;  %v7441_v33 = vmul.f32 %v20652_v55, %v7412_v36  ;;  %vm7465_vm7 = vcmp.eq.f32.partialorder %v23439_v7, 0.0 }
 0xf02   :  { %v7439_v49 = vsel %vm7437_vm8, %v7438_v38, %v7436_v62  ;;  %vm7477_vm8 = vcmp.eq.f32.partialorder %v23443_v60, inf }
 0xf03   :  { %20663 = vrcp.f32 %v7439_v49  ;;  %v7443_v16 = vsel %vm7442_vm9, %v7412_v36, %v7441_v33  ;;  %vm7479_vm9 = vcmp.eq.f32.partialorder %v23443_v60, 0.0 }
 0xf04   :  { %v20654_v8 = vpop.eup %20653  ;;  %20665 = vrsqrt.f32 %v23443_v60  ;;  %v7446_v24 = vsel %vm7444_vm10, %v7445_v14, %v7443_v16 }
 0xf05   :  { %v20656_v61 = vpop.eup %20655  ;;  %v7455_v59 = vmul.f32 %v20654_v8, %v7414_v48  ;;  %20667 = vrcp.f32 %v7446_v24 }
 0xf06   :  { %v7448_v28 = vmul.f32 %v20656_v61, %v23428_v25 }
 0xf07   :  { %v7457_v13 = vsel %vm7456_vm11, %v7414_v48, %v7455_v59 }
 0xf08   :  { %v20658_v4 = vpop.eup %20657  ;;  %v7460_v19 = vsel %vm7458_vm12, %v7459_v23, %v7457_v13  ;;  %v7450_v43 = vsel %vm7449_vm13, %v23428_v25, %v7448_v28 }
 0xf09   :  { %v20660_v36 = vpop.eup %20659  ;;  %20669 = vrcp.f32 %v7460_v19  ;;  %v7453_v3 = vsel %vm7451_vm14, %v7452_v9, %v7450_v43  ;;  %v7469_v47 = vmul.f32 %v20658_v4, %v23437_v2 }
 0xf0a   :  { %20671 = vrcp.f32 %v7453_v3  ;;  %v7462_v22 = vmul.f32 %v20660_v36, %v23439_v7 }
 0xf0b   :  { %v20662_v48 = vpop.eup %20661  ;;  %v7471_v25 = vsel %vm7470_vm15, %v23437_v2, %v7469_v47  ;;  %v23475_v2 = vrot.slane %v23246_v46, %v26411_v35 }
 0xf0c   :  { %v7539_v45 = vmul.f32 %v20662_v48, %v23333_v50  ;;  %v7474_v41 = vsel %vm7472_vm5, %v7473_v26, %v7471_v25  ;;  %v7464_v17 = vsel %vm7463_vm6, %v23439_v7, %v7462_v22  ;;  %v7480_v7 = vand.u32 2147483648, %v23443_v60 }
 0xf0d   :  { %v20664_v44 = vpop.eup %20663  ;;  %v7467_v51 = vsel %vm7465_vm7, %v7466_v27, %v7464_v17 }
 0xf0e   :  { %v20666_v40 = vpop.eup %20665  ;;  %20673 = vrcp.f32 %v7467_v51  ;;  %v7541_v1 = vmul.f32 %v20664_v44, %v23336_v0  ;;  %v7574_v42 = vmul.f32 %v23457_v56, %v7539_v45 }
 0xf0f   :  { %20675 = vrcp.f32 %v7474_v41  ;;  %v7476_v50 = vmul.f32 %v20666_v40, %v23443_v60  ;;  %v20668_v34 = vpop.eup %20667 }
 0xf10   :  { %v7575_v37 = vmul.f32 %v23457_v56, %v7541_v1  ;;  %v7543_v0 = vmul.f32 %v20668_v34, %v23341_v53  ;;  %v23485_v46 = vadd.f32 %v23475_v2, %v7574_v42 }
 0xf11   :  { %v7478_v32 = vsel %vm7477_vm8, %v23443_v60, %v7476_v50 }
 0xf12   :  { %v7481_v20 = vsel %vm7479_vm9, %v7480_v7, %v7478_v32  ;;  %v23488_v38 = vadd.f32 %v23475_v2, %v7575_v37  ;;  %v7576_v14 = vmul.f32 %v23457_v56, %v7543_v0 }
 0xf13   :  { %v20670_v55 = vpop.eup %20669  ;;  %20677 = vrcp.f32 %v7481_v20 }
 0xf14   :  { %v20672_v62 = vpop.eup %20671  ;;  %v7610_v49 = vpack.c.bf16 %v23488_v38, %v23485_v46  ;;  %v7547_v53 = vmul.f32 %v20670_v55, %v23353_v18  ;;  %v23498_v59 = vadd.f32 %v23475_v2, %v7576_v14 }
 0xf15   :  { %v7545_v33 = vmul.f32 %v20672_v62, %v23350_v58 }
 0xf16   :  { %18241 = vmatprep.mubr.msk.bf16.mxu1 %vm143_vm0, %v7610_v49  ;;  %v7578_v13 = vmul.f32 %v23457_v56, %v7547_v53 }
 0xf17   :  { %v7577_v60 = vmul.f32 %v23457_v56, %v7545_v33 }
 0xf18   :  { %v20674_v8 = vpop.eup %20673  ;;  %v23515_v27 = vadd.f32 %v23475_v2, %v7578_v13 }
 0xf19   :  { %v7372_v16 = vpop.xlane.xlu1 %7371  ;;  %v20676_v61 = vpop.eup %20675  ;;  %v23501_v23 = vadd.f32 %v23475_v2, %v7577_v60  ;;  %v7549_v58 = vmul.f32 %v20674_v8, %v23364_v6 }
 0xf1a   :  { %v7402_v24 = vmul.f32 0.03125, %v7372_v16  ;;  %v7551_v36 = vmul.f32 %v20676_v61, %v23361_v21 }
 0xf1b   :  { %v7375_v28 = vpop.xlane.xlu0 %7374  ;;  %v7611_v18 = vpack.c.bf16 %v23501_v23, %v23498_v59  ;;  %v7579_v19 = vmul.f32 %v23457_v56, %v7549_v58 }
 0xf1c   :  { %v7418_v9 = vadd.f32 1e-05, %v7402_v24  ;;  %v7403_v4 = vmul.f32 0.03125, %v7375_v28  ;;  %v7580_v45 = vmul.f32 %v23457_v56, %v7551_v36 }
 0xf1d   :  { %v7378_v43 = vpop.xlane.xlu1 %7377  ;;  %v20678_v3 = vpop.eup %20677  ;;  %18242 = vmatmul.mubr.msk.bf16.vlgmr.msra.gmra.mrb[72].mxu1 %vm143_vm0, %v7611_v18  ;;  %v23511_v26 = vadd.f32 %v23475_v2, %v7579_v19 }
 0xf1e   :  { %20679 = vrsqrt.f32 %v7418_v9  ;;  %v7419_v47 = vadd.f32 1e-05, %v7403_v4  ;;  %v7404_v48 = vmul.f32 0.03125, %v7378_v43  ;;  %v7553_v22 = vmul.f32 %v20678_v3, %v23373_v57 }
 0xf1f   :  { %v7381_v6 = vpop.xlane.xlu0 %7380  ;;  %v7612_v17 = vpack.c.bf16 %v23511_v26, %v23515_v27  ;;  %v23523_v57 = vadd.f32 %v23475_v2, %v7580_v45  ;;  %vm7484_vm10 = vcmp.eq.f32.partialorder %v7418_v9, inf  ;;  %v7487_v50 = vand.u32 2147483648, %v7418_v9 }
 0xf20   :  { %v7405_v25 = vmul.f32 0.03125, %v7381_v6  ;;  %20681 = vrsqrt.f32 %v7419_v47  ;;  %v7420_v21 = vadd.f32 1e-05, %v7404_v48  ;;  %v7581_v44 = vmul.f32 %v23457_v56, %v7553_v22 }
 0xf21   :  { %18245 = vmatprep.mubr.msk.bf16.mxu1 %vm143_vm0, %v7612_v17  ;;  %vm7486_vm11 = vcmp.eq.f32.partialorder %v7418_v9, 0.0  ;;  %vm7491_vm12 = vcmp.eq.f32.partialorder %v7419_v47, inf  ;;  %v7494_v0 = vand.u32 2147483648, %v7419_v47  ;;  %vm7493_vm13 = vcmp.eq.f32.partialorder %v7419_v47, 0.0 }
 0xf22   :  { %v7421_v41 = vadd.f32 1e-05, %v7405_v25  ;;  %20683 = vrsqrt.f32 %v7420_v21  ;;  %v23526_v51 = vadd.f32 %v23475_v2, %v7581_v44  ;;  %vm7498_vm14 = vcmp.eq.f32.partialorder %v7420_v21, inf }
 0xf23   :  { %v7501_v14 = vand.u32 2147483648, %v7420_v21  ;;  %vm7500_vm15 = vcmp.eq.f32.partialorder %v7420_v21, 0.0 }
 0xf24   :  { %20685 = vrsqrt.f32 %v7421_v41  ;;  %v7613_v1 = vpack.c.bf16 %v23526_v51, %v23523_v57  ;;  %vm7505_vm5 = vcmp.eq.f32.partialorder %v7421_v41, inf  ;;  %v7508_v8 = vand.u32 2147483648, %v7421_v41 }
 0xf25   :  { %vm7507_vm6 = vcmp.eq.f32.partialorder %v7421_v41, 0.0 }
 0xf26   :  { %18246 = vmatmul.mubr.msk.bf16.gmra.mrb[76].mxu1 %vm143_vm0, %v7613_v1 }
 0xf28   :  { %v20680_v40 = vpop.eup %20679 }
 0xf29   :  { %v7483_v42 = vmul.f32 %v20680_v40, %v7418_v9 }
 0xf2a   :  { %v20682_v34 = vpop.eup %20681 }
 0xf2b   :  { %v7485_v7 = vsel %vm7484_vm10, %v7418_v9, %v7483_v42  ;;  %v7490_v32 = vmul.f32 %v20682_v34, %v7419_v47 }
 0xf2c   :  { %v7488_v37 = vsel %vm7486_vm11, %v7487_v50, %v7485_v7  ;;  %v20684_v20 = vpop.eup %20683 }
 0xf2d   :  { %20687 = vrcp.f32 %v7488_v37  ;;  %v7492_v55 = vsel %vm7491_vm12, %v7419_v47, %v7490_v32  ;;  %v7497_v33 = vmul.f32 %v20684_v20, %v7420_v21 }
 0xf2e   :  { %v20686_v62 = vpop.eup %20685  ;;  %v7495_v49 = vsel %vm7493_vm13, %v7494_v0, %v7492_v55 }
 0xf2f   :  { %20689 = vrcp.f32 %v7495_v49  ;;  %v7504_v53 = vmul.f32 %v20686_v62, %v7421_v41  ;;  %v7499_v60 = vsel %vm7498_vm14, %v7420_v21, %v7497_v33 }
 0xf30   :  { %v7502_v16 = vsel %vm7500_vm15, %v7501_v14, %v7499_v60  ;;  %vm7819_vm15 = vcmask 523264  }
 0xf31   :  { %v7506_v61 = vsel %vm7505_vm5, %v7421_v41, %v7504_v53  ;;  %20691 = vrcp.f32 %v7502_v16 }
 0xf32   :  { %v7509_v24 = vsel %vm7507_vm6, %v7508_v8, %v7506_v61 }
 0xf33   :  { %20693 = vrcp.f32 %v7509_v24 }
 0xf37   :  { %v20688_v58 = vpop.eup %20687 }
 0xf38   :  { %v7555_v28 = vmul.f32 %v20688_v58, %v23381_v31 }
 0xf39   :  { %v20690_v13 = vpop.eup %20689 }
 0xf3a   :  { %v7557_v9 = vmul.f32 %v20690_v13, %v23384_v11  ;;  %v7582_v4 = vmul.f32 %v23457_v56, %v7555_v28 }
 0xf3b   :  { %v20692_v18 = vpop.eup %20691 }
 0xf3c   :  { %v7583_v19 = vmul.f32 %v23457_v56, %v7557_v9  ;;  %v7559_v36 = vmul.f32 %v20692_v18, %v23389_v54  ;;  %v23537_v3 = vadd.f32 %v23475_v2, %v7582_v4 }
 0xf3d   :  { %v20694_v43 = vpop.eup %20693 }
 0xf3e   :  { %v23540_v47 = vadd.f32 %v23475_v2, %v7583_v19  ;;  %v7561_v48 = vmul.f32 %v20694_v43, %v23395_v39  ;;  %v7584_v31 = vmul.f32 %v23457_v56, %v7559_v36 }
 0xf40   :  { %v7614_v11 = vpack.c.bf16 %v23540_v47, %v23537_v3  ;;  %v7585_v6 = vmul.f32 %v23457_v56, %v7561_v48  ;;  %v23549_v22 = vadd.f32 %v23475_v2, %v7584_v31 }
 0xf42   :  { %18249 = vmatprep.mubr.msk.bf16.mxu1 %vm143_vm0, %v7614_v11  ;;  %v23552_v54 = vadd.f32 %v23475_v2, %v7585_v6 }
 0xf44   :  { %v7615_v25 = vpack.c.bf16 %v23552_v54, %v23549_v22 }
 0xf46   :  { %18250 = vmatmul.mubr.msk.bf16.gmra.mrb[80].mxu1 %vm143_vm0, %v7615_v25 }
 0xf4e   :  { %v7384_v39 = vpop.xlane.xlu1 %7383 }
 0xf4f   :  { %v7406_v45 = vmul.f32 0.03125, %v7384_v39 }
 0xf50   :  { %v7387_v21 = vpop.xlane.xlu0 %7386 }
 0xf51   :  { %v7422_v41 = vadd.f32 1e-05, %v7406_v45  ;;  %v7407_v17 = vmul.f32 0.03125, %v7387_v21 }
 0xf52   :  { %v7390_v44 = vpop.xlane.xlu1 %7389 }
 0xf53   :  { %20695 = vrsqrt.f32 %v7422_v41  ;;  %v7423_v40 = vadd.f32 1e-05, %v7407_v17  ;;  %v7408_v1 = vmul.f32 0.03125, %v7390_v44  ;;  %vm7512_vm7 = vcmp.eq.f32.partialorder %v7422_v41, inf  ;;  %v20367_v44 = vld [vmem:[%s26351_s5 + $0x10] sm:$0xff]  }
 0xf54   :  { %v7393_v42 = vpop.xlane.xlu0 %7392  ;;  %v7515_v0 = vand.u32 2147483648, %v7422_v41  ;;  %vm7514_vm8 = vcmp.eq.f32.partialorder %v7422_v41, 0.0  ;;  %18261 = vmatprep.subr.bf16.mxu0 %v20367_v44 }
 0xf55   :  { %v7409_v50 = vmul.f32 0.03125, %v7393_v42  ;;  %20697 = vrsqrt.f32 %v7423_v40  ;;  %v7424_v34 = vadd.f32 1e-05, %v7408_v1  ;;  %vm7519_vm9 = vcmp.eq.f32.partialorder %v7423_v40, inf  ;;  %18262 = vmatpush3.bf16.msra.mxu0 %v20367_v44 }
 0xf56   :  { %v7522_v33 = vand.u32 2147483648, %v7423_v40  ;;  %vm7521_vm10 = vcmp.eq.f32.partialorder %v7423_v40, 0.0 }
 0xf57   :  { %v7425_v7 = vadd.f32 1e-05, %v7409_v50  ;;  %20699 = vrsqrt.f32 %v7424_v34  ;;  %vm7526_vm11 = vcmp.eq.f32.partialorder %v7424_v34, inf  ;;  %v7529_v61 = vand.u32 2147483648, %v7424_v34 }
 0xf58   :  { %vm7528_vm12 = vcmp.eq.f32.partialorder %v7424_v34, 0.0 }
 0xf59   :  { %20701 = vrsqrt.f32 %v7425_v7  ;;  %vm7533_vm13 = vcmp.eq.f32.partialorder %v7425_v7, inf  ;;  %v7536_v28 = vand.u32 2147483648, %v7425_v7  ;;  %vm7535_vm14 = vcmp.eq.f32.partialorder %v7425_v7, 0.0 }
 0xf5d   :  { %v20696_v37 = vpop.eup %20695 }
 0xf5e   :  { %v7511_v32 = vmul.f32 %v20696_v37, %v7422_v41 }
 0xf5f   :  { %v20698_v20 = vpop.eup %20697 }
 0xf60   :  { %v7513_v55 = vsel %vm7512_vm7, %v7422_v41, %v7511_v32  ;;  %v7518_v49 = vmul.f32 %v20698_v20, %v7423_v40 }
 0xf61   :  { %v7516_v62 = vsel %vm7514_vm8, %v7515_v0, %v7513_v55  ;;  %v20700_v14 = vpop.eup %20699 }
 0xf62   :  { %20703 = vrcp.f32 %v7516_v62  ;;  %v7520_v53 = vsel %vm7519_vm9, %v7423_v40, %v7518_v49  ;;  %v7525_v16 = vmul.f32 %v20700_v14, %v7424_v34 }
 0xf63   :  { %v20702_v60 = vpop.eup %20701  ;;  %v7523_v8 = vsel %vm7521_vm10, %v7522_v33, %v7520_v53 }
 0xf64   :  { %20705 = vrcp.f32 %v7523_v8  ;;  %v7532_v24 = vmul.f32 %v20702_v60, %v7425_v7  ;;  %v7527_v58 = vsel %vm7526_vm11, %v7424_v34, %v7525_v16 }
 0xf65   :  { %v7530_v13 = vsel %vm7528_vm12, %v7529_v61, %v7527_v58 }
 0xf66   :  { %v7534_v9 = vsel %vm7533_vm13, %v7425_v7, %v7532_v24  ;;  %20707 = vrcp.f32 %v7530_v13 }
 0xf67   :  { %v7537_v4 = vsel %vm7535_vm14, %v7536_v28, %v7534_v9 }
 0xf68   :  { %20709 = vrcp.f32 %v7537_v4 }
 0xf6c   :  { %v20704_v18 = vpop.eup %20703 }
 0xf6d   :  { %v7563_v19 = vmul.f32 %v20704_v18, %v23405_v52 }
 0xf6e   :  { %v20706_v43 = vpop.eup %20705 }
 0xf6f   :  { %v7565_v36 = vmul.f32 %v20706_v43, %v23408_v63  ;;  %v7586_v48 = vmul.f32 %v23457_v56, %v7563_v19 }
 0xf70   :  { %v20708_v31 = vpop.eup %20707 }
 0xf71   :  { %v7587_v11 = vmul.f32 %v23457_v56, %v7565_v36  ;;  %v7567_v25 = vmul.f32 %v20708_v31, %v23413_v29  ;;  %v23563_v39 = vadd.f32 %v23475_v2, %v7586_v48 }
 0xf72   :  { %v20710_v6 = vpop.eup %20709 }
 0xf73   :  { %v23566_v45 = vadd.f32 %v23475_v2, %v7587_v11  ;;  %v7569_v21 = vmul.f32 %v20710_v6, %v23419_v5  ;;  %v7588_v52 = vmul.f32 %v23457_v56, %v7567_v25  ;;  %v20368_v5 = vld [vmem:[%s26351_s5 + $0x18] sm:$0xff]  }
 0xf74   :  { %18263 = vmatprep.subr.bf16.mxu0 %v20368_v5 }
 0xf75   :  { %v7616_v63 = vpack.c.bf16 %v23566_v45, %v23563_v39  ;;  %v7589_v41 = vmul.f32 %v23457_v56, %v7569_v21  ;;  %v23575_v17 = vadd.f32 %v23475_v2, %v7588_v52  ;;  %18264 = vmatpush3.bf16.msra.mxu0 %v20368_v5  ;;  %v21169_v56 = vld [vmem:[%s26352_s6] sm:$0x3] }
 0xf77   :  { %18253 = vmatprep.mubr.msk.bf16.mxu1 %vm143_vm0, %v7616_v63  ;;  %v23578_v29 = vadd.f32 %v23475_v2, %v7589_v41  ;;  %v7625_v2 = vrot.slane %v21169_v56, %v23447_v30 }
 0xf79   :  { %v7617_v40 = vpack.c.bf16 %v23578_v29, %v23575_v17 }
 0xf7b   :  { %18254 = vmatmul.mubr.msk.bf16.gmra.mrb[84].mxu1 %vm143_vm0, %v7617_v40 }
 0xff0   :  { %v18243_v1 = vpop.f32.mrb[72].mxu1 }
 0xff1   :  { %v7705_v42 = vadd.f32 %v18243_v1, %v7625_v2  ;;  %v7696_v50 = vpop.f32.mrb[73].mxu1 }
 0xff2   :  { %v7697_v34 = vadd.f32 %v7696_v50, %v7625_v2  ;;  %v18244_v7 = vpop.f32.mrb[74].mxu1 }
 0xff3   :  { %v7708_v37 = vadd.f32 %v18244_v7, %v7625_v2  ;;  %v7699_v32 = vpop.f32.mrb[75].mxu1  ;;  %v7761_v20 = vmax.f32 %v7705_v42, 0.0 }
 0xff4   :  { %v7700_v0 = vadd.f32 %v7699_v32, %v7625_v2  ;;  %v7759_v62 = vmax.f32 %v7697_v34, 0.0 }
 0xff5   :  { %v7762_v55 = vmax.f32 %v7708_v37, 0.0 }
 0xff6   :  { %v7760_v49 = vmax.f32 %v7700_v0, 0.0 }
 0xff7   :  { %v7776_v33 = vpack.c.bf16 %v7762_v55, %v7761_v20 }
 0xff8   :  { %v7775_v14 = vpack.c.bf16 %v7760_v49, %v7759_v62 }
 0xff9   :  { %v18247_v53 = vpop.f32.mrb[76].mxu1 }
 0xffa   :  { %18265 = vmatprep.mubr.msk.bf16.mxu0 %vm7819_vm15, %v7775_v14  ;;  %v7721_v60 = vadd.f32 %v18247_v53, %v7625_v2  ;;  %v7712_v8 = vpop.f32.mrb[77].mxu1  ;;  %v26410_v53 = vsub.s32 5, %v26584_v12 }
 0xffb   :  { %18266 = vmatmul.mubr.msk.bf16.vlgmr.msra.gmra.mrb[88].mxu0 %vm7819_vm15, %v7776_v33  ;;  %v7713_v16 = vadd.f32 %v7712_v8, %v7625_v2  ;;  %v18248_v61 = vpop.f32.mrb[78].mxu1 }
 0xffc   :  { %v7724_v24 = vadd.f32 %v18248_v61, %v7625_v2  ;;  %v7715_v58 = vpop.f32.mrb[79].mxu1  ;;  %v7765_v13 = vmax.f32 %v7721_v60, 0.0  ;;  %v23602_v60 = vld [vmem:[#allocation8] sm:$0xff] }
 0xffd   :  { %v7716_v28 = vadd.f32 %v7715_v58, %v7625_v2  ;;  %v7763_v4 = vmax.f32 %v7713_v16, 0.0  ;;  %v23607_v8 = vrot.slane %v23602_v60, %v26410_v53 }
 0xffe   :  { %v7766_v9 = vmax.f32 %v7724_v24, 0.0 }
 0xfff   :  { %v7764_v18 = vmax.f32 %v7716_v28, 0.0 }
0x1000   :  { %v7778_v19 = vpack.c.bf16 %v7766_v9, %v7765_v13 }
0x1001   :  { %v7777_v43 = vpack.c.bf16 %v7764_v18, %v7763_v4 }
0x1003   :  { %18269 = vmatprep.mubr.msk.bf16.mxu0 %vm7819_vm15, %v7777_v43 }
0x1004   :  { %18270 = vmatmul.mubr.msk.bf16.gmra.mrb[92].mxu0 %vm7819_vm15, %v7778_v19 }
0x1019   :  { %v18251_v36 = vpop.f32.mrb[80].mxu1 }
0x101a   :  { %v7737_v48 = vadd.f32 %v18251_v36, %v7625_v2  ;;  %v7728_v31 = vpop.f32.mrb[81].mxu1 }
0x101b   :  { %v7729_v11 = vadd.f32 %v7728_v31, %v7625_v2  ;;  %v18252_v6 = vpop.f32.mrb[82].mxu1 }
0x101c   :  { %v7740_v25 = vadd.f32 %v18252_v6, %v7625_v2  ;;  %v7731_v21 = vpop.f32.mrb[83].mxu1  ;;  %v7769_v63 = vmax.f32 %v7737_v48, 0.0 }
0x101d   :  { %v7732_v52 = vadd.f32 %v7731_v21, %v7625_v2  ;;  %v7767_v44 = vmax.f32 %v7729_v11, 0.0 }
0x101e   :  { %v7770_v41 = vmax.f32 %v7740_v25, 0.0 }
0x101f   :  { %v7768_v5 = vmax.f32 %v7732_v52, 0.0 }
0x1020   :  { %v7780_v40 = vpack.c.bf16 %v7770_v41, %v7769_v63 }
0x1021   :  { %v7779_v56 = vpack.c.bf16 %v7768_v5, %v7767_v44 }
0x1023   :  { %18273 = vmatprep.mubr.msk.bf16.mxu0 %vm7819_vm15, %v7779_v56 }
0x1024   :  { %18274 = vmatmul.mubr.msk.bf16.gmra.mrb[96].mxu0 %vm7819_vm15, %v7780_v40 }
0x104e   :  { %v18255_v1 = vpop.f32.mrb[84].mxu1 }
0x104f   :  { %v7753_v42 = vadd.f32 %v18255_v1, %v7625_v2  ;;  %v7744_v50 = vpop.f32.mrb[85].mxu1 }
0x1050   :  { %v7745_v34 = vadd.f32 %v7744_v50, %v7625_v2  ;;  %v18256_v7 = vpop.f32.mrb[86].mxu1 }
0x1051   :  { %v7756_v37 = vadd.f32 %v18256_v7, %v7625_v2  ;;  %v7747_v32 = vpop.f32.mrb[87].mxu1  ;;  %v7773_v20 = vmax.f32 %v7753_v42, 0.0 }
0x1052   :  { %v7748_v0 = vadd.f32 %v7747_v32, %v7625_v2  ;;  %v7771_v62 = vmax.f32 %v7745_v34, 0.0 }
0x1053   :  { %v7774_v55 = vmax.f32 %v7756_v37, 0.0 }
0x1054   :  { %v7772_v49 = vmax.f32 %v7748_v0, 0.0 }
0x1055   :  { %v7782_v33 = vpack.c.bf16 %v7774_v55, %v7773_v20 }
0x1056   :  { %v7781_v14 = vpack.c.bf16 %v7772_v49, %v7771_v62 }
0x1058   :  { %18277 = vmatprep.mubr.msk.bf16.mxu0 %vm7819_vm15, %v7781_v14 }
0x1059   :  { %18278 = vmatmul.mubr.msk.bf16.gmra.mrb[100].mxu0 %vm7819_vm15, %v7782_v33 }
0x10ce   :  { %v18267_v2 = vpop.f32.mrb[88].mxu0 }
0x10cf   :  { %v7878_v16 = vpop.f32.mrb[89].mxu0  ;;  %v7887_v61 = vadd.f32 %v18267_v2, %v23607_v8 }
0x10d0   :  { %v7879_v24 = vadd.f32 %v7878_v16, %v23607_v8  ;;  %v18268_v58 = vpop.f32.mrb[90].mxu0 }
0x10d1   :  { %v7881_v28 = vpop.f32.mrb[91].mxu0  ;;  %v7890_v9 = vadd.f32 %v18268_v58, %v23607_v8  ;;  %v23617_v18 = vadd.f32 %v7887_v61, %v23498_v59 }
0x10d2   :  { %v23612_v13 = vadd.f32 %v7879_v24, %v23485_v46  ;;  %v7882_v4 = vadd.f32 %v7881_v28, %v23607_v8 }
0x10d3   :  { %v23625_v36 = vadd.f32 %v7890_v9, %v23501_v23  ;;  %v7963_v48 = vsel %vm143_vm0, %v23617_v18, 0.0 }
0x10d4   :  { %v23620_v19 = vadd.f32 %v7882_v4, %v23488_v38  ;;  %v7957_v43 = vsel %vm143_vm0, %v23612_v13, 0.0 }
0x10d5   :  { %7958 = vadd.xlane.f32.xlu1 %v7957_v43  ;;  %v7966_v38 = vsel %vm143_vm0, %v23625_v36, 0.0 }
0x10d6   :  { %v7960_v46 = vsel %vm143_vm0, %v23620_v19, 0.0 }
0x10d7   :  { %7961 = vadd.xlane.f32.xlu0 %v7960_v46  ;;  %v18271_v59 = vpop.f32.mrb[92].mxu0 }
0x10d8   :  { %v7894_v31 = vpop.f32.mrb[93].mxu0  ;;  %v7903_v11 = vadd.f32 %v18271_v59, %v23607_v8 }
0x10d9   :  { %7964 = vadd.xlane.f32.xlu1 %v7963_v48  ;;  %v7895_v6 = vadd.f32 %v7894_v31, %v23607_v8  ;;  %v18272_v23 = vpop.f32.mrb[94].mxu0 }
0x10da   :  { %v7897_v25 = vpop.f32.mrb[95].mxu0  ;;  %v7906_v52 = vadd.f32 %v18272_v23, %v23607_v8  ;;  %v23641_v41 = vadd.f32 %v7903_v11, %v23523_v57 }
0x10db   :  { %7967 = vadd.xlane.f32.xlu0 %v7966_v38  ;;  %v23636_v21 = vadd.f32 %v7895_v6, %v23515_v27  ;;  %v7898_v63 = vadd.f32 %v7897_v25, %v23607_v8 }
0x10dc   :  { %v23649_v40 = vadd.f32 %v7906_v52, %v23526_v51  ;;  %v7975_v56 = vsel %vm143_vm0, %v23641_v41, 0.0 }
0x10dd   :  { %v23644_v44 = vadd.f32 %v7898_v63, %v23511_v26  ;;  %v7969_v5 = vsel %vm143_vm0, %v23636_v21, 0.0 }
0x10de   :  { %7970 = vadd.xlane.f32.xlu1 %v7969_v5  ;;  %v7978_v57 = vsel %vm143_vm0, %v23649_v40, 0.0 }
0x10df   :  { %v7972_v27 = vsel %vm143_vm0, %v23644_v44, 0.0 }
0x10e0   :  { %7973 = vadd.xlane.f32.xlu0 %v7972_v27 }
0x10e2   :  { %7976 = vadd.xlane.f32.xlu1 %v7975_v56 }
0x10e4   :  { %7979 = vadd.xlane.f32.xlu0 %v7978_v57 }
0x10f7   :  { %v18275_v26 = vpop.f32.mrb[96].mxu0 }
0x10f8   :  { %v7910_v1 = vpop.f32.mrb[97].mxu0  ;;  %v7919_v42 = vadd.f32 %v18275_v26, %v23607_v8 }
0x10f9   :  { %v7911_v50 = vadd.f32 %v7910_v1, %v23607_v8  ;;  %v18276_v51 = vpop.f32.mrb[98].mxu0 }
0x10fa   :  { %v7913_v34 = vpop.f32.mrb[99].mxu0  ;;  %v7922_v37 = vadd.f32 %v18276_v51, %v23607_v8  ;;  %v23665_v0 = vadd.f32 %v7919_v42, %v23549_v22 }
0x10fb   :  { %v23660_v7 = vadd.f32 %v7911_v50, %v23537_v3  ;;  %v7914_v32 = vadd.f32 %v7913_v34, %v23607_v8 }
0x10fc   :  { %v23673_v62 = vadd.f32 %v7922_v37, %v23552_v54  ;;  %v7987_v49 = vsel %vm143_vm0, %v23665_v0, 0.0 }
0x10fd   :  { %v23668_v20 = vadd.f32 %v7914_v32, %v23540_v47  ;;  %v7981_v55 = vsel %vm143_vm0, %v23660_v7, 0.0 }
0x10fe   :  { %7982 = vadd.xlane.f32.xlu1 %v7981_v55  ;;  %v7990_v22 = vsel %vm143_vm0, %v23673_v62, 0.0 }
0x10ff   :  { %v7984_v3 = vsel %vm143_vm0, %v23668_v20, 0.0 }
0x1100   :  { %7985 = vadd.xlane.f32.xlu0 %v7984_v3 }
0x1102   :  { %7988 = vadd.xlane.f32.xlu1 %v7987_v49 }
0x1104   :  { %7991 = vadd.xlane.f32.xlu0 %v7990_v22 }
0x112c   :  { %v18279_v47 = vpop.f32.mrb[100].mxu0 }
0x112d   :  { %v7926_v33 = vpop.f32.mrb[101].mxu0  ;;  %v7935_v14 = vadd.f32 %v18279_v47, %v23607_v8 }
0x112e   :  { %v7927_v2 = vadd.f32 %v7926_v33, %v23607_v8  ;;  %v18280_v54 = vpop.f32.mrb[102].mxu0 }
0x112f   :  { %v7929_v16 = vpop.f32.mrb[103].mxu0  ;;  %v7938_v24 = vadd.f32 %v18280_v54, %v23607_v8  ;;  %v23689_v28 = vadd.f32 %v7935_v14, %v23575_v17 }
0x1130   :  { %v23684_v61 = vadd.f32 %v7927_v2, %v23563_v39  ;;  %v7930_v58 = vadd.f32 %v7929_v16, %v23607_v8 }
0x1131   :  { %v23697_v43 = vadd.f32 %v7938_v24, %v23578_v29  ;;  %v7999_v8 = vsel %vm143_vm0, %v23689_v28, 0.0 }
0x1132   :  { %v23692_v9 = vadd.f32 %v7930_v58, %v23566_v45  ;;  %v7993_v4 = vsel %vm143_vm0, %v23684_v61, 0.0 }
0x1133   :  { %7994 = vadd.xlane.f32.xlu1 %v7993_v4  ;;  %v8002_v17 = vsel %vm143_vm0, %v23697_v43, 0.0 }
0x1134   :  { %v7996_v39 = vsel %vm143_vm0, %v23692_v9, 0.0 }
0x1135   :  { %7997 = vadd.xlane.f32.xlu0 %v7996_v39 }
0x1137   :  { %8000 = vadd.xlane.f32.xlu1 %v7999_v8 }
0x1139   :  { %8003 = vadd.xlane.f32.xlu0 %v8002_v17 }
0x1162   :  { %v7959_v45 = vpop.xlane.xlu1 %7958 }
0x1163   :  { %v8005_v46 = vmul.f32 0.03125, %v7959_v45 }
0x1164   :  { %v7962_v48 = vpop.xlane.xlu0 %7961 }
0x1165   :  { %v23706_v59 = vsub.f32 %v23612_v13, %v8005_v46  ;;  %v8006_v29 = vmul.f32 0.03125, %v7962_v48 }
0x1166   :  { %v7965_v38 = vpop.xlane.xlu1 %7964 }
0x1167   :  { %v23709_v31 = vsub.f32 %v23620_v19, %v8006_v29  ;;  %v8007_v11 = vmul.f32 0.03125, %v7965_v38  ;;  %v8037_v6 = vmul.f32 %v23706_v59, %v23706_v59 }
0x1168   :  { %v7968_v23 = vpop.xlane.xlu0 %7967 }
0x1169   :  { %v23714_v25 = vsub.f32 %v23617_v18, %v8007_v11  ;;  %v8008_v52 = vmul.f32 0.03125, %v7968_v23  ;;  %v8053_v63 = vsel %vm143_vm0, %v8037_v6, 0.0  ;;  %v8038_v13 = vmul.f32 %v23709_v31, %v23709_v31 }
0x116a   :  { %8054 = vadd.xlane.f32.xlu1 %v8053_v63 }
0x116b   :  { %v23720_v5 = vsub.f32 %v23625_v36, %v8008_v52  ;;  %v8056_v19 = vsel %vm143_vm0, %v8038_v13, 0.0  ;;  %v8039_v27 = vmul.f32 %v23714_v25, %v23714_v25  ;;  %v7971_v57 = vpop.xlane.xlu1 %7970  ;;  %v20370_v52 = vld [vmem:[%s26348_s2 + $0x18] sm:$0xff]  }
0x116c   :  { %8057 = vadd.xlane.f32.xlu0 %v8056_v19  ;;  %v8009_v26 = vmul.f32 0.03125, %v7971_v57 }
0x116d   :  { %v8059_v56 = vsel %vm143_vm0, %v8039_v27, 0.0  ;;  %v8040_v18 = vmul.f32 %v23720_v5, %v23720_v5  ;;  %v7974_v42 = vpop.xlane.xlu0 %7973 }
0x116e   :  { %8060 = vadd.xlane.f32.xlu1 %v8059_v56  ;;  %v23730_v36 = vsub.f32 %v23636_v21, %v8009_v26  ;;  %v8010_v50 = vmul.f32 0.03125, %v7974_v42 }
0x116f   :  { %v8062_v1 = vsel %vm143_vm0, %v8040_v18, 0.0  ;;  %v7977_v51 = vpop.xlane.xlu1 %7976 }
0x1170   :  { %8063 = vadd.xlane.f32.xlu0 %v8062_v1  ;;  %v23733_v34 = vsub.f32 %v23644_v44, %v8010_v50  ;;  %v8011_v37 = vmul.f32 0.03125, %v7977_v51  ;;  %v8041_v32 = vmul.f32 %v23730_v36, %v23730_v36 }
0x1171   :  { %v7980_v55 = vpop.xlane.xlu0 %7979 }
0x1172   :  { %v23738_v3 = vsub.f32 %v23641_v41, %v8011_v37  ;;  %v8012_v49 = vmul.f32 0.03125, %v7980_v55  ;;  %v8065_v22 = vsel %vm143_vm0, %v8041_v32, 0.0  ;;  %v8042_v21 = vmul.f32 %v23733_v34, %v23733_v34 }
0x1173   :  { %8066 = vadd.xlane.f32.xlu1 %v8065_v22 }
0x1174   :  { %v23744_v47 = vsub.f32 %v23649_v40, %v8012_v49  ;;  %v8068_v44 = vsel %vm143_vm0, %v8042_v21, 0.0  ;;  %v8043_v33 = vmul.f32 %v23738_v3, %v23738_v3 }
0x1175   :  { %8069 = vadd.xlane.f32.xlu0 %v8068_v44 }
0x1176   :  { %v8071_v14 = vsel %vm143_vm0, %v8043_v33, 0.0  ;;  %v8044_v41 = vmul.f32 %v23744_v47, %v23744_v47 }
0x1177   :  { %8072 = vadd.xlane.f32.xlu1 %v8071_v14 }
0x1178   :  { %v8074_v2 = vsel %vm143_vm0, %v8044_v41, 0.0 }
0x1179   :  { %8075 = vadd.xlane.f32.xlu0 %v8074_v2 }
0x118b   :  { %v7983_v54 = vpop.xlane.xlu1 %7982 }
0x118c   :  { %v8013_v16 = vmul.f32 0.03125, %v7983_v54 }
0x118d   :  { %v7986_v24 = vpop.xlane.xlu0 %7985 }
0x118e   :  { %v23754_v40 = vsub.f32 %v23660_v7, %v8013_v16  ;;  %v8014_v58 = vmul.f32 0.03125, %v7986_v24 }
0x118f   :  { %v7989_v4 = vpop.xlane.xlu1 %7988 }
0x1190   :  { %v23757_v39 = vsub.f32 %v23668_v20, %v8014_v58  ;;  %v8015_v8 = vmul.f32 0.03125, %v7989_v4  ;;  %v8045_v17 = vmul.f32 %v23754_v40, %v23754_v40 }
0x1191   :  { %v7992_v45 = vpop.xlane.xlu0 %7991 }
0x1192   :  { %v23762_v46 = vsub.f32 %v23665_v0, %v8015_v8  ;;  %v8016_v48 = vmul.f32 0.03125, %v7992_v45  ;;  %v8077_v29 = vsel %vm143_vm0, %v8045_v17, 0.0  ;;  %v8046_v7 = vmul.f32 %v23757_v39, %v23757_v39 }
0x1193   :  { %8078 = vadd.xlane.f32.xlu1 %v8077_v29 }
0x1194   :  { %v23768_v38 = vsub.f32 %v23673_v62, %v8016_v48  ;;  %v8080_v20 = vsel %vm143_vm0, %v8046_v7, 0.0  ;;  %v8047_v11 = vmul.f32 %v23762_v46, %v23762_v46  ;;  %v20369_v62 = vld [vmem:[%s26348_s2 + $0x10] sm:$0xff]  }
0x1195   :  { %8081 = vadd.xlane.f32.xlu0 %v8080_v20  ;;  %18281 = vmatprep.subr.bf16.mxu1 %v20369_v62 }
0x1196   :  { %v8083_v6 = vsel %vm143_vm0, %v8047_v11, 0.0  ;;  %v8048_v0 = vmul.f32 %v23768_v38, %v23768_v38  ;;  %18282 = vmatpush3.bf16.msra.mxu1 %v20369_v62 }
0x1197   :  { %8084 = vadd.xlane.f32.xlu1 %v8083_v6  ;;  %18283 = vmatprep.subr.bf16.mxu1 %v20370_v52 }
0x1198   :  { %v8086_v23 = vsel %vm143_vm0, %v8048_v0, 0.0 }
0x1199   :  { %8087 = vadd.xlane.f32.xlu0 %v8086_v23 }
0x119a   :  { %18284 = vmatpush3.bf16.msra.mxu1 %v20370_v52 }
0x11c0   :  { %v7995_v63 = vpop.xlane.xlu1 %7994 }
0x11c1   :  { %v8017_v13 = vmul.f32 0.03125, %v7995_v63 }
0x11c2   :  { %v7998_v19 = vpop.xlane.xlu0 %7997 }
0x11c3   :  { %v23784_v27 = vsub.f32 %v23684_v61, %v8017_v13  ;;  %v8018_v56 = vmul.f32 0.03125, %v7998_v19 }
0x11c4   :  { %v8001_v18 = vpop.xlane.xlu1 %8000 }
0x11c5   :  { %v23787_v57 = vsub.f32 %v23692_v9, %v8018_v56  ;;  %v8019_v26 = vmul.f32 0.03125, %v8001_v18  ;;  %v8049_v1 = vmul.f32 %v23784_v27, %v23784_v27 }
0x11c6   :  { %v8004_v42 = vpop.xlane.xlu0 %8003 }
0x11c7   :  { %v23792_v50 = vsub.f32 %v23689_v28, %v8019_v26  ;;  %v8020_v51 = vmul.f32 0.03125, %v8004_v42  ;;  %v8089_v37 = vsel %vm143_vm0, %v8049_v1, 0.0  ;;  %v8050_v61 = vmul.f32 %v23787_v57, %v23787_v57 }
0x11c8   :  { %8090 = vadd.xlane.f32.xlu1 %v8089_v37 }
0x11c9   :  { %v23798_v32 = vsub.f32 %v23697_v43, %v8020_v51  ;;  %v8092_v9 = vsel %vm143_vm0, %v8050_v61, 0.0  ;;  %v8051_v55 = vmul.f32 %v23792_v50, %v23792_v50 }
0x11ca   :  { %8093 = vadd.xlane.f32.xlu0 %v8092_v9 }
0x11cb   :  { %v8095_v49 = vsel %vm143_vm0, %v8051_v55, 0.0  ;;  %v8052_v28 = vmul.f32 %v23798_v32, %v23798_v32  ;;  %v26409_v55 = vsub.s32 3, %v26584_v12 }
0x11cc   :  { %8096 = vadd.xlane.f32.xlu1 %v8095_v49 }
0x11cd   :  { %v8098_v22 = vsel %vm143_vm0, %v8052_v28, 0.0 }
0x11ce   :  { %8099 = vadd.xlane.f32.xlu0 %v8098_v22 }
0x11f7   :  { %v8055_v21 = vpop.xlane.xlu1 %8054 }
0x11f8   :  { %v8101_v44 = vmul.f32 0.03125, %v8055_v21 }
0x11f9   :  { %v8058_v33 = vpop.xlane.xlu0 %8057 }
0x11fa   :  { %v8117_v43 = vadd.f32 1e-05, %v8101_v44  ;;  %v8102_v14 = vmul.f32 0.03125, %v8058_v33 }
0x11fb   :  { %v8061_v41 = vpop.xlane.xlu1 %8060 }
0x11fc   :  { %20711 = vrsqrt.f32 %v8117_v43  ;;  %v8118_v2 = vadd.f32 1e-05, %v8102_v14  ;;  %v8103_v54 = vmul.f32 0.03125, %v8061_v41  ;;  %vm8135_vm5 = vcmp.eq.f32.partialorder %v8117_v43, inf }
0x11fd   :  { %v8064_v16 = vpop.xlane.xlu0 %8063  ;;  %v8138_v6 = vand.u32 2147483648, %v8117_v43  ;;  %vm8137_vm6 = vcmp.eq.f32.partialorder %v8117_v43, 0.0 }
0x11fe   :  { %v8104_v24 = vmul.f32 0.03125, %v8064_v16  ;;  %20713 = vrsqrt.f32 %v8118_v2  ;;  %v8119_v58 = vadd.f32 1e-05, %v8103_v54  ;;  %vm8142_vm7 = vcmp.eq.f32.partialorder %v8118_v2, inf }
0x11ff   :  { %vm8144_vm8 = vcmp.eq.f32.partialorder %v8118_v2, 0.0  ;;  %v8145_v18 = vand.u32 2147483648, %v8118_v2  ;;  %v23821_v16 = vrot.slane %v23602_v60, %v26409_v55 }
0x1200   :  { %v8120_v4 = vadd.f32 1e-05, %v8104_v24  ;;  %20715 = vrsqrt.f32 %v8119_v58  ;;  %v8067_v8 = vpop.xlane.xlu1 %8066  ;;  %vm8149_vm9 = vcmp.eq.f32.partialorder %v8119_v58, inf  ;;  %vm8151_vm10 = vcmp.eq.f32.partialorder %v8119_v58, 0.0 }
0x1201   :  { %v8105_v17 = vmul.f32 0.03125, %v8067_v8  ;;  %v8152_v49 = vand.u32 2147483648, %v8119_v58 }
0x1202   :  { %20717 = vrsqrt.f32 %v8120_v4  ;;  %v8070_v45 = vpop.xlane.xlu0 %8069  ;;  %vm8156_vm11 = vcmp.eq.f32.partialorder %v8120_v4, inf  ;;  %v8159_v21 = vand.u32 2147483648, %v8120_v4  ;;  %vm8158_vm12 = vcmp.eq.f32.partialorder %v8120_v4, 0.0 }
0x1203   :  { %v8121_v29 = vadd.f32 1e-05, %v8105_v17  ;;  %v8106_v7 = vmul.f32 0.03125, %v8070_v45 }
0x1204   :  { %v8073_v11 = vpop.xlane.xlu1 %8072 }
0x1205   :  { %20719 = vrsqrt.f32 %v8121_v29  ;;  %v23807_v62 = vadd.f32 1e-05, %v8106_v7  ;;  %v8107_v52 = vmul.f32 0.03125, %v8073_v11  ;;  %vm8163_vm13 = vcmp.eq.f32.partialorder %v8121_v29, inf }
0x1206   :  { %v20712_v48 = vpop.eup %20711  ;;  %v8076_v63 = vpop.xlane.xlu0 %8075  ;;  %v8166_v54 = vand.u32 2147483648, %v8121_v29  ;;  %vm8165_vm14 = vcmp.eq.f32.partialorder %v8121_v29, 0.0 }
0x1207   :  { %v8134_v20 = vmul.f32 %v20712_v48, %v8117_v43  ;;  %v8108_v56 = vmul.f32 0.03125, %v8076_v63  ;;  %v23810_v42 = vadd.f32 1e-05, %v8107_v52 }
0x1208   :  { %v20714_v0 = vpop.eup %20713 }
0x1209   :  { %v8136_v23 = vsel %vm8135_vm5, %v8117_v43, %v8134_v20  ;;  %v8141_v19 = vmul.f32 %v20714_v0, %v8118_v2  ;;  %v23812_v51 = vadd.f32 1e-05, %v8108_v56  ;;  %vm8170_vm5 = vcmp.eq.f32.partialorder %v23807_v62, inf }
0x120a   :  { %v8139_v13 = vsel %vm8137_vm6, %v8138_v6, %v8136_v23  ;;  %v20716_v26 = vpop.eup %20715  ;;  %vm8172_vm6 = vcmp.eq.f32.partialorder %v23807_v62, 0.0  ;;  %v8173_v20 = vand.u32 2147483648, %v23807_v62  ;;  %v8180_v52 = vand.u32 2147483648, %v23810_v42 }
0x120b   :  { %20721 = vrcp.f32 %v8139_v13  ;;  %v8143_v1 = vsel %vm8142_vm7, %v8118_v2, %v8141_v19  ;;  %v8148_v9 = vmul.f32 %v20716_v26, %v8119_v58  ;;  %v26408_v2 = vsub.s32 4, %v26584_v12 }
0x120c   :  { %20723 = vrsqrt.f32 %v23807_v62  ;;  %v20718_v37 = vpop.eup %20717  ;;  %v8146_v61 = vsel %vm8144_vm8, %v8145_v18, %v8143_v1  ;;  %vm8177_vm7 = vcmp.eq.f32.partialorder %v23810_v42, inf  ;;  %vm8179_vm8 = vcmp.eq.f32.partialorder %v23810_v42, 0.0 }
0x120d   :  { %20725 = vrcp.f32 %v8146_v61  ;;  %v8155_v28 = vmul.f32 %v20718_v37, %v8120_v4  ;;  %v8150_v22 = vsel %vm8149_vm9, %v8119_v58, %v8148_v9  ;;  %v23828_v48 = vrot.slane %v23602_v60, %v26408_v2 }
0x120e   :  { %20727 = vrsqrt.f32 %v23810_v42  ;;  %v8153_v44 = vsel %vm8151_vm10, %v8152_v49, %v8150_v22  ;;  %vm8184_vm9 = vcmp.eq.f32.partialorder %v23812_v51, inf  ;;  %vm8186_vm10 = vcmp.eq.f32.partialorder %v23812_v51, 0.0 }
0x120f   :  { %v8157_v33 = vsel %vm8156_vm11, %v8120_v4, %v8155_v28  ;;  %20729 = vrsqrt.f32 %v23812_v51  ;;  %v20720_v14 = vpop.eup %20719 }
0x1210   :  { %20731 = vrcp.f32 %v8153_v44  ;;  %v8160_v43 = vsel %vm8158_vm12, %v8159_v21, %v8157_v33  ;;  %v8162_v41 = vmul.f32 %v20720_v14, %v8121_v29 }
0x1211   :  { %20733 = vrcp.f32 %v8160_v43 }
0x1212   :  { %v8164_v58 = vsel %vm8163_vm13, %v8121_v29, %v8162_v41 }
0x1213   :  { %v8167_v8 = vsel %vm8165_vm14, %v8166_v54, %v8164_v58 }
0x1214   :  { %20735 = vrcp.f32 %v8167_v8 }
0x1215   :  { %v20722_v24 = vpop.eup %20721 }
0x1216   :  { %v20724_v4 = vpop.eup %20723  ;;  %v8246_v17 = vmul.f32 %v20722_v24, %v23706_v59 }
0x1217   :  { %v8169_v45 = vmul.f32 %v20724_v4, %v23807_v62  ;;  %v20726_v7 = vpop.eup %20725 }
0x1218   :  { %v8281_v29 = vmul.f32 %v23821_v16, %v8246_v17  ;;  %v20728_v11 = vpop.eup %20727  ;;  %v8248_v6 = vmul.f32 %v20726_v7, %v23709_v31  ;;  %v8187_v31 = vand.u32 2147483648, %v23812_v51 }
0x1219   :  { %v8171_v59 = vsel %vm8170_vm5, %v23807_v62, %v8169_v45  ;;  %v20730_v60 = vpop.eup %20729  ;;  %v8176_v23 = vmul.f32 %v20728_v11, %v23810_v42 }
0x121a   :  { %v8174_v0 = vsel %vm8172_vm6, %v8173_v20, %v8171_v59  ;;  %v20732_v63 = vpop.eup %20731  ;;  %v8183_v13 = vmul.f32 %v20730_v60, %v23812_v51  ;;  %v8282_v62 = vmul.f32 %v23821_v16, %v8248_v6  ;;  %v23847_v18 = vadd.f32 %v23828_v48, %v8281_v29 }
0x121b   :  { %20737 = vrcp.f32 %v8174_v0  ;;  %v20734_v19 = vpop.eup %20733  ;;  %v8178_v56 = vsel %vm8177_vm7, %v23810_v42, %v8176_v23  ;;  %v8250_v26 = vmul.f32 %v20732_v63, %v23714_v25 }
0x121c   :  { %26586 = vst [vmem:[#allocation53_spill] sm:$0xff] %v23847_v18  ;;  %v8181_v1 = vsel %vm8179_vm8, %v8180_v52, %v8178_v56  ;;  %v8185_v37 = vsel %vm8184_vm9, %v23812_v51, %v8183_v13  ;;  %v23854_v61 = vadd.f32 %v23828_v48, %v8282_v62  ;;  %v8252_v9 = vmul.f32 %v20734_v19, %v23720_v5 }
0x121d   :  { %20739 = vrcp.f32 %v8181_v1  ;;  %v8188_v49 = vsel %vm8186_vm10, %v8187_v31, %v8185_v37  ;;  %v8283_v28 = vmul.f32 %v23821_v16, %v8250_v26 }
0x121e   :  { %26587 = vst [vmem:[#allocation54_spill] sm:$0xff] %v23854_v61  ;;  %20741 = vrcp.f32 %v8188_v49  ;;  %v8321_v22 = vpack.c.bf16 %v23854_v61, %v23847_v18  ;;  %v8284_v25 = vmul.f32 %v23821_v16, %v8252_v9  ;;  %v20736_v42 = vpop.eup %20735 }
0x121f   :  { %v23863_v44 = vadd.f32 %v23828_v48, %v8283_v28  ;;  %v8254_v24 = vmul.f32 %v20736_v42, %v23730_v36 }
0x1220   :  { %v8079_v21 = vpop.xlane.xlu1 %8078  ;;  %18285 = vmatprep.mubr.msk.bf16.mxu1 %vm143_vm0, %v8321_v22  ;;  %v23866_v5 = vadd.f32 %v23828_v48, %v8284_v25 }
0x1221   :  { %v8109_v51 = vmul.f32 0.03125, %v8079_v21  ;;  %26588 = vst [vmem:[#allocation55_spill] sm:$0xff] %v23863_v44  ;;  %v8285_v29 = vmul.f32 %v23821_v16, %v8254_v24 }
0x1222   :  { %26589 = vst [vmem:[#allocation56_spill] sm:$0xff] %v23866_v5  ;;  %v8082_v33 = vpop.xlane.xlu0 %8081  ;;  %v8322_v41 = vpack.c.bf16 %v23866_v5, %v23863_v44 }
0x1223   :  { %v8125_v43 = vadd.f32 1e-05, %v8109_v51  ;;  %v8110_v14 = vmul.f32 0.03125, %v8082_v33  ;;  %v23878_v23 = vadd.f32 %v23828_v48, %v8285_v29 }
0x1224   :  { %v8085_v54 = vpop.xlane.xlu1 %8084  ;;  %18286 = vmatmul.mubr.msk.bf16.vlgmr.msra.gmra.mrb[88].mxu1 %vm143_vm0, %v8322_v41 }
0x1225   :  { %v20738_v58 = vpop.eup %20737  ;;  %20743 = vrsqrt.f32 %v8125_v43  ;;  %v8126_v4 = vadd.f32 1e-05, %v8110_v14  ;;  %v8111_v8 = vmul.f32 0.03125, %v8085_v54  ;;  %26590 = vst [vmem:[#allocation20_spill] sm:$0xff] %v23878_v23  ;;  %vm8191_vm11 = vcmp.eq.f32.partialorder %v8125_v43, inf }
0x1226   :  { %v8088_v17 = vpop.xlane.xlu0 %8087  ;;  %v8256_v45 = vmul.f32 %v20738_v58, %v23733_v34  ;;  %v8194_v56 = vand.u32 2147483648, %v8125_v43  ;;  %vm8193_vm12 = vcmp.eq.f32.partialorder %v8125_v43, 0.0 }
0x1227   :  { %v8112_v7 = vmul.f32 0.03125, %v8088_v17  ;;  %v20740_v20 = vpop.eup %20739  ;;  %20745 = vrsqrt.f32 %v8126_v4  ;;  %v8127_v59 = vadd.f32 1e-05, %v8111_v8  ;;  %vm8198_vm13 = vcmp.eq.f32.partialorder %v8126_v4, inf }
0x1228   :  { %v20742_v11 = vpop.eup %20741  ;;  %v8286_v60 = vmul.f32 %v23821_v16, %v8256_v45  ;;  %v8258_v36 = vmul.f32 %v20740_v20, %v23738_v3  ;;  %v8201_v49 = vand.u32 2147483648, %v8126_v4  ;;  %vm8200_vm14 = vcmp.eq.f32.partialorder %v8126_v4, 0.0 }
0x1229   :  { %v8128_v6 = vadd.f32 1e-05, %v8112_v7  ;;  %v8260_v0 = vmul.f32 %v20742_v11, %v23744_v47  ;;  %20747 = vrsqrt.f32 %v8127_v59  ;;  %vm8205_vm5 = vcmp.eq.f32.partialorder %v8127_v59, inf }
0x122a   :  { %v23881_v34 = vadd.f32 %v23828_v48, %v8286_v60  ;;  %v8287_v52 = vmul.f32 %v23821_v16, %v8258_v36  ;;  %v8208_v51 = vand.u32 2147483648, %v8127_v59  ;;  %vm8207_vm6 = vcmp.eq.f32.partialorder %v8127_v59, 0.0 }
0x122b   :  { %20749 = vrsqrt.f32 %v8128_v6  ;;  %v8288_v63 = vmul.f32 %v23821_v16, %v8260_v0  ;;  %vm8212_vm7 = vcmp.eq.f32.partialorder %v8128_v6, inf  ;;  %vm8214_vm8 = vcmp.eq.f32.partialorder %v8128_v6, 0.0 }
0x122c   :  { %26591 = vst [vmem:[#allocation19_spill] sm:$0xff] %v23881_v34  ;;  %v8323_v62 = vpack.c.bf16 %v23881_v34, %v23878_v23  ;;  %v23888_v3 = vadd.f32 %v23828_v48, %v8287_v52 }
0x122d   :  { %v23891_v47 = vadd.f32 %v23828_v48, %v8288_v63 }
0x122e   :  { %26592 = vst [vmem:[#allocation57_spill] sm:$0xff] %v23888_v3  ;;  %18289 = vmatprep.mubr.msk.bf16.mxu1 %vm143_vm0, %v8323_v62 }
0x122f   :  { %v20744_v13 = vpop.eup %20743  ;;  %26593 = vst [vmem:[#allocation21_spill] sm:$0xff] %v23891_v47  ;;  %v8324_v31 = vpack.c.bf16 %v23891_v47, %v23888_v3 }
0x1230   :  { %v8190_v19 = vmul.f32 %v20744_v13, %v8125_v43 }
0x1231   :  { %v20746_v26 = vpop.eup %20745  ;;  %18290 = vmatmul.mubr.msk.bf16.gmra.mrb[92].mxu1 %vm143_vm0, %v8324_v31 }
0x1232   :  { %v8192_v1 = vsel %vm8191_vm11, %v8125_v43, %v8190_v19  ;;  %v8197_v9 = vmul.f32 %v20746_v26, %v8126_v4  ;;  %v8215_v43 = vand.u32 2147483648, %v8128_v6 }
0x1233   :  { %v8195_v37 = vsel %vm8193_vm12, %v8194_v56, %v8192_v1  ;;  %v20748_v28 = vpop.eup %20747 }
0x1234   :  { %20751 = vrcp.f32 %v8195_v37  ;;  %v8199_v22 = vsel %vm8198_vm13, %v8126_v4, %v8197_v9  ;;  %v8204_v42 = vmul.f32 %v20748_v28, %v8127_v59 }
0x1235   :  { %v20750_v25 = vpop.eup %20749  ;;  %v8202_v21 = vsel %vm8200_vm14, %v8201_v49, %v8199_v22 }
0x1236   :  { %20753 = vrcp.f32 %v8202_v21  ;;  %v8211_v33 = vmul.f32 %v20750_v25, %v8128_v6  ;;  %v8206_v14 = vsel %vm8205_vm5, %v8127_v59, %v8204_v42 }
0x1237   :  { %v8209_v41 = vsel %vm8207_vm6, %v8208_v51, %v8206_v14 }
0x1238   :  { %v8213_v54 = vsel %vm8212_vm7, %v8128_v6, %v8211_v33  ;;  %20755 = vrcp.f32 %v8209_v41 }
0x1239   :  { %v8216_v24 = vsel %vm8214_vm8, %v8215_v43, %v8213_v54 }
0x123a   :  { %20757 = vrcp.f32 %v8216_v24 }
0x123e   :  { %v20752_v58 = vpop.eup %20751 }
0x123f   :  { %v8262_v4 = vmul.f32 %v20752_v58, %v23754_v40 }
0x1240   :  { %v20754_v8 = vpop.eup %20753 }
0x1241   :  { %v8264_v17 = vmul.f32 %v20754_v8, %v23757_v39  ;;  %v8289_v45 = vmul.f32 %v23821_v16, %v8262_v4 }
0x1242   :  { %v20756_v7 = vpop.eup %20755 }
0x1243   :  { %v8290_v20 = vmul.f32 %v23821_v16, %v8264_v17  ;;  %v8266_v11 = vmul.f32 %v20756_v7, %v23762_v46  ;;  %v23903_v59 = vadd.f32 %v23828_v48, %v8289_v45 }
0x1244   :  { %v20758_v29 = vpop.eup %20757 }
0x1245   :  { %26594 = vst [vmem:[#allocation22_spill] sm:$0xff] %v23903_v59  ;;  %v23906_v6 = vadd.f32 %v23828_v48, %v8290_v20  ;;  %v8268_v60 = vmul.f32 %v20758_v29, %v23768_v38  ;;  %v8291_v40 = vmul.f32 %v23821_v16, %v8266_v11 }
0x1247   :  { %26595 = vst [vmem:[#allocation25_spill] sm:$0xff] %v23906_v6  ;;  %v8325_v39 = vpack.c.bf16 %v23906_v6, %v23903_v59  ;;  %v8292_v36 = vmul.f32 %v23821_v16, %v8268_v60  ;;  %v23915_v0 = vadd.f32 %v23828_v48, %v8291_v40 }
0x1249   :  { %18293 = vmatprep.mubr.msk.bf16.mxu1 %vm143_vm0, %v8325_v39  ;;  %26596 = vst [vmem:[#allocation26_spill] sm:$0xff] %v23915_v0  ;;  %v23918_v46 = vadd.f32 %v23828_v48, %v8292_v36 }
0x124b   :  { %26597 = vst [vmem:[#allocation27_spill] sm:$0xff] %v23918_v46  ;;  %v8326_v52 = vpack.c.bf16 %v23918_v46, %v23915_v0 }
0x124d   :  { %18294 = vmatmul.mubr.msk.bf16.gmra.mrb[96].mxu1 %vm143_vm0, %v8326_v52 }
0x1255   :  { %v8091_v38 = vpop.xlane.xlu1 %8090 }
0x1256   :  { %v8113_v63 = vmul.f32 0.03125, %v8091_v38 }
0x1257   :  { %v8094_v13 = vpop.xlane.xlu0 %8093 }
0x1258   :  { %v8129_v62 = vadd.f32 1e-05, %v8113_v63  ;;  %v8114_v19 = vmul.f32 0.03125, %v8094_v13 }
0x1259   :  { %v8097_v56 = vpop.xlane.xlu1 %8096 }
0x125a   :  { %20759 = vrsqrt.f32 %v8129_v62  ;;  %v8130_v31 = vadd.f32 1e-05, %v8114_v19  ;;  %v8115_v26 = vmul.f32 0.03125, %v8097_v56  ;;  %vm8219_vm9 = vcmp.eq.f32.partialorder %v8129_v62, inf }
0x125b   :  { %v8100_v1 = vpop.xlane.xlu0 %8099  ;;  %v8222_v25 = vand.u32 2147483648, %v8129_v62  ;;  %vm8221_vm10 = vcmp.eq.f32.partialorder %v8129_v62, 0.0 }
0x125c   :  { %v8116_v37 = vmul.f32 0.03125, %v8100_v1  ;;  %20761 = vrsqrt.f32 %v8130_v31  ;;  %v8131_v9 = vadd.f32 1e-05, %v8115_v26  ;;  %vm8226_vm11 = vcmp.eq.f32.partialorder %v8130_v31, inf }
0x125d   :  { %v8229_v14 = vand.u32 2147483648, %v8130_v31  ;;  %vm8228_vm12 = vcmp.eq.f32.partialorder %v8130_v31, 0.0 }
0x125e   :  { %v8132_v49 = vadd.f32 1e-05, %v8116_v37  ;;  %20763 = vrsqrt.f32 %v8131_v9  ;;  %vm8233_vm13 = vcmp.eq.f32.partialorder %v8131_v9, inf  ;;  %v8236_v4 = vand.u32 2147483648, %v8131_v9 }
0x125f   :  { %vm8235_vm14 = vcmp.eq.f32.partialorder %v8131_v9, 0.0 }
0x1260   :  { %20765 = vrsqrt.f32 %v8132_v49  ;;  %vm8240_vm5 = vcmp.eq.f32.partialorder %v8132_v49, inf  ;;  %v8243_v45 = vand.u32 2147483648, %v8132_v49  ;;  %vm8242_vm6 = vcmp.eq.f32.partialorder %v8132_v49, 0.0 }
0x1264   :  { %v20760_v28 = vpop.eup %20759 }
0x1265   :  { %v8218_v22 = vmul.f32 %v20760_v28, %v8129_v62 }
0x1266   :  { %v20762_v21 = vpop.eup %20761 }
0x1267   :  { %v8220_v42 = vsel %vm8219_vm9, %v8129_v62, %v8218_v22  ;;  %v8225_v33 = vmul.f32 %v20762_v21, %v8130_v31 }
0x1268   :  { %v8223_v51 = vsel %vm8221_vm10, %v8222_v25, %v8220_v42  ;;  %v20764_v43 = vpop.eup %20763 }
0x1269   :  { %20767 = vrcp.f32 %v8223_v51  ;;  %v8227_v41 = vsel %vm8226_vm11, %v8130_v31, %v8225_v33  ;;  %v8232_v58 = vmul.f32 %v20764_v43, %v8131_v9 }
0x126a   :  { %v20766_v54 = vpop.eup %20765  ;;  %v8230_v24 = vsel %vm8228_vm12, %v8229_v14, %v8227_v41 }
0x126b   :  { %20769 = vrcp.f32 %v8230_v24  ;;  %v8239_v8 = vmul.f32 %v20766_v54, %v8132_v49  ;;  %v8234_v17 = vsel %vm8233_vm13, %v8131_v9, %v8232_v58 }
0x126c   :  { %v8237_v7 = vsel %vm8235_vm14, %v8236_v4, %v8234_v17 }
0x126d   :  { %v8241_v20 = vsel %vm8240_vm5, %v8132_v49, %v8239_v8  ;;  %20771 = vrcp.f32 %v8237_v7 }
0x126e   :  { %v8244_v29 = vsel %vm8242_vm6, %v8243_v45, %v8241_v20 }
0x126f   :  { %20773 = vrcp.f32 %v8244_v29 }
0x1273   :  { %v20768_v11 = vpop.eup %20767 }
0x1274   :  { %v8270_v60 = vmul.f32 %v20768_v11, %v23784_v27 }
0x1275   :  { %v20770_v40 = vpop.eup %20769 }
0x1276   :  { %v8272_v39 = vmul.f32 %v20770_v40, %v23787_v57  ;;  %v8293_v36 = vmul.f32 %v23821_v16, %v8270_v60 }
0x1277   :  { %v20772_v52 = vpop.eup %20771 }
0x1278   :  { %v8294_v38 = vmul.f32 %v23821_v16, %v8272_v39  ;;  %v8274_v13 = vmul.f32 %v20772_v52, %v23792_v50  ;;  %v23929_v62 = vadd.f32 %v23828_v48, %v8293_v36 }
0x1279   :  { %v20774_v63 = vpop.eup %20773 }
0x127a   :  { %26598 = vst [vmem:[#allocation28_spill] sm:$0xff] %v23929_v62  ;;  %v23932_v19 = vadd.f32 %v23828_v48, %v8294_v38  ;;  %v8276_v56 = vmul.f32 %v20774_v63, %v23798_v32  ;;  %v8295_v27 = vmul.f32 %v23821_v16, %v8274_v13  ;;  %v16896_v32 = vld [vmem:[%s26352_s6 + $0x2] sm:$0x3] }
0x127b   :  { %v8337_v37 = vrot.slane %v16896_v32, %v26583_v15 }
0x127c   :  { %26599 = vst [vmem:[#allocation17_spill] sm:$0xff] %v23932_v19  ;;  %v8327_v57 = vpack.c.bf16 %v23932_v19, %v23929_v62  ;;  %v8296_v31 = vmul.f32 %v23821_v16, %v8276_v56  ;;  %v23941_v26 = vadd.f32 %v23828_v48, %v8295_v27 }
0x127e   :  { %18297 = vmatprep.mubr.msk.bf16.mxu1 %vm143_vm0, %v8327_v57  ;;  %26600 = vst [vmem:[#allocation45_spill] sm:$0xff] %v23941_v26  ;;  %v23944_v50 = vadd.f32 %v23828_v48, %v8296_v31 }
0x1280   :  { %26601 = vst [vmem:[#allocation46_spill] sm:$0xff] %v23944_v50  ;;  %v8328_v1 = vpack.c.bf16 %v23944_v50, %v23941_v26 }
0x1282   :  { %18298 = vmatmul.mubr.msk.bf16.gmra.mrb[100].mxu1 %vm143_vm0, %v8328_v1 }
0x12f7   :  { %v18287_v16 = vpop.f32.mrb[88].mxu1 }
0x12f8   :  { %v23953_v9 = vadd.f32 %v18287_v16, %v8337_v37  ;;  %v8408_v49 = vpop.f32.mrb[89].mxu1 }
0x12f9   :  { %v23955_v28 = vadd.f32 %v8408_v49, %v8337_v37  ;;  %v18288_v22 = vpop.f32.mrb[90].mxu1 }
0x12fa   :  { %26602 = vst [vmem:[#allocation24_spill] sm:$0xff] %v23953_v9  ;;  %v23957_v48 = vadd.f32 %v18288_v22, %v8337_v37  ;;  %v8411_v25 = vpop.f32.mrb[91].mxu1  ;;  %18312 = vmatprep.mubr.msk.f32.mxu1 %vm271_vm1, %v23953_v9 }
0x12fb   :  { %26603 = vst [vmem:[#allocation44_spill] sm:$0xff] %v23955_v28  ;;  %v23961_v21 = vadd.f32 %v8411_v25, %v8337_v37  ;;  %18305 = vmatprep.mubr.msk.f32.mxu0 %vm271_vm1, %v23955_v28 }
0x12fc   :  { %26604 = vst [vmem:[#allocation49_spill] sm:$0xff] %v23957_v48  ;;  %v23967_v42 = vpack.i.bf16 %v23957_v48, %v23953_v9 }
0x12fd   :  { %26605 = vst [vmem:[#allocation50_spill] sm:$0xff] %v23961_v21  ;;  %v23971_v51 = vpack.i.bf16 %v23961_v21, %v23955_v28 }
0x12fe   :  { %19925 = vrot.lane.b32.xlu0 %v23967_v42, %s21315_s18 }
0x12ff   :  { %26606 = vst [vmem:[#allocation47_spill] sm:$0xff] %v23971_v51  ;;  %19920 = vrot.lane.b32.xlu1 %v23971_v51, %s21315_s18 }
0x1304   :  { %v18291_v33 = vpop.f32.mrb[92].mxu1 }
0x1305   :  { %v8424_v14 = vpop.f32.mrb[93].mxu1  ;;  %v23987_v8 = vadd.f32 %v18291_v33, %v8337_v37 }
0x1306   :  { %v18292_v43 = vpop.f32.mrb[94].mxu1  ;;  %v23977_v54 = vadd.f32 %v8424_v14, %v8337_v37 }
0x1307   :  { %v8427_v41 = vpop.f32.mrb[95].mxu1  ;;  %v23981_v58 = vadd.f32 %v18292_v43, %v8337_v37 }
0x1308   :  { %v23979_v24 = vadd.f32 %v8427_v41, %v8337_v37 }
0x1309   :  { %v23993_v17 = vpack.i.bf16 %v23981_v58, %v23987_v8 }
0x130a   :  { %v23985_v4 = vpack.i.bf16 %v23979_v24, %v23977_v54 }
0x130c   :  { %19930 = vrot.lane.b32.xlu1 %v23985_v4, %s21315_s18 }
0x1310   :  { %19935 = vrot.lane.b32.xlu1 %v23993_v17, %s21315_s18 }
0x1320   :  { %v18295_v45 = vpop.f32.mrb[96].mxu1 }
0x1321   :  { %v8440_v7 = vpop.f32.mrb[97].mxu1  ;;  %v23997_v29 = vadd.f32 %v18295_v45, %v8337_v37 }
0x1322   :  { %v18296_v20 = vpop.f32.mrb[98].mxu1  ;;  %v24001_v40 = vadd.f32 %v8440_v7, %v8337_v37 }
0x1323   :  { %26607 = vst [vmem:[#allocation48_spill] sm:$0xff] %v23997_v29  ;;  %v23999_v11 = vadd.f32 %v18296_v20, %v8337_v37  ;;  %v8443_v60 = vpop.f32.mrb[99].mxu1 }
0x1324   :  { %v24003_v39 = vadd.f32 %v8443_v60, %v8337_v37 }
0x1325   :  { %26608 = vst [vmem:[#allocation51_spill] sm:$0xff] %v23999_v11  ;;  %v24007_v36 = vpack.i.bf16 %v23999_v11, %v23997_v29 }
0x1326   :  { %26609 = vst [vmem:[#allocation52_spill] sm:$0xff] %v24003_v39  ;;  %v24011_v52 = vpack.i.bf16 %v24003_v39, %v24001_v40 }
0x1327   :  { %19945 = vrot.lane.b32.xlu1 %v24007_v36, %s21315_s18 }
0x1328   :  { %19940 = vrot.lane.b32.xlu0 %v24011_v52, %s21315_s18 }
0x1355   :  { %v18299_v38 = vpop.f32.mrb[100].mxu1 }
0x1356   :  { %v8456_v63 = vpop.f32.mrb[101].mxu1  ;;  %v24017_v56 = vadd.f32 %v18299_v38, %v8337_v37 }
0x1357   :  { %v18300_v13 = vpop.f32.mrb[102].mxu1  ;;  %v24021_v31 = vadd.f32 %v8456_v63, %v8337_v37 }
0x1358   :  { %v24019_v27 = vadd.f32 %v18300_v13, %v8337_v37  ;;  %v8459_v57 = vpop.f32.mrb[103].mxu1 }
0x1359   :  { %v24023_v1 = vadd.f32 %v8459_v57, %v8337_v37 }
0x135a   :  { %26610 = vst [vmem:[#allocation29_spill] sm:$0xff] %v24019_v27  ;;  %v24027_v32 = vpack.i.bf16 %v24019_v27, %v24017_v56 }
0x135b   :  { %26611 = vst [vmem:[#allocation30_spill] sm:$0xff] %v24023_v1  ;;  %v24031_v16 = vpack.i.bf16 %v24023_v1, %v24021_v31 }
0x135c   :  { %19955 = vrot.lane.b32.xlu1 %v24027_v32, %s21315_s18 }
0x135d   :  { %19950 = vrot.lane.b32.xlu0 %v24031_v16, %s21315_s18 }
0x1360   :  { %19960 = vrot.lane.b32.xlu1 %v23971_v51, %s21308_s19 }
0x1361   :  { %19965 = vrot.lane.b32.xlu0 %v23967_v42, %s21308_s19 }
0x1364   :  { %19970 = vrot.lane.b32.xlu1 %v23985_v4, %s21308_s19 }
0x1365   :  { %19980 = vrot.lane.b32.xlu0 %v24011_v52, %s21308_s19 }
0x1368   :  { %19975 = vrot.lane.b32.xlu1 %v23993_v17, %s21308_s19 }
0x1369   :  { %19995 = vrot.lane.b32.xlu0 %v23971_v51, %s21316_s26 }
0x136c   :  { %19985 = vrot.lane.b32.xlu1 %v24007_v36, %s21308_s19 }
0x136d   :  { %20005 = vrot.lane.b32.xlu0 %v24031_v16, %s21308_s19 }
0x1370   :  { %v19926_v37 = vpop.permute.xlu0 %19925  ;;  %19990 = vrot.lane.b32.xlu1 %v24027_v32, %s21308_s19 }
0x1371   :  { %v19928_v49 = vunpack.i.h.bf16 %v19926_v37  ;;  %v19927_v22 = vunpack.i.l.bf16 %v19926_v37  ;;  %v19921_v25 = vpop.permute.xlu1 %19920 }
0x1372   :  { %v19923_v33 = vunpack.i.h.bf16 %v19921_v25  ;;  %v19922_v14 = vunpack.i.l.bf16 %v19921_v25 }
0x1373   :  { %v19139_v43 = vpack.c.bf16 %v19928_v49, %v19927_v22 }
0x1374   :  { %v19133_v41 = vpack.c.bf16 %v19923_v33, %v19922_v14  ;;  %20000 = vrot.lane.b32.xlu1 %v23967_v42, %s21316_s26 }
0x1375   :  { %19141 = vmatprep.subr.msk.bf16.mxu1 %vm21579_vm2, %v19139_v43 }
0x1376   :  { %19135 = vmatprep.subr.msk.bf16.mxu0 %vm21579_vm2, %v19133_v41  ;;  %19144 = vmatpush3.bf16.xpose.msk.msra.mxu1 %vm21579_vm2, %v19139_v43 }
0x1377   :  { %19138 = vmatpush3.bf16.xpose.msk.msra.mxu0 %vm21579_vm2, %v19133_v41 }
0x137d   :  { %18313 = vmatmul.mubr.msk.f32.vlgmr.msra.gmra.mrb[104].mxu1 %vm271_vm1, %v23957_v48 }
0x137e   :  { %18306 = vmatmul.mubr.msk.f32.vlgmr.msra.gmra.mrb[104].mxu0 %vm271_vm1, %v23961_v21  ;;  %18326 = vmatprep.mubr.msk.f32.mxu1 %vm271_vm1, %v23987_v8  ;;  %v19931_v45 = vpop.permute.xlu1 %19930 }
0x137f   :  { %18319 = vmatprep.mubr.msk.f32.mxu0 %vm271_vm1, %v23977_v54  ;;  %v19933_v7 = vunpack.i.h.bf16 %v19931_v45  ;;  %v19932_v20 = vunpack.i.l.bf16 %v19931_v45 }
0x1381   :  { %v19145_v60 = vpack.c.bf16 %v19933_v7, %v19932_v20 }
0x1382   :  { %v19936_v38 = vpop.permute.xlu1 %19935 }
0x1383   :  { %v19938_v63 = vunpack.i.h.bf16 %v19936_v38  ;;  %v19937_v13 = vunpack.i.l.bf16 %v19936_v38  ;;  %19147 = vmatprep.subr.msk.bf16.mxu0 %vm21579_vm2, %v19145_v60 }
0x1384   :  { %19150 = vmatpush3.bf16.xpose.msk.msra.mxu0 %vm21579_vm2, %v19145_v60 }
0x1385   :  { %v19151_v57 = vpack.c.bf16 %v19938_v63, %v19937_v13 }
0x1387   :  { %19153 = vmatprep.subr.msk.bf16.mxu1 %vm21579_vm2, %v19151_v57 }
0x1388   :  { %19156 = vmatpush3.bf16.xpose.msk.msra.mxu1 %vm21579_vm2, %v19151_v57 }
0x138b   :  { %18320 = vmatmul.mubr.msk.f32.vlgmr.msra.gmra.mrb[106].mxu0 %vm271_vm1, %v23979_v24 }
0x138c   :  { %18333 = vmatprep.mubr.msk.f32.mxu0 %vm271_vm1, %v24001_v40 }
0x138f   :  { %18327 = vmatmul.mubr.msk.f32.vlgmr.msra.gmra.mrb[106].mxu1 %vm271_vm1, %v23981_v58 }
0x1390   :  { %18340 = vmatprep.mubr.msk.f32.mxu1 %vm271_vm1, %v23997_v29 }
0x1399   :  { %v19946_v37 = vpop.permute.xlu1 %19945 }
0x139a   :  { %v19948_v49 = vunpack.i.h.bf16 %v19946_v37  ;;  %v19947_v22 = vunpack.i.l.bf16 %v19946_v37  ;;  %v19941_v25 = vpop.permute.xlu0 %19940 }
0x139b   :  { %v19943_v33 = vunpack.i.h.bf16 %v19941_v25  ;;  %v19942_v14 = vunpack.i.l.bf16 %v19941_v25 }
0x139c   :  { %v19163_v43 = vpack.c.bf16 %v19948_v49, %v19947_v22 }
0x139d   :  { %v19157_v41 = vpack.c.bf16 %v19943_v33, %v19942_v14 }
0x139e   :  { %19165 = vmatprep.subr.msk.bf16.mxu1 %vm21579_vm2, %v19163_v43 }
0x139f   :  { %19159 = vmatprep.subr.msk.bf16.mxu0 %vm21579_vm2, %v19157_v41  ;;  %19168 = vmatpush3.bf16.xpose.msk.msra.mxu1 %vm21579_vm2, %v19163_v43 }
0x13a0   :  { %19162 = vmatpush3.bf16.xpose.msk.msra.mxu0 %vm21579_vm2, %v19157_v41 }
0x13a6   :  { %18341 = vmatmul.mubr.msk.f32.vlgmr.msra.gmra.mrb[108].mxu1 %vm271_vm1, %v23999_v11 }
0x13a7   :  { %18334 = vmatmul.mubr.msk.f32.vlgmr.msra.gmra.mrb[108].mxu0 %vm271_vm1, %v24003_v39  ;;  %18354 = vmatprep.mubr.msk.f32.mxu1 %vm271_vm1, %v24017_v56 }
0x13a8   :  { %18347 = vmatprep.mubr.msk.f32.mxu0 %vm271_vm1, %v24021_v31 }
0x13ce   :  { %v19956_v45 = vpop.permute.xlu1 %19955 }
0x13cf   :  { %v19958_v7 = vunpack.i.h.bf16 %v19956_v45  ;;  %v19957_v20 = vunpack.i.l.bf16 %v19956_v45  ;;  %v19951_v60 = vpop.permute.xlu0 %19950 }
0x13d0   :  { %v19953_v38 = vunpack.i.h.bf16 %v19951_v60  ;;  %v19952_v63 = vunpack.i.l.bf16 %v19951_v60 }
0x13d1   :  { %v19175_v13 = vpack.c.bf16 %v19958_v7, %v19957_v20 }
0x13d2   :  { %v19169_v57 = vpack.c.bf16 %v19953_v38, %v19952_v63  ;;  %v19961_v37 = vpop.permute.xlu1 %19960 }
0x13d3   :  { %v19963_v49 = vunpack.i.h.bf16 %v19961_v37  ;;  %v19962_v22 = vunpack.i.l.bf16 %v19961_v37  ;;  %v19966_v25 = vpop.permute.xlu0 %19965  ;;  %19177 = vmatprep.subr.msk.bf16.mxu1 %vm21579_vm2, %v19175_v13 }
0x13d4   :  { %v19968_v33 = vunpack.i.h.bf16 %v19966_v25  ;;  %v19967_v14 = vunpack.i.l.bf16 %v19966_v25  ;;  %19171 = vmatprep.subr.msk.bf16.mxu0 %vm21579_vm2, %v19169_v57  ;;  %19180 = vmatpush3.bf16.xpose.msk.msra.mxu1 %vm21579_vm2, %v19175_v13 }
0x13d5   :  { %19174 = vmatpush3.bf16.xpose.msk.msra.mxu0 %vm21579_vm2, %v19169_v57  ;;  %v19181_v43 = vpack.c.bf16 %v19963_v49, %v19962_v22 }
0x13d6   :  { %v19971_v41 = vpop.permute.xlu1 %19970  ;;  %v19185_v45 = vpack.c.bf16 %v19968_v33, %v19967_v14 }
0x13d7   :  { %19182 = vmatprep.subr.bf16.mxu0 %v19181_v43  ;;  %v19973_v7 = vunpack.i.h.bf16 %v19971_v41  ;;  %v19972_v20 = vunpack.i.l.bf16 %v19971_v41 }
0x13d8   :  { %19186 = vmatprep.subr.bf16.mxu1 %v19185_v45 }
0x13d9   :  { %v24117_v13 = vpack.c.bf16 %v19973_v7, %v19972_v20  ;;  %v24134_v7 = vld [vmem:[%s26347_s1] ss:$0 sm:$0xff] }
0x13da   :  { %v19976_v60 = vpop.permute.xlu1 %19975 }
0x13db   :  { %v19978_v38 = vunpack.i.h.bf16 %v19976_v60  ;;  %v19977_v63 = vunpack.i.l.bf16 %v19976_v60  ;;  %18355 = vmatmul.mubr.msk.f32.vlgmr.msra.gmra.mrb[110].mxu1 %vm271_vm1, %v24019_v27 }
0x13dc   :  { %18348 = vmatmul.mubr.msk.f32.vlgmr.msra.gmra.mrb[110].mxu0 %vm271_vm1, %v24023_v1  ;;  %19188 = vmatpush3.bf16.msra.mxu1 %v19185_v45  ;;  %v24126_v45 = vld [vmem:[%s26347_s1 + $0x1] ss:$0 sm:$0xff] }
0x13dd   :  { %19184 = vmatpush3.bf16.msra.mxu0 %v19181_v43  ;;  %v24119_v57 = vpack.c.bf16 %v19978_v38, %v19977_v63 }
0x13de   :  { %19190 = vmatprep.subr.bf16.mxu0 %v24117_v13 }
0x13df   :  { %19194 = vmatprep.subr.bf16.mxu1 %v24119_v57 }
0x1450   :  { %v18314_v37 = vpop.f32.mrb[104].mxu1 }
0x1451   :  { %v9186_v49 = vmul.f32 0.35355338, %v18314_v37  ;;  %v18307_v22 = vpop.f32.mrb[104].mxu0  ;;  %v8640_v25 = vpop.f32.mrb[105].mxu1 }
0x1452   :  { %v9184_v33 = vmul.f32 0.35355338, %v18307_v22  ;;  %v9185_v14 = vmul.f32 0.35355338, %v8640_v25  ;;  %v8551_v41 = vpop.f32.mrb[105].mxu0 }
0x1453   :  { %v24129_v43 = vadd.f32 %v24126_v45, %v9186_v49  ;;  %v9183_v38 = vmul.f32 0.35355338, %v8551_v41 }
0x1454   :  { %v24137_v20 = vadd.f32 %v24134_v7, %v9184_v33  ;;  %v24140_v60 = vadd.f32 %v24126_v45, %v9185_v14 }
0x1455   :  { %v9224_v63 = vsel %vm1058_vm3, %v24129_v43, -inf  ;;  %v24147_v49 = vadd.f32 %v24134_v7, %v9183_v38  ;;  %v24156_v38 = vld [vmem:[%s26347_s1 + $0x3] ss:$0 sm:$0xff] }
0x1456   :  { %9225 = vmax.xlane.f32.xlu0 %v9224_v63  ;;  %v9218_v37 = vsel %vm1058_vm3, %v24137_v20, -inf  ;;  %v9221_v22 = vsel %vm1058_vm3, %v24140_v60, -inf }
0x1457   :  { %9219 = vmax.xlane.f32.xlu1 %v9218_v37  ;;  %v9215_v25 = vsel %vm1058_vm3, %v24147_v49, -inf }
0x145a   :  { %9222 = vmax.xlane.f32.xlu0 %v9221_v22 }
0x145e   :  { %9216 = vmax.xlane.f32.xlu0 %v9215_v25  ;;  %v18321_v33 = vpop.f32.mrb[106].mxu0  ;;  %v24167_v25 = vld [vmem:[%s26347_s1 + $0x2] ss:$0 sm:$0xff] }
0x145f   :  { %v8729_v14 = vpop.f32.mrb[107].mxu0  ;;  %v9188_v2 = vmul.f32 0.35355338, %v18321_v33 }
0x1460   :  { %v9187_v53 = vmul.f32 0.35355338, %v8729_v14 }
0x1461   :  { %v24170_v33 = vadd.f32 %v24167_v25, %v9188_v2 }
0x1462   :  { %v18328_v41 = vpop.f32.mrb[106].mxu1  ;;  %v24175_v14 = vadd.f32 %v24167_v25, %v9187_v53 }
0x1463   :  { %v9190_v63 = vmul.f32 0.35355338, %v18328_v41  ;;  %v8818_v55 = vpop.f32.mrb[107].mxu1 }
0x1464   :  { %v9189_v35 = vmul.f32 0.35355338, %v8818_v55 }
0x1465   :  { %v24159_v37 = vadd.f32 %v24156_v38, %v9190_v63  ;;  %v9227_v63 = vsel %vm1058_vm3, %v24175_v14, -inf }
0x1466   :  { %v24162_v22 = vadd.f32 %v24156_v38, %v9189_v35  ;;  %v9230_v35 = vsel %vm1058_vm3, %v24170_v33, -inf }
0x1467   :  { %v9236_v55 = vsel %vm1058_vm3, %v24159_v37, -inf }
0x1468   :  { %9237 = vmax.xlane.f32.xlu0 %v9236_v55  ;;  %v9233_v41 = vsel %vm1058_vm3, %v24162_v22, -inf  ;;  %v24186_v55 = vld [vmem:[%s26347_s1 + $0x5] ss:$0 sm:$0xff] }
0x1469   :  { %9234 = vmax.xlane.f32.xlu1 %v9233_v41 }
0x146c   :  { %9231 = vmax.xlane.f32.xlu0 %v9230_v35 }
0x146d   :  { %9228 = vmax.xlane.f32.xlu1 %v9227_v63  ;;  %v24197_v63 = vld [vmem:[%s26347_s1 + $0x4] ss:$0 sm:$0xff] }
0x146e   :  { %26612 = vst [vmem:[#allocation33_spill] sm:$0xff] %v24197_v63 }
0x1479   :  { %v18342_v2 = vpop.f32.mrb[108].mxu1 }
0x147a   :  { %v9194_v12 = vmul.f32 0.35355338, %v18342_v2  ;;  %v18335_v30 = vpop.f32.mrb[108].mxu0  ;;  %v8996_v50 = vpop.f32.mrb[109].mxu1 }
0x147b   :  { %v9192_v19 = vmul.f32 0.35355338, %v18335_v30  ;;  %v9193_v53 = vmul.f32 0.35355338, %v8996_v50  ;;  %v8907_v26 = vpop.f32.mrb[109].mxu0 }
0x147c   :  { %v24189_v41 = vadd.f32 %v24186_v55, %v9194_v12  ;;  %v9191_v35 = vmul.f32 0.35355338, %v8907_v26 }
0x147d   :  { %v24192_v62 = vadd.f32 %v24186_v55, %v9193_v53  ;;  %v24200_v30 = vadd.f32 %v24197_v63, %v9192_v19 }
0x147e   :  { %v9248_v50 = vsel %vm1058_vm3, %v24189_v41, -inf  ;;  %v24205_v2 = vadd.f32 %v24197_v63, %v9191_v35 }
0x147f   :  { %9249 = vmax.xlane.f32.xlu0 %v9248_v50  ;;  %v9245_v12 = vsel %vm1058_vm3, %v24192_v62, -inf  ;;  %v9242_v26 = vsel %vm1058_vm3, %v24200_v30, -inf }
0x1480   :  { %9246 = vmax.xlane.f32.xlu1 %v9245_v12  ;;  %v9239_v53 = vsel %vm1058_vm3, %v24205_v2, -inf }
0x1483   :  { %9243 = vmax.xlane.f32.xlu0 %v9242_v26  ;;  %v24220_v26 = vld [vmem:[%s26347_s1 + $0x7] ss:$0 sm:$0xff] }
0x1484   :  { %9240 = vmax.xlane.f32.xlu1 %v9239_v53  ;;  %26613 = vst [vmem:[#allocation34_spill] sm:$0xff] %v24220_v26  ;;  %v24228_v53 = vld [vmem:[%s26347_s1 + $0x6] ss:$0 sm:$0xff] }
0x1485   :  { %26614 = vst [vmem:[#allocation31_spill] sm:$0xff] %v24228_v53 }
0x1495   :  { %20015 = vrot.lane.b32.xlu1 %v23993_v17, %s21316_s26 }
0x1499   :  { %10089 = vrot.lane.b32.xlu1 %v23961_v21, %s21317_s22 }
0x14ae   :  { %v18356_v19 = vpop.f32.mrb[110].mxu1 }
0x14af   :  { %v9198_v35 = vmul.f32 0.35355338, %v18356_v19  ;;  %v18349_v50 = vpop.f32.mrb[110].mxu0  ;;  %v9174_v46 = vpop.f32.mrb[111].mxu1 }
0x14b0   :  { %v9196_v6 = vmul.f32 0.35355338, %v18349_v50  ;;  %v9085_v12 = vpop.f32.mrb[111].mxu0  ;;  %v9197_v50 = vmul.f32 0.35355338, %v9174_v46  ;;  %v24255_v46 = vpop.permute.xlu1 %19985 }
0x14b1   :  { %v24223_v0 = vadd.f32 %v24220_v26, %v9198_v35  ;;  %v9195_v35 = vmul.f32 0.35355338, %v9085_v12 }
0x14b2   :  { %v24231_v59 = vadd.f32 %v24228_v53, %v9196_v6  ;;  %v24238_v34 = vadd.f32 %v24220_v26, %v9197_v50 }
0x14b3   :  { %v9260_v19 = vsel %vm1058_vm3, %v24223_v0, -inf  ;;  %v24241_v3 = vadd.f32 %v24228_v53, %v9195_v35 }
0x14b4   :  { %9261 = vmax.xlane.f32.xlu0 %v9260_v19  ;;  %v9254_v47 = vsel %vm1058_vm3, %v24231_v59, -inf  ;;  %v9257_v6 = vsel %vm1058_vm3, %v24238_v34, -inf  ;;  %v24261_v19 = vpop.permute.xlu1 %19990 }
0x14b5   :  { %v9251_v23 = vsel %vm1058_vm3, %v24241_v3, -inf }
0x14b8   :  { %9255 = vmax.xlane.f32.xlu0 %v9254_v47  ;;  %v24253_v47 = vpop.permute.xlu0 %19980  ;;  %v24265_v50 = vpop.permute.xlu1 %20000 }
0x14bc   :  { %v24259_v12 = vpop.permute.xlu0 %19995 }
0x14bd   :  { %9258 = vmax.xlane.f32.xlu1 %v9257_v6 }
0x14c1   :  { %9252 = vmax.xlane.f32.xlu1 %v9251_v23  ;;  %v24263_v23 = vpop.permute.xlu0 %20005 }
0x14ce   :  { %20010 = vrot.lane.b32.xlu0 %v23985_v4, %s21316_s26 }
0x14d2   :  { %10087 = vrot.lane.b32.xlu0 %v23955_v28, %s21317_s22  ;;  %10180 = vrot.lane.b32.xlu1 %v23957_v48, %s21317_s22 }
0x14d6   :  { %10178 = vrot.lane.b32.xlu0 %v23953_v9, %s21317_s22 }
0x14e3   :  { %v9226_v35 = vpop.xlane.xlu0 %9225 }
0x14e4   :  { %v9266_v6 = vsub.f32 %v24129_v43, %v9226_v35  ;;  %v9220_v5 = vpop.xlane.xlu1 %9219 }
0x14e5   :  { %v9264_v61 = vsub.f32 %v24137_v20, %v9220_v5 }
0x14e6   :  { %v9285_v44 = vmul.f32 1.442695, %v9266_v6 }
0x14e7   :  { %v9281_v18 = vmul.f32 1.442695, %v9264_v61  ;;  %v9223_v15 = vpop.xlane.xlu0 %9222 }
0x14e8   :  { %20775 = vpow2.f32 %v9285_v44  ;;  %v9265_v48 = vsub.f32 %v24140_v60, %v9223_v15 }
0x14e9   :  { %20777 = vpow2.f32 %v9281_v18 }
0x14ea   :  { %v9283_v9 = vmul.f32 1.442695, %v9265_v48 }
0x14eb   :  { %v9217_v28 = vpop.xlane.xlu0 %9216 }
0x14ec   :  { %20779 = vpow2.f32 %v9283_v9  ;;  %v9263_v21 = vsub.f32 %v24147_v49, %v9217_v28 }
0x14ee   :  { %v9279_v53 = vmul.f32 1.442695, %v9263_v21 }
0x14f0   :  { %20781 = vpow2.f32 %v9279_v53 }
0x14f2   :  { %v24271_v26 = vpop.eup %20775 }
0x14f3   :  { %v9320_v43 = vsel %vm1058_vm3, %v24271_v26, 0.0  ;;  %v24275_v5 = vpop.eup %20777 }
0x14f4   :  { %v9314_v48 = vsel %vm1058_vm3, %v24275_v5, 0.0 }
0x14f5   :  { %9321 = vadd.xlane.f32.xlu0 %v9320_v43  ;;  %v9238_v44 = vpop.xlane.xlu0 %9237 }
0x14f6   :  { %v24277_v61 = vpop.eup %20779  ;;  %v9270_v15 = vsub.f32 %v24159_v37, %v9238_v44  ;;  %v9235_v18 = vpop.xlane.xlu1 %9234 }
0x14f7   :  { %v9317_v9 = vsel %vm1058_vm3, %v24277_v61, 0.0  ;;  %v9269_v28 = vsub.f32 %v24162_v22, %v9235_v18 }
0x14f8   :  { %9318 = vadd.xlane.f32.xlu1 %v9317_v9  ;;  %v9293_v21 = vmul.f32 1.442695, %v9270_v15 }
0x14f9   :  { %9315 = vadd.xlane.f32.xlu0 %v9314_v48  ;;  %v9291_v60 = vmul.f32 1.442695, %v9269_v28  ;;  %v9232_v49 = vpop.xlane.xlu0 %9231 }
0x14fa   :  { %v24285_v20 = vpop.eup %20781  ;;  %20783 = vpow2.f32 %v9293_v21  ;;  %v9268_v53 = vsub.f32 %v24170_v33, %v9232_v49  ;;  %v9229_v37 = vpop.xlane.xlu1 %9228 }
0x14fb   :  { %v9311_v35 = vsel %vm1058_vm3, %v24285_v20, 0.0  ;;  %20785 = vpow2.f32 %v9291_v60  ;;  %v9267_v22 = vsub.f32 %v24175_v14, %v9229_v37 }
0x14fc   :  { %9312 = vadd.xlane.f32.xlu1 %v9311_v35  ;;  %v9289_v6 = vmul.f32 1.442695, %v9268_v53 }
0x14fd   :  { %v9287_v43 = vmul.f32 1.442695, %v9267_v22 }
0x14fe   :  { %20787 = vpow2.f32 %v9289_v6 }
0x14ff   :  { %20789 = vpow2.f32 %v9287_v43 }
0x1504   :  { %v24291_v44 = vpop.eup %20783 }
0x1505   :  { %v24293_v15 = vpop.eup %20785  ;;  %v9332_v18 = vsel %vm1058_vm3, %v24291_v44, 0.0 }
0x1506   :  { %9333 = vadd.xlane.f32.xlu0 %v9332_v18  ;;  %v9329_v33 = vsel %vm1058_vm3, %v24293_v15, 0.0 }
0x1507   :  { %9330 = vadd.xlane.f32.xlu1 %v9329_v33 }
0x1508   :  { %v24299_v9 = vpop.eup %20787 }
0x1509   :  { %v24301_v14 = vpop.eup %20789  ;;  %v9326_v28 = vsel %vm1058_vm3, %v24299_v9, 0.0 }
0x150a   :  { %9327 = vadd.xlane.f32.xlu0 %v9326_v28  ;;  %v9323_v48 = vsel %vm1058_vm3, %v24301_v14, 0.0 }
0x150b   :  { %9324 = vadd.xlane.f32.xlu1 %v9323_v48 }
0x150c   :  { %v9250_v21 = vpop.xlane.xlu0 %9249 }
0x150d   :  { %v9274_v60 = vsub.f32 %v24189_v41, %v9250_v21  ;;  %v9247_v49 = vpop.xlane.xlu1 %9246 }
0x150e   :  { %v9273_v53 = vsub.f32 %v24192_v62, %v9247_v49 }
0x150f   :  { %v9301_v37 = vmul.f32 1.442695, %v9274_v60 }
0x1510   :  { %v9299_v35 = vmul.f32 1.442695, %v9273_v53  ;;  %v9244_v22 = vpop.xlane.xlu0 %9243 }
0x1511   :  { %20791 = vpow2.f32 %v9301_v37  ;;  %v9272_v6 = vsub.f32 %v24200_v30, %v9244_v22  ;;  %v9241_v43 = vpop.xlane.xlu1 %9240 }
0x1512   :  { %20793 = vpow2.f32 %v9299_v35  ;;  %v9271_v18 = vsub.f32 %v24205_v2, %v9241_v43 }
0x1513   :  { %v9297_v33 = vmul.f32 1.442695, %v9272_v6 }
0x1514   :  { %v9295_v28 = vmul.f32 1.442695, %v9271_v18 }
0x1515   :  { %20795 = vpow2.f32 %v9297_v33  ;;  %v24329_v53 = vpop.permute.xlu1 %20015 }
0x1516   :  { %20797 = vpow2.f32 %v9295_v28 }
0x1519   :  { %v24332_v43 = vpop.permute.xlu1 %10089 }
0x151b   :  { %v24311_v48 = vpop.eup %20791 }
0x151c   :  { %v24313_v41 = vpop.eup %20793  ;;  %v9344_v62 = vsel %vm1058_vm3, %v24311_v48, 0.0 }
0x151d   :  { %9345 = vadd.xlane.f32.xlu0 %v9344_v62  ;;  %v9341_v21 = vsel %vm1058_vm3, %v24313_v41, 0.0 }
0x151e   :  { %9342 = vadd.xlane.f32.xlu1 %v9341_v21 }
0x151f   :  { %v24319_v30 = vpop.eup %20795 }
0x1520   :  { %v24321_v60 = vpop.eup %20797  ;;  %v9338_v2 = vsel %vm1058_vm3, %v24319_v30, 0.0 }
0x1521   :  { %9339 = vadd.xlane.f32.xlu0 %v9338_v2  ;;  %v9335_v49 = vsel %vm1058_vm3, %v24321_v60, 0.0 }
0x1522   :  { %9336 = vadd.xlane.f32.xlu1 %v9335_v49 }
0x1533   :  { %20025 = vrot.lane.b32.xlu1 %v24007_v36, %s21316_s26 }
0x1541   :  { %v9262_v37 = vpop.xlane.xlu0 %9261 }
0x1542   :  { %v9278_v35 = vsub.f32 %v24223_v0, %v9262_v37 }
0x1544   :  { %v9309_v22 = vmul.f32 1.442695, %v9278_v35 }
0x1545   :  { %v9256_v6 = vpop.xlane.xlu0 %9255 }
0x1546   :  { %20799 = vpow2.f32 %v9309_v22  ;;  %v9276_v18 = vsub.f32 %v24231_v59, %v9256_v6 }
0x1548   :  { %v9305_v33 = vmul.f32 1.442695, %v9276_v18 }
0x1549   :  { %v24359_v18 = vpop.permute.xlu0 %20010 }
0x154a   :  { %20801 = vpow2.f32 %v9305_v33  ;;  %v9259_v28 = vpop.xlane.xlu1 %9258 }
0x154b   :  { %v9277_v62 = vsub.f32 %v24238_v34, %v9259_v28 }
0x154d   :  { %v9307_v21 = vmul.f32 1.442695, %v9277_v62  ;;  %v24365_v33 = vpop.permute.xlu0 %10087 }
0x154e   :  { %v9253_v2 = vpop.xlane.xlu1 %9252 }
0x154f   :  { %20803 = vpow2.f32 %v9307_v21  ;;  %v9275_v49 = vsub.f32 %v24241_v3, %v9253_v2 }
0x1550   :  { %v24337_v63 = vpop.eup %20799 }
0x1551   :  { %v9303_v0 = vmul.f32 1.442695, %v9275_v49  ;;  %v9356_v37 = vsel %vm1058_vm3, %v24337_v63, 0.0  ;;  %v24375_v28 = vpop.permute.xlu0 %10178 }
0x1552   :  { %9357 = vadd.xlane.f32.xlu0 %v9356_v37  ;;  %v24381_v62 = vpop.permute.xlu1 %10180 }
0x1553   :  { %20805 = vpow2.f32 %v9303_v0 }
0x1554   :  { %v24341_v35 = vpop.eup %20801 }
0x1555   :  { %v9350_v59 = vsel %vm1058_vm3, %v24341_v35, 0.0 }
0x1556   :  { %9351 = vadd.xlane.f32.xlu0 %v9350_v59 }
0x1559   :  { %v24345_v34 = vpop.eup %20803 }
0x155a   :  { %v9353_v22 = vsel %vm1058_vm3, %v24345_v34, 0.0 }
0x155b   :  { %9354 = vadd.xlane.f32.xlu1 %v9353_v22  ;;  %v19988_v22 = vunpack.i.h.bf16 %v24255_v46 }
0x155d   :  { %v24349_v3 = vpop.eup %20805 }
0x155e   :  { %v9347_v6 = vsel %vm1058_vm3, %v24349_v3, 0.0 }
0x155f   :  { %9348 = vadd.xlane.f32.xlu1 %v9347_v6  ;;  %v19987_v6 = vunpack.i.l.bf16 %v24255_v46 }
0x1561   :  { %v19201_v46 = vpack.c.bf16 %v19988_v22, %v19987_v6  ;;  %v20008_v22 = vunpack.i.h.bf16 %v24263_v23  ;;  %v20007_v6 = vunpack.i.l.bf16 %v24263_v23 }
0x156c   :  { %20020 = vrot.lane.b32.xlu0 %v24011_v52, %s21316_s26 }
0x1570   :  { %10269 = vrot.lane.b32.xlu0 %v23977_v54, %s21317_s22  ;;  %10271 = vrot.lane.b32.xlu1 %v23979_v24, %s21317_s22 }
0x1574   :  { %10360 = vrot.lane.b32.xlu0 %v23987_v8, %s21317_s22  ;;  %10362 = vrot.lane.b32.xlu1 %v23981_v58, %s21317_s22 }
0x1578   :  { %10451 = vrot.lane.b32.xlu0 %v24001_v40, %s21317_s22  ;;  %20030 = vrot.lane.b32.xlu1 %v24031_v16, %s21316_s26 }
0x157c   :  { %10453 = vrot.lane.b32.xlu0 %v24003_v39, %s21317_s22  ;;  %10542 = vrot.lane.b32.xlu1 %v23997_v29, %s21317_s22 }
0x1580   :  { %20035 = vrot.lane.b32.xlu0 %v24027_v32, %s21316_s26  ;;  %10544 = vrot.lane.b32.xlu1 %v23999_v11, %s21317_s22 }
0x1582   :  { %v9322_v21 = vpop.xlane.xlu0 %9321 }
0x1583   :  { %20807 = vrcp.f32 %v9322_v21 }
0x1584   :  { %10633 = vrot.lane.b32.xlu0 %v24021_v31, %s21317_s22  ;;  %10635 = vrot.lane.b32.xlu1 %v24023_v1, %s21317_s22  ;;  %v19982_v1 = vunpack.i.l.bf16 %v24253_v47 }
0x1585   :  { %v9319_v2 = vpop.xlane.xlu1 %9318 }
0x1586   :  { %20809 = vrcp.f32 %v9319_v2  ;;  %v9316_v49 = vpop.xlane.xlu0 %9315 }
0x1587   :  { %20811 = vrcp.f32 %v9316_v49 }
0x1588   :  { %10724 = vrot.lane.b32.xlu0 %v24017_v56, %s21317_s22  ;;  %10726 = vrot.lane.b32.xlu1 %v24019_v27, %s21317_s22  ;;  %v19983_v27 = vunpack.i.h.bf16 %v24253_v47 }
0x1589   :  { %v9313_v0 = vpop.xlane.xlu1 %9312 }
0x158a   :  { %20813 = vrcp.f32 %v9313_v0 }
0x158c   :  { %20045 = vrot.lane.b32.xlu0 %v23967_v42, %s21318_s23  ;;  %20040 = vrot.lane.b32.xlu1 %v23971_v51, %s21318_s23 }
0x158d   :  { %v20808_v37 = vpop.eup %20807 }
0x158e   :  { %v9378_v2 = vmul.f32 %v20808_v37, %v24271_v26  ;;  %v19992_v37 = vunpack.i.l.bf16 %v24261_v19 }
0x1590   :  { %v20810_v59 = vpop.eup %20809  ;;  %20060 = vrot.lane.b32.xlu0 %v24011_v52, %s21318_s23  ;;  %20050 = vrot.lane.b32.xlu1 %v23985_v4, %s21318_s23 }
0x1591   :  { %v9377_v21 = vmul.f32 %v20810_v59, %v24277_v61  ;;  %v20812_v49 = vpop.eup %20811 }
0x1592   :  { %v9376_v47 = vmul.f32 %v20812_v49, %v24275_v5 }
0x1593   :  { %18368 = vmatprep.mubr.msk.f32.mxu1 %vm1058_vm3, %v9377_v21  ;;  %v9334_v11 = vpop.xlane.xlu0 %9333 }
0x1594   :  { %v20814_v0 = vpop.eup %20813  ;;  %18369 = vmatmul.mubr.msk.f32.vlgmr.msra.gmra.mrb[112].mxu1 %vm1058_vm3, %v9378_v2  ;;  %20070 = vrot.lane.b32.xlu0 %v24031_v16, %s21318_s23  ;;  %20815 = vrcp.f32 %v9334_v11  ;;  %v9331_v29 = vpop.xlane.xlu1 %9330  ;;  %v19197_v11 = vpack.c.bf16 %v19983_v27, %v19982_v1 }
0x1595   :  { %19196 = vmatpush3.bf16.msra.mxu1 %v24119_v57  ;;  %20055 = vrot.lane.b32.xlu1 %v23993_v17, %s21318_s23  ;;  %v9375_v26 = vmul.f32 %v20814_v0, %v24285_v20  ;;  %20817 = vrcp.f32 %v9331_v29  ;;  %v19993_v20 = vunpack.i.h.bf16 %v24261_v19 }
0x1596   :  { %19202 = vmatprep.subr.bf16.mxu1 %v19201_v46 }
0x1597   :  { %18361 = vmatprep.mubr.msk.f32.mxu0 %vm1058_vm3, %v9375_v26  ;;  %v9328_v61 = vpop.xlane.xlu0 %9327  ;;  %v19209_v21 = vpack.c.bf16 %v19993_v20, %v19992_v37  ;;  %v20003_v26 = vunpack.i.h.bf16 %v24265_v50 }
0x1598   :  { %18362 = vmatmul.mubr.msk.f32.vlgmr.msra.gmra.mrb[112].mxu0 %vm1058_vm3, %v9376_v47  ;;  %20080 = vrot.lane.b32.xlu0 %v23971_v51, %s21319_s25  ;;  %20819 = vrcp.f32 %v9328_v61  ;;  %v9325_v57 = vpop.xlane.xlu1 %9324 }
0x1599   :  { %19192 = vmatpush3.bf16.msra.mxu0 %v24117_v13  ;;  %20065 = vrot.lane.b32.xlu1 %v24007_v36, %s21318_s23  ;;  %20821 = vrcp.f32 %v9325_v57 }
0x159a   :  { %19198 = vmatprep.subr.bf16.mxu0 %v19197_v11 }
0x159d   :  { %20075 = vrot.lane.b32.xlu1 %v24027_v32, %s21318_s23 }
0x159e   :  { %v20816_v29 = vpop.eup %20815 }
0x159f   :  { %v20818_v5 = vpop.eup %20817  ;;  %v9382_v1 = vmul.f32 %v20816_v29, %v24291_v44  ;;  %v19205_v44 = vpack.c.bf16 %v20008_v22, %v20007_v6  ;;  %v19998_v29 = vunpack.i.h.bf16 %v24259_v12 }
0x15a0   :  { %v9381_v27 = vmul.f32 %v20818_v5, %v24293_v15  ;;  %v19997_v5 = vunpack.i.l.bf16 %v24259_v12 }
0x15a1   :  { %20085 = vrot.lane.b32.xlu1 %v23967_v42, %s21319_s25 }
0x15a2   :  { %v20820_v13 = vpop.eup %20819  ;;  %18382 = vmatprep.mubr.msk.f32.mxu1 %vm1058_vm3, %v9381_v27 }
0x15a3   :  { %v20822_v59 = vpop.eup %20821  ;;  %18383 = vmatmul.mubr.msk.f32.vlgmr.msra.gmra.mrb[114].mxu1 %vm1058_vm3, %v9382_v1  ;;  %v9380_v15 = vmul.f32 %v20820_v13, %v24299_v9  ;;  %v20002_v9 = vunpack.i.l.bf16 %v24265_v50 }
0x15a4   :  { %19204 = vmatpush3.bf16.msra.mxu1 %v19201_v46  ;;  %v9379_v19 = vmul.f32 %v20822_v59, %v24301_v14 }
0x15a5   :  { %19210 = vmatprep.subr.bf16.mxu1 %v19209_v21  ;;  %v19219_v20 = vpack.c.bf16 %v20003_v26, %v20002_v9  ;;  %v20013_v26 = vunpack.i.h.bf16 %v24359_v18  ;;  %v20012_v9 = vunpack.i.l.bf16 %v24359_v18 }
0x15a6   :  { %18375 = vmatprep.mubr.msk.f32.mxu0 %vm1058_vm3, %v9379_v19  ;;  %v20018_v19 = vunpack.i.h.bf16 %v24329_v53 }
0x15a7   :  { %18376 = vmatmul.mubr.msk.f32.vlgmr.msra.gmra.mrb[114].mxu0 %vm1058_vm3, %v9380_v15  ;;  %v20017_v15 = vunpack.i.l.bf16 %v24329_v53  ;;  %v19225_v18 = vpack.c.bf16 %v20013_v26, %v20012_v9 }
0x15a8   :  { %19200 = vmatpush3.bf16.msra.mxu0 %v19197_v11 }
0x15a9   :  { %19206 = vmatprep.subr.bf16.mxu0 %v19205_v44 }
0x15aa   :  { %v9346_v2 = vpop.xlane.xlu0 %9345 }
0x15ab   :  { %20823 = vrcp.f32 %v9346_v2  ;;  %v9343_v49 = vpop.xlane.xlu1 %9342 }
0x15ac   :  { %20825 = vrcp.f32 %v9343_v49 }
0x15ae   :  { %v9340_v23 = vpop.xlane.xlu0 %9339 }
0x15af   :  { %20827 = vrcp.f32 %v9340_v23  ;;  %v9337_v0 = vpop.xlane.xlu1 %9336 }
0x15b0   :  { %20829 = vrcp.f32 %v9337_v0 }
0x15b3   :  { %v20026_v27 = vpop.permute.xlu1 %20025 }
0x15b5   :  { %v20824_v46 = vpop.eup %20823 }
0x15b6   :  { %v20826_v14 = vpop.eup %20825  ;;  %v9386_v61 = vmul.f32 %v20824_v46, %v24311_v48  ;;  %v19213_v48 = vpack.c.bf16 %v19998_v29, %v19997_v5 }
0x15b7   :  { %v9385_v47 = vmul.f32 %v20826_v14, %v24313_v41  ;;  %v19231_v14 = vpack.c.bf16 %v20018_v19, %v20017_v15 }
0x15b9   :  { %v20828_v11 = vpop.eup %20827  ;;  %18396 = vmatprep.mubr.msk.f32.mxu1 %vm1058_vm3, %v9385_v47 }
0x15ba   :  { %v20830_v57 = vpop.eup %20829  ;;  %18397 = vmatmul.mubr.msk.f32.vlgmr.msra.gmra.mrb[116].mxu1 %vm1058_vm3, %v9386_v61  ;;  %v9384_v50 = vmul.f32 %v20828_v11, %v24319_v30  ;;  %v20028_v61 = vunpack.i.h.bf16 %v20026_v27  ;;  %v20027_v11 = vunpack.i.l.bf16 %v20026_v27 }
0x15bb   :  { %19212 = vmatpush3.bf16.msra.mxu1 %v19209_v21  ;;  %v9383_v37 = vmul.f32 %v20830_v57, %v24321_v60 }
0x15bc   :  { %19221 = vmatprep.subr.msk.bf16.mxu1 %vm21579_vm2, %v19219_v20 }
0x15bd   :  { %18389 = vmatprep.mubr.msk.f32.mxu0 %vm1058_vm3, %v9383_v37 }
0x15be   :  { %18390 = vmatmul.mubr.msk.f32.vlgmr.msra.gmra.mrb[116].mxu0 %vm1058_vm3, %v9384_v50 }
0x15bf   :  { %19208 = vmatpush3.bf16.msra.mxu0 %v19205_v44 }
0x15c0   :  { %19215 = vmatprep.subr.msk.bf16.mxu0 %vm21579_vm2, %v19213_v48 }
0x15df   :  { %v9358_v12 = vpop.xlane.xlu0 %9357 }
0x15e0   :  { %20831 = vrcp.f32 %v9358_v12 }
0x15e3   :  { %v9352_v41 = vpop.xlane.xlu0 %9351 }
0x15e7   :  { %v20021_v1 = vpop.permute.xlu0 %20020 }
0x15e8   :  { %v9355_v60 = vpop.xlane.xlu1 %9354  ;;  %v20022_v29 = vunpack.i.l.bf16 %v20021_v1 }
0x15e9   :  { %20833 = vrcp.f32 %v9355_v60 }
0x15ea   :  { %20835 = vrcp.f32 %v9352_v41  ;;  %v20832_v6 = vpop.eup %20831 }
0x15eb   :  { %v10270_v13 = vpop.permute.xlu0 %10269  ;;  %v9390_v23 = vmul.f32 %v20832_v6, %v24337_v63 }
0x15ec   :  { %v9349_v59 = vpop.xlane.xlu1 %9348 }
0x15ed   :  { %20837 = vrcp.f32 %v9349_v59 }
0x15ef   :  { %v10361_v30 = vpop.permute.xlu0 %10360 }
0x15f0   :  { %v24453_v22 = vpop.permute.xlu1 %10271 }
0x15f3   :  { %v20834_v21 = vpop.eup %20833  ;;  %v10452_v44 = vpop.permute.xlu0 %10451 }
0x15f4   :  { %v10363_v2 = vpop.permute.xlu1 %10362  ;;  %v9389_v49 = vmul.f32 %v20834_v21, %v24345_v34  ;;  %v20836_v0 = vpop.eup %20835 }
0x15f5   :  { %v9388_v34 = vmul.f32 %v20836_v0, %v24341_v35  ;;  %v20023_v35 = vunpack.i.h.bf16 %v20021_v1 }
0x15f6   :  { %18410 = vmatprep.mubr.msk.f32.mxu1 %vm1058_vm3, %v9389_v49 }
0x15f7   :  { %v20838_v46 = vpop.eup %20837  ;;  %v10454_v47 = vpop.permute.xlu0 %10453  ;;  %18411 = vmatmul.mubr.msk.f32.vlgmr.msra.gmra.mrb[118].mxu1 %vm1058_vm3, %v9390_v23 }
0x15f8   :  { %19224 = vmatpush3.bf16.xpose.msk.msra.mxu1 %vm21579_vm2, %v19219_v20  ;;  %18424 = vmatprep.mubr.msk.f32.mxu1 %vm271_vm1, %v24375_v28  ;;  %v20031_v53 = vpop.permute.xlu1 %20030  ;;  %v9387_v63 = vmul.f32 %v20838_v46, %v24349_v3  ;;  %v19243_v28 = vpack.c.bf16 %v20028_v61, %v20027_v11 }
0x15f9   :  { %19233 = vmatprep.subr.msk.bf16.mxu1 %vm21579_vm2, %v19231_v14  ;;  %v20033_v12 = vunpack.i.h.bf16 %v20031_v53  ;;  %v20032_v41 = vunpack.i.l.bf16 %v20031_v53 }
0x15fa   :  { %18403 = vmatprep.mubr.msk.f32.mxu0 %vm1058_vm3, %v9387_v63 }
0x15fb   :  { %v20036_v57 = vpop.permute.xlu0 %20035  ;;  %18404 = vmatmul.mubr.msk.f32.vlgmr.msra.gmra.mrb[118].mxu0 %vm1058_vm3, %v9388_v34  ;;  %v19249_v60 = vpack.c.bf16 %v20033_v12, %v20032_v41 }
0x15fc   :  { %19218 = vmatpush3.bf16.xpose.msk.msra.mxu0 %vm21579_vm2, %v19213_v48  ;;  %18417 = vmatprep.mubr.msk.f32.mxu0 %vm271_vm1, %v24365_v33  ;;  %v10543_v3 = vpop.permute.xlu1 %10542  ;;  %v19237_v33 = vpack.c.bf16 %v20023_v35, %v20022_v29  ;;  %v20038_v37 = vunpack.i.h.bf16 %v20036_v57  ;;  %v20037_v50 = vunpack.i.l.bf16 %v20036_v57 }
0x15fd   :  { %19227 = vmatprep.subr.msk.bf16.mxu0 %vm21579_vm2, %v19225_v18 }
0x15fe   :  { %v19255_v27 = vpack.c.bf16 %v20038_v37, %v20037_v50 }
0x15ff   :  { %18425 = vmatmul.mubr.msk.f32.vlgmr.msra.gmra.mrb[120].mxu1 %vm271_vm1, %v24381_v62  ;;  %v10634_v5 = vpop.permute.xlu0 %10633 }
0x1600   :  { %19236 = vmatpush3.bf16.xpose.msk.msra.mxu1 %vm21579_vm2, %v19231_v14  ;;  %18438 = vmatprep.mubr.msk.f32.mxu1 %vm271_vm1, %v10361_v30  ;;  %v10545_v20 = vpop.permute.xlu1 %10544 }
0x1601   :  { %19245 = vmatprep.subr.msk.bf16.mxu1 %vm21579_vm2, %v19243_v28 }
0x1603   :  { %18418 = vmatmul.mubr.msk.f32.vlgmr.msra.gmra.mrb[120].mxu0 %vm271_vm1, %v24332_v43  ;;  %v10725_v48 = vpop.permute.xlu0 %10724 }
0x1604   :  { %19230 = vmatpush3.bf16.xpose.msk.msra.mxu0 %vm21579_vm2, %v19225_v18  ;;  %18431 = vmatprep.mubr.msk.f32.mxu0 %vm271_vm1, %v10270_v13  ;;  %v10636_v62 = vpop.permute.xlu1 %10635 }
0x1605   :  { %19239 = vmatprep.subr.msk.bf16.mxu0 %vm21579_vm2, %v19237_v33 }
0x1607   :  { %18439 = vmatmul.mubr.msk.f32.vlgmr.msra.gmra.mrb[122].mxu1 %vm271_vm1, %v10363_v2  ;;  %v20046_v1 = vpop.permute.xlu0 %20045 }
0x1608   :  { %19248 = vmatpush3.bf16.xpose.msk.msra.mxu1 %vm21579_vm2, %v19243_v28  ;;  %18452 = vmatprep.mubr.msk.f32.mxu1 %vm271_vm1, %v10543_v3  ;;  %v10727_v43 = vpop.permute.xlu1 %10726  ;;  %v20048_v13 = vunpack.i.h.bf16 %v20046_v1  ;;  %v20047_v59 = vunpack.i.l.bf16 %v20046_v1 }
0x1609   :  { %19257 = vmatprep.subr.msk.bf16.mxu1 %vm21579_vm2, %v19255_v27 }
0x160a   :  { %v19265_v19 = vpack.c.bf16 %v20048_v13, %v20047_v59 }
0x160b   :  { %18432 = vmatmul.mubr.msk.f32.vlgmr.msra.gmra.mrb[122].mxu0 %vm271_vm1, %v24453_v22 }
0x160c   :  { %19242 = vmatpush3.bf16.xpose.msk.msra.mxu0 %vm21579_vm2, %v19237_v33  ;;  %18445 = vmatprep.mubr.msk.f32.mxu0 %vm271_vm1, %v10452_v44  ;;  %v20041_v30 = vpop.permute.xlu1 %20040 }
0x160d   :  { %19251 = vmatprep.subr.msk.bf16.mxu0 %vm21579_vm2, %v19249_v60  ;;  %v20043_v6 = vunpack.i.h.bf16 %v20041_v30  ;;  %v20042_v21 = vunpack.i.l.bf16 %v20041_v30 }
0x160f   :  { %18453 = vmatmul.mubr.msk.f32.vlgmr.msra.gmra.mrb[124].mxu1 %vm271_vm1, %v10545_v20  ;;  %v19261_v15 = vpack.c.bf16 %v20043_v6, %v20042_v21 }
0x1610   :  { %19260 = vmatpush3.bf16.xpose.msk.msra.mxu1 %vm21579_vm2, %v19255_v27  ;;  %18466 = vmatprep.mubr.msk.f32.mxu1 %vm271_vm1, %v10725_v48  ;;  %v20051_v22 = vpop.permute.xlu1 %20050 }
0x1611   :  { %19266 = vmatprep.subr.bf16.mxu1 %v19265_v19  ;;  %v20053_v23 = vunpack.i.h.bf16 %v20051_v22  ;;  %v20052_v0 = vunpack.i.l.bf16 %v20051_v22 }
0x1613   :  { %18446 = vmatmul.mubr.msk.f32.vlgmr.msra.gmra.mrb[124].mxu0 %vm271_vm1, %v10454_v47  ;;  %v24519_v14 = vpack.c.bf16 %v20053_v23, %v20052_v0 }
0x1614   :  { %19254 = vmatpush3.bf16.xpose.msk.msra.mxu0 %vm21579_vm2, %v19249_v60  ;;  %18459 = vmatprep.mubr.msk.f32.mxu0 %vm271_vm1, %v10634_v5  ;;  %v20056_v44 = vpop.permute.xlu1 %20055 }
0x1615   :  { %v20058_v2 = vunpack.i.h.bf16 %v20056_v44  ;;  %v20057_v49 = vunpack.i.l.bf16 %v20056_v44  ;;  %19262 = vmatprep.subr.bf16.mxu0 %v19261_v15 }
0x1617   :  { %18467 = vmatmul.mubr.msk.f32.vlgmr.msra.gmra.mrb[126].mxu1 %vm271_vm1, %v10727_v43  ;;  %v24515_v46 = vpack.c.bf16 %v20058_v2, %v20057_v49 }
0x1618   :  { %19268 = vmatpush3.bf16.msra.mxu1 %v19265_v19 }
0x1619   :  { %19274 = vmatprep.subr.bf16.mxu1 %v24515_v46 }
0x161b   :  { %18460 = vmatmul.mubr.msk.f32.vlgmr.msra.gmra.mrb[126].mxu0 %vm271_vm1, %v10636_v62 }
0x161c   :  { %19264 = vmatpush3.bf16.msra.mxu0 %v19261_v15 }
0x161d   :  { %19270 = vmatprep.subr.bf16.mxu0 %v24519_v14 }
0x1667   :  { %v24522_v26 = vpop.f32.mrb[112].mxu1 }
0x1668   :  { %26615 = vst [vmem:[#allocation32_spill] sm:$0xff] %v24522_v26  ;;  %v24524_v9 = vpop.f32.mrb[113].mxu1 }
0x1669   :  { %26616 = vst [vmem:[#allocation37_spill] sm:$0xff] %v24524_v9 }
0x166b   :  { %v24526_v47 = vpop.f32.mrb[112].mxu0 }
0x166c   :  { %26617 = vst [vmem:[#allocation38_spill] sm:$0xff] %v24526_v47  ;;  %v24528_v53 = vpop.f32.mrb[113].mxu0 }
0x166d   :  { %26618 = vst [vmem:[#allocation35_spill] sm:$0xff] %v24528_v53 }
0x1676   :  { %v24530_v63 = vpop.f32.mrb[114].mxu1 }
0x1677   :  { %26619 = vst [vmem:[#allocation36_spill] sm:$0xff] %v24530_v63  ;;  %v24532_v34 = vpop.f32.mrb[115].mxu1 }
0x1678   :  { %26620 = vst [vmem:[#allocation41_spill] sm:$0xff] %v24532_v34 }
0x167a   :  { %v24534_v18 = vpop.f32.mrb[114].mxu0 }
0x167b   :  { %26621 = vst [vmem:[#allocation42_spill] sm:$0xff] %v24534_v18  ;;  %v24536_v61 = vpop.f32.mrb[115].mxu0 }
0x167c   :  { %26622 = vst [vmem:[#allocation39_spill] sm:$0xff] %v24536_v61 }
0x168d   :  { %v24538_v11 = vpop.f32.mrb[116].mxu1 }
0x168e   :  { %26623 = vst [vmem:[#allocation40_spill] sm:$0xff] %v24538_v11  ;;  %v24540_v57 = vpop.f32.mrb[117].mxu1 }
0x168f   :  { %26624 = vst [vmem:[#allocation23_spill] sm:$0xff] %v24540_v57 }
0x1691   :  { %v24542_v3 = vpop.f32.mrb[116].mxu0 }
0x1692   :  { %26625 = vst [vmem:[#allocation43_spill] sm:$0xff] %v24542_v3  ;;  %v24544_v28 = vpop.f32.mrb[117].mxu0 }
0x1693   :  { %26626 = vst [vmem:[#allocation58_spill] sm:$0xff] %v24544_v28 }
0x16ca   :  { %v24546_v35 = vpop.f32.mrb[118].mxu1 }
0x16cb   :  { %26627 = vst [vmem:[#allocation59_spill] sm:$0xff] %v24546_v35  ;;  %v24548_v29 = vpop.f32.mrb[119].mxu1 }
0x16cc   :  { %26628 = vst [vmem:[#allocation60_spill] sm:$0xff] %v24548_v29 }
0x16ce   :  { %v24550_v5 = vpop.f32.mrb[118].mxu0 }
0x16cf   :  { %26629 = vst [vmem:[#allocation61_spill] sm:$0xff] %v24550_v5  ;;  %v24552_v20 = vpop.f32.mrb[119].mxu0 }
0x16d0   :  { %26630 = vst [vmem:[#allocation62_spill] sm:$0xff] %v24552_v20 }
0x16d2   :  { %v18426_v33 = vpop.f32.mrb[120].mxu1 }
0x16d3   :  { %v10818_v37 = vmul.f32 0.35355338, %v18426_v33  ;;  %v10260_v50 = vpop.f32.mrb[121].mxu1 }
0x16d4   :  { %v10817_v48 = vmul.f32 0.35355338, %v10260_v50 }
0x16d5   :  { %v24555_v62 = vadd.f32 %v24126_v45, %v10818_v37 }
0x16d6   :  { %v18419_v12 = vpop.f32.mrb[120].mxu0  ;;  %v24558_v41 = vadd.f32 %v24126_v45, %v10817_v48 }
0x16d7   :  { %v10816_v27 = vmul.f32 0.35355338, %v18419_v12  ;;  %v10169_v1 = vpop.f32.mrb[121].mxu0  ;;  %v10856_v43 = vsel %vm1058_vm3, %v24555_v62, -inf }
0x16d8   :  { %v10815_v60 = vmul.f32 0.35355338, %v10169_v1  ;;  %10857 = vmax.xlane.f32.xlu0 %v10856_v43  ;;  %v10853_v45 = vsel %vm1058_vm3, %v24558_v41, -inf }
0x16d9   :  { %v24563_v13 = vadd.f32 %v24134_v7, %v10816_v27 }
0x16da   :  { %v18440_v59 = vpop.f32.mrb[122].mxu1  ;;  %v24566_v30 = vadd.f32 %v24134_v7, %v10815_v60 }
0x16db   :  { %v10822_v6 = vmul.f32 0.35355338, %v18440_v59  ;;  %v10442_v21 = vpop.f32.mrb[123].mxu1  ;;  %v10850_v19 = vsel %vm1058_vm3, %v24563_v13, -inf }
0x16dc   :  { %v10821_v22 = vmul.f32 0.35355338, %v10442_v21  ;;  %10854 = vmax.xlane.f32.xlu0 %v10853_v45  ;;  %10851 = vmax.xlane.f32.xlu1 %v10850_v19  ;;  %v10847_v23 = vsel %vm1058_vm3, %v24566_v30, -inf }
0x16dd   :  { %v24576_v2 = vadd.f32 %v24156_v38, %v10822_v6 }
0x16de   :  { %v24573_v15 = vadd.f32 %v24156_v38, %v10821_v22  ;;  %v18433_v44 = vpop.f32.mrb[122].mxu0 }
0x16df   :  { %v10820_v7 = vmul.f32 0.35355338, %v18433_v44  ;;  %v10351_v49 = vpop.f32.mrb[123].mxu0  ;;  %v10868_v27 = vsel %vm1058_vm3, %v24576_v2, -inf  ;;  %v26631_v44 = vld [vmem:[#allocation33_spill] sm:$0xff] }
0x16e0   :  { %v10819_v0 = vmul.f32 0.35355338, %v10351_v49  ;;  %10848 = vmax.xlane.f32.xlu0 %v10847_v23  ;;  %v10865_v33 = vsel %vm1058_vm3, %v24573_v15, -inf }
0x16e1   :  { %10866 = vmax.xlane.f32.xlu1 %v10865_v33  ;;  %v24586_v48 = vadd.f32 %v24167_v25, %v10820_v7 }
0x16e2   :  { %v24583_v37 = vadd.f32 %v24167_v25, %v10819_v0  ;;  %v18454_v50 = vpop.f32.mrb[124].mxu1 }
0x16e3   :  { %v10826_v38 = vmul.f32 0.35355338, %v18454_v50  ;;  %v10624_v12 = vpop.f32.mrb[125].mxu1  ;;  %v10862_v45 = vsel %vm1058_vm3, %v24586_v48, -inf }
0x16e4   :  { %v10825_v1 = vmul.f32 0.35355338, %v10624_v12  ;;  %10869 = vmax.xlane.f32.xlu0 %v10868_v27  ;;  %v10859_v43 = vsel %vm1058_vm3, %v24583_v37, -inf  ;;  %v26632_v12 = vld [vmem:[#allocation34_spill] sm:$0xff] }
0x16e5   :  { %10860 = vmax.xlane.f32.xlu1 %v10859_v43  ;;  %v24596_v6 = vadd.f32 %v24186_v55, %v10826_v38 }
0x16e6   :  { %v24593_v60 = vadd.f32 %v24186_v55, %v10825_v1  ;;  %v18447_v59 = vpop.f32.mrb[124].mxu0 }
0x16e7   :  { %v10824_v25 = vmul.f32 0.35355338, %v18447_v59  ;;  %v10533_v21 = vpop.f32.mrb[125].mxu0  ;;  %v10880_v33 = vsel %vm1058_vm3, %v24596_v6, -inf }
0x16e8   :  { %v10823_v19 = vmul.f32 0.35355338, %v10533_v21  ;;  %10863 = vmax.xlane.f32.xlu0 %v10862_v45  ;;  %v10877_v22 = vsel %vm1058_vm3, %v24593_v60, -inf }
0x16e9   :  { %10878 = vmax.xlane.f32.xlu1 %v10877_v22  ;;  %v24606_v23 = vadd.f32 %v26631_v44, %v10824_v25  ;;  %v26633_v25 = vld [vmem:[#allocation31_spill] sm:$0xff]  ;;  %v26634_v22 = vld [vmem:[#allocation50_spill] sm:$0xff] }
0x16ea   :  { %v24603_v7 = vadd.f32 %v26631_v44, %v10823_v19  ;;  %v18468_v49 = vpop.f32.mrb[126].mxu1  ;;  %v26635_v44 = vld [vmem:[#allocation44_spill] sm:$0xff] }
0x16eb   :  { %v10830_v55 = vmul.f32 0.35355338, %v18468_v49  ;;  %v10806_v0 = vpop.f32.mrb[127].mxu1  ;;  %v10874_v59 = vsel %vm1058_vm3, %v24606_v23, -inf  ;;  %v26636_v49 = vld [vmem:[#allocation24_spill] sm:$0xff] }
0x16ec   :  { %10881 = vmax.xlane.f32.xlu0 %v10880_v33  ;;  %v10871_v50 = vsel %vm1058_vm3, %v24603_v7, -inf }
0x16ed   :  { %10872 = vmax.xlane.f32.xlu1 %v10871_v50  ;;  %v24613_v27 = vadd.f32 %v26632_v12, %v10830_v55  ;;  %v10829_v55 = vmul.f32 0.35355338, %v10806_v0  ;;  %v24648_v0 = vpop.permute.xlu1 %20065 }
0x16ee   :  { %v18461_v38 = vpop.f32.mrb[126].mxu0  ;;  %v20068_v26 = vunpack.i.h.bf16 %v24648_v0 }
0x16ef   :  { %v10828_v1 = vmul.f32 0.35355338, %v18461_v38  ;;  %v10715_v43 = vpop.f32.mrb[127].mxu0  ;;  %v10892_v45 = vsel %vm1058_vm3, %v24613_v27, -inf  ;;  %v24635_v33 = vadd.f32 %v26632_v12, %v10829_v55 }
0x16f0   :  { %10875 = vmax.xlane.f32.xlu0 %v10874_v59  ;;  %v10827_v50 = vmul.f32 0.35355338, %v10715_v43 }
0x16f1   :  { %v24618_v21 = vadd.f32 %v26633_v25, %v10828_v1  ;;  %v10889_v1 = vsel %vm1058_vm3, %v24635_v33, -inf  ;;  %v24652_v43 = vpop.permute.xlu1 %20075 }
0x16f2   :  { %v24638_v38 = vadd.f32 %v26633_v25, %v10827_v50 }
0x16f3   :  { %v10886_v19 = vsel %vm1058_vm3, %v24618_v21, -inf }
0x16f4   :  { %10893 = vmax.xlane.f32.xlu0 %v10892_v45  ;;  %v10883_v59 = vsel %vm1058_vm3, %v24638_v38, -inf  ;;  %v26637_v45 = vld [vmem:[#allocation49_spill] sm:$0xff] }
0x16f5   :  { %v24656_v55 = vpop.permute.xlu1 %20085 }
0x16f8   :  { %10887 = vmax.xlane.f32.xlu0 %v10886_v19  ;;  %v24646_v19 = vpop.permute.xlu0 %20060 }
0x16fc   :  { %v24650_v12 = vpop.permute.xlu0 %20070 }
0x16fe   :  { %20095 = vrot.lane.b32.xlu1 %v23993_v17, %s21319_s25 }
0x1700   :  { %v24654_v25 = vpop.permute.xlu0 %20080 }
0x1702   :  { %11721 = vrot.lane.b32.xlu1 %v26634_v22, %s21320_s7 }
0x170e   :  { %20090 = vrot.lane.b32.xlu0 %v23985_v4, %s21319_s25 }
0x1712   :  { %11719 = vrot.lane.b32.xlu0 %v26635_v44, %s21320_s7 }
0x1716   :  { %11810 = vrot.lane.b32.xlu0 %v26636_v49, %s21320_s7 }
0x1726   :  { %10890 = vmax.xlane.f32.xlu1 %v10889_v1 }
0x172a   :  { %10884 = vmax.xlane.f32.xlu1 %v10883_v59 }
0x173b   :  { %11812 = vrot.lane.b32.xlu1 %v26637_v45, %s21320_s7 }
0x1765   :  { %v10858_v50 = vpop.xlane.xlu0 %10857 }
0x1766   :  { %v10898_v1 = vsub.f32 %v24555_v62, %v10858_v50 }
0x1768   :  { %v10917_v20 = vmul.f32 1.442695, %v10898_v1 }
0x1769   :  { %v10855_v59 = vpop.xlane.xlu0 %10854  ;;  %v10852_v5 = vpop.xlane.xlu1 %10851 }
0x176a   :  { %20839 = vpow2.f32 %v10917_v20  ;;  %v10897_v29 = vsub.f32 %v24558_v41, %v10855_v59  ;;  %v10896_v35 = vsub.f32 %v24563_v13, %v10852_v5 }
0x176c   :  { %v10915_v28 = vmul.f32 1.442695, %v10897_v29  ;;  %v10913_v3 = vmul.f32 1.442695, %v10896_v35 }
0x176d   :  { %v10849_v57 = vpop.xlane.xlu0 %10848 }
0x176e   :  { %20841 = vpow2.f32 %v10915_v28  ;;  %v10895_v11 = vsub.f32 %v24566_v30, %v10849_v57  ;;  %v10867_v61 = vpop.xlane.xlu1 %10866 }
0x176f   :  { %20843 = vpow2.f32 %v10913_v3  ;;  %v10901_v18 = vsub.f32 %v24573_v15, %v10867_v61 }
0x1770   :  { %v10911_v34 = vmul.f32 1.442695, %v10895_v11 }
0x1771   :  { %v10923_v62 = vmul.f32 1.442695, %v10901_v18  ;;  %v10870_v50 = vpop.xlane.xlu0 %10869 }
0x1772   :  { %20845 = vpow2.f32 %v10911_v34  ;;  %v10902_v20 = vsub.f32 %v24576_v2, %v10870_v50  ;;  %v10861_v1 = vpop.xlane.xlu1 %10860 }
0x1773   :  { %v10899_v41 = vsub.f32 %v24583_v37, %v10861_v1  ;;  %20847 = vpow2.f32 %v10923_v62 }
0x1774   :  { %v24665_v5 = vpop.eup %20839  ;;  %v10925_v35 = vmul.f32 1.442695, %v10902_v20 }
0x1775   :  { %v10919_v28 = vmul.f32 1.442695, %v10899_v41  ;;  %v10864_v29 = vpop.xlane.xlu0 %10863  ;;  %v10952_v57 = vsel %vm1058_vm3, %v24665_v5, 0.0 }
0x1776   :  { %20849 = vpow2.f32 %v10925_v35  ;;  %v10900_v61 = vsub.f32 %v24586_v48, %v10864_v29  ;;  %v10879_v18 = vpop.xlane.xlu1 %10878  ;;  %10953 = vadd.xlane.f32.xlu0 %v10952_v57 }
0x1777   :  { %v10905_v34 = vsub.f32 %v24593_v60, %v10879_v18  ;;  %20851 = vpow2.f32 %v10919_v28 }
0x1778   :  { %v24671_v11 = vpop.eup %20841  ;;  %v10921_v3 = vmul.f32 1.442695, %v10900_v61 }
0x1779   :  { %v24673_v13 = vpop.eup %20843  ;;  %v10931_v30 = vmul.f32 1.442695, %v10905_v34  ;;  %v10882_v15 = vpop.xlane.xlu0 %10881  ;;  %v10949_v2 = vsel %vm1058_vm3, %v24671_v11, 0.0 }
0x177a   :  { %20853 = vpow2.f32 %v10921_v3  ;;  %v10906_v37 = vsub.f32 %v24596_v6, %v10882_v15  ;;  %v10873_v59 = vpop.xlane.xlu1 %10872  ;;  %v10946_v48 = vsel %vm1058_vm3, %v24673_v13, 0.0  ;;  %10950 = vadd.xlane.f32.xlu1 %v10949_v2 }
0x177b   :  { %v10903_v60 = vsub.f32 %v24603_v7, %v10873_v59  ;;  %10947 = vadd.xlane.f32.xlu0 %v10946_v48  ;;  %20855 = vpow2.f32 %v10931_v30 }
0x177c   :  { %v24681_v62 = vpop.eup %20845  ;;  %v10933_v50 = vmul.f32 1.442695, %v10906_v37 }
0x177d   :  { %v10927_v20 = vmul.f32 1.442695, %v10903_v60  ;;  %v10876_v1 = vpop.xlane.xlu0 %10875  ;;  %v10943_v41 = vsel %vm1058_vm3, %v24681_v62, 0.0  ;;  %v24685_v35 = vpop.eup %20847 }
0x177e   :  { %20857 = vpow2.f32 %v10933_v50  ;;  %v10904_v6 = vsub.f32 %v24606_v23, %v10876_v1  ;;  %10944 = vadd.xlane.f32.xlu1 %v10943_v41  ;;  %v10961_v61 = vsel %vm1058_vm3, %v24685_v35, 0.0 }
0x177f   :  { %20859 = vpow2.f32 %v10927_v20 }
0x1780   :  { %v24688_v28 = vpop.eup %20849  ;;  %v10929_v7 = vmul.f32 1.442695, %v10904_v6 }
0x1781   :  { %v10894_v29 = vpop.xlane.xlu0 %10893  ;;  %v10964_v57 = vsel %vm1058_vm3, %v24688_v28, 0.0  ;;  %v24694_v18 = vpop.eup %20851 }
0x1782   :  { %20861 = vpow2.f32 %v10929_v7  ;;  %v10910_v34 = vsub.f32 %v24613_v27, %v10894_v29  ;;  %10965 = vadd.xlane.f32.xlu0 %v10964_v57  ;;  %10962 = vadd.xlane.f32.xlu1 %v10961_v61  ;;  %v10955_v2 = vsel %vm1058_vm3, %v24694_v18, 0.0  ;;  %v24730_v61 = vpop.permute.xlu1 %20095 }
0x1784   :  { %v24697_v23 = vpop.eup %20853  ;;  %v10941_v3 = vmul.f32 1.442695, %v10910_v34 }
0x1785   :  { %v10888_v30 = vpop.xlane.xlu0 %10887  ;;  %v10958_v15 = vsel %vm1058_vm3, %v24697_v23, 0.0  ;;  %v24703_v37 = vpop.eup %20855 }
0x1786   :  { %20863 = vpow2.f32 %v10941_v3  ;;  %v10908_v59 = vsub.f32 %v24618_v21, %v10888_v30  ;;  %10959 = vadd.xlane.f32.xlu0 %v10958_v15  ;;  %10956 = vadd.xlane.f32.xlu1 %v10955_v2  ;;  %v10973_v50 = vsel %vm1058_vm3, %v24703_v37, 0.0  ;;  %v24734_v34 = vpop.permute.xlu1 %11721 }
0x1788   :  { %v24706_v27 = vpop.eup %20857  ;;  %v10937_v48 = vmul.f32 1.442695, %v10908_v59 }
0x1789   :  { %v10976_v60 = vsel %vm1058_vm3, %v24706_v27, 0.0  ;;  %v24712_v20 = vpop.eup %20859 }
0x178a   :  { %20865 = vpow2.f32 %v10937_v48  ;;  %10977 = vadd.xlane.f32.xlu0 %v10976_v60  ;;  %10974 = vadd.xlane.f32.xlu1 %v10973_v50  ;;  %v10967_v41 = vsel %vm1058_vm3, %v24712_v20, 0.0 }
0x178c   :  { %v24714_v1 = vpop.eup %20861 }
0x178d   :  { %v10970_v21 = vsel %vm1058_vm3, %v24714_v1, 0.0 }
0x178e   :  { %10971 = vadd.xlane.f32.xlu0 %v10970_v21  ;;  %10968 = vadd.xlane.f32.xlu1 %v10967_v41  ;;  %v26638_v21 = vld [vmem:[#allocation48_spill] sm:$0xff]  ;;  %v26639_v41 = vld [vmem:[#allocation51_spill] sm:$0xff] }
0x1790   :  { %v24720_v6 = vpop.eup %20863 }
0x1791   :  { %v10988_v7 = vsel %vm1058_vm3, %v24720_v6, 0.0 }
0x1792   :  { %10989 = vadd.xlane.f32.xlu0 %v10988_v7  ;;  %v26640_v7 = vld [vmem:[#allocation30_spill] sm:$0xff] }
0x1794   :  { %v24724_v29 = vpop.eup %20865 }
0x1795   :  { %v10982_v57 = vsel %vm1058_vm3, %v24724_v29, 0.0 }
0x1796   :  { %10983 = vadd.xlane.f32.xlu0 %v10982_v57  ;;  %v26641_v57 = vld [vmem:[#allocation29_spill] sm:$0xff] }
0x179f   :  { %20105 = vrot.lane.b32.xlu1 %v24007_v36, %s21319_s25 }
0x17ac   :  { %20100 = vrot.lane.b32.xlu0 %v24011_v52, %s21319_s25 }
0x17b0   :  { %11901 = vrot.lane.b32.xlu0 %v23977_v54, %s21320_s7 }
0x17b3   :  { %v10891_v3 = vpop.xlane.xlu1 %10890 }
0x17b4   :  { %v10909_v30 = vsub.f32 %v24635_v33, %v10891_v3  ;;  %11992 = vrot.lane.b32.xlu0 %v23987_v8, %s21320_s7  ;;  %v24782_v3 = vpop.permute.xlu0 %20090 }
0x17b6   :  { %v10939_v15 = vmul.f32 1.442695, %v10909_v30 }
0x17b7   :  { %v10885_v2 = vpop.xlane.xlu1 %10884 }
0x17b8   :  { %20867 = vpow2.f32 %v10939_v15  ;;  %v10907_v59 = vsub.f32 %v24638_v38, %v10885_v2  ;;  %12083 = vrot.lane.b32.xlu0 %v24001_v40, %s21320_s7  ;;  %v24786_v30 = vpop.permute.xlu0 %11719 }
0x17ba   :  { %v10935_v48 = vmul.f32 1.442695, %v10907_v59 }
0x17bb   :  { %v24796_v2 = vpop.permute.xlu1 %11812 }
0x17bc   :  { %20869 = vpow2.f32 %v10935_v48  ;;  %12085 = vrot.lane.b32.xlu0 %v24003_v39, %s21320_s7  ;;  %v24792_v15 = vpop.permute.xlu0 %11810 }
0x17c0   :  { %20115 = vrot.lane.b32.xlu0 %v24027_v32, %s21319_s25 }
0x17c2   :  { %v24748_v33 = vpop.eup %20867 }
0x17c3   :  { %v10985_v60 = vsel %vm1058_vm3, %v24748_v33, 0.0 }
0x17c4   :  { %12265 = vrot.lane.b32.xlu0 %v24021_v31, %s21320_s7  ;;  %10986 = vadd.xlane.f32.xlu1 %v10985_v60 }
0x17c6   :  { %v24754_v38 = vpop.eup %20869 }
0x17c7   :  { %v10979_v50 = vsel %vm1058_vm3, %v24754_v38, 0.0 }
0x17c8   :  { %12356 = vrot.lane.b32.xlu0 %v24017_v56, %s21320_s7  ;;  %10980 = vadd.xlane.f32.xlu1 %v10979_v50 }
0x17cc   :  { %20125 = vrot.lane.b32.xlu0 %v23967_v42, %s21321_s3 }
0x17d0   :  { %20140 = vrot.lane.b32.xlu0 %v24011_v52, %s21321_s3 }
0x17d4   :  { %20150 = vrot.lane.b32.xlu0 %v24031_v16, %s21321_s3 }
0x17d8   :  { %20160 = vrot.lane.b32.xlu0 %v23971_v51, %s21322_s27 }
0x17d9   :  { %11903 = vrot.lane.b32.xlu1 %v23979_v24, %s21320_s7 }
0x17dd   :  { %11994 = vrot.lane.b32.xlu1 %v23981_v58, %s21320_s7 }
0x17e1   :  { %20110 = vrot.lane.b32.xlu1 %v24031_v16, %s21319_s25 }
0x17e5   :  { %12174 = vrot.lane.b32.xlu1 %v26638_v21, %s21320_s7 }
0x17e9   :  { %12176 = vrot.lane.b32.xlu1 %v26639_v41, %s21320_s7 }
0x17ed   :  { %12267 = vrot.lane.b32.xlu1 %v26640_v7, %s21320_s7 }
0x17f1   :  { %12358 = vrot.lane.b32.xlu1 %v26641_v57, %s21320_s7 }
0x17f5   :  { %20120 = vrot.lane.b32.xlu1 %v23971_v51, %s21321_s3  ;;  %v20067_v51 = vunpack.i.l.bf16 %v24648_v0 }
0x17f7   :  { %v19281_v41 = vpack.c.bf16 %v20068_v26, %v20067_v51  ;;  %v20078_v51 = vunpack.i.h.bf16 %v24652_v43 }
0x17f9   :  { %20130 = vrot.lane.b32.xlu1 %v23985_v4, %s21321_s3 }
0x17fd   :  { %20135 = vrot.lane.b32.xlu1 %v23993_v17, %s21321_s3 }
0x1801   :  { %20145 = vrot.lane.b32.xlu1 %v24007_v36, %s21321_s3 }
0x1803   :  { %v10954_v59 = vpop.xlane.xlu0 %10953 }
0x1804   :  { %20871 = vrcp.f32 %v10954_v59 }
0x1805   :  { %20155 = vrot.lane.b32.xlu1 %v24027_v32, %s21321_s3 }
0x1807   :  { %v10951_v48 = vpop.xlane.xlu1 %10950 }
0x1808   :  { %v10948_v60 = vpop.xlane.xlu0 %10947  ;;  %20873 = vrcp.f32 %v10951_v48 }
0x1809   :  { %20165 = vrot.lane.b32.xlu1 %v23967_v42, %s21322_s27  ;;  %20875 = vrcp.f32 %v10948_v60 }
0x180b   :  { %v10945_v50 = vpop.xlane.xlu1 %10944 }
0x180c   :  { %20877 = vrcp.f32 %v10945_v50 }
0x180e   :  { %v20872_v47 = vpop.eup %20871 }
0x180f   :  { %v10966_v63 = vpop.xlane.xlu0 %10965  ;;  %v10963_v53 = vpop.xlane.xlu1 %10962  ;;  %v11010_v7 = vmul.f32 %v20872_v47, %v24665_v5 }
0x1810   :  { %20879 = vrcp.f32 %v10966_v63  ;;  %v20063_v63 = vunpack.i.h.bf16 %v24646_v19 }
0x1811   :  { %20881 = vrcp.f32 %v10963_v53  ;;  %v20062_v53 = vunpack.i.l.bf16 %v24646_v19 }
0x1812   :  { %v20874_v9 = vpop.eup %20873 }
0x1813   :  { %v10960_v59 = vpop.xlane.xlu0 %10959  ;;  %v10957_v57 = vpop.xlane.xlu1 %10956  ;;  %v11009_v48 = vmul.f32 %v20874_v9, %v24671_v11  ;;  %v19277_v19 = vpack.c.bf16 %v20063_v63, %v20062_v53  ;;  %v20087_v63 = vunpack.i.l.bf16 %v24656_v55 }
0x1814   :  { %20883 = vrcp.f32 %v10960_v59  ;;  %v20876_v60 = vpop.eup %20875  ;;  %v20073_v59 = vunpack.i.h.bf16 %v24650_v12 }
0x1815   :  { %20885 = vrcp.f32 %v10957_v57  ;;  %18480 = vmatprep.mubr.msk.f32.mxu1 %vm1058_vm3, %v11009_v48  ;;  %v11008_v47 = vmul.f32 %v20876_v60, %v24673_v13  ;;  %v20072_v48 = vunpack.i.l.bf16 %v24650_v12 }
0x1816   :  { %v20878_v50 = vpop.eup %20877  ;;  %18481 = vmatmul.mubr.msk.f32.vlgmr.msra.gmra.mrb[128].mxu1 %vm1058_vm3, %v11010_v7 }
0x1817   :  { %19276 = vmatpush3.bf16.msra.mxu1 %v24515_v46  ;;  %v10978_v0 = vpop.xlane.xlu0 %10977  ;;  %v10975_v39 = vpop.xlane.xlu1 %10974  ;;  %v11007_v9 = vmul.f32 %v20878_v50, %v24681_v62  ;;  %v20077_v46 = vunpack.i.l.bf16 %v24652_v43  ;;  %v20088_v50 = vunpack.i.h.bf16 %v24656_v55  ;;  %v19285_v12 = vpack.c.bf16 %v20073_v59, %v20072_v48 }
0x1818   :  { %20887 = vrcp.f32 %v10978_v0  ;;  %19282 = vmatprep.subr.bf16.mxu1 %v19281_v41  ;;  %v20083_v0 = vunpack.i.h.bf16 %v24654_v25  ;;  %v20097_v59 = vunpack.i.l.bf16 %v24730_v61 }
0x1819   :  { %20889 = vrcp.f32 %v10975_v39  ;;  %18473 = vmatprep.mubr.msk.f32.mxu0 %vm1058_vm3, %v11007_v9  ;;  %v20082_v9 = vunpack.i.l.bf16 %v24654_v25 }
0x181a   :  { %v20880_v5 = vpop.eup %20879  ;;  %18474 = vmatmul.mubr.msk.f32.vlgmr.msra.gmra.mrb[128].mxu0 %vm1058_vm3, %v11008_v47  ;;  %v19299_v47 = vpack.c.bf16 %v20088_v50, %v20087_v63  ;;  %v20093_v63 = vunpack.i.h.bf16 %v24782_v3 }
0x181b   :  { %v20882_v11 = vpop.eup %20881  ;;  %19272 = vmatpush3.bf16.msra.mxu0 %v24519_v14  ;;  %v10972_v26 = vpop.xlane.xlu0 %10971  ;;  %v11014_v7 = vmul.f32 %v20880_v5, %v24688_v28  ;;  %v19289_v14 = vpack.c.bf16 %v20078_v51, %v20077_v46 }
0x181c   :  { %v10969_v62 = vpop.xlane.xlu1 %10968  ;;  %20891 = vrcp.f32 %v10972_v26  ;;  %19278 = vmatprep.subr.bf16.mxu0 %v19277_v19  ;;  %v11013_v39 = vmul.f32 %v20882_v11, %v24685_v35 }
0x181d   :  { %20893 = vrcp.f32 %v10969_v62 }
0x181e   :  { %v20884_v13 = vpop.eup %20883  ;;  %18494 = vmatprep.mubr.msk.f32.mxu1 %vm1058_vm3, %v11013_v39 }
0x181f   :  { %v20886_v57 = vpop.eup %20885  ;;  %18495 = vmatmul.mubr.msk.f32.vlgmr.msra.gmra.mrb[130].mxu1 %vm1058_vm3, %v11014_v7  ;;  %v11012_v43 = vmul.f32 %v20884_v13, %v24697_v23  ;;  %v10990_v25 = vpop.xlane.xlu0 %10989 }
0x1820   :  { %19284 = vmatpush3.bf16.msra.mxu1 %v19281_v41  ;;  %v11011_v28 = vmul.f32 %v20886_v57, %v24694_v18  ;;  %20895 = vrcp.f32 %v10990_v25  ;;  %v20098_v57 = vunpack.i.h.bf16 %v24730_v61 }
0x1821   :  { %19290 = vmatprep.subr.bf16.mxu1 %v19289_v14 }
0x1822   :  { %v20888_v60 = vpop.eup %20887  ;;  %18487 = vmatprep.mubr.msk.f32.mxu0 %vm1058_vm3, %v11011_v28  ;;  %v19311_v50 = vpack.c.bf16 %v20098_v57, %v20097_v59 }
0x1823   :  { %v20890_v35 = vpop.eup %20889  ;;  %18488 = vmatmul.mubr.msk.f32.vlgmr.msra.gmra.mrb[130].mxu0 %vm1058_vm3, %v11012_v43  ;;  %v11018_v53 = vmul.f32 %v20888_v60, %v24706_v27  ;;  %v10984_v5 = vpop.xlane.xlu0 %10983 }
0x1824   :  { %19280 = vmatpush3.bf16.msra.mxu0 %v19277_v19  ;;  %v11017_v23 = vmul.f32 %v20890_v35, %v24703_v37  ;;  %v19293_v37 = vpack.c.bf16 %v20083_v0, %v20082_v9 }
0x1825   :  { %19286 = vmatprep.subr.bf16.mxu0 %v19285_v12 }
0x1826   :  { %v20892_v41 = vpop.eup %20891  ;;  %18508 = vmatprep.mubr.msk.f32.mxu1 %vm1058_vm3, %v11017_v23 }
0x1827   :  { %v20894_v18 = vpop.eup %20893  ;;  %18509 = vmatmul.mubr.msk.f32.vlgmr.msra.gmra.mrb[132].mxu1 %vm1058_vm3, %v11018_v53  ;;  %v11016_v55 = vmul.f32 %v20892_v41, %v24714_v1  ;;  %v20101_v19 = vpop.permute.xlu0 %20100 }
0x1828   :  { %19292 = vmatpush3.bf16.msra.mxu1 %v19289_v14  ;;  %v11015_v27 = vmul.f32 %v20894_v18, %v24712_v20  ;;  %v20106_v1 = vpop.permute.xlu1 %20105  ;;  %v20102_v18 = vunpack.i.l.bf16 %v20101_v19 }
0x1829   :  { %19301 = vmatprep.subr.msk.bf16.mxu1 %vm21579_vm2, %v19299_v47  ;;  %v20107_v23 = vunpack.i.l.bf16 %v20106_v1 }
0x182a   :  { %18501 = vmatprep.mubr.msk.f32.mxu0 %vm1058_vm3, %v11015_v27  ;;  %v20896_v39 = vpop.eup %20895 }
0x182b   :  { %18502 = vmatmul.mubr.msk.f32.vlgmr.msra.gmra.mrb[132].mxu0 %vm1058_vm3, %v11016_v55  ;;  %v11902_v11 = vpop.permute.xlu0 %11901  ;;  %v11022_v43 = vmul.f32 %v20896_v39, %v24720_v6 }
0x182c   :  { %19288 = vmatpush3.bf16.msra.mxu0 %v19285_v12  ;;  %v20092_v12 = vunpack.i.l.bf16 %v24782_v3  ;;  %v20108_v3 = vunpack.i.h.bf16 %v20106_v1 }
0x182d   :  { %19295 = vmatprep.subr.msk.bf16.mxu0 %vm21579_vm2, %v19293_v37 }
0x182e   :  { %v19305_v53 = vpack.c.bf16 %v20093_v63, %v20092_v12 }
0x182f   :  { %v11993_v51 = vpop.permute.xlu0 %11992 }
0x1833   :  { %v24844_v46 = vpop.permute.xlu0 %12083 }
0x1837   :  { %v24846_v62 = vpop.permute.xlu0 %12085 }
0x183b   :  { %v20116_v60 = vpop.permute.xlu0 %20115 }
0x183c   :  { %v20117_v55 = vunpack.i.l.bf16 %v20116_v60 }
0x183f   :  { %v12266_v41 = vpop.permute.xlu0 %12265 }
0x1851   :  { %v10987_v20 = vpop.xlane.xlu1 %10986 }
0x1852   :  { %20897 = vrcp.f32 %v10987_v20 }
0x1853   :  { %20899 = vrcp.f32 %v10984_v5 }
0x1855   :  { %v10981_v26 = vpop.xlane.xlu1 %10980 }
0x1856   :  { %20901 = vrcp.f32 %v10981_v26 }
0x1859   :  { %v11904_v7 = vpop.permute.xlu1 %11903 }
0x185c   :  { %v20898_v13 = vpop.eup %20897 }
0x185d   :  { %v11995_v48 = vpop.permute.xlu1 %11994  ;;  %v11021_v14 = vmul.f32 %v20898_v13, %v24748_v33  ;;  %v20900_v28 = vpop.eup %20899 }
0x185e   :  { %v11020_v33 = vmul.f32 %v20900_v28, %v24724_v29  ;;  %v20103_v29 = vunpack.i.h.bf16 %v20101_v19 }
0x185f   :  { %18522 = vmatprep.mubr.msk.f32.mxu1 %vm1058_vm3, %v11021_v14 }
0x1860   :  { %v20902_v35 = vpop.eup %20901  ;;  %18523 = vmatmul.mubr.msk.f32.vlgmr.msra.gmra.mrb[134].mxu1 %vm1058_vm3, %v11022_v43  ;;  %v19317_v9 = vpack.c.bf16 %v20103_v29, %v20102_v18 }
0x1861   :  { %19304 = vmatpush3.bf16.xpose.msk.msra.mxu1 %vm21579_vm2, %v19299_v47  ;;  %18536 = vmatprep.mubr.msk.f32.mxu1 %vm271_vm1, %v24792_v15  ;;  %v20111_v61 = vpop.permute.xlu1 %20110  ;;  %v11019_v6 = vmul.f32 %v20902_v35, %v24754_v38  ;;  %v19323_v15 = vpack.c.bf16 %v20108_v3, %v20107_v23  ;;  %v20118_v47 = vunpack.i.h.bf16 %v20116_v60 }
0x1862   :  { %19313 = vmatprep.subr.msk.bf16.mxu1 %vm21579_vm2, %v19311_v50  ;;  %v20112_v25 = vunpack.i.l.bf16 %v20111_v61 }
0x1863   :  { %18515 = vmatprep.mubr.msk.f32.mxu0 %vm1058_vm3, %v11019_v6  ;;  %v19335_v27 = vpack.c.bf16 %v20118_v47, %v20117_v55 }
0x1864   :  { %18516 = vmatmul.mubr.msk.f32.vlgmr.msra.gmra.mrb[134].mxu0 %vm1058_vm3, %v11020_v33 }
0x1865   :  { %19298 = vmatpush3.bf16.xpose.msk.msra.mxu0 %vm21579_vm2, %v19293_v37  ;;  %18529 = vmatprep.mubr.msk.f32.mxu0 %vm271_vm1, %v24786_v30  ;;  %v12175_v38 = vpop.permute.xlu1 %12174  ;;  %v12357_v30 = vpop.permute.xlu0 %12356  ;;  %v20113_v37 = vunpack.i.h.bf16 %v20111_v61 }
0x1866   :  { %19307 = vmatprep.subr.msk.bf16.mxu0 %vm21579_vm2, %v19305_v53 }
0x1867   :  { %v19329_v1 = vpack.c.bf16 %v20113_v37, %v20112_v25 }
0x1868   :  { %18537 = vmatmul.mubr.msk.f32.vlgmr.msra.gmra.mrb[136].mxu1 %vm271_vm1, %v24796_v2 }
0x1869   :  { %19316 = vmatpush3.bf16.xpose.msk.msra.mxu1 %vm21579_vm2, %v19311_v50  ;;  %18550 = vmatprep.mubr.msk.f32.mxu1 %vm271_vm1, %v11993_v51  ;;  %v12177_v0 = vpop.permute.xlu1 %12176  ;;  %v20126_v5 = vpop.permute.xlu0 %20125 }
0x186a   :  { %19325 = vmatprep.subr.msk.bf16.mxu1 %vm21579_vm2, %v19323_v15  ;;  %v20128_v19 = vunpack.i.h.bf16 %v20126_v5 }
0x186c   :  { %18530 = vmatmul.mubr.msk.f32.vlgmr.msra.gmra.mrb[136].mxu0 %vm271_vm1, %v24734_v34 }
0x186d   :  { %19310 = vmatpush3.bf16.xpose.msk.msra.mxu0 %vm21579_vm2, %v19305_v53  ;;  %18543 = vmatprep.mubr.msk.f32.mxu0 %vm271_vm1, %v11902_v11  ;;  %v12268_v2 = vpop.permute.xlu1 %12267  ;;  %v20127_v11 = vunpack.i.l.bf16 %v20126_v5 }
0x186e   :  { %19319 = vmatprep.subr.msk.bf16.mxu0 %vm21579_vm2, %v19317_v9 }
0x186f   :  { %v19345_v39 = vpack.c.bf16 %v20128_v19, %v20127_v11  ;;  %v24967_v19 = vld [vmem:[%s26347_s1 + $0x1] ss:$0 sm:$0xff] }
0x1870   :  { %18551 = vmatmul.mubr.msk.f32.vlgmr.msra.gmra.mrb[138].mxu1 %vm271_vm1, %v11995_v48 }
0x1871   :  { %19328 = vmatpush3.bf16.xpose.msk.msra.mxu1 %vm21579_vm2, %v19323_v15  ;;  %18564 = vmatprep.mubr.msk.f32.mxu1 %vm271_vm1, %v12175_v38  ;;  %v12359_v34 = vpop.permute.xlu1 %12358 }
0x1872   :  { %19337 = vmatprep.subr.msk.bf16.mxu1 %vm21579_vm2, %v19335_v27 }
0x1874   :  { %18544 = vmatmul.mubr.msk.f32.vlgmr.msra.gmra.mrb[138].mxu0 %vm271_vm1, %v11904_v7 }
0x1875   :  { %19322 = vmatpush3.bf16.xpose.msk.msra.mxu0 %vm21579_vm2, %v19317_v9  ;;  %18557 = vmatprep.mubr.msk.f32.mxu0 %vm271_vm1, %v24844_v46  ;;  %v20121_v51 = vpop.permute.xlu1 %20120 }
0x1876   :  { %19331 = vmatprep.subr.msk.bf16.mxu0 %vm21579_vm2, %v19329_v1  ;;  %v20123_v20 = vunpack.i.h.bf16 %v20121_v51  ;;  %v20122_v26 = vunpack.i.l.bf16 %v20121_v51 }
0x1878   :  { %18565 = vmatmul.mubr.msk.f32.vlgmr.msra.gmra.mrb[140].mxu1 %vm271_vm1, %v12177_v0  ;;  %v19341_v46 = vpack.c.bf16 %v20123_v20, %v20122_v26 }
0x1879   :  { %19340 = vmatpush3.bf16.xpose.msk.msra.mxu1 %vm21579_vm2, %v19335_v27  ;;  %18578 = vmatprep.mubr.msk.f32.mxu1 %vm271_vm1, %v12357_v30  ;;  %v20131_v7 = vpop.permute.xlu1 %20130 }
0x187a   :  { %19346 = vmatprep.subr.bf16.mxu1 %v19345_v39  ;;  %v20133_v48 = vunpack.i.h.bf16 %v20131_v7  ;;  %v20132_v14 = vunpack.i.l.bf16 %v20131_v7 }
0x187c   :  { %18558 = vmatmul.mubr.msk.f32.vlgmr.msra.gmra.mrb[140].mxu0 %vm271_vm1, %v24846_v62  ;;  %v24913_v62 = vpack.c.bf16 %v20133_v48, %v20132_v14 }
0x187d   :  { %19334 = vmatpush3.bf16.xpose.msk.msra.mxu0 %vm21579_vm2, %v19329_v1  ;;  %18571 = vmatprep.mubr.msk.f32.mxu0 %vm271_vm1, %v12266_v41  ;;  %v20136_v13 = vpop.permute.xlu1 %20135 }
0x187e   :  { %v20138_v57 = vunpack.i.h.bf16 %v20136_v13  ;;  %v20137_v59 = vunpack.i.l.bf16 %v20136_v13  ;;  %19342 = vmatprep.subr.bf16.mxu0 %v19341_v46 }
0x1880   :  { %18579 = vmatmul.mubr.msk.f32.vlgmr.msra.gmra.mrb[142].mxu1 %vm271_vm1, %v12359_v34  ;;  %v24909_v43 = vpack.c.bf16 %v20138_v57, %v20137_v59 }
0x1881   :  { %19348 = vmatpush3.bf16.msra.mxu1 %v19345_v39 }
0x1882   :  { %19354 = vmatprep.subr.bf16.mxu1 %v24909_v43 }
0x1884   :  { %18572 = vmatmul.mubr.msk.f32.vlgmr.msra.gmra.mrb[142].mxu0 %vm271_vm1, %v12268_v2 }
0x1885   :  { %19344 = vmatpush3.bf16.msra.mxu0 %v19341_v46  ;;  %v24980_v46 = vld [vmem:[%s26347_s1] ss:$0 sm:$0xff] }
0x1886   :  { %19350 = vmatprep.subr.bf16.mxu0 %v24913_v62 }
0x18e9   :  { %v24916_v28 = vpop.f32.mrb[128].mxu1 }
0x18ea   :  { %26642 = vst [vmem:[#allocation33_spill] sm:$0xff] %v24916_v28  ;;  %v24918_v60 = vpop.f32.mrb[129].mxu1 }
0x18eb   :  { %26643 = vst [vmem:[#allocation34_spill] sm:$0xff] %v24918_v60 }
0x18ed   :  { %v24922_v50 = vpop.f32.mrb[128].mxu0 }
0x18ee   :  { %v24924_v63 = vpop.f32.mrb[129].mxu0 }
0x18f2   :  { %v24928_v61 = vpop.f32.mrb[130].mxu1 }
0x18f3   :  { %26644 = vst [vmem:[#allocation31_spill] sm:$0xff] %v24928_v61  ;;  %v24930_v6 = vpop.f32.mrb[131].mxu1 }
0x18f4   :  { %26645 = vst [vmem:[#allocation50_spill] sm:$0xff] %v24930_v6 }
0x18f6   :  { %v24934_v53 = vpop.f32.mrb[130].mxu0 }
0x18f7   :  { %26646 = vst [vmem:[#allocation44_spill] sm:$0xff] %v24934_v53  ;;  %v24936_v3 = vpop.f32.mrb[131].mxu0 }
0x18f8   :  { %26647 = vst [vmem:[#allocation24_spill] sm:$0xff] %v24936_v3 }
0x18fa   :  { %v24940_v41 = vpop.f32.mrb[132].mxu1 }
0x18fb   :  { %26648 = vst [vmem:[#allocation49_spill] sm:$0xff] %v24940_v41  ;;  %v24942_v38 = vpop.f32.mrb[133].mxu1 }
0x18fc   :  { %26649 = vst [vmem:[#allocation48_spill] sm:$0xff] %v24942_v38 }
0x18fe   :  { %v24946_v29 = vpop.f32.mrb[132].mxu0 }
0x18ff   :  { %26650 = vst [vmem:[#allocation63_spill] sm:$0xff] %v24946_v29  ;;  %v24948_v18 = vpop.f32.mrb[133].mxu0 }
0x1900   :  { %26651 = vst [vmem:[#allocation64_spill] sm:$0xff] %v24948_v18 }
0x1933   :  { %v24952_v30 = vpop.f32.mrb[134].mxu1 }
0x1934   :  { %26652 = vst [vmem:[#allocation65_spill] sm:$0xff] %v24952_v30  ;;  %v24954_v9 = vpop.f32.mrb[135].mxu1 }
0x1935   :  { %26653 = vst [vmem:[#allocation66_spill] sm:$0xff] %v24954_v9 }
0x1937   :  { %v24958_v55 = vpop.f32.mrb[134].mxu0 }
0x1938   :  { %26654 = vst [vmem:[#allocation67_spill] sm:$0xff] %v24958_v55  ;;  %v24960_v2 = vpop.f32.mrb[135].mxu0 }
0x1939   :  { %26655 = vst [vmem:[#allocation68_spill] sm:$0xff] %v24960_v2 }
0x193b   :  { %v18538_v37 = vpop.f32.mrb[136].mxu1 }
0x193c   :  { %v12450_v25 = vmul.f32 0.35355338, %v18538_v37  ;;  %v11892_v5 = vpop.f32.mrb[137].mxu1 }
0x193d   :  { %v12449_v34 = vmul.f32 0.35355338, %v11892_v5 }
0x193e   :  { %v24970_v11 = vadd.f32 %v24967_v19, %v12450_v25 }
0x193f   :  { %v18531_v1 = vpop.f32.mrb[136].mxu0  ;;  %v24973_v51 = vadd.f32 %v24967_v19, %v12449_v34  ;;  %v24995_v34 = vld [vmem:[%s26347_s1 + $0x3] ss:$0 sm:$0xff] }
0x1940   :  { %v12448_v20 = vmul.f32 0.35355338, %v18531_v1  ;;  %v11801_v26 = vpop.f32.mrb[137].mxu0  ;;  %v12488_v39 = vsel %vm1058_vm3, %v24970_v11, -inf }
0x1941   :  { %v12447_v7 = vmul.f32 0.35355338, %v11801_v26  ;;  %12489 = vmax.xlane.f32.xlu0 %v12488_v39  ;;  %v12485_v37 = vsel %vm1058_vm3, %v24973_v51, -inf }
0x1942   :  { %v24983_v13 = vadd.f32 %v24980_v46, %v12448_v20 }
0x1943   :  { %v18552_v57 = vpop.f32.mrb[138].mxu1  ;;  %v24986_v59 = vadd.f32 %v24980_v46, %v12447_v7 }
0x1944   :  { %v12454_v48 = vmul.f32 0.35355338, %v18552_v57  ;;  %v12074_v14 = vpop.f32.mrb[139].mxu1  ;;  %v12482_v25 = vsel %vm1058_vm3, %v24983_v13, -inf }
0x1945   :  { %v12453_v5 = vmul.f32 0.35355338, %v12074_v14  ;;  %12486 = vmax.xlane.f32.xlu0 %v12485_v37  ;;  %12483 = vmax.xlane.f32.xlu1 %v12482_v25  ;;  %v12479_v57 = vsel %vm1058_vm3, %v24986_v59, -inf  ;;  %v25010_v25 = vld [vmem:[%s26347_s1 + $0x2] ss:$0 sm:$0xff] }
0x1946   :  { %v25001_v26 = vadd.f32 %v24995_v34, %v12454_v48 }
0x1947   :  { %v24998_v1 = vadd.f32 %v24995_v34, %v12453_v5  ;;  %v18545_v20 = vpop.f32.mrb[138].mxu0 }
0x1948   :  { %v12452_v39 = vmul.f32 0.35355338, %v18545_v20  ;;  %v11983_v7 = vpop.f32.mrb[139].mxu0 }
0x1949   :  { %v12451_v14 = vmul.f32 0.35355338, %v11983_v7  ;;  %12480 = vmax.xlane.f32.xlu0 %v12479_v57  ;;  %v12497_v37 = vsel %vm1058_vm3, %v24998_v1, -inf  ;;  %v12500_v7 = vsel %vm1058_vm3, %v25001_v26, -inf }
0x194a   :  { %12498 = vmax.xlane.f32.xlu1 %v12497_v37  ;;  %v25016_v20 = vadd.f32 %v25010_v25, %v12452_v39 }
0x194b   :  { %v25013_v5 = vadd.f32 %v25010_v25, %v12451_v14  ;;  %v18566_v48 = vpop.f32.mrb[140].mxu1  ;;  %v25025_v14 = vld [vmem:[%s26347_s1 + $0x5] ss:$0 sm:$0xff] }
0x194c   :  { %v12458_v27 = vmul.f32 0.35355338, %v18566_v48  ;;  %v12256_v47 = vpop.f32.mrb[141].mxu1 }
0x194d   :  { %v12457_v57 = vmul.f32 0.35355338, %v12256_v47  ;;  %12501 = vmax.xlane.f32.xlu0 %v12500_v7  ;;  %v12491_v37 = vsel %vm1058_vm3, %v25013_v5, -inf  ;;  %v12494_v47 = vsel %vm1058_vm3, %v25016_v20, -inf }
0x194e   :  { %12492 = vmax.xlane.f32.xlu1 %v12491_v37  ;;  %v25031_v48 = vadd.f32 %v25025_v14, %v12458_v27 }
0x194f   :  { %v25028_v15 = vadd.f32 %v25025_v14, %v12457_v57  ;;  %v18559_v39 = vpop.f32.mrb[140].mxu0  ;;  %v25040_v57 = vld [vmem:[%s26347_s1 + $0x4] ss:$0 sm:$0xff] }
0x1950   :  { %v12456_v33 = vmul.f32 0.35355338, %v18559_v39  ;;  %v12165_v35 = vpop.f32.mrb[141].mxu0 }
0x1951   :  { %v12455_v7 = vmul.f32 0.35355338, %v12165_v35  ;;  %12495 = vmax.xlane.f32.xlu0 %v12494_v47  ;;  %v12509_v37 = vsel %vm1058_vm3, %v25028_v15, -inf  ;;  %v12512_v35 = vsel %vm1058_vm3, %v25031_v48, -inf }
0x1952   :  { %12510 = vmax.xlane.f32.xlu1 %v12509_v37  ;;  %v25046_v39 = vadd.f32 %v25040_v57, %v12456_v33 }
0x1953   :  { %v25043_v0 = vadd.f32 %v25040_v57, %v12455_v7  ;;  %v18580_v27 = vpop.f32.mrb[142].mxu1  ;;  %v25055_v7 = vld [vmem:[%s26347_s1 + $0x7] ss:$0 sm:$0xff] }
0x1954   :  { %v12462_v23 = vmul.f32 0.35355338, %v18580_v27  ;;  %v12438_v12 = vpop.f32.mrb[143].mxu1  ;;  %v12506_v55 = vsel %vm1058_vm3, %v25046_v39, -inf }
0x1955   :  { %12513 = vmax.xlane.f32.xlu0 %v12512_v35  ;;  %v12503_v47 = vsel %vm1058_vm3, %v25043_v0, -inf  ;;  %v25065_v35 = vld [vmem:[%s26347_s1 + $0x6] ss:$0 sm:$0xff] }
0x1956   :  { %12504 = vmax.xlane.f32.xlu1 %v12503_v47  ;;  %v25058_v2 = vadd.f32 %v25055_v7, %v12462_v23 }
0x1957   :  { %v18573_v37 = vpop.f32.mrb[142].mxu0 }
0x1958   :  { %v12460_v33 = vmul.f32 0.35355338, %v18573_v37  ;;  %v12347_v27 = vpop.f32.mrb[143].mxu0  ;;  %v12524_v9 = vsel %vm1058_vm3, %v25058_v2, -inf }
0x1959   :  { %12507 = vmax.xlane.f32.xlu0 %v12506_v55  ;;  %v12459_v37 = vmul.f32 0.35355338, %v12347_v27 }
0x195a   :  { %v25068_v47 = vadd.f32 %v25065_v35, %v12460_v33 }
0x195b   :  { %v25088_v33 = vadd.f32 %v25065_v35, %v12459_v37 }
0x195c   :  { %v12518_v23 = vsel %vm1058_vm3, %v25068_v47, -inf }
0x195d   :  { %12525 = vmax.xlane.f32.xlu0 %v12524_v9  ;;  %v12461_v9 = vmul.f32 0.35355338, %v12438_v12  ;;  %v25098_v12 = vpop.permute.xlu1 %20145 }
0x195f   :  { %v25085_v55 = vadd.f32 %v25055_v7, %v12461_v9 }
0x1961   :  { %12519 = vmax.xlane.f32.xlu0 %v12518_v23  ;;  %v25102_v27 = vpop.permute.xlu1 %20155 }
0x1965   :  { %v25106_v37 = vpop.permute.xlu1 %20165 }
0x1967   :  { %13351 = vrot.lane.b32.xlu1 %v26635_v44, %s21323_s28  ;;  %v12515_v44 = vsel %vm1058_vm3, %v25088_v33, -inf }
0x196b   :  { %13353 = vrot.lane.b32.xlu1 %v26634_v22, %s21323_s28  ;;  %v12521_v22 = vsel %vm1058_vm3, %v25085_v55, -inf }
0x1977   :  { %20170 = vrot.lane.b32.xlu0 %v23985_v4, %s21322_s27 }
0x197b   :  { %20175 = vrot.lane.b32.xlu0 %v23993_v17, %s21322_s27 }
0x197f   :  { %13442 = vrot.lane.b32.xlu0 %v26636_v49, %s21323_s28  ;;  %v25096_v49 = vpop.permute.xlu0 %20140 }
0x1983   :  { %v25100_v23 = vpop.permute.xlu0 %20150 }
0x1987   :  { %v25104_v9 = vpop.permute.xlu0 %20160 }
0x198f   :  { %12522 = vmax.xlane.f32.xlu1 %v12521_v22 }
0x1993   :  { %12516 = vmax.xlane.f32.xlu1 %v12515_v44 }
0x19a4   :  { %13444 = vrot.lane.b32.xlu1 %v26637_v45, %s21323_s28 }
0x19ce   :  { %v12490_v22 = vpop.xlane.xlu0 %12489 }
0x19cf   :  { %v12530_v30 = vsub.f32 %v24970_v11, %v12490_v22 }
0x19d1   :  { %v12549_v38 = vmul.f32 1.442695, %v12530_v30 }
0x19d2   :  { %v12487_v44 = vpop.xlane.xlu0 %12486  ;;  %v12484_v41 = vpop.xlane.xlu1 %12483 }
0x19d3   :  { %20903 = vpow2.f32 %v12549_v38  ;;  %v12529_v45 = vsub.f32 %v24973_v51, %v12487_v44  ;;  %v12528_v6 = vsub.f32 %v24983_v13, %v12484_v41 }
0x19d5   :  { %v12547_v61 = vmul.f32 1.442695, %v12529_v45  ;;  %v12545_v60 = vmul.f32 1.442695, %v12528_v6 }
0x19d6   :  { %v12481_v28 = vpop.xlane.xlu0 %12480 }
0x19d7   :  { %20905 = vpow2.f32 %v12547_v61  ;;  %v12527_v18 = vsub.f32 %v24986_v59, %v12481_v28  ;;  %v12499_v29 = vpop.xlane.xlu1 %12498 }
0x19d8   :  { %20907 = vpow2.f32 %v12545_v60  ;;  %v12533_v3 = vsub.f32 %v24998_v1, %v12499_v29 }
0x19d9   :  { %v12543_v53 = vmul.f32 1.442695, %v12527_v18 }
0x19da   :  { %v12555_v11 = vmul.f32 1.442695, %v12533_v3  ;;  %v12502_v30 = vpop.xlane.xlu0 %12501 }
0x19db   :  { %20909 = vpow2.f32 %v12543_v53  ;;  %v12534_v38 = vsub.f32 %v25001_v26, %v12502_v30  ;;  %v12493_v22 = vpop.xlane.xlu1 %12492 }
0x19dc   :  { %v12531_v51 = vsub.f32 %v25013_v5, %v12493_v22  ;;  %20911 = vpow2.f32 %v12555_v11 }
0x19dd   :  { %v25115_v41 = vpop.eup %20903  ;;  %v12557_v6 = vmul.f32 1.442695, %v12534_v38 }
0x19de   :  { %v12551_v61 = vmul.f32 1.442695, %v12531_v51  ;;  %v12496_v13 = vpop.xlane.xlu0 %12495  ;;  %v12584_v28 = vsel %vm1058_vm3, %v25115_v41, 0.0 }
0x19df   :  { %20913 = vpow2.f32 %v12557_v6  ;;  %v12532_v60 = vsub.f32 %v25016_v20, %v12496_v13  ;;  %v12511_v3 = vpop.xlane.xlu1 %12510  ;;  %12585 = vadd.xlane.f32.xlu0 %v12584_v28 }
0x19e0   :  { %v12537_v53 = vsub.f32 %v25028_v15, %v12511_v3  ;;  %20915 = vpow2.f32 %v12551_v61 }
0x19e1   :  { %v25121_v29 = vpop.eup %20905  ;;  %v12553_v18 = vmul.f32 1.442695, %v12532_v60 }
0x19e2   :  { %v25123_v59 = vpop.eup %20907  ;;  %v12563_v1 = vmul.f32 1.442695, %v12537_v53  ;;  %v12514_v26 = vpop.xlane.xlu0 %12513  ;;  %v12581_v5 = vsel %vm1058_vm3, %v25121_v29, 0.0 }
0x19e3   :  { %20917 = vpow2.f32 %v12553_v18  ;;  %v12538_v44 = vsub.f32 %v25031_v48, %v12514_v26  ;;  %v12505_v45 = vpop.xlane.xlu1 %12504  ;;  %v12578_v20 = vsel %vm1058_vm3, %v25123_v59, 0.0  ;;  %12582 = vadd.xlane.f32.xlu1 %v12581_v5 }
0x19e4   :  { %v12535_v15 = vsub.f32 %v25043_v0, %v12505_v45  ;;  %12579 = vadd.xlane.f32.xlu0 %v12578_v20  ;;  %20919 = vpow2.f32 %v12563_v1 }
0x19e5   :  { %v25131_v11 = vpop.eup %20909  ;;  %v12565_v30 = vmul.f32 1.442695, %v12538_v44 }
0x19e6   :  { %v12559_v38 = vmul.f32 1.442695, %v12535_v15  ;;  %v12508_v22 = vpop.xlane.xlu0 %12507  ;;  %v12575_v51 = vsel %vm1058_vm3, %v25131_v11, 0.0  ;;  %v25135_v6 = vpop.eup %20911 }
0x19e7   :  { %20921 = vpow2.f32 %v12565_v30  ;;  %v12536_v48 = vsub.f32 %v25046_v39, %v12508_v22  ;;  %12576 = vadd.xlane.f32.xlu1 %v12575_v51  ;;  %v12593_v60 = vsel %vm1058_vm3, %v25135_v6, 0.0 }
0x19e8   :  { %20923 = vpow2.f32 %v12559_v38 }
0x19e9   :  { %v25138_v61 = vpop.eup %20913  ;;  %v12561_v0 = vmul.f32 1.442695, %v12536_v48 }
0x19ea   :  { %v12526_v13 = vpop.xlane.xlu0 %12525  ;;  %v12596_v28 = vsel %vm1058_vm3, %v25138_v61, 0.0  ;;  %v25144_v3 = vpop.eup %20915 }
0x19eb   :  { %20925 = vpow2.f32 %v12561_v0  ;;  %v12542_v53 = vsub.f32 %v25058_v2, %v12526_v13  ;;  %12597 = vadd.xlane.f32.xlu0 %v12596_v28  ;;  %12594 = vadd.xlane.f32.xlu1 %v12593_v60  ;;  %v12587_v5 = vsel %vm1058_vm3, %v25144_v3, 0.0  ;;  %v25180_v60 = vpop.permute.xlu1 %13351 }
0x19ed   :  { %v25147_v39 = vpop.eup %20917  ;;  %v12573_v18 = vmul.f32 1.442695, %v12542_v53 }
0x19ee   :  { %v12520_v1 = vpop.xlane.xlu0 %12519  ;;  %v12590_v26 = vsel %vm1058_vm3, %v25147_v39, 0.0  ;;  %v25153_v44 = vpop.eup %20919 }
0x19ef   :  { %20927 = vpow2.f32 %v12573_v18  ;;  %v12540_v45 = vsub.f32 %v25068_v47, %v12520_v1  ;;  %12591 = vadd.xlane.f32.xlu0 %v12590_v26  ;;  %12588 = vadd.xlane.f32.xlu1 %v12587_v5  ;;  %v12605_v30 = vsel %vm1058_vm3, %v25153_v44, 0.0  ;;  %v25184_v53 = vpop.permute.xlu1 %13353 }
0x19f1   :  { %v25156_v2 = vpop.eup %20921  ;;  %v12569_v20 = vmul.f32 1.442695, %v12540_v45 }
0x19f2   :  { %v12608_v15 = vsel %vm1058_vm3, %v25156_v2, 0.0  ;;  %v25162_v38 = vpop.eup %20923 }
0x19f3   :  { %20929 = vpow2.f32 %v12569_v20  ;;  %12609 = vadd.xlane.f32.xlu0 %v12608_v15  ;;  %12606 = vadd.xlane.f32.xlu1 %v12605_v30  ;;  %v12599_v51 = vsel %vm1058_vm3, %v25162_v38, 0.0  ;;  %v25226_v15 = vpop.permute.xlu0 %20170 }
0x19f5   :  { %v25164_v22 = vpop.eup %20925 }
0x19f6   :  { %v12602_v47 = vsel %vm1058_vm3, %v25164_v22, 0.0 }
0x19f7   :  { %12603 = vadd.xlane.f32.xlu0 %v12602_v47  ;;  %12600 = vadd.xlane.f32.xlu1 %v12599_v51 }
0x19f9   :  { %v25170_v48 = vpop.eup %20927 }
0x19fa   :  { %v12620_v0 = vsel %vm1058_vm3, %v25170_v48, 0.0 }
0x19fb   :  { %12621 = vadd.xlane.f32.xlu0 %v12620_v0 }
0x19fd   :  { %v25174_v13 = vpop.eup %20929 }
0x19fe   :  { %v12614_v28 = vsel %vm1058_vm3, %v25174_v13, 0.0 }
0x19ff   :  { %12615 = vadd.xlane.f32.xlu0 %v12614_v28 }
0x1a08   :  { %13533 = vrot.lane.b32.xlu1 %v23977_v54, %s21323_s28 }
0x1a15   :  { %20180 = vrot.lane.b32.xlu0 %v24011_v52, %s21322_s27 }
0x1a19   :  { %20185 = vrot.lane.b32.xlu0 %v24007_v36, %s21322_s27 }
0x1a1c   :  { %v12523_v18 = vpop.xlane.xlu1 %12522 }
0x1a1d   :  { %v12541_v1 = vsub.f32 %v25085_v55, %v12523_v18  ;;  %13624 = vrot.lane.b32.xlu0 %v23987_v8, %s21323_s28 }
0x1a1f   :  { %v12571_v26 = vmul.f32 1.442695, %v12541_v1 }
0x1a20   :  { %v12517_v5 = vpop.xlane.xlu1 %12516 }
0x1a21   :  { %20931 = vpow2.f32 %v12571_v26  ;;  %v12539_v54 = vsub.f32 %v25088_v33, %v12517_v5  ;;  %20190 = vrot.lane.b32.xlu0 %v24031_v16, %s21322_s27 }
0x1a23   :  { %v12567_v45 = vmul.f32 1.442695, %v12539_v54  ;;  %v20147_v54 = vunpack.i.l.bf16 %v25098_v12 }
0x1a24   :  { %v25236_v30 = vpop.permute.xlu1 %13444 }
0x1a25   :  { %20933 = vpow2.f32 %v12567_v45  ;;  %20195 = vrot.lane.b32.xlu0 %v24027_v32, %s21322_s27 }
0x1a29   :  { %13806 = vrot.lane.b32.xlu0 %v26638_v21, %s21323_s28  ;;  %v26657_v21 = vld [vmem:[#allocation51_spill] sm:$0xff] }
0x1a2b   :  { %v25198_v55 = vpop.eup %20931 }
0x1a2c   :  { %v12617_v8 = vsel %vm1058_vm3, %v25198_v55, 0.0 }
0x1a2d   :  { %13897 = vrot.lane.b32.xlu0 %v24021_v31, %s21323_s28  ;;  %12618 = vadd.xlane.f32.xlu1 %v12617_v8  ;;  %v26656_v31 = vld [vmem:[#allocation52_spill] sm:$0xff] }
0x1a2f   :  { %v25204_v33 = vpop.eup %20933 }
0x1a30   :  { %v12611_v20 = vsel %vm1058_vm3, %v25204_v33, 0.0 }
0x1a31   :  { %13988 = vrot.lane.b32.xlu0 %v24017_v56, %s21323_s28  ;;  %12612 = vadd.xlane.f32.xlu1 %v12611_v20  ;;  %v26658_v56 = vld [vmem:[#allocation30_spill] sm:$0xff] }
0x1a35   :  { %20205 = vrot.lane.b32.xlu0 %v23967_v42, %s21324_s29  ;;  %v26659_v42 = vld [vmem:[#allocation29_spill] sm:$0xff] }
0x1a42   :  { %13535 = vrot.lane.b32.xlu1 %v23979_v24, %s21323_s28  ;;  %v26660_v24 = vld [vmem:[#allocation47_spill] sm:$0xff] }
0x1a46   :  { %13626 = vrot.lane.b32.xlu1 %v23981_v58, %s21323_s28  ;;  %v25230_v58 = vpop.permute.xlu0 %20175 }
0x1a4a   :  { %13715 = vrot.lane.b32.xlu1 %v24001_v40, %s21323_s28  ;;  %v25234_v40 = vpop.permute.xlu0 %13442 }
0x1a4e   :  { %13717 = vrot.lane.b32.xlu1 %v26656_v31, %s21323_s28 }
0x1a52   :  { %13808 = vrot.lane.b32.xlu1 %v26657_v21, %s21323_s28 }
0x1a56   :  { %13899 = vrot.lane.b32.xlu1 %v26658_v56, %s21323_s28 }
0x1a5a   :  { %13990 = vrot.lane.b32.xlu1 %v26659_v42, %s21323_s28  ;;  %v20143_v42 = vunpack.i.h.bf16 %v25096_v49 }
0x1a5e   :  { %20200 = vrot.lane.b32.xlu1 %v26660_v24, %s21324_s29  ;;  %v20142_v24 = vunpack.i.l.bf16 %v25096_v49 }
0x1a60   :  { %v19357_v49 = vpack.c.bf16 %v20143_v42, %v20142_v24  ;;  %v20163_v42 = vunpack.i.h.bf16 %v25104_v9  ;;  %v20162_v24 = vunpack.i.l.bf16 %v25104_v9 }
0x1a62   :  { %20210 = vrot.lane.b32.xlu1 %v23985_v4, %s21324_s29  ;;  %v20148_v4 = vunpack.i.h.bf16 %v25098_v12 }
0x1a6c   :  { %v12586_v47 = vpop.xlane.xlu0 %12585 }
0x1a6d   :  { %20935 = vrcp.f32 %v12586_v47  ;;  %v19361_v47 = vpack.c.bf16 %v20148_v4, %v20147_v54  ;;  %v20153_v54 = vunpack.i.h.bf16 %v25100_v23 }
0x1a70   :  { %v12583_v51 = vpop.xlane.xlu1 %12582 }
0x1a71   :  { %v12580_v0 = vpop.xlane.xlu0 %12579  ;;  %20937 = vrcp.f32 %v12583_v51 }
0x1a72   :  { %20939 = vrcp.f32 %v12580_v0 }
0x1a74   :  { %v12577_v28 = vpop.xlane.xlu1 %12576 }
0x1a75   :  { %20941 = vrcp.f32 %v12577_v28 }
0x1a77   :  { %v20936_v26 = vpop.eup %20935 }
0x1a78   :  { %v12598_v18 = vpop.xlane.xlu0 %12597  ;;  %v12595_v1 = vpop.xlane.xlu1 %12594  ;;  %v12642_v31 = vmul.f32 %v20936_v26, %v25115_v41 }
0x1a79   :  { %20943 = vrcp.f32 %v12598_v18  ;;  %v20158_v18 = vunpack.i.h.bf16 %v25102_v27 }
0x1a7a   :  { %20945 = vrcp.f32 %v12595_v1 }
0x1a7b   :  { %v20938_v5 = vpop.eup %20937 }
0x1a7c   :  { %v12592_v45 = vpop.xlane.xlu0 %12591  ;;  %v12589_v8 = vpop.xlane.xlu1 %12588  ;;  %v12641_v20 = vmul.f32 %v20938_v5, %v25121_v29 }
0x1a7d   :  { %20947 = vrcp.f32 %v12592_v45  ;;  %v20940_v21 = vpop.eup %20939  ;;  %v20152_v45 = vunpack.i.l.bf16 %v25100_v23 }
0x1a7e   :  { %20949 = vrcp.f32 %v12589_v8  ;;  %18592 = vmatprep.mubr.msk.f32.mxu1 %vm1058_vm3, %v12641_v20  ;;  %v12640_v41 = vmul.f32 %v20940_v21, %v25123_v59  ;;  %v20168_v20 = vunpack.i.h.bf16 %v25106_v37 }
0x1a7f   :  { %v20942_v56 = vpop.eup %20941  ;;  %18593 = vmatmul.mubr.msk.f32.vlgmr.msra.gmra.mrb[144].mxu1 %vm1058_vm3, %v12642_v31  ;;  %v20167_v31 = vunpack.i.l.bf16 %v25106_v37  ;;  %v19365_v23 = vpack.c.bf16 %v20153_v54, %v20152_v45 }
0x1a80   :  { %19356 = vmatpush3.bf16.msra.mxu1 %v24909_v43  ;;  %v12610_v12 = vpop.xlane.xlu0 %12609  ;;  %v12607_v51 = vpop.xlane.xlu1 %12606  ;;  %v12639_v29 = vmul.f32 %v20942_v56, %v25131_v11  ;;  %v20157_v43 = vunpack.i.l.bf16 %v25102_v27 }
0x1a81   :  { %20951 = vrcp.f32 %v12610_v12  ;;  %19362 = vmatprep.subr.bf16.mxu1 %v19361_v47 }
0x1a82   :  { %20953 = vrcp.f32 %v12607_v51  ;;  %18585 = vmatprep.mubr.msk.f32.mxu0 %vm1058_vm3, %v12639_v29 }
0x1a83   :  { %v20944_v0 = vpop.eup %20943  ;;  %18586 = vmatmul.mubr.msk.f32.vlgmr.msra.gmra.mrb[144].mxu0 %vm1058_vm3, %v12640_v41 }
0x1a84   :  { %v20946_v28 = vpop.eup %20945  ;;  %19352 = vmatpush3.bf16.msra.mxu0 %v24913_v62  ;;  %v12604_v1 = vpop.xlane.xlu0 %12603  ;;  %v12646_v26 = vmul.f32 %v20944_v0, %v25138_v61  ;;  %v19369_v62 = vpack.c.bf16 %v20158_v18, %v20157_v43 }
0x1a85   :  { %v12601_v11 = vpop.xlane.xlu1 %12600  ;;  %20955 = vrcp.f32 %v12604_v1  ;;  %19358 = vmatprep.subr.bf16.mxu0 %v19357_v49  ;;  %v12645_v59 = vmul.f32 %v20946_v28, %v25135_v6 }
0x1a86   :  { %20957 = vrcp.f32 %v12601_v11  ;;  %v20178_v11 = vunpack.i.h.bf16 %v25230_v58 }
0x1a87   :  { %v20948_v5 = vpop.eup %20947  ;;  %18606 = vmatprep.mubr.msk.f32.mxu1 %vm1058_vm3, %v12645_v59 }
0x1a88   :  { %v20950_v4 = vpop.eup %20949  ;;  %18607 = vmatmul.mubr.msk.f32.vlgmr.msra.gmra.mrb[146].mxu1 %vm1058_vm3, %v12646_v26  ;;  %v12644_v27 = vmul.f32 %v20948_v5, %v25147_v39  ;;  %v12622_v9 = vpop.xlane.xlu0 %12621  ;;  %v20177_v26 = vunpack.i.l.bf16 %v25230_v58 }
0x1a89   :  { %19364 = vmatpush3.bf16.msra.mxu1 %v19361_v47  ;;  %v12643_v61 = vmul.f32 %v20950_v4, %v25144_v3  ;;  %v19379_v47 = vpack.c.bf16 %v20168_v20, %v20167_v31  ;;  %20959 = vrcp.f32 %v12622_v9 }
0x1a8a   :  { %19370 = vmatprep.subr.bf16.mxu1 %v19369_v62 }
0x1a8b   :  { %v20952_v8 = vpop.eup %20951  ;;  %18599 = vmatprep.mubr.msk.f32.mxu0 %vm1058_vm3, %v12643_v61  ;;  %v20172_v61 = vunpack.i.l.bf16 %v25226_v15 }
0x1a8c   :  { %v20954_v6 = vpop.eup %20953  ;;  %18600 = vmatmul.mubr.msk.f32.vlgmr.msra.gmra.mrb[146].mxu0 %vm1058_vm3, %v12644_v27  ;;  %v12650_v21 = vmul.f32 %v20952_v8, %v25156_v2  ;;  %v12616_v12 = vpop.xlane.xlu0 %12615  ;;  %v20173_v27 = vunpack.i.h.bf16 %v25226_v15  ;;  %v19391_v8 = vpack.c.bf16 %v20178_v11, %v20177_v26 }
0x1a8d   :  { %19360 = vmatpush3.bf16.msra.mxu0 %v19357_v49  ;;  %v12649_v39 = vmul.f32 %v20954_v6, %v25153_v44  ;;  %v19373_v44 = vpack.c.bf16 %v20163_v42, %v20162_v24 }
0x1a8e   :  { %19366 = vmatprep.subr.bf16.mxu0 %v19365_v23  ;;  %v19385_v15 = vpack.c.bf16 %v20173_v27, %v20172_v61 }
0x1a8f   :  { %v20956_v56 = vpop.eup %20955  ;;  %18620 = vmatprep.mubr.msk.f32.mxu1 %vm1058_vm3, %v12649_v39 }
0x1a90   :  { %v20958_v3 = vpop.eup %20957  ;;  %18621 = vmatmul.mubr.msk.f32.vlgmr.msra.gmra.mrb[148].mxu1 %vm1058_vm3, %v12650_v21  ;;  %v12648_v37 = vmul.f32 %v20956_v56, %v25164_v22  ;;  %v20181_v51 = vpop.permute.xlu0 %20180 }
0x1a91   :  { %19372 = vmatpush3.bf16.msra.mxu1 %v19369_v62  ;;  %v12647_v2 = vmul.f32 %v20958_v3, %v25162_v38  ;;  %v13534_v22 = vpop.permute.xlu1 %13533 }
0x1a92   :  { %19381 = vmatprep.subr.msk.bf16.mxu1 %vm21579_vm2, %v19379_v47 }
0x1a93   :  { %18613 = vmatprep.mubr.msk.f32.mxu0 %vm1058_vm3, %v12647_v2  ;;  %v20960_v43 = vpop.eup %20959 }
0x1a94   :  { %18614 = vmatmul.mubr.msk.f32.vlgmr.msra.gmra.mrb[148].mxu0 %vm1058_vm3, %v12648_v37  ;;  %v20186_v29 = vpop.permute.xlu0 %20185  ;;  %v12654_v4 = vmul.f32 %v20960_v43, %v25170_v48 }
0x1a95   :  { %19368 = vmatpush3.bf16.msra.mxu0 %v19365_v23  ;;  %v20188_v6 = vunpack.i.h.bf16 %v20186_v29  ;;  %v20187_v20 = vunpack.i.l.bf16 %v20186_v29 }
0x1a96   :  { %19375 = vmatprep.subr.msk.bf16.mxu0 %vm21579_vm2, %v19373_v44 }
0x1a97   :  { %v19403_v23 = vpack.c.bf16 %v20188_v6, %v20187_v20 }
0x1a98   :  { %v13625_v41 = vpop.permute.xlu0 %13624 }
0x1a9c   :  { %v25280_v0 = vpop.permute.xlu0 %20190 }
0x1a9d   :  { %v20193_v42 = vunpack.i.h.bf16 %v25280_v0  ;;  %v20192_v24 = vunpack.i.l.bf16 %v25280_v0 }
0x1a9f   :  { %v19409_v2 = vpack.c.bf16 %v20193_v42, %v20192_v24 }
0x1aa0   :  { %v20196_v28 = vpop.permute.xlu0 %20195 }
0x1aa1   :  { %v20198_v56 = vunpack.i.h.bf16 %v20196_v28  ;;  %v20197_v3 = vunpack.i.l.bf16 %v20196_v28 }
0x1aa4   :  { %v13807_v45 = vpop.permute.xlu0 %13806 }
0x1aa8   :  { %v13898_v31 = vpop.permute.xlu0 %13897 }
0x1aba   :  { %v12619_v38 = vpop.xlane.xlu1 %12618 }
0x1abb   :  { %20961 = vrcp.f32 %v12619_v38 }
0x1abc   :  { %20963 = vrcp.f32 %v12616_v12 }
0x1abe   :  { %v12613_v49 = vpop.xlane.xlu1 %12612 }
0x1abf   :  { %20965 = vrcp.f32 %v12613_v49 }
0x1ac2   :  { %v13536_v18 = vpop.permute.xlu1 %13535 }
0x1ac5   :  { %v20962_v1 = vpop.eup %20961 }
0x1ac6   :  { %v13627_v59 = vpop.permute.xlu1 %13626  ;;  %v12653_v5 = vmul.f32 %v20962_v1, %v25198_v55  ;;  %v20964_v54 = vpop.eup %20963 }
0x1ac7   :  { %v12652_v58 = vmul.f32 %v20964_v54, %v25174_v13  ;;  %v20182_v13 = vunpack.i.l.bf16 %v20181_v51 }
0x1ac8   :  { %18634 = vmatprep.mubr.msk.f32.mxu1 %vm1058_vm3, %v12653_v5 }
0x1ac9   :  { %v20966_v62 = vpop.eup %20965  ;;  %18635 = vmatmul.mubr.msk.f32.vlgmr.msra.gmra.mrb[150].mxu1 %vm1058_vm3, %v12654_v4 }
0x1aca   :  { %19384 = vmatpush3.bf16.xpose.msk.msra.mxu1 %vm21579_vm2, %v19379_v47  ;;  %18648 = vmatprep.mubr.msk.f32.mxu1 %vm271_vm1, %v25234_v40  ;;  %v13716_v55 = vpop.permute.xlu1 %13715  ;;  %v12651_v48 = vmul.f32 %v20966_v62, %v25204_v33  ;;  %v20183_v40 = vunpack.i.h.bf16 %v20181_v51  ;;  %v19415_v47 = vpack.c.bf16 %v20198_v56, %v20197_v3 }
0x1acb   :  { %19393 = vmatprep.subr.msk.bf16.mxu1 %vm21579_vm2, %v19391_v8 }
0x1acc   :  { %18627 = vmatprep.mubr.msk.f32.mxu0 %vm1058_vm3, %v12651_v48  ;;  %v19397_v39 = vpack.c.bf16 %v20183_v40, %v20182_v13 }
0x1acd   :  { %18628 = vmatmul.mubr.msk.f32.vlgmr.msra.gmra.mrb[150].mxu0 %vm1058_vm3, %v12652_v58 }
0x1ace   :  { %19378 = vmatpush3.bf16.xpose.msk.msra.mxu0 %vm21579_vm2, %v19373_v44  ;;  %18641 = vmatprep.mubr.msk.f32.mxu0 %vm271_vm1, %v25180_v60  ;;  %v13718_v33 = vpop.permute.xlu1 %13717  ;;  %v13989_v60 = vpop.permute.xlu0 %13988 }
0x1acf   :  { %19387 = vmatprep.subr.msk.bf16.mxu0 %vm21579_vm2, %v19385_v15 }
0x1ad1   :  { %18649 = vmatmul.mubr.msk.f32.vlgmr.msra.gmra.mrb[152].mxu1 %vm271_vm1, %v25236_v30 }
0x1ad2   :  { %19396 = vmatpush3.bf16.xpose.msk.msra.mxu1 %vm21579_vm2, %v19391_v8  ;;  %18662 = vmatprep.mubr.msk.f32.mxu1 %vm271_vm1, %v13625_v41  ;;  %v13809_v21 = vpop.permute.xlu1 %13808  ;;  %v20206_v37 = vpop.permute.xlu0 %20205 }
0x1ad3   :  { %19405 = vmatprep.subr.msk.bf16.mxu1 %vm21579_vm2, %v19403_v23  ;;  %v20208_v44 = vunpack.i.h.bf16 %v20206_v37  ;;  %v20207_v9 = vunpack.i.l.bf16 %v20206_v37 }
0x1ad5   :  { %18642 = vmatmul.mubr.msk.f32.vlgmr.msra.gmra.mrb[152].mxu0 %vm271_vm1, %v25184_v53 }
0x1ad6   :  { %19390 = vmatpush3.bf16.xpose.msk.msra.mxu0 %vm21579_vm2, %v19385_v15  ;;  %18655 = vmatprep.mubr.msk.f32.mxu0 %vm271_vm1, %v13534_v22  ;;  %v13900_v30 = vpop.permute.xlu1 %13899  ;;  %v19425_v22 = vpack.c.bf16 %v20208_v44, %v20207_v9 }
0x1ad7   :  { %19399 = vmatprep.subr.msk.bf16.mxu0 %vm21579_vm2, %v19397_v39 }
0x1ad9   :  { %18663 = vmatmul.mubr.msk.f32.vlgmr.msra.gmra.mrb[154].mxu1 %vm271_vm1, %v13627_v59 }
0x1ada   :  { %19408 = vmatpush3.bf16.xpose.msk.msra.mxu1 %vm21579_vm2, %v19403_v23  ;;  %18676 = vmatprep.mubr.msk.f32.mxu1 %vm271_vm1, %v13807_v45  ;;  %v13991_v53 = vpop.permute.xlu1 %13990 }
0x1adb   :  { %19417 = vmatprep.subr.msk.bf16.mxu1 %vm21579_vm2, %v19415_v47 }
0x1add   :  { %18656 = vmatmul.mubr.msk.f32.vlgmr.msra.gmra.mrb[154].mxu0 %vm271_vm1, %v13536_v18 }
0x1ade   :  { %19402 = vmatpush3.bf16.xpose.msk.msra.mxu0 %vm21579_vm2, %v19397_v39  ;;  %18669 = vmatprep.mubr.msk.f32.mxu0 %vm271_vm1, %v13716_v55  ;;  %v20201_v12 = vpop.permute.xlu1 %20200 }
0x1adf   :  { %19411 = vmatprep.subr.msk.bf16.mxu0 %vm21579_vm2, %v19409_v2  ;;  %v20203_v51 = vunpack.i.h.bf16 %v20201_v12  ;;  %v20202_v29 = vunpack.i.l.bf16 %v20201_v12 }
0x1ae1   :  { %18677 = vmatmul.mubr.msk.f32.vlgmr.msra.gmra.mrb[156].mxu1 %vm271_vm1, %v13809_v21  ;;  %v19421_v41 = vpack.c.bf16 %v20203_v51, %v20202_v29 }
0x1ae2   :  { %19420 = vmatpush3.bf16.xpose.msk.msra.mxu1 %vm21579_vm2, %v19415_v47  ;;  %18690 = vmatprep.mubr.msk.f32.mxu1 %vm271_vm1, %v13989_v60  ;;  %v20211_v38 = vpop.permute.xlu1 %20210 }
0x1ae3   :  { %19426 = vmatprep.subr.bf16.mxu1 %v19425_v22  ;;  %v20213_v0 = vunpack.i.h.bf16 %v20211_v38  ;;  %v20212_v49 = vunpack.i.l.bf16 %v20211_v38 }
0x1ae5   :  { %18670 = vmatmul.mubr.msk.f32.vlgmr.msra.gmra.mrb[156].mxu0 %vm271_vm1, %v13718_v33  ;;  %v25344_v28 = vpack.c.bf16 %v20213_v0, %v20212_v49 }
0x1ae6   :  { %19414 = vmatpush3.bf16.xpose.msk.msra.mxu0 %vm21579_vm2, %v19409_v2  ;;  %18683 = vmatprep.mubr.msk.f32.mxu0 %vm271_vm1, %v13898_v31 }
0x1ae7   :  { %19422 = vmatprep.subr.bf16.mxu0 %v19421_v41 }
0x1ae9   :  { %18691 = vmatmul.mubr.msk.f32.vlgmr.msra.gmra.mrb[158].mxu1 %vm271_vm1, %v13991_v53 }
0x1aea   :  { %19428 = vmatpush3.bf16.msra.mxu1 %v19425_v22 }
0x1aed   :  { %18684 = vmatmul.mubr.msk.f32.vlgmr.msra.gmra.mrb[158].mxu0 %vm271_vm1, %v13900_v30 }
0x1aee   :  { %19424 = vmatpush3.bf16.msra.mxu0 %v19421_v41 }
0x1aef   :  { %19430 = vmatprep.subr.bf16.mxu0 %v25344_v28 }
0x1b52   :  { %v25347_v18 = vpop.f32.mrb[144].mxu1 }
0x1b53   :  { %v25349_v43 = vpop.f32.mrb[145].mxu1 }
0x1b54   :  { %v20254_v10 = vpack.i.bf16 %v25347_v18, %v25349_v43 }
0x1b56   :  { %v25353_v1 = vpop.f32.mrb[144].mxu0 }
0x1b57   :  { %v25355_v11 = vpop.f32.mrb[145].mxu0 }
0x1b58   :  { %v20249_v26 = vpack.i.bf16 %v25353_v1, %v25355_v11  ;;  %v26665_v1 = vld [vmem:[#allocation63_spill] sm:$0xff]  ;;  %v26666_v11 = vld [vmem:[#allocation64_spill] sm:$0xff] }
0x1b5b   :  { %v25359_v59 = vpop.f32.mrb[146].mxu1 }
0x1b5c   :  { %v25361_v5 = vpop.f32.mrb[147].mxu1 }
0x1b5d   :  { %v20274_v4 = vpack.i.bf16 %v25359_v59, %v25361_v5 }
0x1b5f   :  { %v25365_v54 = vpop.f32.mrb[146].mxu0 }
0x1b60   :  { %v25367_v45 = vpop.f32.mrb[147].mxu0 }
0x1b61   :  { %v20269_v62 = vpack.i.bf16 %v25365_v54, %v25367_v45  ;;  %v26668_v54 = vld [vmem:[#allocation33_spill] sm:$0xff]  ;;  %v26669_v45 = vld [vmem:[#allocation34_spill] sm:$0xff] }
0x1b63   :  { %v25371_v27 = vpop.f32.mrb[148].mxu1 }
0x1b64   :  { %v25373_v61 = vpop.f32.mrb[149].mxu1 }
0x1b65   :  { %v20304_v8 = vpack.i.bf16 %v25371_v27, %v25373_v61 }
0x1b67   :  { %v25377_v55 = vpop.f32.mrb[148].mxu0 }
0x1b68   :  { %v25379_v48 = vpop.f32.mrb[149].mxu0 }
0x1b69   :  { %v20299_v58 = vpack.i.bf16 %v25377_v55, %v25379_v48  ;;  %v26680_v55 = vld [vmem:[#allocation67_spill] sm:$0xff]  ;;  %v26681_v48 = vld [vmem:[#allocation68_spill] sm:$0xff] }
0x1b9c   :  { %v25383_v15 = vpop.f32.mrb[150].mxu1 }
0x1b9d   :  { %v25385_v6 = vpop.f32.mrb[151].mxu1 }
0x1b9e   :  { %v20344_v20 = vpack.i.bf16 %v25383_v15, %v25385_v6 }
0x1ba0   :  { %v25389_v31 = vpop.f32.mrb[150].mxu0 }
0x1ba1   :  { %v25391_v33 = vpop.f32.mrb[151].mxu0 }
0x1ba2   :  { %v20339_v40 = vpack.i.bf16 %v25389_v31, %v25391_v33 }
0x1ba4   :  { %v18650_v13 = vpop.f32.mrb[152].mxu1 }
0x1ba5   :  { %v14082_v23 = vmul.f32 0.35355338, %v18650_v13  ;;  %v13524_v21 = vpop.f32.mrb[153].mxu1 }
0x1ba6   :  { %v14081_v60 = vmul.f32 0.35355338, %v13524_v21 }
0x1ba7   :  { %v25396_v39 = vadd.f32 %v24967_v19, %v14082_v23 }
0x1ba8   :  { %v18643_v56 = vpop.f32.mrb[152].mxu0  ;;  %v25399_v3 = vadd.f32 %v24967_v19, %v14081_v60 }
0x1ba9   :  { %v14080_v30 = vmul.f32 0.35355338, %v18643_v56  ;;  %v13433_v42 = vpop.f32.mrb[153].mxu0  ;;  %v14120_v24 = vsel %vm1058_vm3, %v25396_v39, -inf }
0x1baa   :  { %v14079_v47 = vmul.f32 0.35355338, %v13433_v42  ;;  %14121 = vmax.xlane.f32.xlu0 %v14120_v24  ;;  %v14117_v19 = vsel %vm1058_vm3, %v25399_v3, -inf }
0x1bab   :  { %v25404_v37 = vadd.f32 %v24980_v46, %v14080_v30 }
0x1bac   :  { %v18664_v53 = vpop.f32.mrb[154].mxu1  ;;  %v25407_v2 = vadd.f32 %v24980_v46, %v14079_v47 }
0x1bad   :  { %v14086_v44 = vmul.f32 0.35355338, %v18664_v53  ;;  %v13706_v9 = vpop.f32.mrb[155].mxu1  ;;  %v14114_v12 = vsel %vm1058_vm3, %v25404_v37, -inf }
0x1bae   :  { %v14085_v51 = vmul.f32 0.35355338, %v13706_v9  ;;  %14118 = vmax.xlane.f32.xlu0 %v14117_v19  ;;  %14115 = vmax.xlane.f32.xlu1 %v14114_v12  ;;  %v14111_v0 = vsel %vm1058_vm3, %v25407_v2, -inf }
0x1baf   :  { %v25417_v41 = vadd.f32 %v24995_v34, %v14086_v44 }
0x1bb0   :  { %v25414_v29 = vadd.f32 %v24995_v34, %v14085_v51  ;;  %v18657_v22 = vpop.f32.mrb[154].mxu0 }
0x1bb1   :  { %v14084_v46 = vmul.f32 0.35355338, %v18657_v22  ;;  %v13615_v38 = vpop.f32.mrb[155].mxu0  ;;  %v14132_v30 = vsel %vm1058_vm3, %v25417_v41, -inf }
0x1bb2   :  { %v14083_v49 = vmul.f32 0.35355338, %v13615_v38  ;;  %14112 = vmax.xlane.f32.xlu0 %v14111_v0  ;;  %v14129_v13 = vsel %vm1058_vm3, %v25414_v29, -inf }
0x1bb3   :  { %14130 = vmax.xlane.f32.xlu1 %v14129_v13  ;;  %v25427_v60 = vadd.f32 %v25010_v25, %v14084_v46 }
0x1bb4   :  { %v25424_v23 = vadd.f32 %v25010_v25, %v14083_v49  ;;  %v18678_v21 = vpop.f32.mrb[156].mxu1 }
0x1bb5   :  { %v14090_v34 = vmul.f32 0.35355338, %v18678_v21  ;;  %v13888_v56 = vpop.f32.mrb[157].mxu1  ;;  %v14126_v19 = vsel %vm1058_vm3, %v25427_v60, -inf }
0x1bb6   :  { %v14089_v42 = vmul.f32 0.35355338, %v13888_v56  ;;  %14133 = vmax.xlane.f32.xlu0 %v14132_v30  ;;  %v14123_v24 = vsel %vm1058_vm3, %v25424_v23, -inf }
0x1bb7   :  { %14124 = vmax.xlane.f32.xlu1 %v14123_v24  ;;  %v25437_v44 = vadd.f32 %v25025_v14, %v14090_v34 }
0x1bb8   :  { %v25434_v47 = vadd.f32 %v25025_v14, %v14089_v42  ;;  %v18671_v53 = vpop.f32.mrb[156].mxu0 }
0x1bb9   :  { %v14088_v25 = vmul.f32 0.35355338, %v18671_v53  ;;  %v13797_v9 = vpop.f32.mrb[157].mxu0  ;;  %v14144_v49 = vsel %vm1058_vm3, %v25437_v44, -inf }
0x1bba   :  { %v14087_v12 = vmul.f32 0.35355338, %v13797_v9  ;;  %14127 = vmax.xlane.f32.xlu0 %v14126_v19  ;;  %v14141_v51 = vsel %vm1058_vm3, %v25434_v47, -inf }
0x1bbb   :  { %14142 = vmax.xlane.f32.xlu1 %v14141_v51  ;;  %v25447_v38 = vadd.f32 %v25040_v57, %v14088_v25 }
0x1bbc   :  { %v25444_v22 = vadd.f32 %v25040_v57, %v14087_v12  ;;  %v18692_v46 = vpop.f32.mrb[158].mxu1 }
0x1bbd   :  { %v14094_v14 = vmul.f32 0.35355338, %v18692_v46  ;;  %v14070_v0 = vpop.f32.mrb[159].mxu1  ;;  %v14138_v57 = vsel %vm1058_vm3, %v25447_v38, -inf }
0x1bbe   :  { %14145 = vmax.xlane.f32.xlu0 %v14144_v49  ;;  %v14135_v13 = vsel %vm1058_vm3, %v25444_v22, -inf  ;;  %v14093_v25 = vmul.f32 0.35355338, %v14070_v0 }
0x1bbf   :  { %14136 = vmax.xlane.f32.xlu1 %v14135_v13  ;;  %v25454_v34 = vadd.f32 %v25055_v7, %v14094_v14 }
0x1bc0   :  { %v18685_v21 = vpop.f32.mrb[158].mxu0  ;;  %v25470_v9 = vadd.f32 %v25055_v7, %v14093_v25 }
0x1bc1   :  { %v14092_v56 = vmul.f32 0.35355338, %v18685_v21  ;;  %v13979_v30 = vpop.f32.mrb[159].mxu0  ;;  %v14156_v24 = vsel %vm1058_vm3, %v25454_v34, -inf }
0x1bc2   :  { %14139 = vmax.xlane.f32.xlu0 %v14138_v57  ;;  %v14091_v19 = vmul.f32 0.35355338, %v13979_v30  ;;  %v14153_v51 = vsel %vm1058_vm3, %v25470_v9, -inf }
0x1bc3   :  { %v25459_v42 = vadd.f32 %v25065_v35, %v14092_v56 }
0x1bc4   :  { %v25473_v12 = vadd.f32 %v25065_v35, %v14091_v19 }
0x1bc5   :  { %v14150_v53 = vsel %vm1058_vm3, %v25459_v42, -inf }
0x1bc6   :  { %14157 = vmax.xlane.f32.xlu0 %v14156_v24  ;;  %v14147_v46 = vsel %vm1058_vm3, %v25473_v12, -inf }
0x1bca   :  { %14151 = vmax.xlane.f32.xlu0 %v14150_v53 }
0x1bd0   :  { %20220 = vrot.lane.b32.xlu1 %v24011_v52, %s21324_s29 }
0x1be0   :  { %20215 = vrot.lane.b32.xlu0 %v23993_v17, %s21324_s29 }
0x1bf4   :  { %14154 = vmax.xlane.f32.xlu1 %v14153_v51 }
0x1bf8   :  { %14148 = vmax.xlane.f32.xlu1 %v14147_v46 }
0x1c09   :  { %20225 = vrot.lane.b32.xlu1 %v24007_v36, %s21324_s29 }
0x1c37   :  { %v14122_v17 = vpop.xlane.xlu0 %14121 }
0x1c38   :  { %v14162_v52 = vsub.f32 %v25396_v39, %v14122_v17 }
0x1c3a   :  { %v14181_v7 = vmul.f32 1.442695, %v14162_v52 }
0x1c3b   :  { %v14119_v14 = vpop.xlane.xlu0 %14118  ;;  %v14116_v0 = vpop.xlane.xlu1 %14115 }
0x1c3c   :  { %20967 = vpow2.f32 %v14181_v7  ;;  %v14161_v35 = vsub.f32 %v25399_v3, %v14119_v14  ;;  %v14160_v49 = vsub.f32 %v25404_v37, %v14116_v0 }
0x1c3e   :  { %v14179_v13 = vmul.f32 1.442695, %v14161_v35  ;;  %v14177_v21 = vmul.f32 1.442695, %v14160_v49 }
0x1c3f   :  { %v14113_v56 = vpop.xlane.xlu0 %14112 }
0x1c40   :  { %20969 = vpow2.f32 %v14179_v13  ;;  %v14159_v30 = vsub.f32 %v25407_v2, %v14113_v56  ;;  %v14131_v57 = vpop.xlane.xlu1 %14130 }
0x1c41   :  { %20971 = vpow2.f32 %v14177_v21  ;;  %v14165_v36 = vsub.f32 %v25414_v29, %v14131_v57 }
0x1c42   :  { %v14175_v24 = vmul.f32 1.442695, %v14159_v30 }
0x1c43   :  { %v14187_v39 = vmul.f32 1.442695, %v14165_v36  ;;  %v14134_v53 = vpop.xlane.xlu0 %14133 }
0x1c44   :  { %20973 = vpow2.f32 %v14175_v24  ;;  %v14166_v25 = vsub.f32 %v25417_v41, %v14134_v53  ;;  %v14125_v19 = vpop.xlane.xlu1 %14124 }
0x1c45   :  { %v14163_v3 = vsub.f32 %v25424_v23, %v14125_v19  ;;  %20975 = vpow2.f32 %v14187_v39 }
0x1c46   :  { %v25488_v37 = vpop.eup %20967  ;;  %v14189_v51 = vmul.f32 1.442695, %v14166_v25 }
0x1c47   :  { %v14183_v46 = vmul.f32 1.442695, %v14163_v3  ;;  %v14128_v17 = vpop.xlane.xlu0 %14127  ;;  %v14216_v2 = vsel %vm1058_vm3, %v25488_v37, 0.0 }
0x1c48   :  { %20977 = vpow2.f32 %v14189_v51  ;;  %v14164_v29 = vsub.f32 %v25427_v60, %v14128_v17  ;;  %14217 = vadd.xlane.f32.xlu0 %v14216_v2  ;;  %v14143_v52 = vpop.xlane.xlu1 %14142 }
0x1c49   :  { %v14169_v7 = vsub.f32 %v25434_v47, %v14143_v52  ;;  %20979 = vpow2.f32 %v14183_v46 }
0x1c4a   :  { %v25494_v41 = vpop.eup %20969  ;;  %v14185_v23 = vmul.f32 1.442695, %v14164_v29 }
0x1c4b   :  { %v25496_v14 = vpop.eup %20971  ;;  %v14195_v0 = vmul.f32 1.442695, %v14169_v7  ;;  %v14146_v35 = vpop.xlane.xlu0 %14145  ;;  %v14213_v49 = vsel %vm1058_vm3, %v25494_v41, 0.0 }
0x1c4c   :  { %20981 = vpow2.f32 %v14185_v23  ;;  %v14170_v13 = vsub.f32 %v25437_v44, %v14146_v35  ;;  %14214 = vadd.xlane.f32.xlu1 %v14213_v49  ;;  %v14210_v60 = vsel %vm1058_vm3, %v25496_v14, 0.0  ;;  %v14137_v21 = vpop.xlane.xlu1 %14136 }
0x1c4d   :  { %14211 = vadd.xlane.f32.xlu0 %v14210_v60  ;;  %v14167_v47 = vsub.f32 %v25444_v22, %v14137_v21  ;;  %20983 = vpow2.f32 %v14195_v0 }
0x1c4e   :  { %v25504_v56 = vpop.eup %20973  ;;  %v14197_v30 = vmul.f32 1.442695, %v14170_v13 }
0x1c4f   :  { %v14191_v57 = vmul.f32 1.442695, %v14167_v47  ;;  %v14140_v36 = vpop.xlane.xlu0 %14139  ;;  %v14207_v24 = vsel %vm1058_vm3, %v25504_v56, 0.0  ;;  %v25508_v39 = vpop.eup %20975 }
0x1c50   :  { %20985 = vpow2.f32 %v14197_v30  ;;  %v14168_v44 = vsub.f32 %v25447_v38, %v14140_v36  ;;  %14208 = vadd.xlane.f32.xlu1 %v14207_v24  ;;  %v14225_v3 = vsel %vm1058_vm3, %v25508_v39, 0.0 }
0x1c51   :  { %20987 = vpow2.f32 %v14191_v57 }
0x1c52   :  { %v25511_v53 = vpop.eup %20977  ;;  %v14193_v25 = vmul.f32 1.442695, %v14168_v44 }
0x1c53   :  { %v14158_v22 = vpop.xlane.xlu0 %14157  ;;  %v14228_v19 = vsel %vm1058_vm3, %v25511_v53, 0.0  ;;  %v25517_v51 = vpop.eup %20979 }
0x1c54   :  { %20989 = vpow2.f32 %v14193_v25  ;;  %v14174_v46 = vsub.f32 %v25454_v34, %v14158_v22  ;;  %14229 = vadd.xlane.f32.xlu0 %v14228_v19  ;;  %14226 = vadd.xlane.f32.xlu1 %v14225_v3  ;;  %v14219_v52 = vsel %vm1058_vm3, %v25517_v51, 0.0  ;;  %v25554_v19 = vpop.permute.xlu1 %20220 }
0x1c56   :  { %v25520_v38 = vpop.eup %20981  ;;  %v14205_v17 = vmul.f32 1.442695, %v14174_v46 }
0x1c57   :  { %v14152_v2 = vpop.xlane.xlu0 %14151  ;;  %v14222_v29 = vsel %vm1058_vm3, %v25520_v38, 0.0  ;;  %v25526_v7 = vpop.eup %20983 }
0x1c58   :  { %20991 = vpow2.f32 %v14205_v17  ;;  %v14172_v23 = vsub.f32 %v25459_v42, %v14152_v2  ;;  %14223 = vadd.xlane.f32.xlu0 %v14222_v29  ;;  %14220 = vadd.xlane.f32.xlu1 %v14219_v52  ;;  %v14237_v13 = vsel %vm1058_vm3, %v25526_v7, 0.0  ;;  %v26661_v17 = vpack.i.bf16 %v24922_v50, %v24924_v63 }
0x1c5a   :  { %v25529_v34 = vpop.eup %20985  ;;  %v14201_v0 = vmul.f32 1.442695, %v14172_v23 }
0x1c5b   :  { %v20216_v35 = vpop.permute.xlu0 %20215  ;;  %v14240_v49 = vsel %vm1058_vm3, %v25529_v34, 0.0  ;;  %v25535_v47 = vpop.eup %20987 }
0x1c5c   :  { %20993 = vpow2.f32 %v14201_v0  ;;  %v20218_v60 = vunpack.i.h.bf16 %v20216_v35  ;;  %v20217_v21 = vunpack.i.l.bf16 %v20216_v35  ;;  %14241 = vadd.xlane.f32.xlu0 %v14240_v49  ;;  %14238 = vadd.xlane.f32.xlu1 %v14237_v13  ;;  %v14231_v36 = vsel %vm1058_vm3, %v25535_v47, 0.0  ;;  %v26671_v49 = vld [vmem:[#allocation31_spill] sm:$0xff]  ;;  %v26672_v13 = vld [vmem:[#allocation50_spill] sm:$0xff] }
0x1c5e   :  { %v25537_v42 = vpop.eup %20989  ;;  %v25539_v30 = vpack.c.bf16 %v20218_v60, %v20217_v21  ;;  %v26673_v60 = vpack.i.bf16 %v26671_v49, %v26672_v13  ;;  %v26675_v21 = vld [vmem:[#allocation48_spill] sm:$0xff] }
0x1c5f   :  { %v14234_v57 = vsel %vm1058_vm3, %v25537_v42, 0.0 }
0x1c60   :  { %19434 = vmatprep.subr.bf16.mxu1 %v25539_v30  ;;  %14235 = vadd.xlane.f32.xlu0 %v14234_v57 }
0x1c61   :  { %14232 = vadd.xlane.f32.xlu1 %v14231_v36 }
0x1c62   :  { %v25546_v24 = vpop.eup %20991 }
0x1c63   :  { %v14252_v44 = vsel %vm1058_vm3, %v25546_v24, 0.0 }
0x1c64   :  { %14253 = vadd.xlane.f32.xlu0 %v14252_v44 }
0x1c66   :  { %v25550_v25 = vpop.eup %20993 }
0x1c67   :  { %v14246_v22 = vsel %vm1058_vm3, %v25550_v25, 0.0 }
0x1c68   :  { %14247 = vadd.xlane.f32.xlu0 %v14246_v22 }
0x1c7e   :  { %20230 = vrot.lane.b32.xlu0 %v24031_v16, %s21324_s29  ;;  %v26662_v16 = vld [vmem:[#allocation44_spill] sm:$0xff] }
0x1c81   :  { %v14155_v3 = vpop.xlane.xlu1 %14154 }
0x1c82   :  { %v14173_v46 = vsub.f32 %v25470_v9, %v14155_v3  ;;  %20240 = vrot.lane.b32.xlu0 %v26661_v17, %s21312_s10  ;;  %v26663_v9 = vld [vmem:[#allocation24_spill] sm:$0xff] }
0x1c83   :  { %v26664_v0 = vpack.i.bf16 %v26662_v16, %v26663_v9  ;;  %v20223_v9 = vunpack.i.h.bf16 %v25554_v19 }
0x1c84   :  { %v14203_v2 = vmul.f32 1.442695, %v14173_v46 }
0x1c85   :  { %v14149_v29 = vpop.xlane.xlu1 %14148 }
0x1c86   :  { %20995 = vpow2.f32 %v14203_v2  ;;  %v14171_v52 = vsub.f32 %v25473_v12, %v14149_v29  ;;  %20250 = vrot.lane.b32.xlu0 %v20249_v26, %s21325_s30  ;;  %v26667_v26 = vpack.i.bf16 %v26665_v1, %v26666_v11 }
0x1c88   :  { %v14199_v23 = vmul.f32 1.442695, %v14171_v52 }
0x1c89   :  { %v20226_v36 = vpop.permute.xlu1 %20225 }
0x1c8a   :  { %20997 = vpow2.f32 %v14199_v23  ;;  %20260 = vrot.lane.b32.xlu0 %v26664_v0, %s21312_s10  ;;  %v20228_v5 = vunpack.i.h.bf16 %v20226_v36  ;;  %v20222_v0 = vunpack.i.l.bf16 %v25554_v19 }
0x1c8e   :  { %20270 = vrot.lane.b32.xlu0 %v20269_v62, %s21325_s30  ;;  %v26670_v62 = vpack.i.bf16 %v26668_v54, %v26669_v45 }
0x1c90   :  { %v25576_v50 = vpop.eup %20995 }
0x1c91   :  { %v14249_v63 = vsel %vm1058_vm3, %v25576_v50, 0.0 }
0x1c92   :  { %20280 = vrot.lane.b32.xlu0 %v26667_v26, %s21312_s10  ;;  %14250 = vadd.xlane.f32.xlu1 %v14249_v63 }
0x1c94   :  { %v25584_v12 = vpop.eup %20997 }
0x1c95   :  { %v14243_v35 = vsel %vm1058_vm3, %v25584_v12, 0.0 }
0x1c96   :  { %14244 = vadd.xlane.f32.xlu1 %v14243_v35  ;;  %v19437_v35 = vpack.c.bf16 %v20223_v9, %v20222_v0 }
0x1ca7   :  { %20235 = vrot.lane.b32.xlu1 %v24027_v32, %s21324_s29  ;;  %v26674_v32 = vld [vmem:[#allocation49_spill] sm:$0xff] }
0x1ca8   :  { %v26676_v57 = vpack.i.bf16 %v26674_v32, %v26675_v21 }
0x1cab   :  { %20245 = vrot.lane.b32.xlu1 %v26670_v62, %s21312_s10 }
0x1caf   :  { %20255 = vrot.lane.b32.xlu1 %v20254_v10, %s21325_s30 }
0x1cb3   :  { %20265 = vrot.lane.b32.xlu1 %v26673_v60, %s21312_s10 }
0x1cb7   :  { %20275 = vrot.lane.b32.xlu1 %v20274_v4, %s21325_s30  ;;  %v20227_v4 = vunpack.i.l.bf16 %v20226_v36 }
0x1cb9   :  { %v19441_v63 = vpack.c.bf16 %v20228_v5, %v20227_v4 }
0x1cbb   :  { %20285 = vrot.lane.b32.xlu1 %v26676_v57, %s21312_s10 }
0x1cd5   :  { %v14218_v44 = vpop.xlane.xlu0 %14217 }
0x1cd6   :  { %20999 = vrcp.f32 %v14218_v44 }
0x1cd9   :  { %v14215_v18 = vpop.xlane.xlu1 %14214 }
0x1cda   :  { %v14212_v43 = vpop.xlane.xlu0 %14211  ;;  %21001 = vrcp.f32 %v14215_v18 }
0x1cdb   :  { %21003 = vrcp.f32 %v14212_v43 }
0x1cdd   :  { %v14209_v10 = vpop.xlane.xlu1 %14208 }
0x1cde   :  { %21005 = vrcp.f32 %v14209_v10 }
0x1ce0   :  { %v21000_v46 = vpop.eup %20999 }
0x1ce1   :  { %v14230_v22 = vpop.xlane.xlu0 %14229  ;;  %v14227_v3 = vpop.xlane.xlu1 %14226  ;;  %v14274_v52 = vmul.f32 %v21000_v46, %v25488_v37 }
0x1ce2   :  { %21007 = vrcp.f32 %v14230_v22 }
0x1ce3   :  { %21009 = vrcp.f32 %v14227_v3 }
0x1ce4   :  { %v21002_v59 = vpop.eup %21001 }
0x1ce5   :  { %v14224_v17 = vpop.xlane.xlu0 %14223  ;;  %v14221_v2 = vpop.xlane.xlu1 %14220  ;;  %v14273_v29 = vmul.f32 %v21002_v59, %v25494_v41 }
0x1ce6   :  { %21011 = vrcp.f32 %v14224_v17  ;;  %v21004_v23 = vpop.eup %21003 }
0x1ce7   :  { %21013 = vrcp.f32 %v14221_v2  ;;  %18704 = vmatprep.mubr.msk.f32.mxu1 %vm1058_vm3, %v14273_v29  ;;  %v14272_v37 = vmul.f32 %v21004_v23, %v25496_v14  ;;  %v20371_v23 = vld [vmem:[#allocation5 + $0x10] sm:$0xff]  }
0x1ce8   :  { %v21006_v16 = vpop.eup %21005  ;;  %18705 = vmatmul.mubr.msk.f32.vlgmr.msra.gmra.mrb[160].mxu1 %vm1058_vm3, %v14274_v52 }
0x1ce9   :  { %19436 = vmatpush3.bf16.msra.mxu1 %v25539_v30  ;;  %v14242_v1 = vpop.xlane.xlu0 %14241  ;;  %v14239_v11 = vpop.xlane.xlu1 %14238  ;;  %v14271_v41 = vmul.f32 %v21006_v16, %v25504_v56 }
0x1cea   :  { %21015 = vrcp.f32 %v14242_v1  ;;  %19442 = vmatprep.subr.bf16.mxu1 %v19441_v63 }
0x1ceb   :  { %21017 = vrcp.f32 %v14239_v11  ;;  %18697 = vmatprep.mubr.msk.f32.mxu0 %vm1058_vm3, %v14271_v41 }
0x1cec   :  { %v21008_v26 = vpop.eup %21007  ;;  %18698 = vmatmul.mubr.msk.f32.vlgmr.msra.gmra.mrb[160].mxu0 %vm1058_vm3, %v14272_v37 }
0x1ced   :  { %v21010_v19 = vpop.eup %21009  ;;  %v14278_v54 = vmul.f32 %v21008_v26, %v25511_v53  ;;  %19432 = vmatpush3.bf16.msra.mxu0 %v25344_v28  ;;  %v14236_v30 = vpop.xlane.xlu0 %14235 }
0x1cee   :  { %21019 = vrcp.f32 %v14236_v30  ;;  %v14233_v45 = vpop.xlane.xlu1 %14232  ;;  %19438 = vmatprep.subr.bf16.mxu0 %v19437_v35  ;;  %v14277_v14 = vmul.f32 %v21010_v19, %v25508_v39  ;;  %v26678_v19 = vld [vmem:[#allocation66_spill] sm:$0xff] }
0x1cef   :  { %21021 = vrcp.f32 %v14233_v45 }
0x1cf0   :  { %v21012_v56 = vpop.eup %21011  ;;  %18718 = vmatprep.mubr.msk.f32.mxu1 %vm1058_vm3, %v14277_v14 }
0x1cf1   :  { %v21014_v62 = vpop.eup %21013  ;;  %v14276_v49 = vmul.f32 %v21012_v56, %v25520_v38  ;;  %18719 = vmatmul.mubr.msk.f32.vlgmr.msra.gmra.mrb[162].mxu1 %vm1058_vm3, %v14278_v54  ;;  %v14254_v13 = vpop.xlane.xlu0 %14253 }
0x1cf2   :  { %19444 = vmatpush3.bf16.msra.mxu1 %v19441_v63  ;;  %v14275_v53 = vmul.f32 %v21014_v62, %v25517_v51 }
0x1cf4   :  { %v21016_v28 = vpop.eup %21015  ;;  %18711 = vmatprep.mubr.msk.f32.mxu0 %vm1058_vm3, %v14275_v53 }
0x1cf5   :  { %v21018_v60 = vpop.eup %21017  ;;  %v14282_v32 = vmul.f32 %v21016_v28, %v25529_v34  ;;  %18712 = vmatmul.mubr.msk.f32.vlgmr.msra.gmra.mrb[162].mxu0 %vm1058_vm3, %v14276_v49  ;;  %v14248_v39 = vpop.xlane.xlu0 %14247 }
0x1cf6   :  { %19440 = vmatpush3.bf16.msra.mxu0 %v19437_v35  ;;  %v14281_v21 = vmul.f32 %v21018_v60, %v25526_v7  ;;  %v26677_v35 = vld [vmem:[#allocation65_spill] sm:$0xff] }
0x1cf7   :  { %v26679_v27 = vpack.i.bf16 %v26677_v35, %v26678_v19 }
0x1cf8   :  { %v21020_v57 = vpop.eup %21019  ;;  %18732 = vmatprep.mubr.msk.f32.mxu1 %vm1058_vm3, %v14281_v21 }
0x1cf9   :  { %v21022_v38 = vpop.eup %21021  ;;  %v14280_v36 = vmul.f32 %v21020_v57, %v25537_v42  ;;  %18733 = vmatmul.mubr.msk.f32.vlgmr.msra.gmra.mrb[164].mxu1 %vm1058_vm3, %v14282_v32  ;;  %v20231_v51 = vpop.permute.xlu0 %20230 }
0x1cfa   :  { %v20233_v44 = vunpack.i.h.bf16 %v20231_v51  ;;  %v20232_v18 = vunpack.i.l.bf16 %v20231_v51  ;;  %v14279_v43 = vmul.f32 %v21022_v38, %v25535_v47 }
0x1cfc   :  { %v19445_v34 = vpack.c.bf16 %v20233_v44, %v20232_v18  ;;  %18725 = vmatprep.mubr.msk.f32.mxu0 %vm1058_vm3, %v14279_v43 }
0x1cfd   :  { %18726 = vmatmul.mubr.msk.f32.vlgmr.msra.gmra.mrb[164].mxu0 %vm1058_vm3, %v14280_v36  ;;  %v20241_v15 = vpop.permute.xlu0 %20240 }
0x1cfe   :  { %19446 = vmatprep.subr.bf16.mxu0 %v19445_v34  ;;  %v20243_v51 = vunpack.i.h.bf16 %v20241_v15  ;;  %v20242_v44 = vunpack.i.l.bf16 %v20241_v15  ;;  %v26690_v15 = vld [vmem:[#allocation39_spill] sm:$0xff] }
0x1cff   :  { %19448 = vmatpush3.bf16.msra.mxu0 %v19445_v34  ;;  %v26683_v34 = vld [vmem:[#allocation32_spill] sm:$0xff] }
0x1d00   :  { %18749 = vmatprep.subr.bf16.mxu0 %v20371_v23 }
0x1d1f   :  { %v14251_v7 = vpop.xlane.xlu1 %14250 }
0x1d20   :  { %21023 = vrcp.f32 %v14251_v7 }
0x1d21   :  { %21025 = vrcp.f32 %v14254_v13 }
0x1d22   :  { %21027 = vrcp.f32 %v14248_v39 }
0x1d23   :  { %v14245_v10 = vpop.xlane.xlu1 %14244 }
0x1d24   :  { %21029 = vrcp.f32 %v14245_v10  ;;  %v26684_v10 = vld [vmem:[#allocation37_spill] sm:$0xff] }
0x1d27   :  { %v20236_v42 = vpop.permute.xlu1 %20235 }
0x1d28   :  { %v20238_v22 = vunpack.i.h.bf16 %v20236_v42  ;;  %v20237_v3 = vunpack.i.l.bf16 %v20236_v42 }
0x1d2a   :  { %v21024_v46 = vpop.eup %21023  ;;  %v19449_v59 = vpack.c.bf16 %v20238_v22, %v20237_v3 }
0x1d2b   :  { %v21026_v5 = vpop.eup %21025  ;;  %v14285_v47 = vmul.f32 %v21024_v46, %v25576_v50  ;;  %v20372_v50 = vld [vmem:[#allocation5 + $0x18] sm:$0xff]   ;;  %v20246_v60 = vpop.permute.xlu1 %20245 }
0x1d2c   :  { %19450 = vmatprep.subr.bf16.mxu1 %v19449_v59  ;;  %v21028_v4 = vpop.eup %21027  ;;  %v14286_v2 = vmul.f32 %v21026_v5, %v25546_v24  ;;  %v20248_v33 = vunpack.i.h.bf16 %v20246_v60 }
0x1d2d   :  { %19452 = vmatpush3.bf16.msra.mxu1 %v19449_v59  ;;  %18746 = vmatprep.mubr.msk.f32.mxu1 %vm1058_vm3, %v14285_v47  ;;  %v14284_v52 = vmul.f32 %v21028_v4, %v25550_v25 }
0x1d2e   :  { %v21030_v17 = vpop.eup %21029  ;;  %v15178_v7 = vsel %vm271_vm1, %v26683_v34, %v20248_v33 }
0x1d2f   :  { %v14283_v29 = vmul.f32 %v21030_v17, %v25584_v12  ;;  %v20256_v6 = vpop.permute.xlu1 %20255 }
0x1d30   :  { %18747 = vmatmul.mubr.msk.f32.vlgmr.msra.gmra.mrb[166].mxu1 %vm1058_vm3, %v14286_v2  ;;  %v20258_v38 = vunpack.i.h.bf16 %v20256_v6  ;;  %v20257_v36 = vunpack.i.l.bf16 %v20256_v6 }
0x1d31   :  { %18739 = vmatprep.mubr.msk.f32.mxu0 %vm1058_vm3, %v14283_v29 }
0x1d32   :  { %18740 = vmatmul.mubr.msk.f32.vlgmr.msra.gmra.mrb[166].mxu0 %vm1058_vm3, %v14284_v52  ;;  %v15194_v47 = vsel %vm1058_vm3, %v15178_v7, %v20258_v38 }
0x1d33   :  { %18750 = vmatpush3.bf16.msra.mxu0 %v20371_v23  ;;  %v20266_v32 = vpop.permute.xlu1 %20265  ;;  %v26685_v23 = vld [vmem:[#allocation38_spill] sm:$0xff] }
0x1d34   :  { %18751 = vmatprep.subr.bf16.mxu0 %v20372_v50 }
0x1d37   :  { %18752 = vmatpush3.bf16.msra.mxu0 %v20372_v50  ;;  %v20276_v21 = vpop.permute.xlu1 %20275  ;;  %v15176_v50 = vsel %vm271_vm1, %v26685_v23, %v20243_v51 }
0x1d3b   :  { %v25680_v31 = vpop.permute.xlu1 %20285 }
0x1dbb   :  { %v18706_v16 = vpop.f32.mrb[160].mxu1 }
0x1dbc   :  { %v14452_v9 = vpop.f32.mrb[161].mxu1 }
0x1dbd   :  { %v20289_v0 = vpack.i.bf16 %v18706_v16, %v14452_v9  ;;  %v26686_v16 = vld [vmem:[#allocation35_spill] sm:$0xff] }
0x1dbe   :  { %v15175_v9 = vsel %vm271_vm1, %v26686_v16, %v20242_v44 }
0x1dbf   :  { %20290 = vrot.lane.b32.xlu1 %v20289_v0, %s21326_s11  ;;  %v18699_v24 = vpop.f32.mrb[160].mxu0 }
0x1dc0   :  { %v14365_v12 = vpop.f32.mrb[161].mxu0 }
0x1dc1   :  { %v20294_v25 = vpack.i.bf16 %v18699_v24, %v14365_v12 }
0x1dc3   :  { %20305 = vrot.lane.b32.xlu1 %v20304_v8, %s21325_s30  ;;  %20295 = vrot.lane.b32.xlu0 %v20294_v25, %s21326_s11 }
0x1dc4   :  { %v18720_v63 = vpop.f32.mrb[162].mxu1 }
0x1dc5   :  { %v14626_v1 = vpop.f32.mrb[163].mxu1 }
0x1dc6   :  { %v20309_v11 = vpack.i.bf16 %v18720_v63, %v14626_v1  ;;  %v20268_v63 = vunpack.i.h.bf16 %v20266_v32  ;;  %v20267_v1 = vunpack.i.l.bf16 %v20266_v32 }
0x1dc7   :  { %20300 = vrot.lane.b32.xlu0 %v20299_v58, %s21325_s30  ;;  %v26682_v58 = vpack.i.bf16 %v26680_v55, %v26681_v48  ;;  %v26688_v48 = vld [vmem:[#allocation41_spill] sm:$0xff] }
0x1dc8   :  { %20310 = vrot.lane.b32.xlu1 %v20309_v11, %s21326_s11  ;;  %v18713_v41 = vpop.f32.mrb[162].mxu0  ;;  %v20278_v11 = vunpack.i.h.bf16 %v20276_v21 }
0x1dc9   :  { %v14539_v37 = vpop.f32.mrb[163].mxu0 }
0x1dca   :  { %v20314_v26 = vpack.i.bf16 %v18713_v41, %v14539_v37  ;;  %v20277_v41 = vunpack.i.l.bf16 %v20276_v21  ;;  %v20288_v21 = vunpack.i.h.bf16 %v25680_v31 }
0x1dcc   :  { %20325 = vrot.lane.b32.xlu1 %v26679_v27, %s21312_s10  ;;  %v18734_v61 = vpop.f32.mrb[164].mxu1  ;;  %20315 = vrot.lane.b32.xlu0 %v20314_v26, %s21326_s11 }
0x1dcd   :  { %v14800_v8 = vpop.f32.mrb[165].mxu1 }
0x1dce   :  { %v20329_v54 = vpack.i.bf16 %v18734_v61, %v14800_v8 }
0x1dd0   :  { %20330 = vrot.lane.b32.xlu1 %v20329_v54, %s21326_s11  ;;  %20320 = vrot.lane.b32.xlu0 %v26682_v58, %s21312_s10  ;;  %v18727_v30 = vpop.f32.mrb[164].mxu0  ;;  %v26687_v54 = vld [vmem:[#allocation36_spill] sm:$0xff]  ;;  %v15181_v58 = vsel %vm271_vm1, %v26688_v48, %v20267_v1  ;;  %s21328_s10 = smov [#allocation10]  }
0x1dd1   :  { %v14713_v45 = vpop.f32.mrb[165].mxu0  ;;  %v15182_v55 = vsel %vm271_vm1, %v26687_v54, %v20268_v63  ;;  %s16643_s27 = sshll.u32 %s21328_s10, 4  ;;  %s16644_s27 = int_to_ptr.vmem [resolvable:$true] %s16643_s27 }
0x1dd2   :  { %v20334_v14 = vpack.i.bf16 %v18727_v30, %v14713_v45  ;;  %p21282_p5 = scmp.lt.s32.totalorder %s16644_s27, %s16644_s27 }
0x1dd4   :  { %20345 = vrot.lane.b32.xlu1 %v20344_v20, %s21325_s30  ;;  %20335 = vrot.lane.b32.xlu0 %v20334_v14, %s21326_s11  ;;  %v20251_v20 = vpop.permute.xlu0 %20250 }
0x1dd5   :  { %v20253_v46 = vunpack.i.h.bf16 %v20251_v20  ;;  %v20252_v59 = vunpack.i.l.bf16 %v20251_v20 }
0x1dd7   :  { %v15191_v12 = vsel %vm1058_vm3, %v15175_v9, %v20252_v59  ;;  %v15192_v25 = vsel %vm1058_vm3, %v15176_v50, %v20253_v46  ;;  %v26692_v59 = vld [vmem:[#allocation23_spill] sm:$0xff] }
0x1dd8   :  { %20340 = vrot.lane.b32.xlu0 %v20339_v40, %s21325_s30  ;;  %v20261_v39 = vpop.permute.xlu0 %20260  ;;  %v20247_v40 = vunpack.i.l.bf16 %v20246_v60  ;;  %v26693_v9 = vld [vmem:[#allocation43_spill] sm:$0xff] }
0x1dd9   :  { %v20263_v27 = vunpack.i.h.bf16 %v20261_v39  ;;  %v20262_v61 = vunpack.i.l.bf16 %v20261_v39 }
0x1dda   :  { %v15177_v42 = vsel %vm271_vm1, %v26684_v10, %v20247_v40 }
0x1ddb   :  { %v15193_v5 = vsel %vm1058_vm3, %v15177_v42, %v20257_v36  ;;  %v15179_v6 = vsel %vm271_vm1, %v26690_v15, %v20262_v61  ;;  %v26698_v15 = vld [vmem:[#allocation62_spill] sm:$0xff] }
0x1ddc   :  { %v25678_v57 = vpop.permute.xlu0 %20270 }
0x1ddd   :  { %v20273_v14 = vunpack.i.h.bf16 %v25678_v57 }
0x1de0   :  { %v25682_v18 = vpop.permute.xlu0 %20280 }
0x1de1   :  { %v20283_v7 = vunpack.i.h.bf16 %v25682_v18  ;;  %v20282_v10 = vunpack.i.l.bf16 %v25682_v18 }
0x1e03   :  { %v18748_v56 = vpop.f32.mrb[166].mxu1 }
0x1e04   :  { %v14974_v62 = vpop.f32.mrb[167].mxu1 }
0x1e05   :  { %v20354_v49 = vpack.i.bf16 %v18748_v56, %v14974_v62  ;;  %v18741_v13 = vpop.f32.mrb[166].mxu0  ;;  %v20272_v56 = vunpack.i.l.bf16 %v25678_v57  ;;  %v15197_v62 = vsel %vm1058_vm3, %v15181_v58, %v20277_v41  ;;  %v20287_v57 = vunpack.i.l.bf16 %v25680_v31  ;;  %v26691_v31 = vld [vmem:[#allocation40_spill] sm:$0xff] }
0x1e06   :  { %v14887_v53 = vpop.f32.mrb[167].mxu0  ;;  %v15186_v46 = vsel %vm271_vm1, %v26691_v31, %v20288_v21 }
0x1e07   :  { %v20349_v28 = vpack.i.bf16 %v18741_v13, %v14887_v53  ;;  %20355 = vrot.lane.b32.xlu1 %v20354_v49, %s21326_s11  ;;  %v15198_v49 = vsel %vm1058_vm3, %v15182_v55, %v20278_v11  ;;  %v15195_v38 = vsel %vm1058_vm3, %v15179_v6, %v20272_v56 }
0x1e09   :  { %20350 = vrot.lane.b32.xlu0 %v20349_v28, %s21326_s11  ;;  %v26689_v28 = vld [vmem:[#allocation42_spill] sm:$0xff] }
0x1e0a   :  { %v15180_v60 = vsel %vm271_vm1, %v26689_v28, %v20263_v27  ;;  %v26697_v28 = vld [vmem:[#allocation61_spill] sm:$0xff] }
0x1e0b   :  { %v15196_v36 = vsel %vm1058_vm3, %v15180_v60, %v20273_v14  ;;  %v26695_v14 = vld [vmem:[#allocation59_spill] sm:$0xff] }
0x1e31   :  { %v20291_v43 = vpop.permute.xlu1 %20290 }
0x1e32   :  { %v20293_v22 = vunpack.i.h.bf16 %v20291_v43  ;;  %v20292_v3 = vunpack.i.l.bf16 %v20291_v43 }
0x1e34   :  { %v15209_v4 = vsel %vm7051_vm4, %v15193_v5, %v20292_v3  ;;  %v15210_v17 = vsel %vm7051_vm4, %v15194_v47, %v20293_v22  ;;  %v15185_v5 = vsel %vm271_vm1, %v26692_v59, %v20287_v57 }
0x1e35   :  { %v15224_v2 = vpack.c.bf16 %v15210_v17, %v15209_v4  ;;  %v20306_v29 = vpop.permute.xlu1 %20305  ;;  %v20296_v52 = vpop.permute.xlu0 %20295 }
0x1e36   :  { %v20298_v0 = vunpack.i.h.bf16 %v20296_v52  ;;  %v20297_v24 = vunpack.i.l.bf16 %v20296_v52  ;;  %v20308_v51 = vunpack.i.h.bf16 %v20306_v29  ;;  %v20307_v44 = vunpack.i.l.bf16 %v20306_v29 }
0x1e38   :  { %v15208_v37 = vsel %vm7051_vm4, %v15192_v25, %v20298_v0  ;;  %v15207_v26 = vsel %vm7051_vm4, %v15191_v12, %v20297_v24  ;;  %v15201_v17 = vsel %vm1058_vm3, %v15185_v5, %v20307_v44  ;;  %v15184_v0 = vsel %vm271_vm1, %v26693_v9, %v20283_v7  ;;  %v26694_v24 = vld [vmem:[#allocation58_spill] sm:$0xff] }
0x1e39   :  { %v15223_v35 = vpack.c.bf16 %v15208_v37, %v15207_v26  ;;  %v20301_v19 = vpop.permute.xlu0 %20300  ;;  %v15183_v12 = vsel %vm271_vm1, %v26694_v24, %v20282_v10  ;;  %v25762_v7 = vld [vmem:[#allocation8 + $0x8] sm:$0xff]  ;;  %v26699_v10 = vld [vmem:[#allocation16_spill] sm:$0xff] }
0x1e3a   :  { %v20311_v8 = vpop.permute.xlu1 %20310  ;;  %v20303_v29 = vunpack.i.h.bf16 %v20301_v19  ;;  %v20302_v52 = vunpack.i.l.bf16 %v20301_v19 }
0x1e3b   :  { %v20313_v30 = vunpack.i.h.bf16 %v20311_v8  ;;  %v20312_v45 = vunpack.i.l.bf16 %v20311_v8  ;;  %18753 = vmatprep.mubr.msk.bf16.mxu0 %vm143_vm0, %v15223_v35 }
0x1e3c   :  { %18754 = vmatmul.mubr.msk.bf16.vlgmr.msra.gmra.mrb[168].mxu0 %vm143_vm0, %v15224_v2  ;;  %v15202_v2 = vsel %vm1058_vm3, %v15186_v46, %v20308_v51  ;;  %v15200_v1 = vsel %vm1058_vm3, %v15184_v0, %v20303_v29  ;;  %v15199_v11 = vsel %vm1058_vm3, %v15183_v12, %v20302_v52  ;;  %v26703_v0 = vld [vmem:[#allocation56_spill] sm:$0xff] }
0x1e3d   :  { %v15213_v13 = vsel %vm7051_vm4, %v15197_v62, %v20312_v45  ;;  %v15214_v53 = vsel %vm7051_vm4, %v15198_v49, %v20313_v30  ;;  %v26696_v62 = vld [vmem:[#allocation60_spill] sm:$0xff] }
0x1e3e   :  { %v15226_v20 = vpack.c.bf16 %v15214_v53, %v15213_v13  ;;  %v20326_v32 = vpop.permute.xlu1 %20325  ;;  %v20316_v39 = vpop.permute.xlu0 %20315 }
0x1e3f   :  { %v20318_v33 = vunpack.i.h.bf16 %v20316_v39  ;;  %v20317_v40 = vunpack.i.l.bf16 %v20316_v39  ;;  %v20328_v19 = vunpack.i.h.bf16 %v20326_v32  ;;  %v20327_v27 = vunpack.i.l.bf16 %v20326_v32 }
0x1e41   :  { %v15212_v43 = vsel %vm7051_vm4, %v15196_v36, %v20318_v33  ;;  %v15211_v34 = vsel %vm7051_vm4, %v15195_v38, %v20317_v40  ;;  %v15190_v56 = vsel %vm271_vm1, %v26695_v14, %v20328_v19  ;;  %v15189_v49 = vsel %vm271_vm1, %v26696_v62, %v20327_v27 }
0x1e42   :  { %v15225_v42 = vpack.c.bf16 %v15212_v43, %v15211_v34  ;;  %v20331_v22 = vpop.permute.xlu1 %20330  ;;  %v20321_v3 = vpop.permute.xlu0 %20320 }
0x1e43   :  { %v20333_v47 = vunpack.i.h.bf16 %v20331_v22  ;;  %v20332_v4 = vunpack.i.l.bf16 %v20331_v22  ;;  %v20323_v8 = vunpack.i.h.bf16 %v20321_v3  ;;  %v20322_v54 = vunpack.i.l.bf16 %v20321_v3 }
0x1e44   :  { %18757 = vmatprep.mubr.msk.bf16.mxu0 %vm143_vm0, %v15225_v42  ;;  %v25766_v42 = vrot.slane %v25762_v7, %v26699_v10 }
0x1e45   :  { %v15218_v18 = vsel %vm7051_vm4, %v15202_v2, %v20333_v47  ;;  %v15217_v23 = vsel %vm7051_vm4, %v15201_v17, %v20332_v4  ;;  %18758 = vmatmul.mubr.msk.bf16.gmra.mrb[172].mxu0 %vm143_vm0, %v15226_v20  ;;  %v15188_v60 = vsel %vm271_vm1, %v26697_v28, %v20323_v8  ;;  %v15187_v6 = vsel %vm271_vm1, %v26698_v15, %v20322_v54  ;;  %v26700_v47 = vld [vmem:[#allocation53_spill] sm:$0xff]  ;;  %v26701_v2 = vld [vmem:[#allocation55_spill] sm:$0xff] }
0x1e46   :  { %v15228_v50 = vpack.c.bf16 %v15218_v18, %v15217_v23  ;;  %v20336_v16 = vpop.permute.xlu0 %20335  ;;  %v20346_v35 = vpop.permute.xlu1 %20345  ;;  %v26702_v18 = vld [vmem:[#allocation54_spill] sm:$0xff]  ;;  %v26706_v54 = vld [vmem:[#allocation19_spill] sm:$0xff] }
0x1e47   :  { %v20338_v25 = vunpack.i.h.bf16 %v20336_v16  ;;  %v20337_v63 = vunpack.i.l.bf16 %v20336_v16  ;;  %v20348_v55 = vunpack.i.h.bf16 %v20346_v35  ;;  %v20347_v48 = vunpack.i.l.bf16 %v20346_v35 }
0x1e49   :  { %v15216_v41 = vsel %vm7051_vm4, %v15200_v1, %v20338_v25  ;;  %v15215_v37 = vsel %vm7051_vm4, %v15199_v11, %v20337_v63  ;;  %v15206_v20 = vsel %vm1058_vm3, %v15190_v56, %v20348_v55  ;;  %v15205_v32 = vsel %vm1058_vm3, %v15189_v49, %v20347_v48 }
0x1e4a   :  { %v15227_v26 = vpack.c.bf16 %v15216_v41, %v15215_v37  ;;  %v20341_v61 = vpop.permute.xlu0 %20340  ;;  %v26704_v37 = vld [vmem:[#allocation20_spill] sm:$0xff] }
0x1e4b   :  { %v20343_v58 = vunpack.i.h.bf16 %v20341_v61  ;;  %v20342_v30 = vunpack.i.l.bf16 %v20341_v61  ;;  %v26705_v61 = vld [vmem:[#allocation57_spill] sm:$0xff] }
0x1e4c   :  { %18761 = vmatprep.mubr.msk.bf16.mxu0 %vm143_vm0, %v15227_v26 }
0x1e4d   :  { %18762 = vmatmul.mubr.msk.bf16.gmra.mrb[176].mxu0 %vm143_vm0, %v15228_v50  ;;  %v15204_v38 = vsel %vm1058_vm3, %v15188_v60, %v20343_v58  ;;  %v15203_v36 = vsel %vm1058_vm3, %v15187_v6, %v20342_v30  ;;  %v26707_v30 = vld [vmem:[#allocation21_spill] sm:$0xff]  ;;  %v26708_v60 = vld [vmem:[#allocation22_spill] sm:$0xff] }
0x1e79   :  { %v20356_v45 = vpop.permute.xlu1 %20355 }
0x1e7a   :  { %v20358_v13 = vunpack.i.h.bf16 %v20356_v45  ;;  %v20357_v53 = vunpack.i.l.bf16 %v20356_v45 }
0x1e7b   :  { %v20351_v39 = vpop.permute.xlu0 %20350 }
0x1e7c   :  { %v15222_v21 = vsel %vm7051_vm4, %v15206_v20, %v20358_v13  ;;  %v15221_v57 = vsel %vm7051_vm4, %v15205_v32, %v20357_v53  ;;  %v20353_v33 = vunpack.i.h.bf16 %v20351_v39  ;;  %v20352_v40 = vunpack.i.l.bf16 %v20351_v39  ;;  %v26709_v39 = vld [vmem:[#allocation26_spill] sm:$0xff] }
0x1e7d   :  { %v15230_v51 = vpack.c.bf16 %v15222_v21, %v15221_v57  ;;  %v26710_v57 = vld [vmem:[#allocation25_spill] sm:$0xff] }
0x1e7e   :  { %v15220_v44 = vsel %vm7051_vm4, %v15204_v38, %v20353_v33  ;;  %v15219_v43 = vsel %vm7051_vm4, %v15203_v36, %v20352_v40  ;;  %v26711_v38 = vld [vmem:[#allocation27_spill] sm:$0xff] }
0x1e7f   :  { %v15229_v34 = vpack.c.bf16 %v15220_v44, %v15219_v43 }
0x1e81   :  { %18765 = vmatprep.mubr.msk.bf16.mxu0 %vm143_vm0, %v15229_v34 }
0x1e82   :  { %18766 = vmatmul.mubr.msk.bf16.gmra.mrb[180].mxu0 %vm143_vm0, %v15230_v51 }
0x1f0f   :  { %v18755_v22 = vpop.f32.mrb[168].mxu0 }
0x1f10   :  { %v15306_v3 = vpop.f32.mrb[169].mxu0  ;;  %v15375_v31 = vadd.f32 %v18755_v22, %v25766_v42 }
0x1f11   :  { %v15373_v46 = vadd.f32 %v25766_v42, %v15306_v3  ;;  %v18756_v59 = vpop.f32.mrb[170].mxu0 }
0x1f12   :  { %v15309_v5 = vpop.f32.mrb[171].mxu0  ;;  %v25775_v29 = vadd.f32 %v15375_v31, %v26701_v2  ;;  %v15376_v52 = vadd.f32 %v18756_v59, %v25766_v42 }
0x1f13   :  { %v25771_v4 = vadd.f32 %v15373_v46, %v26700_v47  ;;  %v15374_v17 = vadd.f32 %v25766_v42, %v15309_v5  ;;  %v26712_v5 = vld [vmem:[#allocation28_spill] sm:$0xff] }
0x1f14   :  { %v25786_v24 = vadd.f32 %v15376_v52, %v26703_v0  ;;  %v15411_v25 = vsel %vm143_vm0, %v25775_v29, 0.0  ;;  %v26713_v52 = vld [vmem:[#allocation45_spill] sm:$0xff]  ;;  %v26715_v0 = vld [vmem:[#allocation46_spill] sm:$0xff] }
0x1f15   :  { %v25779_v23 = vadd.f32 %v15374_v17, %v26702_v18  ;;  %v15405_v50 = vsel %vm143_vm0, %v25771_v4, 0.0 }
0x1f16   :  { %15406 = vadd.xlane.f32.xlu0 %v15405_v50  ;;  %v15414_v27 = vsel %vm143_vm0, %v25786_v24, 0.0  ;;  %v26714_v50 = vld [vmem:[#allocation17_spill] sm:$0xff] }
0x1f17   :  { %v15408_v16 = vsel %vm143_vm0, %v25779_v23, 0.0 }
0x1f18   :  { %v18759_v9 = vpop.f32.mrb[172].mxu0  ;;  %15409 = vadd.xlane.f32.xlu1 %v15408_v16 }
0x1f19   :  { %v15322_v12 = vpop.f32.mrb[173].mxu0  ;;  %v15379_v63 = vadd.f32 %v18759_v9, %v25766_v42 }
0x1f1a   :  { %v15377_v1 = vadd.f32 %v25766_v42, %v15322_v12  ;;  %v18760_v11 = vpop.f32.mrb[174].mxu0  ;;  %15412 = vadd.xlane.f32.xlu0 %v15411_v25 }
0x1f1b   :  { %v15325_v41 = vpop.f32.mrb[175].mxu0  ;;  %v15380_v19 = vadd.f32 %v18760_v11, %v25766_v42  ;;  %v25800_v8 = vadd.f32 %v15379_v63, %v26705_v61 }
0x1f1c   :  { %v25793_v26 = vadd.f32 %v15377_v1, %v26704_v37  ;;  %v15378_v35 = vadd.f32 %v25766_v42, %v15325_v41 }
0x1f1d   :  { %v25808_v45 = vadd.f32 %v15380_v19, %v26707_v30  ;;  %v15423_v53 = vsel %vm143_vm0, %v25800_v8, 0.0 }
0x1f1e   :  { %v25803_v55 = vadd.f32 %v15378_v35, %v26706_v54  ;;  %15415 = vadd.xlane.f32.xlu0 %v15414_v27  ;;  %v15417_v48 = vsel %vm143_vm0, %v25793_v26, 0.0 }
0x1f1f   :  { %15418 = vadd.xlane.f32.xlu1 %v15417_v48  ;;  %v15426_v32 = vsel %vm143_vm0, %v25808_v45, 0.0 }
0x1f20   :  { %v18763_v58 = vpop.f32.mrb[176].mxu0  ;;  %v15420_v56 = vsel %vm143_vm0, %v25803_v55, 0.0 }
0x1f21   :  { %v15338_v14 = vpop.f32.mrb[177].mxu0  ;;  %v15383_v62 = vadd.f32 %v18763_v58, %v25766_v42 }
0x1f22   :  { %v15381_v49 = vadd.f32 %v25766_v42, %v15338_v14  ;;  %v18764_v13 = vpop.f32.mrb[178].mxu0  ;;  %15421 = vadd.xlane.f32.xlu0 %v15420_v56 }
0x1f23   :  { %15424 = vadd.xlane.f32.xlu1 %v15423_v53  ;;  %v15341_v28 = vpop.f32.mrb[179].mxu0  ;;  %v15384_v20 = vadd.f32 %v18764_v13, %v25766_v42  ;;  %v25824_v21 = vadd.f32 %v15383_v62, %v26709_v39 }
0x1f24   :  { %v25817_v15 = vadd.f32 %v15381_v49, %v26708_v60  ;;  %v15382_v6 = vadd.f32 %v25766_v42, %v15341_v28 }
0x1f25   :  { %v25832_v36 = vadd.f32 %v15384_v20, %v26711_v38  ;;  %v15435_v44 = vsel %vm143_vm0, %v25824_v21, 0.0 }
0x1f26   :  { %v25827_v33 = vadd.f32 %v15382_v6, %v26710_v57  ;;  %15427 = vadd.xlane.f32.xlu0 %v15426_v32  ;;  %v15429_v40 = vsel %vm143_vm0, %v25817_v15, 0.0 }
0x1f27   :  { %15430 = vadd.xlane.f32.xlu1 %v15429_v40  ;;  %v15438_v43 = vsel %vm143_vm0, %v25832_v36, 0.0 }
0x1f28   :  { %v15432_v51 = vsel %vm143_vm0, %v25827_v33, 0.0 }
0x1f2a   :  { %15433 = vadd.xlane.f32.xlu0 %v15432_v51 }
0x1f2b   :  { %15436 = vadd.xlane.f32.xlu1 %v15435_v44 }
0x1f2e   :  { %15439 = vadd.xlane.f32.xlu0 %v15438_v43 }
0x1f55   :  { %v18767_v34 = vpop.f32.mrb[180].mxu0 }
0x1f56   :  { %v15354_v22 = vpop.f32.mrb[181].mxu0  ;;  %v15387_v3 = vadd.f32 %v18767_v34, %v25766_v42 }
0x1f57   :  { %v15385_v31 = vadd.f32 %v25766_v42, %v15354_v22  ;;  %v18768_v46 = vpop.f32.mrb[182].mxu0 }
0x1f58   :  { %v15357_v59 = vpop.f32.mrb[183].mxu0  ;;  %v15388_v17 = vadd.f32 %v18768_v46, %v25766_v42  ;;  %v25848_v18 = vadd.f32 %v15387_v3, %v26713_v52 }
0x1f59   :  { %v25843_v47 = vadd.f32 %v15385_v31, %v26712_v5  ;;  %v15386_v2 = vadd.f32 %v25766_v42, %v15357_v59 }
0x1f5a   :  { %v25856_v12 = vadd.f32 %v15388_v17, %v26715_v0  ;;  %v15447_v42 = vsel %vm143_vm0, %v25848_v18, 0.0 }
0x1f5b   :  { %v25851_v16 = vadd.f32 %v15386_v2, %v26714_v50  ;;  %v15441_v9 = vsel %vm143_vm0, %v25843_v47, 0.0 }
0x1f5c   :  { %15442 = vadd.xlane.f32.xlu1 %v15441_v9  ;;  %v15450_v63 = vsel %vm143_vm0, %v25856_v12, 0.0 }
0x1f5d   :  { %v15444_v25 = vsel %vm143_vm0, %v25851_v16, 0.0 }
0x1f5e   :  { %15445 = vadd.xlane.f32.xlu0 %v15444_v25 }
0x1f60   :  { %15448 = vadd.xlane.f32.xlu1 %v15447_v42 }
0x1f62   :  { %15451 = vadd.xlane.f32.xlu0 %v15450_v63 }
0x1fa3   :  { %v15407_v1 = vpop.xlane.xlu0 %15406 }
0x1fa4   :  { %v15453_v11 = vmul.f32 0.03125, %v15407_v1 }
0x1fa5   :  { %v15410_v41 = vpop.xlane.xlu1 %15409 }
0x1fa6   :  { %v25865_v37 = vsub.f32 %v25771_v4, %v15453_v11  ;;  %v15454_v35 = vmul.f32 0.03125, %v15410_v41 }
0x1fa7   :  { %v15413_v19 = vpop.xlane.xlu0 %15412 }
0x1fa8   :  { %v25868_v27 = vsub.f32 %v25779_v23, %v15454_v35  ;;  %v15455_v61 = vmul.f32 0.03125, %v15413_v19  ;;  %v15485_v54 = vmul.f32 %v25865_v37, %v25865_v37  ;;  %v20373_v35 = vld [vmem:[#allocation7 + $0x10] sm:$0xff]   ;;  %v20374_v19 = vld [vmem:[#allocation7 + $0x18] sm:$0xff]  }
0x1fa9   :  { %18769 = vmatprep.subr.bf16.mxu1 %v20373_v35 }
0x1faa   :  { %v25873_v48 = vsub.f32 %v25775_v29, %v15455_v61  ;;  %v15501_v58 = vsel %vm143_vm0, %v15485_v54, 0.0  ;;  %v15486_v30 = vmul.f32 %v25868_v27, %v25868_v27  ;;  %18770 = vmatpush3.bf16.msra.mxu1 %v20373_v35  ;;  %v26716_v35 = vld [vmem:[#allocation18_spill] sm:$0xff] }
0x1fab   :  { %v15416_v14 = vpop.xlane.xlu0 %15415  ;;  %15502 = vadd.xlane.f32.xlu1 %v15501_v58  ;;  %18771 = vmatprep.subr.bf16.mxu1 %v20374_v19 }
0x1fac   :  { %v15456_v4 = vmul.f32 0.03125, %v15416_v14  ;;  %v15419_v56 = vpop.xlane.xlu1 %15418  ;;  %v15504_v62 = vsel %vm143_vm0, %v15486_v30, 0.0  ;;  %v15487_v23 = vmul.f32 %v25873_v48, %v25873_v48 }
0x1fad   :  { %v15457_v49 = vmul.f32 0.03125, %v15419_v56  ;;  %15505 = vadd.xlane.f32.xlu0 %v15504_v62 }
0x1fae   :  { %v25882_v13 = vsub.f32 %v25786_v24, %v15456_v4  ;;  %v15507_v29 = vsel %vm143_vm0, %v15487_v23, 0.0  ;;  %18772 = vmatpush3.bf16.msra.mxu1 %v20374_v19  ;;  %v25976_v19 = vrot.slane %v25762_v7, %v26716_v35 }
0x1faf   :  { %v25886_v53 = vsub.f32 %v25793_v26, %v15457_v49  ;;  %v15422_v28 = vpop.xlane.xlu0 %15421  ;;  %15508 = vadd.xlane.f32.xlu1 %v15507_v29 }
0x1fb0   :  { %v15425_v60 = vpop.xlane.xlu1 %15424  ;;  %v15458_v6 = vmul.f32 0.03125, %v15422_v28  ;;  %v15488_v20 = vmul.f32 %v25882_v13, %v25882_v13 }
0x1fb1   :  { %v15459_v32 = vmul.f32 0.03125, %v15425_v60  ;;  %v15489_v39 = vmul.f32 %v25886_v53, %v25886_v53 }
0x1fb2   :  { %v25893_v57 = vsub.f32 %v25803_v55, %v15458_v6  ;;  %v15510_v24 = vsel %vm143_vm0, %v15488_v20, 0.0 }
0x1fb3   :  { %v25897_v40 = vsub.f32 %v25800_v8, %v15459_v32  ;;  %v15428_v26 = vpop.xlane.xlu0 %15427  ;;  %v15513_v38 = vsel %vm143_vm0, %v15489_v39, 0.0  ;;  %15511 = vadd.xlane.f32.xlu0 %v15510_v24  ;;  %v20376_v39 = vld [vmem:[%s26351_s5 + $0x28] sm:$0xff]  }
0x1fb4   :  { %v15460_v51 = vmul.f32 0.03125, %v15428_v26  ;;  %v15431_v44 = vpop.xlane.xlu1 %15430  ;;  %15514 = vadd.xlane.f32.xlu1 %v15513_v38  ;;  %v15490_v43 = vmul.f32 %v25893_v57, %v25893_v57 }
0x1fb5   :  { %v15461_v34 = vmul.f32 0.03125, %v15431_v44  ;;  %v15491_v55 = vmul.f32 %v25897_v40, %v25897_v40 }
0x1fb6   :  { %v25905_v22 = vsub.f32 %v25808_v45, %v15460_v51  ;;  %v15516_v8 = vsel %vm143_vm0, %v15490_v43, 0.0 }
0x1fb7   :  { %v25909_v3 = vsub.f32 %v25817_v15, %v15461_v34  ;;  %v15434_v31 = vpop.xlane.xlu0 %15433  ;;  %v15519_v46 = vsel %vm143_vm0, %v15491_v55, 0.0  ;;  %15517 = vadd.xlane.f32.xlu0 %v15516_v8 }
0x1fb8   :  { %v15437_v59 = vpop.xlane.xlu1 %15436  ;;  %v15462_v5 = vmul.f32 0.03125, %v15434_v31  ;;  %15520 = vadd.xlane.f32.xlu1 %v15519_v46  ;;  %v15492_v17 = vmul.f32 %v25905_v22, %v25905_v22 }
0x1fb9   :  { %v15463_v2 = vmul.f32 0.03125, %v15437_v59  ;;  %v15493_v45 = vmul.f32 %v25909_v3, %v25909_v3 }
0x1fba   :  { %v25917_v52 = vsub.f32 %v25827_v33, %v15462_v5  ;;  %v15522_v15 = vsel %vm143_vm0, %v15492_v17, 0.0 }
0x1fbb   :  { %v25921_v50 = vsub.f32 %v25824_v21, %v15463_v2  ;;  %v15440_v9 = vpop.xlane.xlu0 %15439  ;;  %v15525_v0 = vsel %vm143_vm0, %v15493_v45, 0.0  ;;  %15523 = vadd.xlane.f32.xlu0 %v15522_v15 }
0x1fbc   :  { %v15464_v25 = vmul.f32 0.03125, %v15440_v9  ;;  %15526 = vadd.xlane.f32.xlu1 %v15525_v0  ;;  %v15494_v42 = vmul.f32 %v25917_v52, %v25917_v52 }
0x1fbd   :  { %v15495_v63 = vmul.f32 %v25921_v50, %v25921_v50 }
0x1fbe   :  { %v25929_v33 = vsub.f32 %v25832_v36, %v15464_v25  ;;  %v15528_v1 = vsel %vm143_vm0, %v15494_v42, 0.0 }
0x1fbf   :  { %v15531_v21 = vsel %vm143_vm0, %v15495_v63, 0.0  ;;  %15529 = vadd.xlane.f32.xlu0 %v15528_v1 }
0x1fc0   :  { %15532 = vadd.xlane.f32.xlu1 %v15531_v21  ;;  %v15496_v11 = vmul.f32 %v25929_v33, %v25929_v33 }
0x1fc2   :  { %v15534_v41 = vsel %vm143_vm0, %v15496_v11, 0.0 }
0x1fc3   :  { %15535 = vadd.xlane.f32.xlu0 %v15534_v41 }
0x1fe9   :  { %v15443_v61 = vpop.xlane.xlu1 %15442 }
0x1fea   :  { %v15465_v54 = vmul.f32 0.03125, %v15443_v61 }
0x1feb   :  { %v15446_v36 = vpop.xlane.xlu0 %15445 }
0x1fec   :  { %v25937_v58 = vsub.f32 %v25843_v47, %v15465_v54  ;;  %v15466_v30 = vmul.f32 0.03125, %v15446_v36 }
0x1fed   :  { %v15449_v14 = vpop.xlane.xlu1 %15448 }
0x1fee   :  { %v25940_v4 = vsub.f32 %v25851_v16, %v15466_v30  ;;  %v15467_v56 = vmul.f32 0.03125, %v15449_v14  ;;  %v15497_v62 = vmul.f32 %v25937_v58, %v25937_v58 }
0x1fef   :  { %v15452_v23 = vpop.xlane.xlu0 %15451 }
0x1ff0   :  { %v25945_v49 = vsub.f32 %v25848_v18, %v15467_v56  ;;  %v15468_v29 = vmul.f32 0.03125, %v15452_v23  ;;  %v15537_v28 = vsel %vm143_vm0, %v15497_v62, 0.0  ;;  %v15498_v47 = vmul.f32 %v25940_v4, %v25940_v4  ;;  %v26717_v56 = vld [vmem:[#allocation15_spill] sm:$0xff] }
0x1ff1   :  { %15538 = vadd.xlane.f32.xlu1 %v15537_v28  ;;  %v26718_v62 = vsub.s32 2, %v26717_v56 }
0x1ff2   :  { %v25951_v60 = vsub.f32 %v25856_v12, %v15468_v29  ;;  %v15540_v16 = vsel %vm143_vm0, %v15498_v47, 0.0  ;;  %v15499_v6 = vmul.f32 %v25945_v49, %v25945_v49  ;;  %v20375_v12 = vld [vmem:[%s26351_s5 + $0x20] sm:$0xff]  }
0x1ff3   :  { %15541 = vadd.xlane.f32.xlu0 %v15540_v16  ;;  %18789 = vmatprep.subr.bf16.mxu0 %v20375_v12  ;;  %v25984_v23 = vrot.slane %v25762_v7, %v26718_v62 }
0x1ff4   :  { %v15543_v20 = vsel %vm143_vm0, %v15499_v6, 0.0  ;;  %v15500_v18 = vmul.f32 %v25951_v60, %v25951_v60  ;;  %18790 = vmatpush3.bf16.msra.mxu0 %v20375_v12 }
0x1ff5   :  { %15544 = vadd.xlane.f32.xlu1 %v15543_v20  ;;  %18791 = vmatprep.subr.bf16.mxu0 %v20376_v39 }
0x1ff6   :  { %v15546_v32 = vsel %vm143_vm0, %v15500_v18, 0.0 }
0x1ff7   :  { %15547 = vadd.xlane.f32.xlu0 %v15546_v32 }
0x1ff8   :  { %18792 = vmatpush3.bf16.msra.mxu0 %v20376_v39 }
0x2038   :  { %v15503_v24 = vpop.xlane.xlu1 %15502 }
0x2039   :  { %v15549_v26 = vmul.f32 0.03125, %v15503_v24 }
0x203a   :  { %v15506_v38 = vpop.xlane.xlu0 %15505 }
0x203b   :  { %v15565_v51 = vadd.f32 1e-05, %v15549_v26  ;;  %v15550_v44 = vmul.f32 0.03125, %v15506_v38 }
0x203c   :  { %v15509_v43 = vpop.xlane.xlu1 %15508 }
0x203d   :  { %21031 = vrsqrt.f32 %v15565_v51  ;;  %v15566_v34 = vadd.f32 1e-05, %v15550_v44  ;;  %v15551_v55 = vmul.f32 0.03125, %v15509_v43  ;;  %vm15583_vm1 = vcmp.eq.f32.partialorder %v15565_v51, inf }
0x203e   :  { %v15586_v21 = vand.u32 2147483648, %v15565_v51  ;;  %vm15585_vm2 = vcmp.eq.f32.partialorder %v15565_v51, 0.0 }
0x203f   :  { %21033 = vrsqrt.f32 %v15566_v34  ;;  %v15567_v31 = vadd.f32 1e-05, %v15551_v55  ;;  %vm15590_vm3 = vcmp.eq.f32.partialorder %v15566_v34, inf  ;;  %vm15592_vm4 = vcmp.eq.f32.partialorder %v15566_v34, 0.0 }
0x2040   :  { %v15512_v8 = vpop.xlane.xlu0 %15511  ;;  %v15593_v29 = vand.u32 2147483648, %v15566_v34 }
0x2041   :  { %v15515_v46 = vpop.xlane.xlu1 %15514  ;;  %v15552_v59 = vmul.f32 0.03125, %v15512_v8  ;;  %21035 = vrsqrt.f32 %v15567_v31  ;;  %vm15597_vm7 = vcmp.eq.f32.partialorder %v15567_v31, inf  ;;  %vm15599_vm8 = vcmp.eq.f32.partialorder %v15567_v31, 0.0 }
0x2042   :  { %v15553_v5 = vmul.f32 0.03125, %v15515_v46  ;;  %v15600_v7 = vand.u32 2147483648, %v15567_v31 }
0x2043   :  { %v25968_v2 = vadd.f32 1e-05, %v15552_v59 }
0x2044   :  { %v25966_v17 = vadd.f32 1e-05, %v15553_v5  ;;  %v15518_v45 = vpop.xlane.xlu0 %15517 }
0x2045   :  { %v15521_v15 = vpop.xlane.xlu1 %15520  ;;  %v15554_v9 = vmul.f32 0.03125, %v15518_v45  ;;  %vm15604_vm11 = vcmp.eq.f32.partialorder %v25968_v2, inf  ;;  %vm15606_vm12 = vcmp.eq.f32.partialorder %v25968_v2, 0.0  ;;  %v15607_v5 = vand.u32 2147483648, %v25968_v2 }
0x2046   :  { %21037 = vrsqrt.f32 %v25966_v17  ;;  %v15555_v42 = vmul.f32 0.03125, %v15521_v15  ;;  %vm15611_vm9 = vcmp.eq.f32.partialorder %v25966_v17, inf  ;;  %vm15613_vm10 = vcmp.eq.f32.partialorder %v25966_v17, 0.0 }
0x2047   :  { %v21032_v0 = vpop.eup %21031  ;;  %21039 = vrsqrt.f32 %v25968_v2  ;;  %v25972_v63 = vadd.f32 1e-05, %v15554_v9  ;;  %v15614_v8 = vand.u32 2147483648, %v25966_v17 }
0x2048   :  { %v15582_v25 = vmul.f32 %v21032_v0, %v15565_v51  ;;  %v15524_v1 = vpop.xlane.xlu0 %15523  ;;  %v25978_v36 = vadd.f32 1e-05, %v15555_v42 }
0x2049   :  { %v15527_v11 = vpop.xlane.xlu1 %15526  ;;  %v15556_v41 = vmul.f32 0.03125, %v15524_v1  ;;  %v21034_v61 = vpop.eup %21033  ;;  %21041 = vrsqrt.f32 %v25972_v63  ;;  %vm15618_vm13 = vcmp.eq.f32.partialorder %v25972_v63, inf  ;;  %vm15620_vm5 = vcmp.eq.f32.partialorder %v25972_v63, 0.0 }
0x204a   :  { %v15584_v54 = vsel %vm15583_vm1, %v15565_v51, %v15582_v25  ;;  %v15589_v14 = vmul.f32 %v21034_v61, %v15566_v34  ;;  %v15557_v6 = vmul.f32 0.03125, %v15527_v11  ;;  %vm15625_vm14 = vcmp.eq.f32.partialorder %v25978_v36, inf }
0x204b   :  { %v15587_v30 = vsel %vm15585_vm2, %v15586_v21, %v15584_v54  ;;  %v21036_v47 = vpop.eup %21035  ;;  %v25987_v20 = vadd.f32 1e-05, %v15556_v41  ;;  %v15621_v21 = vand.u32 2147483648, %v25972_v63  ;;  %vm15627_vm6 = vcmp.eq.f32.partialorder %v25978_v36, 0.0 }
0x204c   :  { %21043 = vrcp.f32 %v15587_v30  ;;  %v15530_v28 = vpop.xlane.xlu0 %15529  ;;  %v15591_v16 = vsel %vm15590_vm3, %v15566_v34, %v15589_v14  ;;  %v15596_v12 = vmul.f32 %v21036_v47, %v15567_v31  ;;  %v25990_v24 = vadd.f32 1e-05, %v15557_v6 }
0x204d   :  { %21045 = vrsqrt.f32 %v25978_v36  ;;  %v15533_v18 = vpop.xlane.xlu1 %15532  ;;  %v15594_v32 = vsel %vm15592_vm4, %v15593_v29, %v15591_v16  ;;  %v15558_v44 = vmul.f32 0.03125, %v15530_v28  ;;  %v15628_v30 = vand.u32 2147483648, %v25978_v36 }
0x204e   :  { %v15559_v39 = vmul.f32 0.03125, %v15533_v18  ;;  %21047 = vrcp.f32 %v15594_v32  ;;  %v15598_v38 = vsel %vm15597_vm7, %v15567_v31, %v15596_v12  ;;  %vm15632_vm1 = vcmp.eq.f32.partialorder %v25987_v20, inf }
0x204f   :  { %21049 = vrsqrt.f32 %v25987_v20  ;;  %v15601_v34 = vsel %vm15599_vm8, %v15600_v7, %v15598_v38  ;;  %v26010_v0 = vadd.f32 1e-05, %v15558_v44  ;;  %vm15634_vm2 = vcmp.eq.f32.partialorder %v25987_v20, 0.0 }
0x2050   :  { %v21038_v26 = vpop.eup %21037  ;;  %v25994_v51 = vadd.f32 1e-05, %v15559_v39  ;;  %21051 = vrsqrt.f32 %v25990_v24  ;;  %v15536_v31 = vpop.xlane.xlu0 %15535  ;;  %vm15639_vm3 = vcmp.eq.f32.partialorder %v25990_v24, inf  ;;  %vm15641_vm4 = vcmp.eq.f32.partialorder %v25990_v24, 0.0 }
0x2051   :  { %v21040_v43 = vpop.eup %21039  ;;  %v15610_v55 = vmul.f32 %v21038_v26, %v25966_v17  ;;  %21053 = vrcp.f32 %v15601_v34  ;;  %v15560_v1 = vmul.f32 0.03125, %v15536_v31 }
0x2052   :  { %v15603_v46 = vmul.f32 %v21040_v43, %v25968_v2  ;;  %21055 = vrsqrt.f32 %v25994_v51  ;;  %vm15653_vm7 = vcmp.eq.f32.partialorder %v25994_v51, inf  ;;  %vm15655_vm8 = vcmp.eq.f32.partialorder %v25994_v51, 0.0 }
0x2053   :  { %v15612_v59 = vsel %vm15611_vm9, %v25966_v17, %v15610_v55  ;;  %v21042_v45 = vpop.eup %21041  ;;  %v26018_v41 = vadd.f32 1e-05, %v15560_v1  ;;  %v15656_v31 = vand.u32 2147483648, %v25994_v51  ;;  %vm15646_vm9 = vcmp.eq.f32.partialorder %v26010_v0, inf }
0x2054   :  { %v15615_v15 = vsel %vm15613_vm10, %v15614_v8, %v15612_v59  ;;  %v15605_v9 = vsel %vm15604_vm11, %v25968_v2, %v15603_v46  ;;  %v15617_v42 = vmul.f32 %v21042_v45, %v25972_v63  ;;  %vm15648_vm10 = vcmp.eq.f32.partialorder %v26010_v0, 0.0 }
0x2055   :  { %21057 = vrcp.f32 %v15615_v15  ;;  %v15608_v25 = vsel %vm15606_vm12, %v15607_v5, %v15605_v9  ;;  %vm15660_vm11 = vcmp.eq.f32.partialorder %v26018_v41, inf  ;;  %vm15662_vm12 = vcmp.eq.f32.partialorder %v26018_v41, 0.0 }
0x2056   :  { %v21044_v17 = vpop.eup %21043  ;;  %21059 = vrcp.f32 %v15608_v25  ;;  %v15619_v2 = vsel %vm15618_vm13, %v25972_v63, %v15617_v42  ;;  %v15635_v63 = vand.u32 2147483648, %v25987_v20 }
0x2057   :  { %v21046_v11 = vpop.eup %21045  ;;  %21061 = vrsqrt.f32 %v26010_v0  ;;  %v15694_v61 = vmul.f32 %v21044_v17, %v25865_v37  ;;  %v15622_v14 = vsel %vm15620_vm5, %v15621_v21, %v15619_v2 }
0x2058   :  { %v15624_v54 = vmul.f32 %v21046_v11, %v25978_v36  ;;  %v21048_v62 = vpop.eup %21047  ;;  %21063 = vrcp.f32 %v15622_v14  ;;  %v15663_v14 = vand.u32 2147483648, %v26018_v41 }
0x2059   :  { %v21050_v29 = vpop.eup %21049  ;;  %21065 = vrsqrt.f32 %v26018_v41  ;;  %v15696_v28 = vmul.f32 %v21048_v62, %v25868_v27  ;;  %v15729_v47 = vmul.f32 %v25976_v19, %v15694_v61 }
0x205a   :  { %v15626_v37 = vsel %vm15625_vm14, %v25978_v36, %v15624_v54  ;;  %v21052_v16 = vpop.eup %21051  ;;  %v15631_v18 = vmul.f32 %v21050_v29, %v25987_v20  ;;  %v15642_v36 = vand.u32 2147483648, %v25990_v24 }
0x205b   :  { %v15629_v6 = vsel %vm15627_vm6, %v15628_v30, %v15626_v37  ;;  %v21054_v32 = vpop.eup %21053  ;;  %v15638_v12 = vmul.f32 %v21052_v16, %v25990_v24  ;;  %v15730_v39 = vmul.f32 %v25976_v19, %v15696_v28  ;;  %v26044_v26 = vadd.f32 %v25984_v23, %v15729_v47 }
0x205c   :  { %21067 = vrcp.f32 %v15629_v6  ;;  %v21056_v7 = vpop.eup %21055  ;;  %v15633_v27 = vsel %vm15632_vm1, %v25987_v20, %v15631_v18  ;;  %v15698_v38 = vmul.f32 %v21054_v32, %v25873_v48 }
0x205d   :  { %v15640_v44 = vsel %vm15639_vm3, %v25990_v24, %v15638_v12  ;;  %v15636_v43 = vsel %vm15634_vm2, %v15635_v63, %v15633_v27  ;;  %v15652_v34 = vmul.f32 %v21056_v7, %v25994_v51  ;;  %v15750_v55 = vadd.f32 %v25984_v23, %v15730_v39 }
0x205e   :  { %v15643_v46 = vsel %vm15641_vm4, %v15642_v36, %v15640_v44  ;;  %21069 = vrcp.f32 %v15636_v43  ;;  %v15731_v24 = vmul.f32 %v25976_v19, %v15698_v38 }
0x205f   :  { %v21058_v8 = vpop.eup %21057  ;;  %21071 = vrcp.f32 %v15643_v46  ;;  %v15654_v48 = vsel %vm15653_vm7, %v25994_v51, %v15652_v34  ;;  %v15765_v20 = vpack.c.bf16 %v15750_v55, %v26044_v26  ;;  %v15649_v51 = vand.u32 2147483648, %v26010_v0 }
0x2060   :  { %v21060_v59 = vpop.eup %21059  ;;  %v15702_v5 = vmul.f32 %v21058_v8, %v25886_v53  ;;  %v15657_v15 = vsel %vm15655_vm8, %v15656_v31, %v15654_v48  ;;  %v26072_v61 = vadd.f32 %v25984_v23, %v15731_v24 }
0x2061   :  { %v21062_v45 = vpop.eup %21061  ;;  %v15700_v9 = vmul.f32 %v21060_v59, %v25882_v13  ;;  %18773 = vmatprep.mubr.msk.bf16.mxu1 %vm143_vm0, %v15765_v20  ;;  %21073 = vrcp.f32 %v15657_v15 }
0x2062   :  { %v15645_v25 = vmul.f32 %v21062_v45, %v26010_v0  ;;  %v21064_v42 = vpop.eup %21063  ;;  %v15733_v21 = vmul.f32 %v25976_v19, %v15702_v5 }
0x2063   :  { %v15732_v1 = vmul.f32 %v25976_v19, %v15700_v9  ;;  %v21066_v17 = vpop.eup %21065  ;;  %v15704_v13 = vmul.f32 %v21064_v42, %v25893_v57 }
0x2064   :  { %v15647_v53 = vsel %vm15646_vm9, %v26010_v0, %v15645_v25  ;;  %v15659_v2 = vmul.f32 %v21066_v17, %v26018_v41  ;;  %v26083_v37 = vadd.f32 %v25984_v23, %v15733_v21 }
0x2065   :  { %v15650_v11 = vsel %vm15648_vm10, %v15649_v51, %v15647_v53  ;;  %v15752_v54 = vadd.f32 %v25984_v23, %v15732_v1  ;;  %v15734_v0 = vmul.f32 %v25976_v19, %v15704_v13 }
0x2066   :  { %v21068_v30 = vpop.eup %21067  ;;  %21075 = vrcp.f32 %v15650_v11  ;;  %v15661_v57 = vsel %vm15660_vm11, %v26018_v41, %v15659_v2 }
0x2067   :  { %v15766_v62 = vpack.c.bf16 %v15752_v54, %v26072_v61  ;;  %v15706_v63 = vmul.f32 %v21068_v30, %v25897_v40  ;;  %v15664_v29 = vsel %vm15662_vm12, %v15663_v14, %v15661_v57  ;;  %v15754_v28 = vadd.f32 %v25984_v23, %v15734_v0 }
0x2068   :  { %v21070_v47 = vpop.eup %21069  ;;  %21077 = vrcp.f32 %v15664_v29 }
0x2069   :  { %18774 = vmatmul.mubr.msk.bf16.vlgmr.msra.gmra.mrb[168].mxu1 %vm143_vm0, %v15766_v62  ;;  %v21072_v16 = vpop.eup %21071  ;;  %v15767_v6 = vpack.c.bf16 %v15754_v28, %v26083_v37  ;;  %v15708_v18 = vmul.f32 %v21070_v47, %v25905_v22  ;;  %v15735_v41 = vmul.f32 %v25976_v19, %v15706_v63 }
0x206a   :  { %v15710_v12 = vmul.f32 %v21072_v16, %v25909_v3 }
0x206b   :  { %18777 = vmatprep.mubr.msk.bf16.mxu1 %vm143_vm0, %v15767_v6  ;;  %v15736_v40 = vmul.f32 %v25976_v19, %v15708_v18  ;;  %v21074_v32 = vpop.eup %21073  ;;  %v26094_v36 = vadd.f32 %v25984_v23, %v15735_v41 }
0x206c   :  { %v15714_v38 = vmul.f32 %v21074_v32, %v25921_v50  ;;  %v15737_v44 = vmul.f32 %v25976_v19, %v15710_v12 }
0x206d   :  { %v15756_v39 = vadd.f32 %v25984_v23, %v15736_v40 }
0x206e   :  { %v15739_v55 = vmul.f32 %v25976_v19, %v15714_v38  ;;  %v26106_v8 = vadd.f32 %v25984_v23, %v15737_v44 }
0x206f   :  { %v15768_v27 = vpack.c.bf16 %v15756_v39, %v26094_v36 }
0x2070   :  { %v21076_v7 = vpop.eup %21075  ;;  %v26112_v31 = vadd.f32 %v25984_v23, %v15739_v55 }
0x2071   :  { %v15712_v22 = vmul.f32 %v21076_v7, %v25917_v52  ;;  %18778 = vmatmul.mubr.msk.bf16.gmra.mrb[172].mxu1 %vm143_vm0, %v15768_v27 }
0x2072   :  { %v21078_v43 = vpop.eup %21077 }
0x2073   :  { %v15738_v34 = vmul.f32 %v25976_v19, %v15712_v22  ;;  %v15716_v3 = vmul.f32 %v21078_v43, %v25929_v33 }
0x2075   :  { %v15758_v46 = vadd.f32 %v25984_v23, %v15738_v34  ;;  %v15740_v50 = vmul.f32 %v25976_v19, %v15716_v3 }
0x2077   :  { %v15769_v52 = vpack.c.bf16 %v15758_v46, %v26106_v8  ;;  %v15760_v59 = vadd.f32 %v25984_v23, %v15740_v50 }
0x2079   :  { %18781 = vmatprep.mubr.msk.bf16.mxu1 %vm143_vm0, %v15769_v52  ;;  %v15770_v33 = vpack.c.bf16 %v15760_v59, %v26112_v31 }
0x207b   :  { %18782 = vmatmul.mubr.msk.bf16.gmra.mrb[176].mxu1 %vm143_vm0, %v15770_v33 }
0x207e   :  { %v15539_v48 = vpop.xlane.xlu1 %15538 }
0x207f   :  { %v15561_v20 = vmul.f32 0.03125, %v15539_v48 }
0x2080   :  { %v15542_v5 = vpop.xlane.xlu0 %15541 }
0x2081   :  { %v15577_v45 = vadd.f32 1e-05, %v15561_v20  ;;  %v15562_v15 = vmul.f32 0.03125, %v15542_v5 }
0x2082   :  { %v15545_v9 = vpop.xlane.xlu1 %15544 }
0x2083   :  { %21079 = vrsqrt.f32 %v15577_v45  ;;  %v15578_v24 = vadd.f32 1e-05, %v15562_v15  ;;  %v15563_v25 = vmul.f32 0.03125, %v15545_v9  ;;  %vm15667_vm13 = vcmp.eq.f32.partialorder %v15577_v45, inf }
0x2084   :  { %v15548_v42 = vpop.xlane.xlu0 %15547  ;;  %v15670_v21 = vand.u32 2147483648, %v15577_v45  ;;  %vm15669_vm14 = vcmp.eq.f32.partialorder %v15577_v45, 0.0 }
0x2085   :  { %v15564_v51 = vmul.f32 0.03125, %v15548_v42  ;;  %21081 = vrsqrt.f32 %v15578_v24  ;;  %v15579_v1 = vadd.f32 1e-05, %v15563_v25  ;;  %vm15674_vm5 = vcmp.eq.f32.partialorder %v15578_v24, inf }
0x2086   :  { %v15677_v14 = vand.u32 2147483648, %v15578_v24  ;;  %vm15676_vm6 = vcmp.eq.f32.partialorder %v15578_v24, 0.0 }
0x2087   :  { %v15580_v17 = vadd.f32 1e-05, %v15564_v51  ;;  %21083 = vrsqrt.f32 %v15579_v1  ;;  %vm15681_vm1 = vcmp.eq.f32.partialorder %v15579_v1, inf  ;;  %v15684_v28 = vand.u32 2147483648, %v15579_v1 }
0x2088   :  { %vm15683_vm2 = vcmp.eq.f32.partialorder %v15579_v1, 0.0 }
0x2089   :  { %21085 = vrsqrt.f32 %v15580_v17  ;;  %vm15688_vm3 = vcmp.eq.f32.partialorder %v15580_v17, inf  ;;  %v15691_v6 = vand.u32 2147483648, %v15580_v17  ;;  %vm15690_vm4 = vcmp.eq.f32.partialorder %v15580_v17, 0.0 }
0x208d   :  { %v21080_v53 = vpop.eup %21079 }
0x208e   :  { %v15666_v13 = vmul.f32 %v21080_v53, %v15577_v45 }
0x208f   :  { %v21082_v11 = vpop.eup %21081 }
0x2090   :  { %v15668_v2 = vsel %vm15667_vm13, %v15577_v45, %v15666_v13  ;;  %v15673_v30 = vmul.f32 %v21082_v11, %v15578_v24 }
0x2091   :  { %v15671_v54 = vsel %vm15669_vm14, %v15670_v21, %v15668_v2  ;;  %v21084_v0 = vpop.eup %21083 }
0x2092   :  { %21087 = vrcp.f32 %v15671_v54  ;;  %v15675_v57 = vsel %vm15674_vm5, %v15578_v24, %v15673_v30  ;;  %v15680_v29 = vmul.f32 %v21084_v0, %v15579_v1 }
0x2093   :  { %v21086_v62 = vpop.eup %21085  ;;  %v15678_v63 = vsel %vm15676_vm6, %v15677_v14, %v15675_v57 }
0x2094   :  { %21089 = vrcp.f32 %v15678_v63  ;;  %v15687_v47 = vmul.f32 %v21086_v62, %v15580_v17  ;;  %v15682_v16 = vsel %vm15681_vm1, %v15579_v1, %v15680_v29 }
0x2095   :  { %v15685_v18 = vsel %vm15683_vm2, %v15684_v28, %v15682_v16 }
0x2096   :  { %v15689_v41 = vsel %vm15688_vm3, %v15580_v17, %v15687_v47  ;;  %21091 = vrcp.f32 %v15685_v18 }
0x2097   :  { %v15692_v40 = vsel %vm15690_vm4, %v15691_v6, %v15689_v41 }
0x2098   :  { %21093 = vrcp.f32 %v15692_v40 }
0x209c   :  { %v21088_v32 = vpop.eup %21087 }
0x209d   :  { %v15718_v12 = vmul.f32 %v21088_v32, %v25937_v58 }
0x209e   :  { %v21090_v39 = vpop.eup %21089 }
0x209f   :  { %v15720_v7 = vmul.f32 %v21090_v39, %v25940_v4  ;;  %v15741_v27 = vmul.f32 %v25976_v19, %v15718_v12 }
0x20a0   :  { %v21092_v38 = vpop.eup %21091 }
0x20a1   :  { %v15742_v22 = vmul.f32 %v25976_v19, %v15720_v7  ;;  %v15722_v43 = vmul.f32 %v21092_v38, %v25945_v49  ;;  %v26124_v34 = vadd.f32 %v25984_v23, %v15741_v27 }
0x20a2   :  { %v21094_v44 = vpop.eup %21093 }
0x20a3   :  { %v15762_v3 = vadd.f32 %v25984_v23, %v15742_v22  ;;  %v15724_v55 = vmul.f32 %v21094_v44, %v25951_v60  ;;  %v15743_v58 = vmul.f32 %v25976_v19, %v15722_v43  ;;  %v20377_v60 = vld [vmem:[%s26351_s5 + $0x30] sm:$0xff]  }
0x20a4   :  { %18793 = vmatprep.subr.bf16.mxu0 %v20377_v60 }
0x20a5   :  { %v15771_v46 = vpack.c.bf16 %v15762_v3, %v26124_v34  ;;  %v15744_v4 = vmul.f32 %v25976_v19, %v15724_v55  ;;  %v26133_v50 = vadd.f32 %v25984_v23, %v15743_v58  ;;  %v20378_v19 = vld [vmem:[%s26351_s5 + $0x38] sm:$0xff]   ;;  %18794 = vmatpush3.bf16.msra.mxu0 %v20377_v60 }
0x20a6   :  { %18795 = vmatprep.subr.bf16.mxu0 %v20378_v19 }
0x20a7   :  { %18785 = vmatprep.mubr.msk.bf16.mxu1 %vm143_vm0, %v15771_v46  ;;  %v15764_v49 = vadd.f32 %v25984_v23, %v15744_v4  ;;  %v21187_v23 = vld [vmem:[%s26352_s6 + $0x2] sm:$0x3] }
0x20a8   :  { %v15781_v59 = vrot.slane %v21187_v23, %v26716_v35 }
0x20a9   :  { %v15772_v52 = vpack.c.bf16 %v15764_v49, %v26133_v50  ;;  %18796 = vmatpush3.bf16.msra.mxu0 %v20378_v19 }
0x20ab   :  { %18786 = vmatmul.mubr.msk.bf16.gmra.mrb[180].mxu1 %vm143_vm0, %v15772_v52 }
0x213c   :  { %v18775_v33 = vpop.f32.mrb[168].mxu1 }
0x213d   :  { %v15861_v48 = vadd.f32 %v18775_v33, %v15781_v59  ;;  %v15852_v20 = vpop.f32.mrb[169].mxu1 }
0x213e   :  { %v15853_v5 = vadd.f32 %v15852_v20, %v15781_v59  ;;  %v18776_v45 = vpop.f32.mrb[170].mxu1 }
0x213f   :  { %v15864_v15 = vadd.f32 %v18776_v45, %v15781_v59  ;;  %v15855_v9 = vpop.f32.mrb[171].mxu1  ;;  %v15917_v25 = vmax.f32 %v15861_v48, 0.0  ;;  %v26719_v45 = vsub.s32 5, %v26717_v56 }
0x2140   :  { %v15856_v24 = vadd.f32 %v15855_v9, %v15781_v59  ;;  %v15915_v51 = vmax.f32 %v15853_v5, 0.0  ;;  %v26156_v5 = vld [vmem:[#allocation8 + $0x8] sm:$0xff] }
0x2141   :  { %v15918_v42 = vmax.f32 %v15864_v15, 0.0  ;;  %v15951_v15 = vrot.slane %v26156_v5, %v26719_v45 }
0x2142   :  { %v15916_v1 = vmax.f32 %v15856_v24, 0.0 }
0x2143   :  { %v15932_v17 = vpack.c.bf16 %v15918_v42, %v15917_v25 }
0x2144   :  { %v15931_v53 = vpack.c.bf16 %v15916_v1, %v15915_v51  ;;  %v18779_v13 = vpop.f32.mrb[172].mxu1 }
0x2145   :  { %v15877_v21 = vadd.f32 %v18779_v13, %v15781_v59  ;;  %v15868_v11 = vpop.f32.mrb[173].mxu1 }
0x2146   :  { %18797 = vmatprep.mubr.msk.bf16.mxu0 %vm7819_vm15, %v15931_v53  ;;  %v15869_v35 = vadd.f32 %v15868_v11, %v15781_v59  ;;  %v18780_v2 = vpop.f32.mrb[174].mxu1 }
0x2147   :  { %18798 = vmatmul.mubr.msk.bf16.vlgmr.msra.gmra.mrb[184].mxu0 %vm7819_vm15, %v15932_v17  ;;  %v15880_v54 = vadd.f32 %v18780_v2, %v15781_v59  ;;  %v15871_v30 = vpop.f32.mrb[175].mxu1  ;;  %v15921_v0 = vmax.f32 %v15877_v21, 0.0 }
0x2148   :  { %v15872_v14 = vadd.f32 %v15871_v30, %v15781_v59  ;;  %v15919_v62 = vmax.f32 %v15869_v35, 0.0 }
0x2149   :  { %v15922_v57 = vmax.f32 %v15880_v54, 0.0 }
0x214a   :  { %v15920_v63 = vmax.f32 %v15872_v14, 0.0 }
0x214b   :  { %v15934_v29 = vpack.c.bf16 %v15922_v57, %v15921_v0 }
0x214c   :  { %v15933_v28 = vpack.c.bf16 %v15920_v63, %v15919_v62 }
0x214e   :  { %v18783_v47 = vpop.f32.mrb[176].mxu1  ;;  %18801 = vmatprep.mubr.msk.bf16.mxu0 %vm7819_vm15, %v15933_v28 }
0x214f   :  { %v15893_v16 = vadd.f32 %v18783_v47, %v15781_v59  ;;  %v15884_v6 = vpop.f32.mrb[177].mxu1  ;;  %18802 = vmatmul.mubr.msk.bf16.gmra.mrb[188].mxu0 %vm7819_vm15, %v15934_v29 }
0x2150   :  { %v15885_v18 = vadd.f32 %v15884_v6, %v15781_v59  ;;  %v18784_v41 = vpop.f32.mrb[178].mxu1 }
0x2151   :  { %v15896_v40 = vadd.f32 %v18784_v41, %v15781_v59  ;;  %v15887_v32 = vpop.f32.mrb[179].mxu1  ;;  %v15925_v39 = vmax.f32 %v15893_v16, 0.0 }
0x2152   :  { %v15888_v12 = vadd.f32 %v15887_v32, %v15781_v59  ;;  %v15923_v27 = vmax.f32 %v15885_v18, 0.0 }
0x2153   :  { %v15926_v7 = vmax.f32 %v15896_v40, 0.0 }
0x2154   :  { %v15924_v38 = vmax.f32 %v15888_v12, 0.0 }
0x2155   :  { %v15936_v22 = vpack.c.bf16 %v15926_v7, %v15925_v39 }
0x2156   :  { %v15935_v44 = vpack.c.bf16 %v15924_v38, %v15923_v27 }
0x2158   :  { %18805 = vmatprep.mubr.msk.bf16.mxu0 %vm7819_vm15, %v15935_v44 }
0x2159   :  { %18806 = vmatmul.mubr.msk.bf16.gmra.mrb[192].mxu0 %vm7819_vm15, %v15936_v22 }
0x217e   :  { %v18787_v43 = vpop.f32.mrb[180].mxu1 }
0x217f   :  { %v15909_v3 = vadd.f32 %v18787_v43, %v15781_v59  ;;  %v15900_v55 = vpop.f32.mrb[181].mxu1 }
0x2180   :  { %v15901_v58 = vadd.f32 %v15900_v55, %v15781_v59  ;;  %v18788_v46 = vpop.f32.mrb[182].mxu1 }
0x2181   :  { %v15912_v4 = vadd.f32 %v18788_v46, %v15781_v59  ;;  %v15903_v49 = vpop.f32.mrb[183].mxu1  ;;  %v15929_v60 = vmax.f32 %v15909_v3, 0.0 }
0x2182   :  { %v15904_v52 = vadd.f32 %v15903_v49, %v15781_v59  ;;  %v15927_v23 = vmax.f32 %v15901_v58, 0.0 }
0x2183   :  { %v15930_v19 = vmax.f32 %v15912_v4, 0.0 }
0x2184   :  { %v15928_v33 = vmax.f32 %v15904_v52, 0.0 }
0x2185   :  { %v15938_v48 = vpack.c.bf16 %v15930_v19, %v15929_v60 }
0x2186   :  { %v15937_v20 = vpack.c.bf16 %v15928_v33, %v15927_v23 }
0x2188   :  { %18809 = vmatprep.mubr.msk.bf16.mxu0 %vm7819_vm15, %v15937_v20 }
0x2189   :  { %18810 = vmatmul.mubr.msk.bf16.gmra.mrb[196].mxu0 %vm7819_vm15, %v15938_v48 }
0x221a   :  { %v18799_v9 = vpop.f32.mrb[184].mxu0 }
0x221b   :  { %v16042_v24 = vadd.f32 %v18799_v9, %v15951_v15  ;;  %v16034_v25 = vpop.f32.mrb[185].mxu0 }
0x221c   :  { %v16035_v59 = vadd.f32 %v16034_v25, %v15951_v15  ;;  %v18800_v42 = vpop.f32.mrb[186].mxu0 }
0x221d   :  { %v16090_v51 = vadd.f32 %v16042_v24, %v26072_v61  ;;  %v16037_v1 = vpop.f32.mrb[187].mxu0 }
0x221e   :  { %v16089_v17 = vadd.f32 %v16035_v59, %v26044_v26 }
0x221f   :  { %v16100_v53 = vsel %vm143_vm0, %v16090_v51, 0.0 }
0x2220   :  { %16101 = vadd.xlane.f32.xlu1 %v16100_v53  ;;  %v16097_v21 = vsel %vm143_vm0, %v16089_v17, 0.0 }
0x2222   :  { %v18803_v13 = vpop.f32.mrb[188].mxu0 }
0x2223   :  { %v16056_v11 = vadd.f32 %v18803_v13, %v15951_v15  ;;  %v16048_v35 = vpop.f32.mrb[189].mxu0 }
0x2224   :  { %16098 = vadd.xlane.f32.xlu1 %v16097_v21  ;;  %v16049_v2 = vadd.f32 %v16048_v35, %v15951_v15  ;;  %v18804_v54 = vpop.f32.mrb[190].mxu0 }
0x2225   :  { %v16092_v30 = vadd.f32 %v16056_v11, %v26094_v36  ;;  %v16051_v14 = vpop.f32.mrb[191].mxu0 }
0x2226   :  { %v16091_v0 = vadd.f32 %v16049_v2, %v26083_v37 }
0x2227   :  { %v16106_v61 = vsel %vm143_vm0, %v16092_v30, 0.0 }
0x2228   :  { %16107 = vadd.xlane.f32.xlu0 %v16106_v61  ;;  %v16103_v26 = vsel %vm143_vm0, %v16091_v0, 0.0 }
0x222c   :  { %v18807_v57 = vpop.f32.mrb[192].mxu0  ;;  %16104 = vadd.xlane.f32.xlu0 %v16103_v26 }
0x222d   :  { %v16070_v62 = vadd.f32 %v18807_v57, %v15951_v15  ;;  %v16062_v63 = vpop.f32.mrb[193].mxu0 }
0x222e   :  { %v16063_v29 = vadd.f32 %v16062_v63, %v15951_v15  ;;  %v18808_v28 = vpop.f32.mrb[194].mxu0 }
0x222f   :  { %v16094_v47 = vadd.f32 %v16070_v62, %v26112_v31  ;;  %v16065_v16 = vpop.f32.mrb[195].mxu0 }
0x2230   :  { %v16093_v6 = vadd.f32 %v16063_v29, %v26106_v8 }
0x2231   :  { %v16112_v36 = vsel %vm143_vm0, %v16094_v47, 0.0 }
0x2232   :  { %16113 = vadd.xlane.f32.xlu0 %v16112_v36  ;;  %v16109_v37 = vsel %vm143_vm0, %v16093_v6, 0.0 }
0x2233   :  { %16110 = vadd.xlane.f32.xlu1 %v16109_v37 }
0x225c   :  { %v18811_v18 = vpop.f32.mrb[196].mxu0 }
0x225d   :  { %v16084_v41 = vadd.f32 %v18811_v18, %v15951_v15  ;;  %v16076_v40 = vpop.f32.mrb[197].mxu0 }
0x225e   :  { %v16077_v32 = vadd.f32 %v16076_v40, %v15951_v15  ;;  %v18812_v12 = vpop.f32.mrb[198].mxu0 }
0x225f   :  { %v16096_v39 = vadd.f32 %v16084_v41, %v26133_v50  ;;  %v16079_v7 = vpop.f32.mrb[199].mxu0 }
0x2260   :  { %v16095_v27 = vadd.f32 %v16077_v32, %v26124_v34 }
0x2261   :  { %v16118_v31 = vsel %vm143_vm0, %v16096_v39, 0.0 }
0x2262   :  { %16119 = vadd.xlane.f32.xlu0 %v16118_v31  ;;  %v16115_v8 = vsel %vm143_vm0, %v16095_v27, 0.0 }
0x2263   :  { %16116 = vadd.xlane.f32.xlu1 %v16115_v8 }
0x22ad   :  { %v16102_v38 = vpop.xlane.xlu1 %16101 }
0x22ae   :  { %v16122_v22 = vmul.f32 0.03125, %v16102_v38 }
0x22b0   :  { %v26177_v44 = vsub.f32 %v16090_v51, %v16122_v22 }
0x22b1   :  { %v16099_v43 = vpop.xlane.xlu1 %16098 }
0x22b2   :  { %v16121_v3 = vmul.f32 0.03125, %v16099_v43  ;;  %v16138_v55 = vmul.f32 %v26177_v44, %v26177_v44 }
0x22b4   :  { %v26181_v58 = vsub.f32 %v16089_v17, %v16121_v3  ;;  %v16148_v50 = vsel %vm143_vm0, %v16138_v55, 0.0 }
0x22b5   :  { %16149 = vadd.xlane.f32.xlu1 %v16148_v50  ;;  %v16108_v34 = vpop.xlane.xlu0 %16107 }
0x22b6   :  { %v16137_v46 = vmul.f32 %v26181_v58, %v26181_v58  ;;  %v16124_v4 = vmul.f32 0.03125, %v16108_v34 }
0x22b8   :  { %v16145_v49 = vsel %vm143_vm0, %v16137_v46, 0.0  ;;  %v26187_v52 = vsub.f32 %v16092_v30, %v16124_v4 }
0x22b9   :  { %16146 = vadd.xlane.f32.xlu1 %v16145_v49  ;;  %v16105_v60 = vpop.xlane.xlu0 %16104 }
0x22ba   :  { %v16123_v19 = vmul.f32 0.03125, %v16105_v60  ;;  %v16140_v23 = vmul.f32 %v26187_v52, %v26187_v52 }
0x22bc   :  { %v26191_v33 = vsub.f32 %v16091_v0, %v16123_v19  ;;  %v16154_v48 = vsel %vm143_vm0, %v16140_v23, 0.0 }
0x22bd   :  { %16155 = vadd.xlane.f32.xlu0 %v16154_v48 }
0x22be   :  { %v16139_v20 = vmul.f32 %v26191_v33, %v26191_v33 }
0x22bf   :  { %v16114_v45 = vpop.xlane.xlu0 %16113 }
0x22c0   :  { %v16126_v15 = vmul.f32 0.03125, %v16114_v45  ;;  %v16111_v9 = vpop.xlane.xlu1 %16110  ;;  %v16151_v24 = vsel %vm143_vm0, %v16139_v20, 0.0 }
0x22c1   :  { %v16125_v25 = vmul.f32 0.03125, %v16111_v9  ;;  %16152 = vadd.xlane.f32.xlu0 %v16151_v24 }
0x22c2   :  { %v26197_v59 = vsub.f32 %v16094_v47, %v16126_v15 }
0x22c3   :  { %v26199_v42 = vsub.f32 %v16093_v6, %v16125_v25 }
0x22c4   :  { %v16142_v51 = vmul.f32 %v26197_v59, %v26197_v59 }
0x22c5   :  { %v16141_v1 = vmul.f32 %v26199_v42, %v26199_v42 }
0x22c6   :  { %v16160_v17 = vsel %vm143_vm0, %v16142_v51, 0.0 }
0x22c7   :  { %16161 = vadd.xlane.f32.xlu0 %v16160_v17  ;;  %v16157_v53 = vsel %vm143_vm0, %v16141_v1, 0.0 }
0x22c8   :  { %16158 = vadd.xlane.f32.xlu1 %v16157_v53 }
0x22ef   :  { %v16120_v13 = vpop.xlane.xlu0 %16119 }
0x22f0   :  { %v16128_v21 = vmul.f32 0.03125, %v16120_v13  ;;  %v16117_v11 = vpop.xlane.xlu1 %16116 }
0x22f1   :  { %v16127_v35 = vmul.f32 0.03125, %v16117_v11 }
0x22f2   :  { %v26207_v2 = vsub.f32 %v16096_v39, %v16128_v21 }
0x22f3   :  { %v26209_v54 = vsub.f32 %v16095_v27, %v16127_v35 }
0x22f4   :  { %v16144_v30 = vmul.f32 %v26207_v2, %v26207_v2 }
0x22f5   :  { %v16143_v14 = vmul.f32 %v26209_v54, %v26209_v54 }
0x22f6   :  { %v16166_v0 = vsel %vm143_vm0, %v16144_v30, 0.0 }
0x22f7   :  { %16167 = vadd.xlane.f32.xlu0 %v16166_v0  ;;  %v16163_v61 = vsel %vm143_vm0, %v16143_v14, 0.0 }
0x22f8   :  { %16164 = vadd.xlane.f32.xlu1 %v16163_v61 }
0x2342   :  { %v16150_v26 = vpop.xlane.xlu1 %16149 }
0x2343   :  { %v16170_v29 = vmul.f32 0.03125, %v16150_v26 }
0x2345   :  { %v16178_v6 = vadd.f32 1e-05, %v16170_v29 }
0x2346   :  { %v16147_v62 = vpop.xlane.xlu1 %16146 }
0x2347   :  { %v16169_v47 = vmul.f32 0.03125, %v16147_v62  ;;  %21095 = vrsqrt.f32 %v16178_v6  ;;  %vm16194_vm15 = vcmp.eq.f32.partialorder %v16178_v6, inf  ;;  %v16197_v34 = vand.u32 2147483648, %v16178_v6 }
0x2348   :  { %vm16196_vm8 = vcmp.eq.f32.partialorder %v16178_v6, 0.0 }
0x2349   :  { %v16177_v18 = vadd.f32 1e-05, %v16169_v47 }
0x234a   :  { %v16156_v57 = vpop.xlane.xlu0 %16155 }
0x234b   :  { %v16172_v41 = vmul.f32 0.03125, %v16156_v57  ;;  %vm16187_vm9 = vcmp.eq.f32.partialorder %v16177_v18, inf  ;;  %v16190_v20 = vand.u32 2147483648, %v16177_v18  ;;  %vm16189_vm11 = vcmp.eq.f32.partialorder %v16177_v18, 0.0 }
0x234d   :  { %v16180_v12 = vadd.f32 1e-05, %v16172_v41 }
0x234e   :  { %v16153_v63 = vpop.xlane.xlu0 %16152 }
0x234f   :  { %v16171_v28 = vmul.f32 0.03125, %v16153_v63  ;;  %vm16208_vm12 = vcmp.eq.f32.partialorder %v16180_v12, inf  ;;  %v16211_v21 = vand.u32 2147483648, %v16180_v12  ;;  %vm16210_vm5 = vcmp.eq.f32.partialorder %v16180_v12, 0.0 }
0x2351   :  { %v16179_v36 = vadd.f32 1e-05, %v16171_v28  ;;  %v21096_v27 = vpop.eup %21095 }
0x2352   :  { %v16193_v38 = vmul.f32 %v21096_v27, %v16178_v6 }
0x2353   :  { %21097 = vrsqrt.f32 %v16179_v36  ;;  %vm16201_vm7 = vcmp.eq.f32.partialorder %v16179_v36, inf  ;;  %v16204_v23 = vand.u32 2147483648, %v16179_v36  ;;  %vm16203_vm10 = vcmp.eq.f32.partialorder %v16179_v36, 0.0 }
0x2354   :  { %v16162_v40 = vpop.xlane.xlu0 %16161  ;;  %21099 = vrsqrt.f32 %v16177_v18  ;;  %v16195_v50 = vsel %vm16194_vm15, %v16178_v6, %v16193_v38  ;;  %v26720_v6 = vsub.s32 3, %v26717_v56 }
0x2355   :  { %v16159_v16 = vpop.xlane.xlu1 %16158  ;;  %v16174_v39 = vmul.f32 0.03125, %v16162_v40  ;;  %v16198_v49 = vsel %vm16196_vm8, %v16197_v34, %v16195_v50  ;;  %vm16294_vm8 = vcmask 1042434  }
0x2356   :  { %v16173_v37 = vmul.f32 0.03125, %v16159_v16 }
0x2357   :  { %v16182_v7 = vadd.f32 1e-05, %v16174_v39 }
0x2358   :  { %v16181_v32 = vadd.f32 1e-05, %v16173_v37 }
0x2359   :  { %vm16222_vm6 = vcmp.eq.f32.partialorder %v16182_v7, inf  ;;  %v16225_v61 = vand.u32 2147483648, %v16182_v7  ;;  %vm16224_vm1 = vcmp.eq.f32.partialorder %v16182_v7, 0.0 }
0x235a   :  { %21101 = vrsqrt.f32 %v16181_v32  ;;  %vm16215_vm13 = vcmp.eq.f32.partialorder %v16181_v32, inf  ;;  %v16218_v53 = vand.u32 2147483648, %v16181_v32  ;;  %vm16217_vm14 = vcmp.eq.f32.partialorder %v16181_v32, 0.0 }
0x235b   :  { %21103 = vrsqrt.f32 %v16180_v12 }
0x235c   :  { %21105 = vrsqrt.f32 %v16182_v7 }
0x235d   :  { %v21098_v31 = vpop.eup %21097  ;;  %21107 = vrcp.f32 %v16198_v49 }
0x235e   :  { %v21100_v8 = vpop.eup %21099  ;;  %v16200_v22 = vmul.f32 %v21098_v31, %v16179_v36 }
0x235f   :  { %v16186_v3 = vmul.f32 %v21100_v8, %v16177_v18 }
0x2360   :  { %v16202_v46 = vsel %vm16201_vm7, %v16179_v36, %v16200_v22  ;;  %v16260_v36 = vrot.slane %v26156_v5, %v26720_v6  ;;  %vm16291_vm7 = vcmask 1041409  }
0x2361   :  { %v16188_v60 = vsel %vm16187_vm9, %v16177_v18, %v16186_v3  ;;  %v16205_v45 = vsel %vm16203_vm10, %v16204_v23, %v16202_v46  ;;  %vm16297_vm9 = vcmask 1043459   ;;  %vm16300_vm10 = vcmask 1044484  }
0x2362   :  { %v16191_v9 = vsel %vm16189_vm11, %v16190_v20, %v16188_v60  ;;  %21109 = vrcp.f32 %v16205_v45  ;;  %vm16303_vm11 = vcmask 1045509  }
0x2363   :  { %21111 = vrcp.f32 %v16191_v9 }
0x2364   :  { %v21102_v43 = vpop.eup %21101 }
0x2365   :  { %v21104_v55 = vpop.eup %21103  ;;  %v16214_v4 = vmul.f32 %v21102_v43, %v16181_v32 }
0x2366   :  { %v16207_v19 = vmul.f32 %v21104_v55, %v16180_v12  ;;  %v21106_v48 = vpop.eup %21105 }
0x2367   :  { %v16216_v24 = vsel %vm16215_vm13, %v16181_v32, %v16214_v4  ;;  %v16221_v17 = vmul.f32 %v21106_v48, %v16182_v7  ;;  %v21108_v57 = vpop.eup %21107  ;;  %vm16309_vm13 = vcmask 1047559  }
0x2368   :  { %v16209_v1 = vsel %vm16208_vm12, %v16180_v12, %v16207_v19  ;;  %v16219_v35 = vsel %vm16217_vm14, %v16218_v53, %v16216_v24  ;;  %v16244_v40 = vmul.f32 %v21108_v57, %v26177_v44  ;;  %v26721_v44 = vsub.s32 4, %v26717_v56 }
0x2369   :  { %v16212_v14 = vsel %vm16210_vm5, %v16211_v21, %v16209_v1  ;;  %v16223_v0 = vsel %vm16222_vm6, %v16182_v7, %v16221_v17  ;;  %vm16306_vm12 = vcmask 1046534  }
0x236a   :  { %v16226_v26 = vsel %vm16224_vm1, %v16225_v61, %v16223_v0  ;;  %v16262_v43 = vmul.f32 %v16260_v36, %v16244_v40  ;;  %v16272_v3 = vrot.slane %v26156_v5, %v26721_v44 }
0x236c   :  { %v21110_v62 = vpop.eup %21109  ;;  %v16274_v49 = vadd.f32 %v16272_v3, %v16262_v43 }
0x236d   :  { %v21112_v63 = vpop.eup %21111  ;;  %v16246_v16 = vmul.f32 %v21110_v62, %v26191_v33 }
0x236e   :  { %v16242_v33 = vmul.f32 %v21112_v63, %v26181_v58 }
0x236f   :  { %v16263_v38 = vmul.f32 %v16260_v36, %v16246_v16 }
0x2370   :  { %v16261_v50 = vmul.f32 %v16260_v36, %v16242_v33 }
0x2371   :  { %v16275_v46 = vadd.f32 %v16272_v3, %v16263_v38 }
0x2372   :  { %v16273_v60 = vadd.f32 %v16272_v3, %v16261_v50 }
0x2384   :  { %v16168_v15 = vpop.xlane.xlu0 %16167 }
0x2385   :  { %v16176_v25 = vmul.f32 0.03125, %v16168_v15  ;;  %v16165_v51 = vpop.xlane.xlu1 %16164 }
0x2386   :  { %v16175_v13 = vmul.f32 0.03125, %v16165_v51 }
0x2387   :  { %v16184_v11 = vadd.f32 1e-05, %v16176_v25 }
0x2388   :  { %v16183_v30 = vadd.f32 1e-05, %v16175_v13 }
0x2389   :  { %21113 = vrsqrt.f32 %v16184_v11  ;;  %vm16236_vm2 = vcmp.eq.f32.partialorder %v16184_v11, inf  ;;  %v16239_v18 = vand.u32 2147483648, %v16184_v11  ;;  %vm16238_vm3 = vcmp.eq.f32.partialorder %v16184_v11, 0.0 }
0x238a   :  { %21115 = vrsqrt.f32 %v16183_v30  ;;  %vm16229_vm4 = vcmp.eq.f32.partialorder %v16183_v30, inf  ;;  %v16232_v39 = vand.u32 2147483648, %v16183_v30  ;;  %vm16231_vm15 = vcmp.eq.f32.partialorder %v16183_v30, 0.0 }
0x238b   :  { %21117 = vrcp.f32 %v16219_v35 }
0x238c   :  { %21119 = vrcp.f32 %v16212_v14 }
0x238d   :  { %21121 = vrcp.f32 %v16226_v26 }
0x2393   :  { %v21114_v29 = vpop.eup %21113 }
0x2394   :  { %v21116_v28 = vpop.eup %21115  ;;  %v16235_v47 = vmul.f32 %v21114_v29, %v16184_v11 }
0x2395   :  { %v21118_v37 = vpop.eup %21117  ;;  %v16228_v41 = vmul.f32 %v21116_v28, %v16183_v30 }
0x2396   :  { %v21120_v32 = vpop.eup %21119  ;;  %v16237_v12 = vsel %vm16236_vm2, %v16184_v11, %v16235_v47  ;;  %v16250_v8 = vmul.f32 %v21118_v37, %v26199_v42  ;;  %v16293_v42 = vrot.slane %v16275_v46, 6 }
0x2397   :  { %v16240_v7 = vsel %vm16238_vm3, %v16239_v18, %v16237_v12  ;;  %v16230_v27 = vsel %vm16229_vm4, %v16183_v30, %v16228_v41  ;;  %v16248_v22 = vmul.f32 %v21120_v32, %v26187_v52  ;;  %v21122_v55 = vpop.eup %21121  ;;  %v16290_v52 = vrot.slane %v16274_v49, 7 }
0x2398   :  { %21123 = vrcp.f32 %v16240_v7  ;;  %v16233_v31 = vsel %vm16231_vm15, %v16232_v39, %v16230_v27  ;;  %v16265_v34 = vmul.f32 %v16260_v36, %v16250_v8  ;;  %v16252_v4 = vmul.f32 %v21122_v55, %v26197_v59 }
0x2399   :  { %21125 = vrcp.f32 %v16233_v31  ;;  %v16264_v58 = vmul.f32 %v16260_v36, %v16248_v22  ;;  %v16292_v15 = vsel %vm16291_vm7, %v16290_v52, %v16273_v60 }
0x239a   :  { %v16277_v19 = vadd.f32 %v16272_v3, %v16265_v34  ;;  %v16266_v23 = vmul.f32 %v16260_v36, %v16252_v4  ;;  %v16295_v59 = vsel %vm16294_vm8, %v16293_v42, %v16292_v15  ;;  %v21327_v15 = vmov 0  }
0x239b   :  { %v16276_v48 = vadd.f32 %v16272_v3, %v16264_v58  ;;  %16583 = vmatprep.mubr.bf16.mxu1 %v21327_v15 }
0x239c   :  { %v16299_v24 = vrot.slane %v16277_v19, 4  ;;  %v16278_v51 = vadd.f32 %v16272_v3, %v16266_v23 }
0x239d   :  { %v16296_v1 = vrot.slane %v16276_v48, 5 }
0x239f   :  { %v16298_v13 = vsel %vm16297_vm9, %v16296_v1, %v16295_v59  ;;  %v20387_v59 = vld [vmem:[%s26354_s8 + $0xc] ss:$16 sps:$4 sm:$0xff]  }
0x23a0   :  { %v16301_v11 = vsel %vm16300_vm10, %v16299_v24, %v16298_v13 }
0x23a2   :  { %v21124_v20 = vpop.eup %21123 }
0x23a3   :  { %v21126_v45 = vpop.eup %21125  ;;  %v16256_v5 = vmul.f32 %v21124_v20, %v26207_v2  ;;  %v16302_v2 = vrot.slane %v16278_v51, 3  ;;  %v20379_v20 = vld [vmem:[%s26354_s8] ss:$16 sps:$4 sm:$0xff]  }
0x23a4   :  { %v16254_v9 = vmul.f32 %v21126_v45, %v26209_v54  ;;  %v20381_v45 = vld [vmem:[%s26354_s8 + $0x4] ss:$16 sps:$4 sm:$0xff]  }
0x23a5   :  { %v16268_v25 = vmul.f32 %v16260_v36, %v16256_v5  ;;  %v16304_v54 = vsel %vm16303_vm11, %v16302_v2, %v16301_v11  ;;  %v20384_v5 = vld [vmem:[%s26354_s8 + $0x24] ss:$16 sps:$4 sm:$0xff]   ;;  %16551 = vmatprep.subr.bf16.mxu1 %v20381_v45 }
0x23a6   :  { %v16267_v17 = vmul.f32 %v16260_v36, %v16254_v9  ;;  %16552 = vmatpush1.bf16.msra.mxu1 %v20379_v20  ;;  %v20382_v9 = vld [vmem:[%s26354_s8 + $0x20] ss:$16 sps:$4 sm:$0xff]  }
0x23a7   :  { %v16280_v53 = vadd.f32 %v16272_v3, %v16268_v25  ;;  %16553 = vmatprep.subr.bf16.mxu1 %v20384_v5 }
0x23a8   :  { %v16279_v21 = vadd.f32 %v16272_v3, %v16267_v17 }
0x23a9   :  { %v16308_v30 = vrot.slane %v16280_v53, 1 }
0x23aa   :  { %v16305_v35 = vrot.slane %v16279_v21, 2  ;;  %16554 = vmatpush1.bf16.msra.mxu1 %v20382_v9 }
0x23ab   :  { %16592 = vmatprep.subr.bf16.mxu1 %v20387_v59 }
0x23ac   :  { %v16307_v14 = vsel %vm16306_vm12, %v16305_v35, %v16304_v54 }
0x23ad   :  { %v16310_v0 = vsel %vm16309_vm13, %v16308_v30, %v16307_v14 }
0x23ae   :  { %v16312_v61 = vsel %vm143_vm0, %v16310_v0, 0.0 }
0x23af   :  { %16313 = vadd.xlane.f32.xlu1 %v16312_v61  ;;  %v16417_v61 = vsub.s32 6, %v26717_v56 }
0x243c   :  { %v16314_v26 = vpop.xlane.xlu1 %16313 }
0x243d   :  { %v16315_v57 = vmul.f32 0.03125, %v16314_v26  ;;  %v16281_v26 = vld [vmem:[#allocation8] sm:$0xff] }
0x243f   :  { %v16317_v62 = vrot.slane %v16315_v57, 1  ;;  %v16318_v63 = vrot.slane %v16315_v57, 2  ;;  %v16319_v29 = vrot.slane %v16315_v57, 3  ;;  %v16320_v28 = vrot.slane %v16315_v57, 4 }
0x2440   :  { %v16321_v47 = vrot.slane %v16315_v57, 5  ;;  %v16322_v16 = vrot.slane %v16315_v57, 6  ;;  %v16323_v6 = vrot.slane %v16315_v57, 7  ;;  %v26239_v36 = vsub.f32 %v16273_v60, %v16315_v57 }
0x2441   :  { %v26241_v37 = vsub.f32 %v16274_v49, %v16317_v62  ;;  %v26243_v18 = vsub.f32 %v16275_v46, %v16318_v63  ;;  %v26245_v41 = vsub.f32 %v16276_v48, %v16319_v29  ;;  %v26247_v40 = vsub.f32 %v16277_v19, %v16320_v28 }
0x2442   :  { %v26249_v32 = vsub.f32 %v16278_v51, %v16321_v47  ;;  %v26251_v12 = vsub.f32 %v16279_v21, %v16322_v16  ;;  %v26253_v39 = vsub.f32 %v16280_v53, %v16323_v6  ;;  %v16340_v8 = vmul.f32 %v26239_v36, %v26239_v36 }
0x2443   :  { %v16341_v7 = vmul.f32 %v26241_v37, %v26241_v37  ;;  %v16342_v27 = vmul.f32 %v26243_v18, %v26243_v18  ;;  %v16343_v33 = vmul.f32 %v26245_v41, %v26245_v41  ;;  %v16344_v31 = vmul.f32 %v26247_v40, %v26247_v40 }
0x2444   :  { %v16345_v38 = vmul.f32 %v26249_v32, %v26249_v32  ;;  %v16346_v44 = vmul.f32 %v26251_v12, %v26251_v12  ;;  %v16347_v3 = vmul.f32 %v26253_v39, %v26253_v39  ;;  %v16429_v57 = vsub.s32 7, %v26717_v56 }
0x2445   :  { %v16356_v22 = vrot.slane %v16341_v7, 7  ;;  %v16358_v43 = vrot.slane %v16342_v27, 6  ;;  %v16360_v50 = vrot.slane %v16343_v33, 5  ;;  %v16362_v46 = vrot.slane %v16344_v31, 4 }
0x2446   :  { %v16364_v58 = vrot.slane %v16345_v38, 3  ;;  %v16366_v60 = vrot.slane %v16346_v44, 2  ;;  %v16368_v42 = vrot.slane %v16347_v3, 1  ;;  %v16418_v62 = vrot.slane %v16281_v26, %v16417_v61 }
0x2447   :  { %v16357_v55 = vsel %vm16291_vm7, %v16356_v22, %v16340_v8  ;;  %v16430_v47 = vrot.slane %v16281_v26, %v16429_v57 }
0x2448   :  { %v16359_v34 = vsel %vm16294_vm8, %v16358_v43, %v16357_v55 }
0x2449   :  { %v16361_v4 = vsel %vm16297_vm9, %v16360_v50, %v16359_v34 }
0x244a   :  { %v16363_v49 = vsel %vm16300_vm10, %v16362_v46, %v16361_v4 }
0x244b   :  { %v16365_v19 = vsel %vm16303_vm11, %v16364_v58, %v16363_v49 }
0x244c   :  { %v16367_v23 = vsel %vm16306_vm12, %v16366_v60, %v16365_v19 }
0x244d   :  { %v16369_v48 = vsel %vm16309_vm13, %v16368_v42, %v16367_v23 }
0x244e   :  { %v16371_v52 = vsel %vm143_vm0, %v16369_v48, 0.0 }
0x244f   :  { %16372 = vadd.xlane.f32.xlu0 %v16371_v52 }
0x24dc   :  { %v16373_v24 = vpop.xlane.xlu0 %16372 }
0x24dd   :  { %v16374_v25 = vmul.f32 0.03125, %v16373_v24 }
0x24df   :  { %v16375_v51 = vadd.f32 1e-05, %v16374_v25 }
0x24e1   :  { %21127 = vrsqrt.f32 %v16375_v51  ;;  %vm16378_vm14 = vcmp.eq.f32.partialorder %v16375_v51, inf  ;;  %v16381_v53 = vand.u32 2147483648, %v16375_v51  ;;  %vm16380_vm5 = vcmp.eq.f32.partialorder %v16375_v51, 0.0 }
0x24eb   :  { %v21128_v1 = vpop.eup %21127 }
0x24ec   :  { %v16377_v17 = vmul.f32 %v21128_v1, %v16375_v51 }
0x24ee   :  { %v16379_v13 = vsel %vm16378_vm14, %v16375_v51, %v16377_v17 }
0x24ef   :  { %v16382_v21 = vsel %vm16380_vm5, %v16381_v53, %v16379_v13 }
0x24f0   :  { %v16384_v11 = vrot.slane %v16382_v21, 1  ;;  %v16385_v2 = vrot.slane %v16382_v21, 2  ;;  %v16386_v35 = vrot.slane %v16382_v21, 3  ;;  %v16387_v54 = vrot.slane %v16382_v21, 4 }
0x24f1   :  { %21129 = vrcp.f32 %v16382_v21  ;;  %v16388_v30 = vrot.slane %v16382_v21, 5  ;;  %v16389_v14 = vrot.slane %v16382_v21, 6  ;;  %v16390_v0 = vrot.slane %v16382_v21, 7 }
0x24f2   :  { %21131 = vrcp.f32 %v16384_v11 }
0x24f3   :  { %21133 = vrcp.f32 %v16385_v2 }
0x24f4   :  { %21135 = vrcp.f32 %v16386_v35 }
0x24f5   :  { %21137 = vrcp.f32 %v16387_v54 }
0x24f6   :  { %21139 = vrcp.f32 %v16388_v30 }
0x24f7   :  { %21141 = vrcp.f32 %v16389_v14 }
0x24f8   :  { %21143 = vrcp.f32 %v16390_v0 }
0x24fb   :  { %v21130_v63 = vpop.eup %21129 }
0x24fc   :  { %v21132_v29 = vpop.eup %21131  ;;  %v16400_v28 = vmul.f32 %v21130_v63, %v26239_v36 }
0x24fd   :  { %v21134_v16 = vpop.eup %21133  ;;  %v16402_v6 = vmul.f32 %v21132_v29, %v26241_v37  ;;  %v20385_v29 = vld [vmem:[%s26354_s8 + $0x8] ss:$16 sps:$4 sm:$0xff]  }
0x24fe   :  { %v21136_v7 = vpop.eup %21135  ;;  %v16404_v27 = vmul.f32 %v21134_v16, %v26243_v18  ;;  %v16419_v33 = vmul.f32 %v16418_v62, %v16400_v28  ;;  %v20388_v16 = vld [vmem:[%s26354_s8 + $0x28] ss:$16 sps:$4 sm:$0xff]  }
0x24ff   :  { %v21138_v31 = vpop.eup %21137  ;;  %v16406_v8 = vmul.f32 %v21136_v7, %v26245_v41  ;;  %v16420_v38 = vmul.f32 %v16418_v62, %v16402_v6  ;;  %v16447_v6 = vld [vmem:[%s26354_s8 + $0x40] sm:$0xff] }
0x2500   :  { %v21140_v22 = vpop.eup %21139  ;;  %v16408_v56 = vmul.f32 %v21138_v31, %v26247_v40  ;;  %v16421_v43 = vmul.f32 %v16418_v62, %v16404_v27  ;;  %v16431_v44 = vadd.f32 %v16430_v47, %v16419_v33  ;;  %v16457_v7 = vunpack.c.l.bf16 %v16447_v6 }
0x2501   :  { %v21142_v3 = vpop.eup %21141  ;;  %v16410_v36 = vmul.f32 %v21140_v22, %v26249_v32  ;;  %v16422_v55 = vmul.f32 %v16418_v62, %v16406_v8  ;;  %v16432_v50 = vadd.f32 %v16430_v47, %v16420_v38  ;;  %v16458_v27 = vunpack.c.h.bf16 %v16447_v6  ;;  %v16448_v8 = vld [vmem:[%s26354_s8 + $0x48] sm:$0xff] }
0x2502   :  { %v21144_v34 = vpop.eup %21143  ;;  %v16412_v37 = vmul.f32 %v21142_v3, %v26251_v12  ;;  %v16423_v46 = vmul.f32 %v16418_v62, %v16408_v56  ;;  %v16433_v18 = vadd.f32 %v16430_v47, %v16421_v43  ;;  %v16449_v4 = vpack.c.bf16 %v16431_v44, %v16431_v44 }
0x2503   :  { %v16414_v58 = vmul.f32 %v21144_v34, %v26253_v39  ;;  %v16424_v41 = vmul.f32 %v16418_v62, %v16410_v36  ;;  %v16434_v49 = vadd.f32 %v16430_v47, %v16422_v55  ;;  %v16450_v60 = vpack.c.bf16 %v16432_v50, %v16432_v50 }
0x2504   :  { %v16425_v19 = vmul.f32 %v16418_v62, %v16412_v37  ;;  %v16435_v40 = vadd.f32 %v16430_v47, %v16423_v46  ;;  %v16451_v42 = vpack.c.bf16 %v16433_v18, %v16433_v18  ;;  %v16485_v5 = vunpack.c.l.b16 %v16449_v4 }
0x2505   :  { %v16426_v23 = vmul.f32 %v16418_v62, %v16414_v58  ;;  %v16436_v48 = vadd.f32 %v16430_v47, %v16424_v41  ;;  %v16452_v52 = vpack.c.bf16 %v16434_v49, %v16434_v49  ;;  %v16486_v32 = vunpack.c.l.b16 %v16450_v60 }
0x2506   :  { %v16437_v20 = vadd.f32 %v16430_v47, %v16425_v19  ;;  %v16453_v45 = vpack.c.bf16 %v16435_v40, %v16435_v40  ;;  %v16487_v9 = vunpack.c.l.b16 %v16451_v42  ;;  %v16464_v33 = vrot.slane %v16457_v7, %v26699_v10 }
0x2507   :  { %v16438_v12 = vadd.f32 %v16430_v47, %v16426_v23  ;;  %v16454_v59 = vpack.c.bf16 %v16436_v48, %v16436_v48  ;;  %v16488_v24 = vunpack.c.l.b16 %v16452_v52  ;;  %v16493_v25 = vrot.slane %v16486_v32, 7  ;;  %v20390_v47 = vld [vmem:[%s26354_s8 + $0x2c] ss:$16 sps:$4 sm:$0xff]   ;;  %s21277_s8 = scalar_lea.vmem %s16644_s27, 512 }
0x2508   :  { %v16455_v51 = vpack.c.bf16 %v16437_v20, %v16437_v20  ;;  %v16489_v39 = vunpack.c.l.b16 %v16453_v45  ;;  %v16495_v1 = vrot.slane %v16487_v9, 6  ;;  %v16468_v31 = vrot.slane %v16458_v27, %v26699_v10  ;;  %p21278_p4 = scmp.ne.s32.totalorder %s16644_s27, %s21277_s8  ;;  %p21283_p6 = scmp.lt.s32.totalorder %s21277_s8, %s21277_s8 }
0x2509   :  { %v16456_v17 = vpack.c.bf16 %v16438_v12, %v16438_v12  ;;  %v16490_v53 = vunpack.c.l.b16 %v16454_v59  ;;  %v16494_v13 = vsel %vm16291_vm7, %v16493_v25, %v16485_v5  ;;  %v16497_v21 = vrot.slane %v16488_v24, 5 }
0x250a   :  { %v16491_v11 = vunpack.c.l.b16 %v16455_v51  ;;  %v16496_v2 = vsel %vm16294_vm8, %v16495_v1, %v16494_v13  ;;  %v16499_v35 = vrot.slane %v16489_v39, 4  ;;  %v16459_v56 = vunpack.c.l.bf16 %v16448_v8  ;;  %p21284_p7 = por %p21283_p6, %p21282_p5 }
0x250b   :  { %v16492_v54 = vunpack.c.l.b16 %v16456_v17  ;;  %v16498_v30 = vsel %vm16297_vm9, %v16497_v21, %v16496_v2  ;;  %v16501_v14 = vrot.slane %v16490_v53, 3  ;;  %v16460_v3 = vunpack.c.h.bf16 %v16448_v8 }
0x250c   :  { %v16500_v0 = vsel %vm16300_vm10, %v16499_v35, %v16498_v30  ;;  %v16503_v61 = vrot.slane %v16491_v11, 2  ;;  %v16472_v55 = vrot.slane %v16459_v56, %v26699_v10  ;;  %p21285_p8 = pnand %p21284_p7, %p21278_p4 }
0x250d   :  { %v16502_v26 = vsel %vm16303_vm11, %v16501_v14, %v16500_v0  ;;  %v16505_v57 = vrot.slane %v16492_v54, 1  ;;  %v16476_v50 = vrot.slane %v16460_v3, %v26699_v10 }
0x250e   :  { %v16504_v62 = vsel %vm16306_vm12, %v16503_v61, %v16502_v26 }
0x250f   :  { %v16506_v63 = vsel %vm16309_vm13, %v16505_v57, %v16504_v62 }
0x2510   :  { %v16507_v28 = vpack.c.b16 %v16506_v63, %v16506_v63 }
0x2512   :  { %17151 = vmatmul.mubr.msk.bf16.vlgmr.msra.gmra.mrb[184].mxu1 %vm143_vm0, %v16507_v28 }
0x2513   :  { %16593 = vmatpush1.bf16.msra.mxu1 %v20385_v29  ;;  %16624 = vmatprep.mubr.bf16.mxu1 %v21327_v15 }
0x2514   :  { %16594 = vmatprep.subr.bf16.mxu1 %v20390_v47 }
0x2517   :  { %16595 = vmatpush1.bf16.msra.mxu1 %v20388_v16 }
0x251a   :  { %17152 = vmatmul.mubr.msk.bf16.vlgmr.msra.gmra.mrb[188].mxu1 %vm143_vm0, %v16507_v28 }
0x25e5   :  { %v16585_v38 = vpop.f32.mrb[184].mxu1 }
0x25e6   :  { %v16586_v15 = vadd.f32 %v16585_v38, %v16464_v33  ;;  %v16587_v22 = vpop.f32.mrb[185].mxu1 }
0x25e7   :  { %v16588_v43 = vadd.f32 %v16587_v22, %v16468_v31  ;;  %v16589_v44 = vpop.f32.mrb[186].mxu1 }
0x25e8   :  { %16633 = vst [vmem:[#allocation10] sm:$0xff] %v16586_v15  ;;  %v16590_v36 = vpop.f32.mrb[187].mxu1 }
0x25e9   :  { %16634 = vst [vmem:[#allocation10 + $0x8] sm:$0xff] %v16588_v43 }
0x25ed   :  { %v16626_v34 = vpop.f32.mrb[188].mxu1 }
0x25ee   :  { %v16627_v37 = vadd.f32 %v16626_v34, %v16472_v55  ;;  %v16628_v46 = vpop.f32.mrb[189].mxu1 }
0x25ef   :  { %v16629_v18 = vadd.f32 %v16628_v46, %v16476_v50  ;;  %v16630_v4 = vpop.f32.mrb[190].mxu1 }
0x25f0   :  { %16635 = vst [vmem:[#allocation10 + $0x10] sm:$0xff] %v16627_v37  ;;  %v16631_v58 = vpop.f32.mrb[191].mxu1 }
0x25f1   :  { %16636 = vst [vmem:[#allocation10 + $0x18] sm:$0xff] %v16629_v18 }
0x25f2   :  { %21288 = shalt.err (!%p21285_p8)
}
0x25f3   :  { %s21289_s30 = scalar_lea.hbm %s26355_s9, 512 }
0x25f4   :  { %p21290_p9 = scmp.ne.s32.totalorder %s26355_s9, %s21289_s30  ;;  %p21293_p10 = scmp.lt.u32.totalorder %s21289_s30, %s26355_s9 }
0x25f6   :  { %p21295_p11 = pnand %p21293_p10, %p21290_p9 }
0x25f8   :  { %21298 = shalt.err (!%p21295_p11)
}
0x25f9   :  { %16646 = dma.vmem_to_hbm [thread:$0]  %s16644_s27, 512, %s26355_s9, [#allocation4]  }
0x25fa   :  { %21305 = dma.done.wait [#allocation4], 512  }
0x25fb   :  { %21306 = vsyncadd [#allocation4], 4294966784 }
0x25fc   :  { %16650 = vsyncpa [#allocation3], 1 }
0x25fd   :  { %16651 = vsyncpa [#allocation6], 1 }
0x25fe   :  { %16652 = vsyncpa [#allocation9], 1 }
0x25ff   :  { %16653 = vsyncpa [#allocation4], 1 }

</bundles_post_ra>
